<compile_context>
chip_gen: v7x
topology: tpu7x:2x2x1
jax: 0.10.0
libtpu: 0.0.40
codegen_flags: <defaults>
</compile_context>

<pallas_src>
import functools
from collections import namedtuple

import numpy as np
import jax
import jax.numpy as jnp
from jax.experimental import pallas as pl
from jax.experimental.pallas import tpu as pltpu

Genotype = namedtuple("Genotype", "normal normal_concat reduce reduce_concat")

GENOTYPE = Genotype(
    normal=[("sep_conv_3x3", 0), ("skip_connect", 1),
            ("sep_conv_3x3", 0), ("max_pool_3x3", 1),
            ("skip_connect", 0), ("avg_pool_3x3", 2),
            ("sep_conv_3x3", 1), ("skip_connect", 2)],
    normal_concat=[2, 3, 4, 5],
    reduce=[("max_pool_3x3", 0), ("max_pool_3x3", 1),
            ("skip_connect", 2), ("max_pool_3x3", 0),
            ("skip_connect", 2), ("skip_connect", 3),
            ("skip_connect", 2), ("avg_pool_3x3", 1)],
    reduce_concat=[2, 3, 4, 5],
)

EPS = 1e-5


# ----------------- precomputed spatial operators (hoisted to init) -----------------

@functools.lru_cache(maxsize=None)
def _spatial_operators_np(h, w):
    """Shift_t (zero-filled 3x3 taps), per-tap validity, and the avg-pool operator."""
    hw = h * w
    shift = np.zeros((9, hw, hw), np.float32)
    valid = np.zeros((9, hw, 1), np.float32)
    for t in range(9):
        dy, dx = t // 3 - 1, t % 3 - 1
        for i in range(h):
            for j in range(w):
                si, sj = i + dy, j + dx
                if 0 <= si < h and 0 <= sj < w:
                    k = i * w + j
                    shift[t, k, si * w + sj] = 1.0
                    valid[t, k, 0] = 1.0
    cnt = valid.sum(axis=0)                    # (hw, 1) valid-neighbour count
    avg = shift.sum(axis=0) / cnt              # count_include_pad=False folded in
    return shift, valid, avg.astype(np.float32)


# --------------------- deterministic parameter setup (BN folded) -------------------

def _fold_bn(key, c, affine):
    km, kv, kg, kb = jax.random.split(key, 4)
    mean = 0.1 * jax.random.normal(km, (c,), jnp.float32)
    var = 0.5 + jax.random.uniform(kv, (c,), jnp.float32)
    if affine:
        gamma = 0.8 + 0.4 * jax.random.uniform(kg, (c,), jnp.float32)
        beta = 0.1 * jax.random.normal(kb, (c,), jnp.float32)
    else:
        gamma = jnp.ones((c,), jnp.float32)
        beta = jnp.zeros((c,), jnp.float32)
    scale = gamma / jnp.sqrt(var + EPS)
    bias = beta - mean * scale
    return scale.reshape(1, c), bias.reshape(1, c)


def init_relu_conv_bn(key, cin, cout):
    # ReLU -> 1x1 conv -> BN(affine); BN scale folded into the conv weights.
    kw, kbn = jax.random.split(key)
    w = jax.random.normal(kw, (cin, cout), jnp.float32) * (cin ** -0.5)
    scale, bias = _fold_bn(kbn, cout, affine=True)
    return w * scale, bias                                      # (cin,cout), (1,cout)


def init_sep_conv(key, c):
    # (ReLU -> depthwise 3x3 -> pointwise 1x1 -> BN) x 2, each stage folded into
    # 9 per-tap (C,C) matrices: W[t,ci,co] = dw[t,ci] * pw[ci,co] * bn_scale[co].
    tap_w, biases = [], []
    for kstage in jax.random.split(key, 2):
        kdw, kpw, kbn = jax.random.split(kstage, 3)
        dw = jax.random.normal(kdw, (3, 3, c), jnp.float32) / 3.0
        pw = jax.random.normal(kpw, (c, c), jnp.float32) * (c ** -0.5)
        scale, bias = _fold_bn(kbn, c, affine=True)
        wfold = dw.reshape(9, c)[:, :, None] * (pw * scale)[None, :, :]
        tap_w.append(wfold)                                     # (9, c, c)
        biases.append(bias)                                     # (1, c)
    return tap_w, biases


# ------------------------------ fused cell kernel ----------------------------------

def _make_cell_kernel(op_names, indices, concat, op_slots):
    n_nodes = len(op_names) // 2

    def kernel(s0_ref, s1_ref, w0_ref, b0_ref, w1_ref, b1_ref,
               sepw_ref, sepb_ref, pscale_ref, pbias_ref,
               shift_ref, valid_ref, avg_ref, o_ref):
        f32 = jnp.float32

        def preproc(x, w_ref, b_ref):
            return jnp.dot(jnp.maximum(x, 0.0), w_ref[...],
                           preferred_element_type=f32) + b_ref[...]

        def shifted(x, t):
            # Shift_t encodes the (dy,dx) tap with zero fill at the borders.
            return jnp.dot(shift_ref[t], x, preferred_element_type=f32)

        def sep_conv(x, pair):
            y = x
            for st in range(2):
                stage = pair * 2 + st
                xr = jnp.maximum(y, 0.0)          # ReLU commutes with zero pad
                acc = None
                for t in range(9):
                    term = jnp.dot(shifted(xr, t), sepw_ref[stage * 9 + t],
                                   preferred_element_type=f32)
                    acc = term if acc is None else acc + term
                y = acc + sepb_ref[stage]
            return y

        def max_pool_bn(x, slot):
            m = None
            for t in range(9):
                s = jnp.where(valid_ref[t] > 0.5, shifted(x, t), -jnp.inf)
                m = s if m is None else jnp.maximum(m, s)
            return m * pscale_ref[slot] + pbias_ref[slot]

        def avg_pool_bn(x, slot):
            pooled = jnp.dot(avg_ref[...], x, preferred_element_type=f32)
            return pooled * pscale_ref[slot] + pbias_ref[slot]

        def apply_op(j, x):
            kind, slot = op_slots[j]
            if kind == "skip":
                return x                           # Identity (dropout == 0.0)
            if kind == "sep":
                return sep_conv(x, slot)
            if op_names[j] == "max_pool_3x3":
                return max_pool_bn(x, slot)
            return avg_pool_bn(x, slot)

        states = [preproc(s0_ref[0], w0_ref, b0_ref),
                  preproc(s1_ref[0], w1_ref, b1_ref)]
        for i in range(n_nodes):
            a = apply_op(2 * i, states[indices[2 * i]])
            b = apply_op(2 * i + 1, states[indices[2 * i + 1]])
            states.append(a + b)
        # channel concat of the selected nodes; single full-block store
        o_ref[0] = jnp.concatenate([states[k] for k in concat], axis=-1)

    return kernel


# ---------------------------------- AugmentCell -------------------------------------

class AugmentCell:
    """Fused normal DARTS augment cell (eval mode): one Pallas kernel per forward."""

    def __init__(self, genotype, c_prev_prev, c_prev, c, reduce, reduce_prev,
                 dropout, key):
        assert not reduce and not reduce_prev, "only the normal-cell path is implemented"
        assert dropout == 0.0
        self.c = c
        self.op_names, self.indices = zip(*genotype.normal)
        self.concat = tuple(genotype.normal_concat)

        keys = jax.random.split(key, 2 + len(self.op_names))
        self.w0, self.b0 = init_relu_conv_bn(keys[0], c_prev_prev, c)
        self.w1, self.b1 = init_relu_conv_bn(keys[1], c_prev, c)

        sep_w, sep_b, pool_s, pool_b = [], [], [], []
        self.op_slots = []
        for i, name in enumerate(self.op_names):
            k = keys[2 + i]
            if name == "skip_connect":
                self.op_slots.append(("skip", -1))
            elif name == "sep_conv_3x3":
                self.op_slots.append(("sep", len(sep_w) // 2))
                tw, tb = init_sep_conv(k, c)
                sep_w += tw
                sep_b += tb
            elif name in ("max_pool_3x3", "avg_pool_3x3"):
                self.op_slots.append(("pool", len(pool_s)))
                s, b = _fold_bn(k, c, affine=False)
                pool_s.append(s)
                pool_b.append(b)
            else:
                raise ValueError(f"unsupported op {name}")
        if not sep_w:   # keep stacked arrays non-empty for any genotype
            sep_w, sep_b = [jnp.zeros((9, c, c))], [jnp.zeros((1, c))]
        if not pool_s:
            pool_s, pool_b = [jnp.ones((1, c))], [jnp.zeros((1, c))]
        self.sep_w = jnp.concatenate(sep_w, axis=0)                 # (stages*9, c, c)
        self.sep_b = jnp.concatenate(sep_b, axis=0)[:, None, :]     # (stages, 1, c)
        self.pool_s = jnp.concatenate(pool_s, axis=0)[:, None, :]   # (npool, 1, c)
        self.pool_b = jnp.concatenate(pool_b, axis=0)[:, None, :]

        self._kernel = _make_cell_kernel(self.op_names, self.indices,
                                         self.concat, tuple(self.op_slots))
        self._forward = jax.jit(self._forward_impl)

    def _forward_impl(self, s0_nchw, s1_nchw):
        n, _, h, w = s0_nchw.shape
        hw = h * w
        cout = self.c * len(self.concat)
        shift, valid, avg = (jnp.asarray(a) for a in _spatial_operators_np(h, w))

        # NCHW -> (N, H*W, C) pixel-major layout for per-pixel matmuls
        s0 = jnp.transpose(s0_nchw, (0, 2, 3, 1)).reshape(n, hw, -1).astype(jnp.float32)
        s1 = jnp.transpose(s1_nchw, (0, 2, 3, 1)).reshape(n, hw, -1).astype(jnp.float32)

        full2 = lambda arr: pl.BlockSpec(arr.shape, lambda i: (0, 0))
        full3 = lambda arr: pl.BlockSpec(arr.shape, lambda i: (0, 0, 0))

        out = pl.pallas_call(
            self._kernel,
            out_shape=jax.ShapeDtypeStruct((n, hw, cout), jnp.float32),
            grid=(n,),
            in_specs=[
                pl.BlockSpec((1, hw, s0.shape[-1]), lambda i: (i, 0, 0)),
                pl.BlockSpec((1, hw, s1.shape[-1]), lambda i: (i, 0, 0)),
                full2(self.w0), full2(self.b0),
                full2(self.w1), full2(self.b1),
                full3(self.sep_w), full3(self.sep_b),
                full3(self.pool_s), full3(self.pool_b),
                full3(shift), full3(valid), full2(avg),
            ],
            out_specs=pl.BlockSpec((1, hw, cout), lambda i: (i, 0, 0)),
            compiler_params=pltpu.CompilerParams(
                dimension_semantics=("parallel",)),
        )(s0, s1, self.w0, self.b0, self.w1, self.b1,
          self.sep_w, self.sep_b, self.pool_s, self.pool_b,
          shift, valid, avg)

        out = out.reshape(n, h, w, cout)
        return jnp.transpose(out, (0, 3, 1, 2))      # back to NCHW

    def __call__(self, s0, s1):
        return self._forward(s0, s1)


if __name__ == "__main__":
    key = jax.random.PRNGKey(0)
    kparams, k0, k1 = jax.random.split(key, 3)

    N, C_PP, C_P, C, H, W = 2, 16, 16, 16, 8, 8
    cell = AugmentCell(GENOTYPE, C_PP, C_P, C,
                       reduce=False, reduce_prev=False, dropout=0.0, key=kparams)

    s0 = jax.random.normal(k0, (N, C_PP, H, W), jnp.float32)   # NCHW, like PyTorch
    s1 = jax.random.normal(k1, (N, C_P, H, W), jnp.float32)

    out = jax.block_until_ready(cell(s0, s1))
    assert out.shape == (N, C * len(GENOTYPE.normal_concat), H, W), out.shape
    assert bool(jnp.all(jnp.isfinite(out)))
    print("KERNEL_OK")
</pallas_src>

<mosaic_0001>
module attributes {stable_mosaic.version = 11 : i64} {
  func.func @kernel(%arg0: i32, %arg1: memref<1x64x16xf32, #tpu.memory_space<vmem>>, %arg2: memref<1x64x16xf32, #tpu.memory_space<vmem>>, %arg3: memref<16x16xf32, #tpu.memory_space<vmem>>, %arg4: memref<1x16xf32, #tpu.memory_space<vmem>>, %arg5: memref<16x16xf32, #tpu.memory_space<vmem>>, %arg6: memref<1x16xf32, #tpu.memory_space<vmem>>, %arg7: memref<54x16x16xf32, #tpu.memory_space<vmem>>, %arg8: memref<6x1x16xf32, #tpu.memory_space<vmem>>, %arg9: memref<2x1x16xf32, #tpu.memory_space<vmem>>, %arg10: memref<2x1x16xf32, #tpu.memory_space<vmem>>, %arg11: memref<9x64x64xf32, #tpu.memory_space<vmem>>, %arg12: memref<9x64x1xf32, #tpu.memory_space<vmem>>, %arg13: memref<64x64xf32, #tpu.memory_space<vmem>>, %arg14: memref<1x64x64xf32, #tpu.memory_space<vmem>>) attributes {dimension_semantics = [#tpu.dimension_semantics<parallel>], iteration_bounds = array<i64: 2>, scalar_prefetch = 0 : i64, scratch_operands = 0 : i64, tpu.core_type = #tpu.core_type<tc>, window_params = [{transform_indices = @transform_0, window_bounds = array<i64: 1, 64, 16>}, {transform_indices = @transform_1, window_bounds = array<i64: 1, 64, 16>}, {pipeline_mode = #tpu.pipeline_mode<synchronous>, transform_indices = @transform_2, window_bounds = array<i64: 16, 16>}, {pipeline_mode = #tpu.pipeline_mode<synchronous>, transform_indices = @transform_3, window_bounds = array<i64: 1, 16>}, {pipeline_mode = #tpu.pipeline_mode<synchronous>, transform_indices = @transform_4, window_bounds = array<i64: 16, 16>}, {pipeline_mode = #tpu.pipeline_mode<synchronous>, transform_indices = @transform_5, window_bounds = array<i64: 1, 16>}, {pipeline_mode = #tpu.pipeline_mode<synchronous>, transform_indices = @transform_6, window_bounds = array<i64: 54, 16, 16>}, {pipeline_mode = #tpu.pipeline_mode<synchronous>, transform_indices = @transform_7, window_bounds = array<i64: 6, 1, 16>}, {pipeline_mode = #tpu.pipeline_mode<synchronous>, transform_indices = @transform_8, window_bounds = array<i64: 2, 1, 16>}, {pipeline_mode = #tpu.pipeline_mode<synchronous>, transform_indices = @transform_9, window_bounds = array<i64: 2, 1, 16>}, {pipeline_mode = #tpu.pipeline_mode<synchronous>, transform_indices = @transform_10, window_bounds = array<i64: 9, 64, 64>}, {pipeline_mode = #tpu.pipeline_mode<synchronous>, transform_indices = @transform_11, window_bounds = array<i64: 9, 64, 1>}, {pipeline_mode = #tpu.pipeline_mode<synchronous>, transform_indices = @transform_12, window_bounds = array<i64: 64, 64>}, {transform_indices = @transform_13, window_bounds = array<i64: 1, 64, 64>}]} {
    %c0 = arith.constant 0 : index
    %c0_0 = arith.constant 0 : index
    %c0_1 = arith.constant 0 : index
    %0 = vector.load %arg1[%c0, %c0_0, %c0_1] : memref<1x64x16xf32, #tpu.memory_space<vmem>>, vector<1x64x16xf32>
    %1 = vector.shape_cast %0 : vector<1x64x16xf32> to vector<64x16xf32>
    %cst = arith.constant 0.000000e+00 : f32
    %2 = vector.broadcast %cst : f32 to vector<64x16xf32>
    %3 = arith.maximumf %1, %2 : vector<64x16xf32>
    %c0_2 = arith.constant 0 : index
    %c0_3 = arith.constant 0 : index
    %4 = vector.load %arg3[%c0_2, %c0_3] : memref<16x16xf32, #tpu.memory_space<vmem>>, vector<16x16xf32>
    %cst_4 = arith.constant dense<0.000000e+00> : vector<64x16xf32>
    %5 = tpu.matmul %3, %4, %cst_4 {dimension_numbers = #tpu.dot_dimension_numbers<[1], [0], [0], [1], [0, 0, 1, 1], [], []>} : vector<64x16xf32>, vector<16x16xf32>, vector<64x16xf32> -> vector<64x16xf32>
    %c0_5 = arith.constant 0 : index
    %c0_6 = arith.constant 0 : index
    %6 = vector.load %arg4[%c0_5, %c0_6] : memref<1x16xf32, #tpu.memory_space<vmem>>, vector<1x16xf32>
    %7 = vector.broadcast %6 : vector<1x16xf32> to vector<64x16xf32>
    %8 = arith.addf %5, %7 : vector<64x16xf32>
    %c0_7 = arith.constant 0 : index
    %c0_8 = arith.constant 0 : index
    %c0_9 = arith.constant 0 : index
    %9 = vector.load %arg2[%c0_7, %c0_8, %c0_9] : memref<1x64x16xf32, #tpu.memory_space<vmem>>, vector<1x64x16xf32>
    %10 = vector.shape_cast %9 : vector<1x64x16xf32> to vector<64x16xf32>
    %cst_10 = arith.constant 0.000000e+00 : f32
    %11 = vector.broadcast %cst_10 : f32 to vector<64x16xf32>
    %12 = arith.maximumf %10, %11 : vector<64x16xf32>
    %c0_11 = arith.constant 0 : index
    %c0_12 = arith.constant 0 : index
    %13 = vector.load %arg5[%c0_11, %c0_12] : memref<16x16xf32, #tpu.memory_space<vmem>>, vector<16x16xf32>
    %cst_13 = arith.constant dense<0.000000e+00> : vector<64x16xf32>
    %14 = tpu.matmul %12, %13, %cst_13 {dimension_numbers = #tpu.dot_dimension_numbers<[1], [0], [0], [1], [0, 0, 1, 1], [], []>} : vector<64x16xf32>, vector<16x16xf32>, vector<64x16xf32> -> vector<64x16xf32>
    %c0_14 = arith.constant 0 : index
    %c0_15 = arith.constant 0 : index
    %15 = vector.load %arg6[%c0_14, %c0_15] : memref<1x16xf32, #tpu.memory_space<vmem>>, vector<1x16xf32>
    %16 = vector.broadcast %15 : vector<1x16xf32> to vector<64x16xf32>
    %17 = arith.addf %14, %16 : vector<64x16xf32>
    %cst_16 = arith.constant 0.000000e+00 : f32
    %18 = vector.broadcast %cst_16 : f32 to vector<64x16xf32>
    %19 = arith.maximumf %8, %18 : vector<64x16xf32>
    %c0_17 = arith.constant 0 : index
    %c0_18 = arith.constant 0 : index
    %c0_19 = arith.constant 0 : index
    %20 = vector.load %arg11[%c0_17, %c0_18, %c0_19] : memref<9x64x64xf32, #tpu.memory_space<vmem>>, vector<1x64x64xf32>
    %21 = vector.shape_cast %20 : vector<1x64x64xf32> to vector<64x64xf32>
    %cst_20 = arith.constant dense<0.000000e+00> : vector<64x16xf32>
    %22 = tpu.matmul %21, %19, %cst_20 {dimension_numbers = #tpu.dot_dimension_numbers<[1], [0], [0], [1], [0, 0, 1, 1], [], []>} : vector<64x64xf32>, vector<64x16xf32>, vector<64x16xf32> -> vector<64x16xf32>
    %c0_21 = arith.constant 0 : index
    %c0_22 = arith.constant 0 : index
    %c0_23 = arith.constant 0 : index
    %23 = vector.load %arg7[%c0_21, %c0_22, %c0_23] : memref<54x16x16xf32, #tpu.memory_space<vmem>>, vector<1x16x16xf32>
    %24 = vector.shape_cast %23 : vector<1x16x16xf32> to vector<16x16xf32>
    %cst_24 = arith.constant dense<0.000000e+00> : vector<64x16xf32>
    %25 = tpu.matmul %22, %24, %cst_24 {dimension_numbers = #tpu.dot_dimension_numbers<[1], [0], [0], [1], [0, 0, 1, 1], [], []>} : vector<64x16xf32>, vector<16x16xf32>, vector<64x16xf32> -> vector<64x16xf32>
    %c1 = arith.constant 1 : index
    %c0_25 = arith.constant 0 : index
    %c0_26 = arith.constant 0 : index
    %26 = vector.load %arg11[%c1, %c0_25, %c0_26] : memref<9x64x64xf32, #tpu.memory_space<vmem>>, vector<1x64x64xf32>
    %27 = vector.shape_cast %26 : vector<1x64x64xf32> to vector<64x64xf32>
    %cst_27 = arith.constant dense<0.000000e+00> : vector<64x16xf32>
    %28 = tpu.matmul %27, %19, %cst_27 {dimension_numbers = #tpu.dot_dimension_numbers<[1], [0], [0], [1], [0, 0, 1, 1], [], []>} : vector<64x64xf32>, vector<64x16xf32>, vector<64x16xf32> -> vector<64x16xf32>
    %c1_28 = arith.constant 1 : index
    %c0_29 = arith.constant 0 : index
    %c0_30 = arith.constant 0 : index
    %29 = vector.load %arg7[%c1_28, %c0_29, %c0_30] : memref<54x16x16xf32, #tpu.memory_space<vmem>>, vector<1x16x16xf32>
    %30 = vector.shape_cast %29 : vector<1x16x16xf32> to vector<16x16xf32>
    %cst_31 = arith.constant dense<0.000000e+00> : vector<64x16xf32>
    %31 = tpu.matmul %28, %30, %cst_31 {dimension_numbers = #tpu.dot_dimension_numbers<[1], [0], [0], [1], [0, 0, 1, 1], [], []>} : vector<64x16xf32>, vector<16x16xf32>, vector<64x16xf32> -> vector<64x16xf32>
    %32 = arith.addf %25, %31 : vector<64x16xf32>
    %c2 = arith.constant 2 : index
    %c0_32 = arith.constant 0 : index
    %c0_33 = arith.constant 0 : index
    %33 = vector.load %arg11[%c2, %c0_32, %c0_33] : memref<9x64x64xf32, #tpu.memory_space<vmem>>, vector<1x64x64xf32>
    %34 = vector.shape_cast %33 : vector<1x64x64xf32> to vector<64x64xf32>
    %cst_34 = arith.constant dense<0.000000e+00> : vector<64x16xf32>
    %35 = tpu.matmul %34, %19, %cst_34 {dimension_numbers = #tpu.dot_dimension_numbers<[1], [0], [0], [1], [0, 0, 1, 1], [], []>} : vector<64x64xf32>, vector<64x16xf32>, vector<64x16xf32> -> vector<64x16xf32>
    %c2_35 = arith.constant 2 : index
    %c0_36 = arith.constant 0 : index
    %c0_37 = arith.constant 0 : index
    %36 = vector.load %arg7[%c2_35, %c0_36, %c0_37] : memref<54x16x16xf32, #tpu.memory_space<vmem>>, vector<1x16x16xf32>
    %37 = vector.shape_cast %36 : vector<1x16x16xf32> to vector<16x16xf32>
    %cst_38 = arith.constant dense<0.000000e+00> : vector<64x16xf32>
    %38 = tpu.matmul %35, %37, %cst_38 {dimension_numbers = #tpu.dot_dimension_numbers<[1], [0], [0], [1], [0, 0, 1, 1], [], []>} : vector<64x16xf32>, vector<16x16xf32>, vector<64x16xf32> -> vector<64x16xf32>
    %39 = arith.addf %32, %38 : vector<64x16xf32>
    %c3 = arith.constant 3 : index
    %c0_39 = arith.constant 0 : index
    %c0_40 = arith.constant 0 : index
    %40 = vector.load %arg11[%c3, %c0_39, %c0_40] : memref<9x64x64xf32, #tpu.memory_space<vmem>>, vector<1x64x64xf32>
    %41 = vector.shape_cast %40 : vector<1x64x64xf32> to vector<64x64xf32>
    %cst_41 = arith.constant dense<0.000000e+00> : vector<64x16xf32>
    %42 = tpu.matmul %41, %19, %cst_41 {dimension_numbers = #tpu.dot_dimension_numbers<[1], [0], [0], [1], [0, 0, 1, 1], [], []>} : vector<64x64xf32>, vector<64x16xf32>, vector<64x16xf32> -> vector<64x16xf32>
    %c3_42 = arith.constant 3 : index
    %c0_43 = arith.constant 0 : index
    %c0_44 = arith.constant 0 : index
    %43 = vector.load %arg7[%c3_42, %c0_43, %c0_44] : memref<54x16x16xf32, #tpu.memory_space<vmem>>, vector<1x16x16xf32>
    %44 = vector.shape_cast %43 : vector<1x16x16xf32> to vector<16x16xf32>
    %cst_45 = arith.constant dense<0.000000e+00> : vector<64x16xf32>
    %45 = tpu.matmul %42, %44, %cst_45 {dimension_numbers = #tpu.dot_dimension_numbers<[1], [0], [0], [1], [0, 0, 1, 1], [], []>} : vector<64x16xf32>, vector<16x16xf32>, vector<64x16xf32> -> vector<64x16xf32>
    %46 = arith.addf %39, %45 : vector<64x16xf32>
    %c4 = arith.constant 4 : index
    %c0_46 = arith.constant 0 : index
    %c0_47 = arith.constant 0 : index
    %47 = vector.load %arg11[%c4, %c0_46, %c0_47] : memref<9x64x64xf32, #tpu.memory_space<vmem>>, vector<1x64x64xf32>
    %48 = vector.shape_cast %47 : vector<1x64x64xf32> to vector<64x64xf32>
    %cst_48 = arith.constant dense<0.000000e+00> : vector<64x16xf32>
    %49 = tpu.matmul %48, %19, %cst_48 {dimension_numbers = #tpu.dot_dimension_numbers<[1], [0], [0], [1], [0, 0, 1, 1], [], []>} : vector<64x64xf32>, vector<64x16xf32>, vector<64x16xf32> -> vector<64x16xf32>
    %c4_49 = arith.constant 4 : index
    %c0_50 = arith.constant 0 : index
    %c0_51 = arith.constant 0 : index
    %50 = vector.load %arg7[%c4_49, %c0_50, %c0_51] : memref<54x16x16xf32, #tpu.memory_space<vmem>>, vector<1x16x16xf32>
    %51 = vector.shape_cast %50 : vector<1x16x16xf32> to vector<16x16xf32>
    %cst_52 = arith.constant dense<0.000000e+00> : vector<64x16xf32>
    %52 = tpu.matmul %49, %51, %cst_52 {dimension_numbers = #tpu.dot_dimension_numbers<[1], [0], [0], [1], [0, 0, 1, 1], [], []>} : vector<64x16xf32>, vector<16x16xf32>, vector<64x16xf32> -> vector<64x16xf32>
    %53 = arith.addf %46, %52 : vector<64x16xf32>
    %c5 = arith.constant 5 : index
    %c0_53 = arith.constant 0 : index
    %c0_54 = arith.constant 0 : index
    %54 = vector.load %arg11[%c5, %c0_53, %c0_54] : memref<9x64x64xf32, #tpu.memory_space<vmem>>, vector<1x64x64xf32>
    %55 = vector.shape_cast %54 : vector<1x64x64xf32> to vector<64x64xf32>
    %cst_55 = arith.constant dense<0.000000e+00> : vector<64x16xf32>
    %56 = tpu.matmul %55, %19, %cst_55 {dimension_numbers = #tpu.dot_dimension_numbers<[1], [0], [0], [1], [0, 0, 1, 1], [], []>} : vector<64x64xf32>, vector<64x16xf32>, vector<64x16xf32> -> vector<64x16xf32>
    %c5_56 = arith.constant 5 : index
    %c0_57 = arith.constant 0 : index
    %c0_58 = arith.constant 0 : index
    %57 = vector.load %arg7[%c5_56, %c0_57, %c0_58] : memref<54x16x16xf32, #tpu.memory_space<vmem>>, vector<1x16x16xf32>
    %58 = vector.shape_cast %57 : vector<1x16x16xf32> to vector<16x16xf32>
    %cst_59 = arith.constant dense<0.000000e+00> : vector<64x16xf32>
    %59 = tpu.matmul %56, %58, %cst_59 {dimension_numbers = #tpu.dot_dimension_numbers<[1], [0], [0], [1], [0, 0, 1, 1], [], []>} : vector<64x16xf32>, vector<16x16xf32>, vector<64x16xf32> -> vector<64x16xf32>
    %60 = arith.addf %53, %59 : vector<64x16xf32>
    %c6 = arith.constant 6 : index
    %c0_60 = arith.constant 0 : index
    %c0_61 = arith.constant 0 : index
    %61 = vector.load %arg11[%c6, %c0_60, %c0_61] : memref<9x64x64xf32, #tpu.memory_space<vmem>>, vector<1x64x64xf32>
    %62 = vector.shape_cast %61 : vector<1x64x64xf32> to vector<64x64xf32>
    %cst_62 = arith.constant dense<0.000000e+00> : vector<64x16xf32>
    %63 = tpu.matmul %62, %19, %cst_62 {dimension_numbers = #tpu.dot_dimension_numbers<[1], [0], [0], [1], [0, 0, 1, 1], [], []>} : vector<64x64xf32>, vector<64x16xf32>, vector<64x16xf32> -> vector<64x16xf32>
    %c6_63 = arith.constant 6 : index
    %c0_64 = arith.constant 0 : index
    %c0_65 = arith.constant 0 : index
    %64 = vector.load %arg7[%c6_63, %c0_64, %c0_65] : memref<54x16x16xf32, #tpu.memory_space<vmem>>, vector<1x16x16xf32>
    %65 = vector.shape_cast %64 : vector<1x16x16xf32> to vector<16x16xf32>
    %cst_66 = arith.constant dense<0.000000e+00> : vector<64x16xf32>
    %66 = tpu.matmul %63, %65, %cst_66 {dimension_numbers = #tpu.dot_dimension_numbers<[1], [0], [0], [1], [0, 0, 1, 1], [], []>} : vector<64x16xf32>, vector<16x16xf32>, vector<64x16xf32> -> vector<64x16xf32>
    %67 = arith.addf %60, %66 : vector<64x16xf32>
    %c7 = arith.constant 7 : index
    %c0_67 = arith.constant 0 : index
    %c0_68 = arith.constant 0 : index
    %68 = vector.load %arg11[%c7, %c0_67, %c0_68] : memref<9x64x64xf32, #tpu.memory_space<vmem>>, vector<1x64x64xf32>
    %69 = vector.shape_cast %68 : vector<1x64x64xf32> to vector<64x64xf32>
    %cst_69 = arith.constant dense<0.000000e+00> : vector<64x16xf32>
    %70 = tpu.matmul %69, %19, %cst_69 {dimension_numbers = #tpu.dot_dimension_numbers<[1], [0], [0], [1], [0, 0, 1, 1], [], []>} : vector<64x64xf32>, vector<64x16xf32>, vector<64x16xf32> -> vector<64x16xf32>
    %c7_70 = arith.constant 7 : index
    %c0_71 = arith.constant 0 : index
    %c0_72 = arith.constant 0 : index
    %71 = vector.load %arg7[%c7_70, %c0_71, %c0_72] : memref<54x16x16xf32, #tpu.memory_space<vmem>>, vector<1x16x16xf32>
    %72 = vector.shape_cast %71 : vector<1x16x16xf32> to vector<16x16xf32>
    %cst_73 = arith.constant dense<0.000000e+00> : vector<64x16xf32>
    %73 = tpu.matmul %70, %72, %cst_73 {dimension_numbers = #tpu.dot_dimension_numbers<[1], [0], [0], [1], [0, 0, 1, 1], [], []>} : vector<64x16xf32>, vector<16x16xf32>, vector<64x16xf32> -> vector<64x16xf32>
    %74 = arith.addf %67, %73 : vector<64x16xf32>
    %c8 = arith.constant 8 : index
    %c0_74 = arith.constant 0 : index
    %c0_75 = arith.constant 0 : index
    %75 = vector.load %arg11[%c8, %c0_74, %c0_75] : memref<9x64x64xf32, #tpu.memory_space<vmem>>, vector<1x64x64xf32>
    %76 = vector.shape_cast %75 : vector<1x64x64xf32> to vector<64x64xf32>
    %cst_76 = arith.constant dense<0.000000e+00> : vector<64x16xf32>
    %77 = tpu.matmul %76, %19, %cst_76 {dimension_numbers = #tpu.dot_dimension_numbers<[1], [0], [0], [1], [0, 0, 1, 1], [], []>} : vector<64x64xf32>, vector<64x16xf32>, vector<64x16xf32> -> vector<64x16xf32>
    %c8_77 = arith.constant 8 : index
    %c0_78 = arith.constant 0 : index
    %c0_79 = arith.constant 0 : index
    %78 = vector.load %arg7[%c8_77, %c0_78, %c0_79] : memref<54x16x16xf32, #tpu.memory_space<vmem>>, vector<1x16x16xf32>
    %79 = vector.shape_cast %78 : vector<1x16x16xf32> to vector<16x16xf32>
    %cst_80 = arith.constant dense<0.000000e+00> : vector<64x16xf32>
    %80 = tpu.matmul %77, %79, %cst_80 {dimension_numbers = #tpu.dot_dimension_numbers<[1], [0], [0], [1], [0, 0, 1, 1], [], []>} : vector<64x16xf32>, vector<16x16xf32>, vector<64x16xf32> -> vector<64x16xf32>
    %81 = arith.addf %74, %80 : vector<64x16xf32>
    %c0_81 = arith.constant 0 : index
    %c0_82 = arith.constant 0 : index
    %c0_83 = arith.constant 0 : index
    %82 = vector.load %arg8[%c0_81, %c0_82, %c0_83] : memref<6x1x16xf32, #tpu.memory_space<vmem>>, vector<1x1x16xf32>
    %83 = vector.shape_cast %82 : vector<1x1x16xf32> to vector<1x16xf32>
    %84 = vector.broadcast %83 : vector<1x16xf32> to vector<64x16xf32>
    %85 = arith.addf %81, %84 : vector<64x16xf32>
    %cst_84 = arith.constant 0.000000e+00 : f32
    %86 = vector.broadcast %cst_84 : f32 to vector<64x16xf32>
    %87 = arith.maximumf %85, %86 : vector<64x16xf32>
    %c0_85 = arith.constant 0 : index
    %c0_86 = arith.constant 0 : index
    %c0_87 = arith.constant 0 : index
    %88 = vector.load %arg11[%c0_85, %c0_86, %c0_87] : memref<9x64x64xf32, #tpu.memory_space<vmem>>, vector<1x64x64xf32>
    %89 = vector.shape_cast %88 : vector<1x64x64xf32> to vector<64x64xf32>
    %cst_88 = arith.constant dense<0.000000e+00> : vector<64x16xf32>
    %90 = tpu.matmul %89, %87, %cst_88 {dimension_numbers = #tpu.dot_dimension_numbers<[1], [0], [0], [1], [0, 0, 1, 1], [], []>} : vector<64x64xf32>, vector<64x16xf32>, vector<64x16xf32> -> vector<64x16xf32>
    %c9 = arith.constant 9 : index
    %c0_89 = arith.constant 0 : index
    %c0_90 = arith.constant 0 : index
    %91 = vector.load %arg7[%c9, %c0_89, %c0_90] : memref<54x16x16xf32, #tpu.memory_space<vmem>>, vector<1x16x16xf32>
    %92 = vector.shape_cast %91 : vector<1x16x16xf32> to vector<16x16xf32>
    %cst_91 = arith.constant dense<0.000000e+00> : vector<64x16xf32>
    %93 = tpu.matmul %90, %92, %cst_91 {dimension_numbers = #tpu.dot_dimension_numbers<[1], [0], [0], [1], [0, 0, 1, 1], [], []>} : vector<64x16xf32>, vector<16x16xf32>, vector<64x16xf32> -> vector<64x16xf32>
    %c1_92 = arith.constant 1 : index
    %c0_93 = arith.constant 0 : index
    %c0_94 = arith.constant 0 : index
    %94 = vector.load %arg11[%c1_92, %c0_93, %c0_94] : memref<9x64x64xf32, #tpu.memory_space<vmem>>, vector<1x64x64xf32>
    %95 = vector.shape_cast %94 : vector<1x64x64xf32> to vector<64x64xf32>
    %cst_95 = arith.constant dense<0.000000e+00> : vector<64x16xf32>
    %96 = tpu.matmul %95, %87, %cst_95 {dimension_numbers = #tpu.dot_dimension_numbers<[1], [0], [0], [1], [0, 0, 1, 1], [], []>} : vector<64x64xf32>, vector<64x16xf32>, vector<64x16xf32> -> vector<64x16xf32>
    %c10 = arith.constant 10 : index
    %c0_96 = arith.constant 0 : index
    %c0_97 = arith.constant 0 : index
    %97 = vector.load %arg7[%c10, %c0_96, %c0_97] : memref<54x16x16xf32, #tpu.memory_space<vmem>>, vector<1x16x16xf32>
    %98 = vector.shape_cast %97 : vector<1x16x16xf32> to vector<16x16xf32>
    %cst_98 = arith.constant dense<0.000000e+00> : vector<64x16xf32>
    %99 = tpu.matmul %96, %98, %cst_98 {dimension_numbers = #tpu.dot_dimension_numbers<[1], [0], [0], [1], [0, 0, 1, 1], [], []>} : vector<64x16xf32>, vector<16x16xf32>, vector<64x16xf32> -> vector<64x16xf32>
    %100 = arith.addf %93, %99 : vector<64x16xf32>
    %c2_99 = arith.constant 2 : index
    %c0_100 = arith.constant 0 : index
    %c0_101 = arith.constant 0 : index
    %101 = vector.load %arg11[%c2_99, %c0_100, %c0_101] : memref<9x64x64xf32, #tpu.memory_space<vmem>>, vector<1x64x64xf32>
    %102 = vector.shape_cast %101 : vector<1x64x64xf32> to vector<64x64xf32>
    %cst_102 = arith.constant dense<0.000000e+00> : vector<64x16xf32>
    %103 = tpu.matmul %102, %87, %cst_102 {dimension_numbers = #tpu.dot_dimension_numbers<[1], [0], [0], [1], [0, 0, 1, 1], [], []>} : vector<64x64xf32>, vector<64x16xf32>, vector<64x16xf32> -> vector<64x16xf32>
    %c11 = arith.constant 11 : index
    %c0_103 = arith.constant 0 : index
    %c0_104 = arith.constant 0 : index
    %104 = vector.load %arg7[%c11, %c0_103, %c0_104] : memref<54x16x16xf32, #tpu.memory_space<vmem>>, vector<1x16x16xf32>
    %105 = vector.shape_cast %104 : vector<1x16x16xf32> to vector<16x16xf32>
    %cst_105 = arith.constant dense<0.000000e+00> : vector<64x16xf32>
    %106 = tpu.matmul %103, %105, %cst_105 {dimension_numbers = #tpu.dot_dimension_numbers<[1], [0], [0], [1], [0, 0, 1, 1], [], []>} : vector<64x16xf32>, vector<16x16xf32>, vector<64x16xf32> -> vector<64x16xf32>
    %107 = arith.addf %100, %106 : vector<64x16xf32>
    %c3_106 = arith.constant 3 : index
    %c0_107 = arith.constant 0 : index
    %c0_108 = arith.constant 0 : index
    %108 = vector.load %arg11[%c3_106, %c0_107, %c0_108] : memref<9x64x64xf32, #tpu.memory_space<vmem>>, vector<1x64x64xf32>
    %109 = vector.shape_cast %108 : vector<1x64x64xf32> to vector<64x64xf32>
    %cst_109 = arith.constant dense<0.000000e+00> : vector<64x16xf32>
    %110 = tpu.matmul %109, %87, %cst_109 {dimension_numbers = #tpu.dot_dimension_numbers<[1], [0], [0], [1], [0, 0, 1, 1], [], []>} : vector<64x64xf32>, vector<64x16xf32>, vector<64x16xf32> -> vector<64x16xf32>
    %c12 = arith.constant 12 : index
    %c0_110 = arith.constant 0 : index
    %c0_111 = arith.constant 0 : index
    %111 = vector.load %arg7[%c12, %c0_110, %c0_111] : memref<54x16x16xf32, #tpu.memory_space<vmem>>, vector<1x16x16xf32>
    %112 = vector.shape_cast %111 : vector<1x16x16xf32> to vector<16x16xf32>
    %cst_112 = arith.constant dense<0.000000e+00> : vector<64x16xf32>
    %113 = tpu.matmul %110, %112, %cst_112 {dimension_numbers = #tpu.dot_dimension_numbers<[1], [0], [0], [1], [0, 0, 1, 1], [], []>} : vector<64x16xf32>, vector<16x16xf32>, vector<64x16xf32> -> vector<64x16xf32>
    %114 = arith.addf %107, %113 : vector<64x16xf32>
    %c4_113 = arith.constant 4 : index
    %c0_114 = arith.constant 0 : index
    %c0_115 = arith.constant 0 : index
    %115 = vector.load %arg11[%c4_113, %c0_114, %c0_115] : memref<9x64x64xf32, #tpu.memory_space<vmem>>, vector<1x64x64xf32>
    %116 = vector.shape_cast %115 : vector<1x64x64xf32> to vector<64x64xf32>
    %cst_116 = arith.constant dense<0.000000e+00> : vector<64x16xf32>
    %117 = tpu.matmul %116, %87, %cst_116 {dimension_numbers = #tpu.dot_dimension_numbers<[1], [0], [0], [1], [0, 0, 1, 1], [], []>} : vector<64x64xf32>, vector<64x16xf32>, vector<64x16xf32> -> vector<64x16xf32>
    %c13 = arith.constant 13 : index
    %c0_117 = arith.constant 0 : index
    %c0_118 = arith.constant 0 : index
    %118 = vector.load %arg7[%c13, %c0_117, %c0_118] : memref<54x16x16xf32, #tpu.memory_space<vmem>>, vector<1x16x16xf32>
    %119 = vector.shape_cast %118 : vector<1x16x16xf32> to vector<16x16xf32>
    %cst_119 = arith.constant dense<0.000000e+00> : vector<64x16xf32>
    %120 = tpu.matmul %117, %119, %cst_119 {dimension_numbers = #tpu.dot_dimension_numbers<[1], [0], [0], [1], [0, 0, 1, 1], [], []>} : vector<64x16xf32>, vector<16x16xf32>, vector<64x16xf32> -> vector<64x16xf32>
    %121 = arith.addf %114, %120 : vector<64x16xf32>
    %c5_120 = arith.constant 5 : index
    %c0_121 = arith.constant 0 : index
    %c0_122 = arith.constant 0 : index
    %122 = vector.load %arg11[%c5_120, %c0_121, %c0_122] : memref<9x64x64xf32, #tpu.memory_space<vmem>>, vector<1x64x64xf32>
    %123 = vector.shape_cast %122 : vector<1x64x64xf32> to vector<64x64xf32>
    %cst_123 = arith.constant dense<0.000000e+00> : vector<64x16xf32>
    %124 = tpu.matmul %123, %87, %cst_123 {dimension_numbers = #tpu.dot_dimension_numbers<[1], [0], [0], [1], [0, 0, 1, 1], [], []>} : vector<64x64xf32>, vector<64x16xf32>, vector<64x16xf32> -> vector<64x16xf32>
    %c14 = arith.constant 14 : index
    %c0_124 = arith.constant 0 : index
    %c0_125 = arith.constant 0 : index
    %125 = vector.load %arg7[%c14, %c0_124, %c0_125] : memref<54x16x16xf32, #tpu.memory_space<vmem>>, vector<1x16x16xf32>
    %126 = vector.shape_cast %125 : vector<1x16x16xf32> to vector<16x16xf32>
    %cst_126 = arith.constant dense<0.000000e+00> : vector<64x16xf32>
    %127 = tpu.matmul %124, %126, %cst_126 {dimension_numbers = #tpu.dot_dimension_numbers<[1], [0], [0], [1], [0, 0, 1, 1], [], []>} : vector<64x16xf32>, vector<16x16xf32>, vector<64x16xf32> -> vector<64x16xf32>
    %128 = arith.addf %121, %127 : vector<64x16xf32>
    %c6_127 = arith.constant 6 : index
    %c0_128 = arith.constant 0 : index
    %c0_129 = arith.constant 0 : index
    %129 = vector.load %arg11[%c6_127, %c0_128, %c0_129] : memref<9x64x64xf32, #tpu.memory_space<vmem>>, vector<1x64x64xf32>
    %130 = vector.shape_cast %129 : vector<1x64x64xf32> to vector<64x64xf32>
    %cst_130 = arith.constant dense<0.000000e+00> : vector<64x16xf32>
    %131 = tpu.matmul %130, %87, %cst_130 {dimension_numbers = #tpu.dot_dimension_numbers<[1], [0], [0], [1], [0, 0, 1, 1], [], []>} : vector<64x64xf32>, vector<64x16xf32>, vector<64x16xf32> -> vector<64x16xf32>
    %c15 = arith.constant 15 : index
    %c0_131 = arith.constant 0 : index
    %c0_132 = arith.constant 0 : index
    %132 = vector.load %arg7[%c15, %c0_131, %c0_132] : memref<54x16x16xf32, #tpu.memory_space<vmem>>, vector<1x16x16xf32>
    %133 = vector.shape_cast %132 : vector<1x16x16xf32> to vector<16x16xf32>
    %cst_133 = arith.constant dense<0.000000e+00> : vector<64x16xf32>
    %134 = tpu.matmul %131, %133, %cst_133 {dimension_numbers = #tpu.dot_dimension_numbers<[1], [0], [0], [1], [0, 0, 1, 1], [], []>} : vector<64x16xf32>, vector<16x16xf32>, vector<64x16xf32> -> vector<64x16xf32>
    %135 = arith.addf %128, %134 : vector<64x16xf32>
    %c7_134 = arith.constant 7 : index
    %c0_135 = arith.constant 0 : index
    %c0_136 = arith.constant 0 : index
    %136 = vector.load %arg11[%c7_134, %c0_135, %c0_136] : memref<9x64x64xf32, #tpu.memory_space<vmem>>, vector<1x64x64xf32>
    %137 = vector.shape_cast %136 : vector<1x64x64xf32> to vector<64x64xf32>
    %cst_137 = arith.constant dense<0.000000e+00> : vector<64x16xf32>
    %138 = tpu.matmul %137, %87, %cst_137 {dimension_numbers = #tpu.dot_dimension_numbers<[1], [0], [0], [1], [0, 0, 1, 1], [], []>} : vector<64x64xf32>, vector<64x16xf32>, vector<64x16xf32> -> vector<64x16xf32>
    %c16 = arith.constant 16 : index
    %c0_138 = arith.constant 0 : index
    %c0_139 = arith.constant 0 : index
    %139 = vector.load %arg7[%c16, %c0_138, %c0_139] : memref<54x16x16xf32, #tpu.memory_space<vmem>>, vector<1x16x16xf32>
    %140 = vector.shape_cast %139 : vector<1x16x16xf32> to vector<16x16xf32>
    %cst_140 = arith.constant dense<0.000000e+00> : vector<64x16xf32>
    %141 = tpu.matmul %138, %140, %cst_140 {dimension_numbers = #tpu.dot_dimension_numbers<[1], [0], [0], [1], [0, 0, 1, 1], [], []>} : vector<64x16xf32>, vector<16x16xf32>, vector<64x16xf32> -> vector<64x16xf32>
    %142 = arith.addf %135, %141 : vector<64x16xf32>
    %c8_141 = arith.constant 8 : index
    %c0_142 = arith.constant 0 : index
    %c0_143 = arith.constant 0 : index
    %143 = vector.load %arg11[%c8_141, %c0_142, %c0_143] : memref<9x64x64xf32, #tpu.memory_space<vmem>>, vector<1x64x64xf32>
    %144 = vector.shape_cast %143 : vector<1x64x64xf32> to vector<64x64xf32>
    %cst_144 = arith.constant dense<0.000000e+00> : vector<64x16xf32>
    %145 = tpu.matmul %144, %87, %cst_144 {dimension_numbers = #tpu.dot_dimension_numbers<[1], [0], [0], [1], [0, 0, 1, 1], [], []>} : vector<64x64xf32>, vector<64x16xf32>, vector<64x16xf32> -> vector<64x16xf32>
    %c17 = arith.constant 17 : index
    %c0_145 = arith.constant 0 : index
    %c0_146 = arith.constant 0 : index
    %146 = vector.load %arg7[%c17, %c0_145, %c0_146] : memref<54x16x16xf32, #tpu.memory_space<vmem>>, vector<1x16x16xf32>
    %147 = vector.shape_cast %146 : vector<1x16x16xf32> to vector<16x16xf32>
    %cst_147 = arith.constant dense<0.000000e+00> : vector<64x16xf32>
    %148 = tpu.matmul %145, %147, %cst_147 {dimension_numbers = #tpu.dot_dimension_numbers<[1], [0], [0], [1], [0, 0, 1, 1], [], []>} : vector<64x16xf32>, vector<16x16xf32>, vector<64x16xf32> -> vector<64x16xf32>
    %149 = arith.addf %142, %148 : vector<64x16xf32>
    %c1_148 = arith.constant 1 : index
    %c0_149 = arith.constant 0 : index
    %c0_150 = arith.constant 0 : index
    %150 = vector.load %arg8[%c1_148, %c0_149, %c0_150] : memref<6x1x16xf32, #tpu.memory_space<vmem>>, vector<1x1x16xf32>
    %151 = vector.shape_cast %150 : vector<1x1x16xf32> to vector<1x16xf32>
    %152 = vector.broadcast %151 : vector<1x16xf32> to vector<64x16xf32>
    %153 = arith.addf %149, %152 : vector<64x16xf32>
    %154 = arith.addf %153, %17 : vector<64x16xf32>
    %cst_151 = arith.constant 0.000000e+00 : f32
    %155 = vector.broadcast %cst_151 : f32 to vector<64x16xf32>
    %156 = arith.maximumf %8, %155 : vector<64x16xf32>
    %c0_152 = arith.constant 0 : index
    %c0_153 = arith.constant 0 : index
    %c0_154 = arith.constant 0 : index
    %157 = vector.load %arg11[%c0_152, %c0_153, %c0_154] : memref<9x64x64xf32, #tpu.memory_space<vmem>>, vector<1x64x64xf32>
    %158 = vector.shape_cast %157 : vector<1x64x64xf32> to vector<64x64xf32>
    %cst_155 = arith.constant dense<0.000000e+00> : vector<64x16xf32>
    %159 = tpu.matmul %158, %156, %cst_155 {dimension_numbers = #tpu.dot_dimension_numbers<[1], [0], [0], [1], [0, 0, 1, 1], [], []>} : vector<64x64xf32>, vector<64x16xf32>, vector<64x16xf32> -> vector<64x16xf32>
    %c18 = arith.constant 18 : index
    %c0_156 = arith.constant 0 : index
    %c0_157 = arith.constant 0 : index
    %160 = vector.load %arg7[%c18, %c0_156, %c0_157] : memref<54x16x16xf32, #tpu.memory_space<vmem>>, vector<1x16x16xf32>
    %161 = vector.shape_cast %160 : vector<1x16x16xf32> to vector<16x16xf32>
    %cst_158 = arith.constant dense<0.000000e+00> : vector<64x16xf32>
    %162 = tpu.matmul %159, %161, %cst_158 {dimension_numbers = #tpu.dot_dimension_numbers<[1], [0], [0], [1], [0, 0, 1, 1], [], []>} : vector<64x16xf32>, vector<16x16xf32>, vector<64x16xf32> -> vector<64x16xf32>
    %c1_159 = arith.constant 1 : index
    %c0_160 = arith.constant 0 : index
    %c0_161 = arith.constant 0 : index
    %163 = vector.load %arg11[%c1_159, %c0_160, %c0_161] : memref<9x64x64xf32, #tpu.memory_space<vmem>>, vector<1x64x64xf32>
    %164 = vector.shape_cast %163 : vector<1x64x64xf32> to vector<64x64xf32>
    %cst_162 = arith.constant dense<0.000000e+00> : vector<64x16xf32>
    %165 = tpu.matmul %164, %156, %cst_162 {dimension_numbers = #tpu.dot_dimension_numbers<[1], [0], [0], [1], [0, 0, 1, 1], [], []>} : vector<64x64xf32>, vector<64x16xf32>, vector<64x16xf32> -> vector<64x16xf32>
    %c19 = arith.constant 19 : index
    %c0_163 = arith.constant 0 : index
    %c0_164 = arith.constant 0 : index
    %166 = vector.load %arg7[%c19, %c0_163, %c0_164] : memref<54x16x16xf32, #tpu.memory_space<vmem>>, vector<1x16x16xf32>
    %167 = vector.shape_cast %166 : vector<1x16x16xf32> to vector<16x16xf32>
    %cst_165 = arith.constant dense<0.000000e+00> : vector<64x16xf32>
    %168 = tpu.matmul %165, %167, %cst_165 {dimension_numbers = #tpu.dot_dimension_numbers<[1], [0], [0], [1], [0, 0, 1, 1], [], []>} : vector<64x16xf32>, vector<16x16xf32>, vector<64x16xf32> -> vector<64x16xf32>
    %169 = arith.addf %162, %168 : vector<64x16xf32>
    %c2_166 = arith.constant 2 : index
    %c0_167 = arith.constant 0 : index
    %c0_168 = arith.constant 0 : index
    %170 = vector.load %arg11[%c2_166, %c0_167, %c0_168] : memref<9x64x64xf32, #tpu.memory_space<vmem>>, vector<1x64x64xf32>
    %171 = vector.shape_cast %170 : vector<1x64x64xf32> to vector<64x64xf32>
    %cst_169 = arith.constant dense<0.000000e+00> : vector<64x16xf32>
    %172 = tpu.matmul %171, %156, %cst_169 {dimension_numbers = #tpu.dot_dimension_numbers<[1], [0], [0], [1], [0, 0, 1, 1], [], []>} : vector<64x64xf32>, vector<64x16xf32>, vector<64x16xf32> -> vector<64x16xf32>
    %c20 = arith.constant 20 : index
    %c0_170 = arith.constant 0 : index
    %c0_171 = arith.constant 0 : index
    %173 = vector.load %arg7[%c20, %c0_170, %c0_171] : memref<54x16x16xf32, #tpu.memory_space<vmem>>, vector<1x16x16xf32>
    %174 = vector.shape_cast %173 : vector<1x16x16xf32> to vector<16x16xf32>
    %cst_172 = arith.constant dense<0.000000e+00> : vector<64x16xf32>
    %175 = tpu.matmul %172, %174, %cst_172 {dimension_numbers = #tpu.dot_dimension_numbers<[1], [0], [0], [1], [0, 0, 1, 1], [], []>} : vector<64x16xf32>, vector<16x16xf32>, vector<64x16xf32> -> vector<64x16xf32>
    %176 = arith.addf %169, %175 : vector<64x16xf32>
    %c3_173 = arith.constant 3 : index
    %c0_174 = arith.constant 0 : index
    %c0_175 = arith.constant 0 : index
    %177 = vector.load %arg11[%c3_173, %c0_174, %c0_175] : memref<9x64x64xf32, #tpu.memory_space<vmem>>, vector<1x64x64xf32>
    %178 = vector.shape_cast %177 : vector<1x64x64xf32> to vector<64x64xf32>
    %cst_176 = arith.constant dense<0.000000e+00> : vector<64x16xf32>
    %179 = tpu.matmul %178, %156, %cst_176 {dimension_numbers = #tpu.dot_dimension_numbers<[1], [0], [0], [1], [0, 0, 1, 1], [], []>} : vector<64x64xf32>, vector<64x16xf32>, vector<64x16xf32> -> vector<64x16xf32>
    %c21 = arith.constant 21 : index
    %c0_177 = arith.constant 0 : index
    %c0_178 = arith.constant 0 : index
    %180 = vector.load %arg7[%c21, %c0_177, %c0_178] : memref<54x16x16xf32, #tpu.memory_space<vmem>>, vector<1x16x16xf32>
    %181 = vector.shape_cast %180 : vector<1x16x16xf32> to vector<16x16xf32>
    %cst_179 = arith.constant dense<0.000000e+00> : vector<64x16xf32>
    %182 = tpu.matmul %179, %181, %cst_179 {dimension_numbers = #tpu.dot_dimension_numbers<[1], [0], [0], [1], [0, 0, 1, 1], [], []>} : vector<64x16xf32>, vector<16x16xf32>, vector<64x16xf32> -> vector<64x16xf32>
    %183 = arith.addf %176, %182 : vector<64x16xf32>
    %c4_180 = arith.constant 4 : index
    %c0_181 = arith.constant 0 : index
    %c0_182 = arith.constant 0 : index
    %184 = vector.load %arg11[%c4_180, %c0_181, %c0_182] : memref<9x64x64xf32, #tpu.memory_space<vmem>>, vector<1x64x64xf32>
    %185 = vector.shape_cast %184 : vector<1x64x64xf32> to vector<64x64xf32>
    %cst_183 = arith.constant dense<0.000000e+00> : vector<64x16xf32>
    %186 = tpu.matmul %185, %156, %cst_183 {dimension_numbers = #tpu.dot_dimension_numbers<[1], [0], [0], [1], [0, 0, 1, 1], [], []>} : vector<64x64xf32>, vector<64x16xf32>, vector<64x16xf32> -> vector<64x16xf32>
    %c22 = arith.constant 22 : index
    %c0_184 = arith.constant 0 : index
    %c0_185 = arith.constant 0 : index
    %187 = vector.load %arg7[%c22, %c0_184, %c0_185] : memref<54x16x16xf32, #tpu.memory_space<vmem>>, vector<1x16x16xf32>
    %188 = vector.shape_cast %187 : vector<1x16x16xf32> to vector<16x16xf32>
    %cst_186 = arith.constant dense<0.000000e+00> : vector<64x16xf32>
    %189 = tpu.matmul %186, %188, %cst_186 {dimension_numbers = #tpu.dot_dimension_numbers<[1], [0], [0], [1], [0, 0, 1, 1], [], []>} : vector<64x16xf32>, vector<16x16xf32>, vector<64x16xf32> -> vector<64x16xf32>
    %190 = arith.addf %183, %189 : vector<64x16xf32>
    %c5_187 = arith.constant 5 : index
    %c0_188 = arith.constant 0 : index
    %c0_189 = arith.constant 0 : index
    %191 = vector.load %arg11[%c5_187, %c0_188, %c0_189] : memref<9x64x64xf32, #tpu.memory_space<vmem>>, vector<1x64x64xf32>
    %192 = vector.shape_cast %191 : vector<1x64x64xf32> to vector<64x64xf32>
    %cst_190 = arith.constant dense<0.000000e+00> : vector<64x16xf32>
    %193 = tpu.matmul %192, %156, %cst_190 {dimension_numbers = #tpu.dot_dimension_numbers<[1], [0], [0], [1], [0, 0, 1, 1], [], []>} : vector<64x64xf32>, vector<64x16xf32>, vector<64x16xf32> -> vector<64x16xf32>
    %c23 = arith.constant 23 : index
    %c0_191 = arith.constant 0 : index
    %c0_192 = arith.constant 0 : index
    %194 = vector.load %arg7[%c23, %c0_191, %c0_192] : memref<54x16x16xf32, #tpu.memory_space<vmem>>, vector<1x16x16xf32>
    %195 = vector.shape_cast %194 : vector<1x16x16xf32> to vector<16x16xf32>
    %cst_193 = arith.constant dense<0.000000e+00> : vector<64x16xf32>
    %196 = tpu.matmul %193, %195, %cst_193 {dimension_numbers = #tpu.dot_dimension_numbers<[1], [0], [0], [1], [0, 0, 1, 1], [], []>} : vector<64x16xf32>, vector<16x16xf32>, vector<64x16xf32> -> vector<64x16xf32>
    %197 = arith.addf %190, %196 : vector<64x16xf32>
    %c6_194 = arith.constant 6 : index
    %c0_195 = arith.constant 0 : index
    %c0_196 = arith.constant 0 : index
    %198 = vector.load %arg11[%c6_194, %c0_195, %c0_196] : memref<9x64x64xf32, #tpu.memory_space<vmem>>, vector<1x64x64xf32>
    %199 = vector.shape_cast %198 : vector<1x64x64xf32> to vector<64x64xf32>
    %cst_197 = arith.constant dense<0.000000e+00> : vector<64x16xf32>
    %200 = tpu.matmul %199, %156, %cst_197 {dimension_numbers = #tpu.dot_dimension_numbers<[1], [0], [0], [1], [0, 0, 1, 1], [], []>} : vector<64x64xf32>, vector<64x16xf32>, vector<64x16xf32> -> vector<64x16xf32>
    %c24 = arith.constant 24 : index
    %c0_198 = arith.constant 0 : index
    %c0_199 = arith.constant 0 : index
    %201 = vector.load %arg7[%c24, %c0_198, %c0_199] : memref<54x16x16xf32, #tpu.memory_space<vmem>>, vector<1x16x16xf32>
    %202 = vector.shape_cast %201 : vector<1x16x16xf32> to vector<16x16xf32>
    %cst_200 = arith.constant dense<0.000000e+00> : vector<64x16xf32>
    %203 = tpu.matmul %200, %202, %cst_200 {dimension_numbers = #tpu.dot_dimension_numbers<[1], [0], [0], [1], [0, 0, 1, 1], [], []>} : vector<64x16xf32>, vector<16x16xf32>, vector<64x16xf32> -> vector<64x16xf32>
    %204 = arith.addf %197, %203 : vector<64x16xf32>
    %c7_201 = arith.constant 7 : index
    %c0_202 = arith.constant 0 : index
    %c0_203 = arith.constant 0 : index
    %205 = vector.load %arg11[%c7_201, %c0_202, %c0_203] : memref<9x64x64xf32, #tpu.memory_space<vmem>>, vector<1x64x64xf32>
    %206 = vector.shape_cast %205 : vector<1x64x64xf32> to vector<64x64xf32>
    %cst_204 = arith.constant dense<0.000000e+00> : vector<64x16xf32>
    %207 = tpu.matmul %206, %156, %cst_204 {dimension_numbers = #tpu.dot_dimension_numbers<[1], [0], [0], [1], [0, 0, 1, 1], [], []>} : vector<64x64xf32>, vector<64x16xf32>, vector<64x16xf32> -> vector<64x16xf32>
    %c25 = arith.constant 25 : index
    %c0_205 = arith.constant 0 : index
    %c0_206 = arith.constant 0 : index
    %208 = vector.load %arg7[%c25, %c0_205, %c0_206] : memref<54x16x16xf32, #tpu.memory_space<vmem>>, vector<1x16x16xf32>
    %209 = vector.shape_cast %208 : vector<1x16x16xf32> to vector<16x16xf32>
    %cst_207 = arith.constant dense<0.000000e+00> : vector<64x16xf32>
    %210 = tpu.matmul %207, %209, %cst_207 {dimension_numbers = #tpu.dot_dimension_numbers<[1], [0], [0], [1], [0, 0, 1, 1], [], []>} : vector<64x16xf32>, vector<16x16xf32>, vector<64x16xf32> -> vector<64x16xf32>
    %211 = arith.addf %204, %210 : vector<64x16xf32>
    %c8_208 = arith.constant 8 : index
    %c0_209 = arith.constant 0 : index
    %c0_210 = arith.constant 0 : index
    %212 = vector.load %arg11[%c8_208, %c0_209, %c0_210] : memref<9x64x64xf32, #tpu.memory_space<vmem>>, vector<1x64x64xf32>
    %213 = vector.shape_cast %212 : vector<1x64x64xf32> to vector<64x64xf32>
    %cst_211 = arith.constant dense<0.000000e+00> : vector<64x16xf32>
    %214 = tpu.matmul %213, %156, %cst_211 {dimension_numbers = #tpu.dot_dimension_numbers<[1], [0], [0], [1], [0, 0, 1, 1], [], []>} : vector<64x64xf32>, vector<64x16xf32>, vector<64x16xf32> -> vector<64x16xf32>
    %c26 = arith.constant 26 : index
    %c0_212 = arith.constant 0 : index
    %c0_213 = arith.constant 0 : index
    %215 = vector.load %arg7[%c26, %c0_212, %c0_213] : memref<54x16x16xf32, #tpu.memory_space<vmem>>, vector<1x16x16xf32>
    %216 = vector.shape_cast %215 : vector<1x16x16xf32> to vector<16x16xf32>
    %cst_214 = arith.constant dense<0.000000e+00> : vector<64x16xf32>
    %217 = tpu.matmul %214, %216, %cst_214 {dimension_numbers = #tpu.dot_dimension_numbers<[1], [0], [0], [1], [0, 0, 1, 1], [], []>} : vector<64x16xf32>, vector<16x16xf32>, vector<64x16xf32> -> vector<64x16xf32>
    %218 = arith.addf %211, %217 : vector<64x16xf32>
    %c2_215 = arith.constant 2 : index
    %c0_216 = arith.constant 0 : index
    %c0_217 = arith.constant 0 : index
    %219 = vector.load %arg8[%c2_215, %c0_216, %c0_217] : memref<6x1x16xf32, #tpu.memory_space<vmem>>, vector<1x1x16xf32>
    %220 = vector.shape_cast %219 : vector<1x1x16xf32> to vector<1x16xf32>
    %221 = vector.broadcast %220 : vector<1x16xf32> to vector<64x16xf32>
    %222 = arith.addf %218, %221 : vector<64x16xf32>
    %cst_218 = arith.constant 0.000000e+00 : f32
    %223 = vector.broadcast %cst_218 : f32 to vector<64x16xf32>
    %224 = arith.maximumf %222, %223 : vector<64x16xf32>
    %c0_219 = arith.constant 0 : index
    %c0_220 = arith.constant 0 : index
    %c0_221 = arith.constant 0 : index
    %225 = vector.load %arg11[%c0_219, %c0_220, %c0_221] : memref<9x64x64xf32, #tpu.memory_space<vmem>>, vector<1x64x64xf32>
    %226 = vector.shape_cast %225 : vector<1x64x64xf32> to vector<64x64xf32>
    %cst_222 = arith.constant dense<0.000000e+00> : vector<64x16xf32>
    %227 = tpu.matmul %226, %224, %cst_222 {dimension_numbers = #tpu.dot_dimension_numbers<[1], [0], [0], [1], [0, 0, 1, 1], [], []>} : vector<64x64xf32>, vector<64x16xf32>, vector<64x16xf32> -> vector<64x16xf32>
    %c27 = arith.constant 27 : index
    %c0_223 = arith.constant 0 : index
    %c0_224 = arith.constant 0 : index
    %228 = vector.load %arg7[%c27, %c0_223, %c0_224] : memref<54x16x16xf32, #tpu.memory_space<vmem>>, vector<1x16x16xf32>
    %229 = vector.shape_cast %228 : vector<1x16x16xf32> to vector<16x16xf32>
    %cst_225 = arith.constant dense<0.000000e+00> : vector<64x16xf32>
    %230 = tpu.matmul %227, %229, %cst_225 {dimension_numbers = #tpu.dot_dimension_numbers<[1], [0], [0], [1], [0, 0, 1, 1], [], []>} : vector<64x16xf32>, vector<16x16xf32>, vector<64x16xf32> -> vector<64x16xf32>
    %c1_226 = arith.constant 1 : index
    %c0_227 = arith.constant 0 : index
    %c0_228 = arith.constant 0 : index
    %231 = vector.load %arg11[%c1_226, %c0_227, %c0_228] : memref<9x64x64xf32, #tpu.memory_space<vmem>>, vector<1x64x64xf32>
    %232 = vector.shape_cast %231 : vector<1x64x64xf32> to vector<64x64xf32>
    %cst_229 = arith.constant dense<0.000000e+00> : vector<64x16xf32>
    %233 = tpu.matmul %232, %224, %cst_229 {dimension_numbers = #tpu.dot_dimension_numbers<[1], [0], [0], [1], [0, 0, 1, 1], [], []>} : vector<64x64xf32>, vector<64x16xf32>, vector<64x16xf32> -> vector<64x16xf32>
    %c28 = arith.constant 28 : index
    %c0_230 = arith.constant 0 : index
    %c0_231 = arith.constant 0 : index
    %234 = vector.load %arg7[%c28, %c0_230, %c0_231] : memref<54x16x16xf32, #tpu.memory_space<vmem>>, vector<1x16x16xf32>
    %235 = vector.shape_cast %234 : vector<1x16x16xf32> to vector<16x16xf32>
    %cst_232 = arith.constant dense<0.000000e+00> : vector<64x16xf32>
    %236 = tpu.matmul %233, %235, %cst_232 {dimension_numbers = #tpu.dot_dimension_numbers<[1], [0], [0], [1], [0, 0, 1, 1], [], []>} : vector<64x16xf32>, vector<16x16xf32>, vector<64x16xf32> -> vector<64x16xf32>
    %237 = arith.addf %230, %236 : vector<64x16xf32>
    %c2_233 = arith.constant 2 : index
    %c0_234 = arith.constant 0 : index
    %c0_235 = arith.constant 0 : index
    %238 = vector.load %arg11[%c2_233, %c0_234, %c0_235] : memref<9x64x64xf32, #tpu.memory_space<vmem>>, vector<1x64x64xf32>
    %239 = vector.shape_cast %238 : vector<1x64x64xf32> to vector<64x64xf32>
    %cst_236 = arith.constant dense<0.000000e+00> : vector<64x16xf32>
    %240 = tpu.matmul %239, %224, %cst_236 {dimension_numbers = #tpu.dot_dimension_numbers<[1], [0], [0], [1], [0, 0, 1, 1], [], []>} : vector<64x64xf32>, vector<64x16xf32>, vector<64x16xf32> -> vector<64x16xf32>
    %c29 = arith.constant 29 : index
    %c0_237 = arith.constant 0 : index
    %c0_238 = arith.constant 0 : index
    %241 = vector.load %arg7[%c29, %c0_237, %c0_238] : memref<54x16x16xf32, #tpu.memory_space<vmem>>, vector<1x16x16xf32>
    %242 = vector.shape_cast %241 : vector<1x16x16xf32> to vector<16x16xf32>
    %cst_239 = arith.constant dense<0.000000e+00> : vector<64x16xf32>
    %243 = tpu.matmul %240, %242, %cst_239 {dimension_numbers = #tpu.dot_dimension_numbers<[1], [0], [0], [1], [0, 0, 1, 1], [], []>} : vector<64x16xf32>, vector<16x16xf32>, vector<64x16xf32> -> vector<64x16xf32>
    %244 = arith.addf %237, %243 : vector<64x16xf32>
    %c3_240 = arith.constant 3 : index
    %c0_241 = arith.constant 0 : index
    %c0_242 = arith.constant 0 : index
    %245 = vector.load %arg11[%c3_240, %c0_241, %c0_242] : memref<9x64x64xf32, #tpu.memory_space<vmem>>, vector<1x64x64xf32>
    %246 = vector.shape_cast %245 : vector<1x64x64xf32> to vector<64x64xf32>
    %cst_243 = arith.constant dense<0.000000e+00> : vector<64x16xf32>
    %247 = tpu.matmul %246, %224, %cst_243 {dimension_numbers = #tpu.dot_dimension_numbers<[1], [0], [0], [1], [0, 0, 1, 1], [], []>} : vector<64x64xf32>, vector<64x16xf32>, vector<64x16xf32> -> vector<64x16xf32>
    %c30 = arith.constant 30 : index
    %c0_244 = arith.constant 0 : index
    %c0_245 = arith.constant 0 : index
    %248 = vector.load %arg7[%c30, %c0_244, %c0_245] : memref<54x16x16xf32, #tpu.memory_space<vmem>>, vector<1x16x16xf32>
    %249 = vector.shape_cast %248 : vector<1x16x16xf32> to vector<16x16xf32>
    %cst_246 = arith.constant dense<0.000000e+00> : vector<64x16xf32>
    %250 = tpu.matmul %247, %249, %cst_246 {dimension_numbers = #tpu.dot_dimension_numbers<[1], [0], [0], [1], [0, 0, 1, 1], [], []>} : vector<64x16xf32>, vector<16x16xf32>, vector<64x16xf32> -> vector<64x16xf32>
    %251 = arith.addf %244, %250 : vector<64x16xf32>
    %c4_247 = arith.constant 4 : index
    %c0_248 = arith.constant 0 : index
    %c0_249 = arith.constant 0 : index
    %252 = vector.load %arg11[%c4_247, %c0_248, %c0_249] : memref<9x64x64xf32, #tpu.memory_space<vmem>>, vector<1x64x64xf32>
    %253 = vector.shape_cast %252 : vector<1x64x64xf32> to vector<64x64xf32>
    %cst_250 = arith.constant dense<0.000000e+00> : vector<64x16xf32>
    %254 = tpu.matmul %253, %224, %cst_250 {dimension_numbers = #tpu.dot_dimension_numbers<[1], [0], [0], [1], [0, 0, 1, 1], [], []>} : vector<64x64xf32>, vector<64x16xf32>, vector<64x16xf32> -> vector<64x16xf32>
    %c31 = arith.constant 31 : index
    %c0_251 = arith.constant 0 : index
    %c0_252 = arith.constant 0 : index
    %255 = vector.load %arg7[%c31, %c0_251, %c0_252] : memref<54x16x16xf32, #tpu.memory_space<vmem>>, vector<1x16x16xf32>
    %256 = vector.shape_cast %255 : vector<1x16x16xf32> to vector<16x16xf32>
    %cst_253 = arith.constant dense<0.000000e+00> : vector<64x16xf32>
    %257 = tpu.matmul %254, %256, %cst_253 {dimension_numbers = #tpu.dot_dimension_numbers<[1], [0], [0], [1], [0, 0, 1, 1], [], []>} : vector<64x16xf32>, vector<16x16xf32>, vector<64x16xf32> -> vector<64x16xf32>
    %258 = arith.addf %251, %257 : vector<64x16xf32>
    %c5_254 = arith.constant 5 : index
    %c0_255 = arith.constant 0 : index
    %c0_256 = arith.constant 0 : index
    %259 = vector.load %arg11[%c5_254, %c0_255, %c0_256] : memref<9x64x64xf32, #tpu.memory_space<vmem>>, vector<1x64x64xf32>
    %260 = vector.shape_cast %259 : vector<1x64x64xf32> to vector<64x64xf32>
    %cst_257 = arith.constant dense<0.000000e+00> : vector<64x16xf32>
    %261 = tpu.matmul %260, %224, %cst_257 {dimension_numbers = #tpu.dot_dimension_numbers<[1], [0], [0], [1], [0, 0, 1, 1], [], []>} : vector<64x64xf32>, vector<64x16xf32>, vector<64x16xf32> -> vector<64x16xf32>
    %c32 = arith.constant 32 : index
    %c0_258 = arith.constant 0 : index
    %c0_259 = arith.constant 0 : index
    %262 = vector.load %arg7[%c32, %c0_258, %c0_259] : memref<54x16x16xf32, #tpu.memory_space<vmem>>, vector<1x16x16xf32>
    %263 = vector.shape_cast %262 : vector<1x16x16xf32> to vector<16x16xf32>
    %cst_260 = arith.constant dense<0.000000e+00> : vector<64x16xf32>
    %264 = tpu.matmul %261, %263, %cst_260 {dimension_numbers = #tpu.dot_dimension_numbers<[1], [0], [0], [1], [0, 0, 1, 1], [], []>} : vector<64x16xf32>, vector<16x16xf32>, vector<64x16xf32> -> vector<64x16xf32>
    %265 = arith.addf %258, %264 : vector<64x16xf32>
    %c6_261 = arith.constant 6 : index
    %c0_262 = arith.constant 0 : index
    %c0_263 = arith.constant 0 : index
    %266 = vector.load %arg11[%c6_261, %c0_262, %c0_263] : memref<9x64x64xf32, #tpu.memory_space<vmem>>, vector<1x64x64xf32>
    %267 = vector.shape_cast %266 : vector<1x64x64xf32> to vector<64x64xf32>
    %cst_264 = arith.constant dense<0.000000e+00> : vector<64x16xf32>
    %268 = tpu.matmul %267, %224, %cst_264 {dimension_numbers = #tpu.dot_dimension_numbers<[1], [0], [0], [1], [0, 0, 1, 1], [], []>} : vector<64x64xf32>, vector<64x16xf32>, vector<64x16xf32> -> vector<64x16xf32>
    %c33 = arith.constant 33 : index
    %c0_265 = arith.constant 0 : index
    %c0_266 = arith.constant 0 : index
    %269 = vector.load %arg7[%c33, %c0_265, %c0_266] : memref<54x16x16xf32, #tpu.memory_space<vmem>>, vector<1x16x16xf32>
    %270 = vector.shape_cast %269 : vector<1x16x16xf32> to vector<16x16xf32>
    %cst_267 = arith.constant dense<0.000000e+00> : vector<64x16xf32>
    %271 = tpu.matmul %268, %270, %cst_267 {dimension_numbers = #tpu.dot_dimension_numbers<[1], [0], [0], [1], [0, 0, 1, 1], [], []>} : vector<64x16xf32>, vector<16x16xf32>, vector<64x16xf32> -> vector<64x16xf32>
    %272 = arith.addf %265, %271 : vector<64x16xf32>
    %c7_268 = arith.constant 7 : index
    %c0_269 = arith.constant 0 : index
    %c0_270 = arith.constant 0 : index
    %273 = vector.load %arg11[%c7_268, %c0_269, %c0_270] : memref<9x64x64xf32, #tpu.memory_space<vmem>>, vector<1x64x64xf32>
    %274 = vector.shape_cast %273 : vector<1x64x64xf32> to vector<64x64xf32>
    %cst_271 = arith.constant dense<0.000000e+00> : vector<64x16xf32>
    %275 = tpu.matmul %274, %224, %cst_271 {dimension_numbers = #tpu.dot_dimension_numbers<[1], [0], [0], [1], [0, 0, 1, 1], [], []>} : vector<64x64xf32>, vector<64x16xf32>, vector<64x16xf32> -> vector<64x16xf32>
    %c34 = arith.constant 34 : index
    %c0_272 = arith.constant 0 : index
    %c0_273 = arith.constant 0 : index
    %276 = vector.load %arg7[%c34, %c0_272, %c0_273] : memref<54x16x16xf32, #tpu.memory_space<vmem>>, vector<1x16x16xf32>
    %277 = vector.shape_cast %276 : vector<1x16x16xf32> to vector<16x16xf32>
    %cst_274 = arith.constant dense<0.000000e+00> : vector<64x16xf32>
    %278 = tpu.matmul %275, %277, %cst_274 {dimension_numbers = #tpu.dot_dimension_numbers<[1], [0], [0], [1], [0, 0, 1, 1], [], []>} : vector<64x16xf32>, vector<16x16xf32>, vector<64x16xf32> -> vector<64x16xf32>
    %279 = arith.addf %272, %278 : vector<64x16xf32>
    %c8_275 = arith.constant 8 : index
    %c0_276 = arith.constant 0 : index
    %c0_277 = arith.constant 0 : index
    %280 = vector.load %arg11[%c8_275, %c0_276, %c0_277] : memref<9x64x64xf32, #tpu.memory_space<vmem>>, vector<1x64x64xf32>
    %281 = vector.shape_cast %280 : vector<1x64x64xf32> to vector<64x64xf32>
    %cst_278 = arith.constant dense<0.000000e+00> : vector<64x16xf32>
    %282 = tpu.matmul %281, %224, %cst_278 {dimension_numbers = #tpu.dot_dimension_numbers<[1], [0], [0], [1], [0, 0, 1, 1], [], []>} : vector<64x64xf32>, vector<64x16xf32>, vector<64x16xf32> -> vector<64x16xf32>
    %c35 = arith.constant 35 : index
    %c0_279 = arith.constant 0 : index
    %c0_280 = arith.constant 0 : index
    %283 = vector.load %arg7[%c35, %c0_279, %c0_280] : memref<54x16x16xf32, #tpu.memory_space<vmem>>, vector<1x16x16xf32>
    %284 = vector.shape_cast %283 : vector<1x16x16xf32> to vector<16x16xf32>
    %cst_281 = arith.constant dense<0.000000e+00> : vector<64x16xf32>
    %285 = tpu.matmul %282, %284, %cst_281 {dimension_numbers = #tpu.dot_dimension_numbers<[1], [0], [0], [1], [0, 0, 1, 1], [], []>} : vector<64x16xf32>, vector<16x16xf32>, vector<64x16xf32> -> vector<64x16xf32>
    %286 = arith.addf %279, %285 : vector<64x16xf32>
    %c3_282 = arith.constant 3 : index
    %c0_283 = arith.constant 0 : index
    %c0_284 = arith.constant 0 : index
    %287 = vector.load %arg8[%c3_282, %c0_283, %c0_284] : memref<6x1x16xf32, #tpu.memory_space<vmem>>, vector<1x1x16xf32>
    %288 = vector.shape_cast %287 : vector<1x1x16xf32> to vector<1x16xf32>
    %289 = vector.broadcast %288 : vector<1x16xf32> to vector<64x16xf32>
    %290 = arith.addf %286, %289 : vector<64x16xf32>
    %c0_285 = arith.constant 0 : index
    %c0_286 = arith.constant 0 : index
    %c0_287 = arith.constant 0 : index
    %291 = vector.load %arg12[%c0_285, %c0_286, %c0_287] : memref<9x64x1xf32, #tpu.memory_space<vmem>>, vector<1x64x1xf32>
    %292 = vector.shape_cast %291 : vector<1x64x1xf32> to vector<64x1xf32>
    %cst_288 = arith.constant 5.000000e-01 : f32
    %293 = vector.broadcast %cst_288 : f32 to vector<64x1xf32>
    %294 = arith.cmpf ogt, %292, %293 : vector<64x1xf32>
    %c0_289 = arith.constant 0 : index
    %c0_290 = arith.constant 0 : index
    %c0_291 = arith.constant 0 : index
    %295 = vector.load %arg11[%c0_289, %c0_290, %c0_291] : memref<9x64x64xf32, #tpu.memory_space<vmem>>, vector<1x64x64xf32>
    %296 = vector.shape_cast %295 : vector<1x64x64xf32> to vector<64x64xf32>
    %cst_292 = arith.constant dense<0.000000e+00> : vector<64x16xf32>
    %297 = tpu.matmul %296, %17, %cst_292 {dimension_numbers = #tpu.dot_dimension_numbers<[1], [0], [0], [1], [0, 0, 1, 1], [], []>} : vector<64x64xf32>, vector<64x16xf32>, vector<64x16xf32> -> vector<64x16xf32>
    %cst_293 = arith.constant 0xFF800000 : f32
    %298 = vector.shape_cast %294 : vector<64x1xi1> to vector<64x1xi1>
    %299 = vector.broadcast %298 : vector<64x1xi1> to vector<64x16xi1>
    %300 = vector.broadcast %cst_293 : f32 to vector<64x16xf32>
    %301 = arith.select %299, %297, %300 : vector<64x16xi1>, vector<64x16xf32>
    %c1_294 = arith.constant 1 : index
    %c0_295 = arith.constant 0 : index
    %c0_296 = arith.constant 0 : index
    %302 = vector.load %arg12[%c1_294, %c0_295, %c0_296] : memref<9x64x1xf32, #tpu.memory_space<vmem>>, vector<1x64x1xf32>
    %303 = vector.shape_cast %302 : vector<1x64x1xf32> to vector<64x1xf32>
    %cst_297 = arith.constant 5.000000e-01 : f32
    %304 = vector.broadcast %cst_297 : f32 to vector<64x1xf32>
    %305 = arith.cmpf ogt, %303, %304 : vector<64x1xf32>
    %c1_298 = arith.constant 1 : index
    %c0_299 = arith.constant 0 : index
    %c0_300 = arith.constant 0 : index
    %306 = vector.load %arg11[%c1_298, %c0_299, %c0_300] : memref<9x64x64xf32, #tpu.memory_space<vmem>>, vector<1x64x64xf32>
    %307 = vector.shape_cast %306 : vector<1x64x64xf32> to vector<64x64xf32>
    %cst_301 = arith.constant dense<0.000000e+00> : vector<64x16xf32>
    %308 = tpu.matmul %307, %17, %cst_301 {dimension_numbers = #tpu.dot_dimension_numbers<[1], [0], [0], [1], [0, 0, 1, 1], [], []>} : vector<64x64xf32>, vector<64x16xf32>, vector<64x16xf32> -> vector<64x16xf32>
    %cst_302 = arith.constant 0xFF800000 : f32
    %309 = vector.shape_cast %305 : vector<64x1xi1> to vector<64x1xi1>
    %310 = vector.broadcast %309 : vector<64x1xi1> to vector<64x16xi1>
    %311 = vector.broadcast %cst_302 : f32 to vector<64x16xf32>
    %312 = arith.select %310, %308, %311 : vector<64x16xi1>, vector<64x16xf32>
    %313 = arith.maximumf %301, %312 : vector<64x16xf32>
    %c2_303 = arith.constant 2 : index
    %c0_304 = arith.constant 0 : index
    %c0_305 = arith.constant 0 : index
    %314 = vector.load %arg12[%c2_303, %c0_304, %c0_305] : memref<9x64x1xf32, #tpu.memory_space<vmem>>, vector<1x64x1xf32>
    %315 = vector.shape_cast %314 : vector<1x64x1xf32> to vector<64x1xf32>
    %cst_306 = arith.constant 5.000000e-01 : f32
    %316 = vector.broadcast %cst_306 : f32 to vector<64x1xf32>
    %317 = arith.cmpf ogt, %315, %316 : vector<64x1xf32>
    %c2_307 = arith.constant 2 : index
    %c0_308 = arith.constant 0 : index
    %c0_309 = arith.constant 0 : index
    %318 = vector.load %arg11[%c2_307, %c0_308, %c0_309] : memref<9x64x64xf32, #tpu.memory_space<vmem>>, vector<1x64x64xf32>
    %319 = vector.shape_cast %318 : vector<1x64x64xf32> to vector<64x64xf32>
    %cst_310 = arith.constant dense<0.000000e+00> : vector<64x16xf32>
    %320 = tpu.matmul %319, %17, %cst_310 {dimension_numbers = #tpu.dot_dimension_numbers<[1], [0], [0], [1], [0, 0, 1, 1], [], []>} : vector<64x64xf32>, vector<64x16xf32>, vector<64x16xf32> -> vector<64x16xf32>
    %cst_311 = arith.constant 0xFF800000 : f32
    %321 = vector.shape_cast %317 : vector<64x1xi1> to vector<64x1xi1>
    %322 = vector.broadcast %321 : vector<64x1xi1> to vector<64x16xi1>
    %323 = vector.broadcast %cst_311 : f32 to vector<64x16xf32>
    %324 = arith.select %322, %320, %323 : vector<64x16xi1>, vector<64x16xf32>
    %325 = arith.maximumf %313, %324 : vector<64x16xf32>
    %c3_312 = arith.constant 3 : index
    %c0_313 = arith.constant 0 : index
    %c0_314 = arith.constant 0 : index
    %326 = vector.load %arg12[%c3_312, %c0_313, %c0_314] : memref<9x64x1xf32, #tpu.memory_space<vmem>>, vector<1x64x1xf32>
    %327 = vector.shape_cast %326 : vector<1x64x1xf32> to vector<64x1xf32>
    %cst_315 = arith.constant 5.000000e-01 : f32
    %328 = vector.broadcast %cst_315 : f32 to vector<64x1xf32>
    %329 = arith.cmpf ogt, %327, %328 : vector<64x1xf32>
    %c3_316 = arith.constant 3 : index
    %c0_317 = arith.constant 0 : index
    %c0_318 = arith.constant 0 : index
    %330 = vector.load %arg11[%c3_316, %c0_317, %c0_318] : memref<9x64x64xf32, #tpu.memory_space<vmem>>, vector<1x64x64xf32>
    %331 = vector.shape_cast %330 : vector<1x64x64xf32> to vector<64x64xf32>
    %cst_319 = arith.constant dense<0.000000e+00> : vector<64x16xf32>
    %332 = tpu.matmul %331, %17, %cst_319 {dimension_numbers = #tpu.dot_dimension_numbers<[1], [0], [0], [1], [0, 0, 1, 1], [], []>} : vector<64x64xf32>, vector<64x16xf32>, vector<64x16xf32> -> vector<64x16xf32>
    %cst_320 = arith.constant 0xFF800000 : f32
    %333 = vector.shape_cast %329 : vector<64x1xi1> to vector<64x1xi1>
    %334 = vector.broadcast %333 : vector<64x1xi1> to vector<64x16xi1>
    %335 = vector.broadcast %cst_320 : f32 to vector<64x16xf32>
    %336 = arith.select %334, %332, %335 : vector<64x16xi1>, vector<64x16xf32>
    %337 = arith.maximumf %325, %336 : vector<64x16xf32>
    %c4_321 = arith.constant 4 : index
    %c0_322 = arith.constant 0 : index
    %c0_323 = arith.constant 0 : index
    %338 = vector.load %arg12[%c4_321, %c0_322, %c0_323] : memref<9x64x1xf32, #tpu.memory_space<vmem>>, vector<1x64x1xf32>
    %339 = vector.shape_cast %338 : vector<1x64x1xf32> to vector<64x1xf32>
    %cst_324 = arith.constant 5.000000e-01 : f32
    %340 = vector.broadcast %cst_324 : f32 to vector<64x1xf32>
    %341 = arith.cmpf ogt, %339, %340 : vector<64x1xf32>
    %c4_325 = arith.constant 4 : index
    %c0_326 = arith.constant 0 : index
    %c0_327 = arith.constant 0 : index
    %342 = vector.load %arg11[%c4_325, %c0_326, %c0_327] : memref<9x64x64xf32, #tpu.memory_space<vmem>>, vector<1x64x64xf32>
    %343 = vector.shape_cast %342 : vector<1x64x64xf32> to vector<64x64xf32>
    %cst_328 = arith.constant dense<0.000000e+00> : vector<64x16xf32>
    %344 = tpu.matmul %343, %17, %cst_328 {dimension_numbers = #tpu.dot_dimension_numbers<[1], [0], [0], [1], [0, 0, 1, 1], [], []>} : vector<64x64xf32>, vector<64x16xf32>, vector<64x16xf32> -> vector<64x16xf32>
    %cst_329 = arith.constant 0xFF800000 : f32
    %345 = vector.shape_cast %341 : vector<64x1xi1> to vector<64x1xi1>
    %346 = vector.broadcast %345 : vector<64x1xi1> to vector<64x16xi1>
    %347 = vector.broadcast %cst_329 : f32 to vector<64x16xf32>
    %348 = arith.select %346, %344, %347 : vector<64x16xi1>, vector<64x16xf32>
    %349 = arith.maximumf %337, %348 : vector<64x16xf32>
    %c5_330 = arith.constant 5 : index
    %c0_331 = arith.constant 0 : index
    %c0_332 = arith.constant 0 : index
    %350 = vector.load %arg12[%c5_330, %c0_331, %c0_332] : memref<9x64x1xf32, #tpu.memory_space<vmem>>, vector<1x64x1xf32>
    %351 = vector.shape_cast %350 : vector<1x64x1xf32> to vector<64x1xf32>
    %cst_333 = arith.constant 5.000000e-01 : f32
    %352 = vector.broadcast %cst_333 : f32 to vector<64x1xf32>
    %353 = arith.cmpf ogt, %351, %352 : vector<64x1xf32>
    %c5_334 = arith.constant 5 : index
    %c0_335 = arith.constant 0 : index
    %c0_336 = arith.constant 0 : index
    %354 = vector.load %arg11[%c5_334, %c0_335, %c0_336] : memref<9x64x64xf32, #tpu.memory_space<vmem>>, vector<1x64x64xf32>
    %355 = vector.shape_cast %354 : vector<1x64x64xf32> to vector<64x64xf32>
    %cst_337 = arith.constant dense<0.000000e+00> : vector<64x16xf32>
    %356 = tpu.matmul %355, %17, %cst_337 {dimension_numbers = #tpu.dot_dimension_numbers<[1], [0], [0], [1], [0, 0, 1, 1], [], []>} : vector<64x64xf32>, vector<64x16xf32>, vector<64x16xf32> -> vector<64x16xf32>
    %cst_338 = arith.constant 0xFF800000 : f32
    %357 = vector.shape_cast %353 : vector<64x1xi1> to vector<64x1xi1>
    %358 = vector.broadcast %357 : vector<64x1xi1> to vector<64x16xi1>
    %359 = vector.broadcast %cst_338 : f32 to vector<64x16xf32>
    %360 = arith.select %358, %356, %359 : vector<64x16xi1>, vector<64x16xf32>
    %361 = arith.maximumf %349, %360 : vector<64x16xf32>
    %c6_339 = arith.constant 6 : index
    %c0_340 = arith.constant 0 : index
    %c0_341 = arith.constant 0 : index
    %362 = vector.load %arg12[%c6_339, %c0_340, %c0_341] : memref<9x64x1xf32, #tpu.memory_space<vmem>>, vector<1x64x1xf32>
    %363 = vector.shape_cast %362 : vector<1x64x1xf32> to vector<64x1xf32>
    %cst_342 = arith.constant 5.000000e-01 : f32
    %364 = vector.broadcast %cst_342 : f32 to vector<64x1xf32>
    %365 = arith.cmpf ogt, %363, %364 : vector<64x1xf32>
    %c6_343 = arith.constant 6 : index
    %c0_344 = arith.constant 0 : index
    %c0_345 = arith.constant 0 : index
    %366 = vector.load %arg11[%c6_343, %c0_344, %c0_345] : memref<9x64x64xf32, #tpu.memory_space<vmem>>, vector<1x64x64xf32>
    %367 = vector.shape_cast %366 : vector<1x64x64xf32> to vector<64x64xf32>
    %cst_346 = arith.constant dense<0.000000e+00> : vector<64x16xf32>
    %368 = tpu.matmul %367, %17, %cst_346 {dimension_numbers = #tpu.dot_dimension_numbers<[1], [0], [0], [1], [0, 0, 1, 1], [], []>} : vector<64x64xf32>, vector<64x16xf32>, vector<64x16xf32> -> vector<64x16xf32>
    %cst_347 = arith.constant 0xFF800000 : f32
    %369 = vector.shape_cast %365 : vector<64x1xi1> to vector<64x1xi1>
    %370 = vector.broadcast %369 : vector<64x1xi1> to vector<64x16xi1>
    %371 = vector.broadcast %cst_347 : f32 to vector<64x16xf32>
    %372 = arith.select %370, %368, %371 : vector<64x16xi1>, vector<64x16xf32>
    %373 = arith.maximumf %361, %372 : vector<64x16xf32>
    %c7_348 = arith.constant 7 : index
    %c0_349 = arith.constant 0 : index
    %c0_350 = arith.constant 0 : index
    %374 = vector.load %arg12[%c7_348, %c0_349, %c0_350] : memref<9x64x1xf32, #tpu.memory_space<vmem>>, vector<1x64x1xf32>
    %375 = vector.shape_cast %374 : vector<1x64x1xf32> to vector<64x1xf32>
    %cst_351 = arith.constant 5.000000e-01 : f32
    %376 = vector.broadcast %cst_351 : f32 to vector<64x1xf32>
    %377 = arith.cmpf ogt, %375, %376 : vector<64x1xf32>
    %c7_352 = arith.constant 7 : index
    %c0_353 = arith.constant 0 : index
    %c0_354 = arith.constant 0 : index
    %378 = vector.load %arg11[%c7_352, %c0_353, %c0_354] : memref<9x64x64xf32, #tpu.memory_space<vmem>>, vector<1x64x64xf32>
    %379 = vector.shape_cast %378 : vector<1x64x64xf32> to vector<64x64xf32>
    %cst_355 = arith.constant dense<0.000000e+00> : vector<64x16xf32>
    %380 = tpu.matmul %379, %17, %cst_355 {dimension_numbers = #tpu.dot_dimension_numbers<[1], [0], [0], [1], [0, 0, 1, 1], [], []>} : vector<64x64xf32>, vector<64x16xf32>, vector<64x16xf32> -> vector<64x16xf32>
    %cst_356 = arith.constant 0xFF800000 : f32
    %381 = vector.shape_cast %377 : vector<64x1xi1> to vector<64x1xi1>
    %382 = vector.broadcast %381 : vector<64x1xi1> to vector<64x16xi1>
    %383 = vector.broadcast %cst_356 : f32 to vector<64x16xf32>
    %384 = arith.select %382, %380, %383 : vector<64x16xi1>, vector<64x16xf32>
    %385 = arith.maximumf %373, %384 : vector<64x16xf32>
    %c8_357 = arith.constant 8 : index
    %c0_358 = arith.constant 0 : index
    %c0_359 = arith.constant 0 : index
    %386 = vector.load %arg12[%c8_357, %c0_358, %c0_359] : memref<9x64x1xf32, #tpu.memory_space<vmem>>, vector<1x64x1xf32>
    %387 = vector.shape_cast %386 : vector<1x64x1xf32> to vector<64x1xf32>
    %cst_360 = arith.constant 5.000000e-01 : f32
    %388 = vector.broadcast %cst_360 : f32 to vector<64x1xf32>
    %389 = arith.cmpf ogt, %387, %388 : vector<64x1xf32>
    %c8_361 = arith.constant 8 : index
    %c0_362 = arith.constant 0 : index
    %c0_363 = arith.constant 0 : index
    %390 = vector.load %arg11[%c8_361, %c0_362, %c0_363] : memref<9x64x64xf32, #tpu.memory_space<vmem>>, vector<1x64x64xf32>
    %391 = vector.shape_cast %390 : vector<1x64x64xf32> to vector<64x64xf32>
    %cst_364 = arith.constant dense<0.000000e+00> : vector<64x16xf32>
    %392 = tpu.matmul %391, %17, %cst_364 {dimension_numbers = #tpu.dot_dimension_numbers<[1], [0], [0], [1], [0, 0, 1, 1], [], []>} : vector<64x64xf32>, vector<64x16xf32>, vector<64x16xf32> -> vector<64x16xf32>
    %cst_365 = arith.constant 0xFF800000 : f32
    %393 = vector.shape_cast %389 : vector<64x1xi1> to vector<64x1xi1>
    %394 = vector.broadcast %393 : vector<64x1xi1> to vector<64x16xi1>
    %395 = vector.broadcast %cst_365 : f32 to vector<64x16xf32>
    %396 = arith.select %394, %392, %395 : vector<64x16xi1>, vector<64x16xf32>
    %397 = arith.maximumf %385, %396 : vector<64x16xf32>
    %c0_366 = arith.constant 0 : index
    %c0_367 = arith.constant 0 : index
    %c0_368 = arith.constant 0 : index
    %398 = vector.load %arg9[%c0_366, %c0_367, %c0_368] : memref<2x1x16xf32, #tpu.memory_space<vmem>>, vector<1x1x16xf32>
    %399 = vector.shape_cast %398 : vector<1x1x16xf32> to vector<1x16xf32>
    %400 = vector.broadcast %399 : vector<1x16xf32> to vector<64x16xf32>
    %401 = arith.mulf %397, %400 : vector<64x16xf32>
    %c0_369 = arith.constant 0 : index
    %c0_370 = arith.constant 0 : index
    %c0_371 = arith.constant 0 : index
    %402 = vector.load %arg10[%c0_369, %c0_370, %c0_371] : memref<2x1x16xf32, #tpu.memory_space<vmem>>, vector<1x1x16xf32>
    %403 = vector.shape_cast %402 : vector<1x1x16xf32> to vector<1x16xf32>
    %404 = vector.broadcast %403 : vector<1x16xf32> to vector<64x16xf32>
    %405 = arith.addf %401, %404 : vector<64x16xf32>
    %406 = arith.addf %290, %405 : vector<64x16xf32>
    %c0_372 = arith.constant 0 : index
    %c0_373 = arith.constant 0 : index
    %407 = vector.load %arg13[%c0_372, %c0_373] : memref<64x64xf32, #tpu.memory_space<vmem>>, vector<64x64xf32>
    %cst_374 = arith.constant dense<0.000000e+00> : vector<64x16xf32>
    %408 = tpu.matmul %407, %154, %cst_374 {dimension_numbers = #tpu.dot_dimension_numbers<[1], [0], [0], [1], [0, 0, 1, 1], [], []>} : vector<64x64xf32>, vector<64x16xf32>, vector<64x16xf32> -> vector<64x16xf32>
    %c1_375 = arith.constant 1 : index
    %c0_376 = arith.constant 0 : index
    %c0_377 = arith.constant 0 : index
    %409 = vector.load %arg9[%c1_375, %c0_376, %c0_377] : memref<2x1x16xf32, #tpu.memory_space<vmem>>, vector<1x1x16xf32>
    %410 = vector.shape_cast %409 : vector<1x1x16xf32> to vector<1x16xf32>
    %411 = vector.broadcast %410 : vector<1x16xf32> to vector<64x16xf32>
    %412 = arith.mulf %408, %411 : vector<64x16xf32>
    %c1_378 = arith.constant 1 : index
    %c0_379 = arith.constant 0 : index
    %c0_380 = arith.constant 0 : index
    %413 = vector.load %arg10[%c1_378, %c0_379, %c0_380] : memref<2x1x16xf32, #tpu.memory_space<vmem>>, vector<1x1x16xf32>
    %414 = vector.shape_cast %413 : vector<1x1x16xf32> to vector<1x16xf32>
    %415 = vector.broadcast %414 : vector<1x16xf32> to vector<64x16xf32>
    %416 = arith.addf %412, %415 : vector<64x16xf32>
    %417 = arith.addf %8, %416 : vector<64x16xf32>
    %cst_381 = arith.constant 0.000000e+00 : f32
    %418 = vector.broadcast %cst_381 : f32 to vector<64x16xf32>
    %419 = arith.maximumf %17, %418 : vector<64x16xf32>
    %c0_382 = arith.constant 0 : index
    %c0_383 = arith.constant 0 : index
    %c0_384 = arith.constant 0 : index
    %420 = vector.load %arg11[%c0_382, %c0_383, %c0_384] : memref<9x64x64xf32, #tpu.memory_space<vmem>>, vector<1x64x64xf32>
    %421 = vector.shape_cast %420 : vector<1x64x64xf32> to vector<64x64xf32>
    %cst_385 = arith.constant dense<0.000000e+00> : vector<64x16xf32>
    %422 = tpu.matmul %421, %419, %cst_385 {dimension_numbers = #tpu.dot_dimension_numbers<[1], [0], [0], [1], [0, 0, 1, 1], [], []>} : vector<64x64xf32>, vector<64x16xf32>, vector<64x16xf32> -> vector<64x16xf32>
    %c36 = arith.constant 36 : index
    %c0_386 = arith.constant 0 : index
    %c0_387 = arith.constant 0 : index
    %423 = vector.load %arg7[%c36, %c0_386, %c0_387] : memref<54x16x16xf32, #tpu.memory_space<vmem>>, vector<1x16x16xf32>
    %424 = vector.shape_cast %423 : vector<1x16x16xf32> to vector<16x16xf32>
    %cst_388 = arith.constant dense<0.000000e+00> : vector<64x16xf32>
    %425 = tpu.matmul %422, %424, %cst_388 {dimension_numbers = #tpu.dot_dimension_numbers<[1], [0], [0], [1], [0, 0, 1, 1], [], []>} : vector<64x16xf32>, vector<16x16xf32>, vector<64x16xf32> -> vector<64x16xf32>
    %c1_389 = arith.constant 1 : index
    %c0_390 = arith.constant 0 : index
    %c0_391 = arith.constant 0 : index
    %426 = vector.load %arg11[%c1_389, %c0_390, %c0_391] : memref<9x64x64xf32, #tpu.memory_space<vmem>>, vector<1x64x64xf32>
    %427 = vector.shape_cast %426 : vector<1x64x64xf32> to vector<64x64xf32>
    %cst_392 = arith.constant dense<0.000000e+00> : vector<64x16xf32>
    %428 = tpu.matmul %427, %419, %cst_392 {dimension_numbers = #tpu.dot_dimension_numbers<[1], [0], [0], [1], [0, 0, 1, 1], [], []>} : vector<64x64xf32>, vector<64x16xf32>, vector<64x16xf32> -> vector<64x16xf32>
    %c37 = arith.constant 37 : index
    %c0_393 = arith.constant 0 : index
    %c0_394 = arith.constant 0 : index
    %429 = vector.load %arg7[%c37, %c0_393, %c0_394] : memref<54x16x16xf32, #tpu.memory_space<vmem>>, vector<1x16x16xf32>
    %430 = vector.shape_cast %429 : vector<1x16x16xf32> to vector<16x16xf32>
    %cst_395 = arith.constant dense<0.000000e+00> : vector<64x16xf32>
    %431 = tpu.matmul %428, %430, %cst_395 {dimension_numbers = #tpu.dot_dimension_numbers<[1], [0], [0], [1], [0, 0, 1, 1], [], []>} : vector<64x16xf32>, vector<16x16xf32>, vector<64x16xf32> -> vector<64x16xf32>
    %432 = arith.addf %425, %431 : vector<64x16xf32>
    %c2_396 = arith.constant 2 : index
    %c0_397 = arith.constant 0 : index
    %c0_398 = arith.constant 0 : index
    %433 = vector.load %arg11[%c2_396, %c0_397, %c0_398] : memref<9x64x64xf32, #tpu.memory_space<vmem>>, vector<1x64x64xf32>
    %434 = vector.shape_cast %433 : vector<1x64x64xf32> to vector<64x64xf32>
    %cst_399 = arith.constant dense<0.000000e+00> : vector<64x16xf32>
    %435 = tpu.matmul %434, %419, %cst_399 {dimension_numbers = #tpu.dot_dimension_numbers<[1], [0], [0], [1], [0, 0, 1, 1], [], []>} : vector<64x64xf32>, vector<64x16xf32>, vector<64x16xf32> -> vector<64x16xf32>
    %c38 = arith.constant 38 : index
    %c0_400 = arith.constant 0 : index
    %c0_401 = arith.constant 0 : index
    %436 = vector.load %arg7[%c38, %c0_400, %c0_401] : memref<54x16x16xf32, #tpu.memory_space<vmem>>, vector<1x16x16xf32>
    %437 = vector.shape_cast %436 : vector<1x16x16xf32> to vector<16x16xf32>
    %cst_402 = arith.constant dense<0.000000e+00> : vector<64x16xf32>
    %438 = tpu.matmul %435, %437, %cst_402 {dimension_numbers = #tpu.dot_dimension_numbers<[1], [0], [0], [1], [0, 0, 1, 1], [], []>} : vector<64x16xf32>, vector<16x16xf32>, vector<64x16xf32> -> vector<64x16xf32>
    %439 = arith.addf %432, %438 : vector<64x16xf32>
    %c3_403 = arith.constant 3 : index
    %c0_404 = arith.constant 0 : index
    %c0_405 = arith.constant 0 : index
    %440 = vector.load %arg11[%c3_403, %c0_404, %c0_405] : memref<9x64x64xf32, #tpu.memory_space<vmem>>, vector<1x64x64xf32>
    %441 = vector.shape_cast %440 : vector<1x64x64xf32> to vector<64x64xf32>
    %cst_406 = arith.constant dense<0.000000e+00> : vector<64x16xf32>
    %442 = tpu.matmul %441, %419, %cst_406 {dimension_numbers = #tpu.dot_dimension_numbers<[1], [0], [0], [1], [0, 0, 1, 1], [], []>} : vector<64x64xf32>, vector<64x16xf32>, vector<64x16xf32> -> vector<64x16xf32>
    %c39 = arith.constant 39 : index
    %c0_407 = arith.constant 0 : index
    %c0_408 = arith.constant 0 : index
    %443 = vector.load %arg7[%c39, %c0_407, %c0_408] : memref<54x16x16xf32, #tpu.memory_space<vmem>>, vector<1x16x16xf32>
    %444 = vector.shape_cast %443 : vector<1x16x16xf32> to vector<16x16xf32>
    %cst_409 = arith.constant dense<0.000000e+00> : vector<64x16xf32>
    %445 = tpu.matmul %442, %444, %cst_409 {dimension_numbers = #tpu.dot_dimension_numbers<[1], [0], [0], [1], [0, 0, 1, 1], [], []>} : vector<64x16xf32>, vector<16x16xf32>, vector<64x16xf32> -> vector<64x16xf32>
    %446 = arith.addf %439, %445 : vector<64x16xf32>
    %c4_410 = arith.constant 4 : index
    %c0_411 = arith.constant 0 : index
    %c0_412 = arith.constant 0 : index
    %447 = vector.load %arg11[%c4_410, %c0_411, %c0_412] : memref<9x64x64xf32, #tpu.memory_space<vmem>>, vector<1x64x64xf32>
    %448 = vector.shape_cast %447 : vector<1x64x64xf32> to vector<64x64xf32>
    %cst_413 = arith.constant dense<0.000000e+00> : vector<64x16xf32>
    %449 = tpu.matmul %448, %419, %cst_413 {dimension_numbers = #tpu.dot_dimension_numbers<[1], [0], [0], [1], [0, 0, 1, 1], [], []>} : vector<64x64xf32>, vector<64x16xf32>, vector<64x16xf32> -> vector<64x16xf32>
    %c40 = arith.constant 40 : index
    %c0_414 = arith.constant 0 : index
    %c0_415 = arith.constant 0 : index
    %450 = vector.load %arg7[%c40, %c0_414, %c0_415] : memref<54x16x16xf32, #tpu.memory_space<vmem>>, vector<1x16x16xf32>
    %451 = vector.shape_cast %450 : vector<1x16x16xf32> to vector<16x16xf32>
    %cst_416 = arith.constant dense<0.000000e+00> : vector<64x16xf32>
    %452 = tpu.matmul %449, %451, %cst_416 {dimension_numbers = #tpu.dot_dimension_numbers<[1], [0], [0], [1], [0, 0, 1, 1], [], []>} : vector<64x16xf32>, vector<16x16xf32>, vector<64x16xf32> -> vector<64x16xf32>
    %453 = arith.addf %446, %452 : vector<64x16xf32>
    %c5_417 = arith.constant 5 : index
    %c0_418 = arith.constant 0 : index
    %c0_419 = arith.constant 0 : index
    %454 = vector.load %arg11[%c5_417, %c0_418, %c0_419] : memref<9x64x64xf32, #tpu.memory_space<vmem>>, vector<1x64x64xf32>
    %455 = vector.shape_cast %454 : vector<1x64x64xf32> to vector<64x64xf32>
    %cst_420 = arith.constant dense<0.000000e+00> : vector<64x16xf32>
    %456 = tpu.matmul %455, %419, %cst_420 {dimension_numbers = #tpu.dot_dimension_numbers<[1], [0], [0], [1], [0, 0, 1, 1], [], []>} : vector<64x64xf32>, vector<64x16xf32>, vector<64x16xf32> -> vector<64x16xf32>
    %c41 = arith.constant 41 : index
    %c0_421 = arith.constant 0 : index
    %c0_422 = arith.constant 0 : index
    %457 = vector.load %arg7[%c41, %c0_421, %c0_422] : memref<54x16x16xf32, #tpu.memory_space<vmem>>, vector<1x16x16xf32>
    %458 = vector.shape_cast %457 : vector<1x16x16xf32> to vector<16x16xf32>
    %cst_423 = arith.constant dense<0.000000e+00> : vector<64x16xf32>
    %459 = tpu.matmul %456, %458, %cst_423 {dimension_numbers = #tpu.dot_dimension_numbers<[1], [0], [0], [1], [0, 0, 1, 1], [], []>} : vector<64x16xf32>, vector<16x16xf32>, vector<64x16xf32> -> vector<64x16xf32>
    %460 = arith.addf %453, %459 : vector<64x16xf32>
    %c6_424 = arith.constant 6 : index
    %c0_425 = arith.constant 0 : index
    %c0_426 = arith.constant 0 : index
    %461 = vector.load %arg11[%c6_424, %c0_425, %c0_426] : memref<9x64x64xf32, #tpu.memory_space<vmem>>, vector<1x64x64xf32>
    %462 = vector.shape_cast %461 : vector<1x64x64xf32> to vector<64x64xf32>
    %cst_427 = arith.constant dense<0.000000e+00> : vector<64x16xf32>
    %463 = tpu.matmul %462, %419, %cst_427 {dimension_numbers = #tpu.dot_dimension_numbers<[1], [0], [0], [1], [0, 0, 1, 1], [], []>} : vector<64x64xf32>, vector<64x16xf32>, vector<64x16xf32> -> vector<64x16xf32>
    %c42 = arith.constant 42 : index
    %c0_428 = arith.constant 0 : index
    %c0_429 = arith.constant 0 : index
    %464 = vector.load %arg7[%c42, %c0_428, %c0_429] : memref<54x16x16xf32, #tpu.memory_space<vmem>>, vector<1x16x16xf32>
    %465 = vector.shape_cast %464 : vector<1x16x16xf32> to vector<16x16xf32>
    %cst_430 = arith.constant dense<0.000000e+00> : vector<64x16xf32>
    %466 = tpu.matmul %463, %465, %cst_430 {dimension_numbers = #tpu.dot_dimension_numbers<[1], [0], [0], [1], [0, 0, 1, 1], [], []>} : vector<64x16xf32>, vector<16x16xf32>, vector<64x16xf32> -> vector<64x16xf32>
    %467 = arith.addf %460, %466 : vector<64x16xf32>
    %c7_431 = arith.constant 7 : index
    %c0_432 = arith.constant 0 : index
    %c0_433 = arith.constant 0 : index
    %468 = vector.load %arg11[%c7_431, %c0_432, %c0_433] : memref<9x64x64xf32, #tpu.memory_space<vmem>>, vector<1x64x64xf32>
    %469 = vector.shape_cast %468 : vector<1x64x64xf32> to vector<64x64xf32>
    %cst_434 = arith.constant dense<0.000000e+00> : vector<64x16xf32>
    %470 = tpu.matmul %469, %419, %cst_434 {dimension_numbers = #tpu.dot_dimension_numbers<[1], [0], [0], [1], [0, 0, 1, 1], [], []>} : vector<64x64xf32>, vector<64x16xf32>, vector<64x16xf32> -> vector<64x16xf32>
    %c43 = arith.constant 43 : index
    %c0_435 = arith.constant 0 : index
    %c0_436 = arith.constant 0 : index
    %471 = vector.load %arg7[%c43, %c0_435, %c0_436] : memref<54x16x16xf32, #tpu.memory_space<vmem>>, vector<1x16x16xf32>
    %472 = vector.shape_cast %471 : vector<1x16x16xf32> to vector<16x16xf32>
    %cst_437 = arith.constant dense<0.000000e+00> : vector<64x16xf32>
    %473 = tpu.matmul %470, %472, %cst_437 {dimension_numbers = #tpu.dot_dimension_numbers<[1], [0], [0], [1], [0, 0, 1, 1], [], []>} : vector<64x16xf32>, vector<16x16xf32>, vector<64x16xf32> -> vector<64x16xf32>
    %474 = arith.addf %467, %473 : vector<64x16xf32>
    %c8_438 = arith.constant 8 : index
    %c0_439 = arith.constant 0 : index
    %c0_440 = arith.constant 0 : index
    %475 = vector.load %arg11[%c8_438, %c0_439, %c0_440] : memref<9x64x64xf32, #tpu.memory_space<vmem>>, vector<1x64x64xf32>
    %476 = vector.shape_cast %475 : vector<1x64x64xf32> to vector<64x64xf32>
    %cst_441 = arith.constant dense<0.000000e+00> : vector<64x16xf32>
    %477 = tpu.matmul %476, %419, %cst_441 {dimension_numbers = #tpu.dot_dimension_numbers<[1], [0], [0], [1], [0, 0, 1, 1], [], []>} : vector<64x64xf32>, vector<64x16xf32>, vector<64x16xf32> -> vector<64x16xf32>
    %c44 = arith.constant 44 : index
    %c0_442 = arith.constant 0 : index
    %c0_443 = arith.constant 0 : index
    %478 = vector.load %arg7[%c44, %c0_442, %c0_443] : memref<54x16x16xf32, #tpu.memory_space<vmem>>, vector<1x16x16xf32>
    %479 = vector.shape_cast %478 : vector<1x16x16xf32> to vector<16x16xf32>
    %cst_444 = arith.constant dense<0.000000e+00> : vector<64x16xf32>
    %480 = tpu.matmul %477, %479, %cst_444 {dimension_numbers = #tpu.dot_dimension_numbers<[1], [0], [0], [1], [0, 0, 1, 1], [], []>} : vector<64x16xf32>, vector<16x16xf32>, vector<64x16xf32> -> vector<64x16xf32>
    %481 = arith.addf %474, %480 : vector<64x16xf32>
    %c4_445 = arith.constant 4 : index
    %c0_446 = arith.constant 0 : index
    %c0_447 = arith.constant 0 : index
    %482 = vector.load %arg8[%c4_445, %c0_446, %c0_447] : memref<6x1x16xf32, #tpu.memory_space<vmem>>, vector<1x1x16xf32>
    %483 = vector.shape_cast %482 : vector<1x1x16xf32> to vector<1x16xf32>
    %484 = vector.broadcast %483 : vector<1x16xf32> to vector<64x16xf32>
    %485 = arith.addf %481, %484 : vector<64x16xf32>
    %cst_448 = arith.constant 0.000000e+00 : f32
    %486 = vector.broadcast %cst_448 : f32 to vector<64x16xf32>
    %487 = arith.maximumf %485, %486 : vector<64x16xf32>
    %c0_449 = arith.constant 0 : index
    %c0_450 = arith.constant 0 : index
    %c0_451 = arith.constant 0 : index
    %488 = vector.load %arg11[%c0_449, %c0_450, %c0_451] : memref<9x64x64xf32, #tpu.memory_space<vmem>>, vector<1x64x64xf32>
    %489 = vector.shape_cast %488 : vector<1x64x64xf32> to vector<64x64xf32>
    %cst_452 = arith.constant dense<0.000000e+00> : vector<64x16xf32>
    %490 = tpu.matmul %489, %487, %cst_452 {dimension_numbers = #tpu.dot_dimension_numbers<[1], [0], [0], [1], [0, 0, 1, 1], [], []>} : vector<64x64xf32>, vector<64x16xf32>, vector<64x16xf32> -> vector<64x16xf32>
    %c45 = arith.constant 45 : index
    %c0_453 = arith.constant 0 : index
    %c0_454 = arith.constant 0 : index
    %491 = vector.load %arg7[%c45, %c0_453, %c0_454] : memref<54x16x16xf32, #tpu.memory_space<vmem>>, vector<1x16x16xf32>
    %492 = vector.shape_cast %491 : vector<1x16x16xf32> to vector<16x16xf32>
    %cst_455 = arith.constant dense<0.000000e+00> : vector<64x16xf32>
    %493 = tpu.matmul %490, %492, %cst_455 {dimension_numbers = #tpu.dot_dimension_numbers<[1], [0], [0], [1], [0, 0, 1, 1], [], []>} : vector<64x16xf32>, vector<16x16xf32>, vector<64x16xf32> -> vector<64x16xf32>
    %c1_456 = arith.constant 1 : index
    %c0_457 = arith.constant 0 : index
    %c0_458 = arith.constant 0 : index
    %494 = vector.load %arg11[%c1_456, %c0_457, %c0_458] : memref<9x64x64xf32, #tpu.memory_space<vmem>>, vector<1x64x64xf32>
    %495 = vector.shape_cast %494 : vector<1x64x64xf32> to vector<64x64xf32>
    %cst_459 = arith.constant dense<0.000000e+00> : vector<64x16xf32>
    %496 = tpu.matmul %495, %487, %cst_459 {dimension_numbers = #tpu.dot_dimension_numbers<[1], [0], [0], [1], [0, 0, 1, 1], [], []>} : vector<64x64xf32>, vector<64x16xf32>, vector<64x16xf32> -> vector<64x16xf32>
    %c46 = arith.constant 46 : index
    %c0_460 = arith.constant 0 : index
    %c0_461 = arith.constant 0 : index
    %497 = vector.load %arg7[%c46, %c0_460, %c0_461] : memref<54x16x16xf32, #tpu.memory_space<vmem>>, vector<1x16x16xf32>
    %498 = vector.shape_cast %497 : vector<1x16x16xf32> to vector<16x16xf32>
    %cst_462 = arith.constant dense<0.000000e+00> : vector<64x16xf32>
    %499 = tpu.matmul %496, %498, %cst_462 {dimension_numbers = #tpu.dot_dimension_numbers<[1], [0], [0], [1], [0, 0, 1, 1], [], []>} : vector<64x16xf32>, vector<16x16xf32>, vector<64x16xf32> -> vector<64x16xf32>
    %500 = arith.addf %493, %499 : vector<64x16xf32>
    %c2_463 = arith.constant 2 : index
    %c0_464 = arith.constant 0 : index
    %c0_465 = arith.constant 0 : index
    %501 = vector.load %arg11[%c2_463, %c0_464, %c0_465] : memref<9x64x64xf32, #tpu.memory_space<vmem>>, vector<1x64x64xf32>
    %502 = vector.shape_cast %501 : vector<1x64x64xf32> to vector<64x64xf32>
    %cst_466 = arith.constant dense<0.000000e+00> : vector<64x16xf32>
    %503 = tpu.matmul %502, %487, %cst_466 {dimension_numbers = #tpu.dot_dimension_numbers<[1], [0], [0], [1], [0, 0, 1, 1], [], []>} : vector<64x64xf32>, vector<64x16xf32>, vector<64x16xf32> -> vector<64x16xf32>
    %c47 = arith.constant 47 : index
    %c0_467 = arith.constant 0 : index
    %c0_468 = arith.constant 0 : index
    %504 = vector.load %arg7[%c47, %c0_467, %c0_468] : memref<54x16x16xf32, #tpu.memory_space<vmem>>, vector<1x16x16xf32>
    %505 = vector.shape_cast %504 : vector<1x16x16xf32> to vector<16x16xf32>
    %cst_469 = arith.constant dense<0.000000e+00> : vector<64x16xf32>
    %506 = tpu.matmul %503, %505, %cst_469 {dimension_numbers = #tpu.dot_dimension_numbers<[1], [0], [0], [1], [0, 0, 1, 1], [], []>} : vector<64x16xf32>, vector<16x16xf32>, vector<64x16xf32> -> vector<64x16xf32>
    %507 = arith.addf %500, %506 : vector<64x16xf32>
    %c3_470 = arith.constant 3 : index
    %c0_471 = arith.constant 0 : index
    %c0_472 = arith.constant 0 : index
    %508 = vector.load %arg11[%c3_470, %c0_471, %c0_472] : memref<9x64x64xf32, #tpu.memory_space<vmem>>, vector<1x64x64xf32>
    %509 = vector.shape_cast %508 : vector<1x64x64xf32> to vector<64x64xf32>
    %cst_473 = arith.constant dense<0.000000e+00> : vector<64x16xf32>
    %510 = tpu.matmul %509, %487, %cst_473 {dimension_numbers = #tpu.dot_dimension_numbers<[1], [0], [0], [1], [0, 0, 1, 1], [], []>} : vector<64x64xf32>, vector<64x16xf32>, vector<64x16xf32> -> vector<64x16xf32>
    %c48 = arith.constant 48 : index
    %c0_474 = arith.constant 0 : index
    %c0_475 = arith.constant 0 : index
    %511 = vector.load %arg7[%c48, %c0_474, %c0_475] : memref<54x16x16xf32, #tpu.memory_space<vmem>>, vector<1x16x16xf32>
    %512 = vector.shape_cast %511 : vector<1x16x16xf32> to vector<16x16xf32>
    %cst_476 = arith.constant dense<0.000000e+00> : vector<64x16xf32>
    %513 = tpu.matmul %510, %512, %cst_476 {dimension_numbers = #tpu.dot_dimension_numbers<[1], [0], [0], [1], [0, 0, 1, 1], [], []>} : vector<64x16xf32>, vector<16x16xf32>, vector<64x16xf32> -> vector<64x16xf32>
    %514 = arith.addf %507, %513 : vector<64x16xf32>
    %c4_477 = arith.constant 4 : index
    %c0_478 = arith.constant 0 : index
    %c0_479 = arith.constant 0 : index
    %515 = vector.load %arg11[%c4_477, %c0_478, %c0_479] : memref<9x64x64xf32, #tpu.memory_space<vmem>>, vector<1x64x64xf32>
    %516 = vector.shape_cast %515 : vector<1x64x64xf32> to vector<64x64xf32>
    %cst_480 = arith.constant dense<0.000000e+00> : vector<64x16xf32>
    %517 = tpu.matmul %516, %487, %cst_480 {dimension_numbers = #tpu.dot_dimension_numbers<[1], [0], [0], [1], [0, 0, 1, 1], [], []>} : vector<64x64xf32>, vector<64x16xf32>, vector<64x16xf32> -> vector<64x16xf32>
    %c49 = arith.constant 49 : index
    %c0_481 = arith.constant 0 : index
    %c0_482 = arith.constant 0 : index
    %518 = vector.load %arg7[%c49, %c0_481, %c0_482] : memref<54x16x16xf32, #tpu.memory_space<vmem>>, vector<1x16x16xf32>
    %519 = vector.shape_cast %518 : vector<1x16x16xf32> to vector<16x16xf32>
    %cst_483 = arith.constant dense<0.000000e+00> : vector<64x16xf32>
    %520 = tpu.matmul %517, %519, %cst_483 {dimension_numbers = #tpu.dot_dimension_numbers<[1], [0], [0], [1], [0, 0, 1, 1], [], []>} : vector<64x16xf32>, vector<16x16xf32>, vector<64x16xf32> -> vector<64x16xf32>
    %521 = arith.addf %514, %520 : vector<64x16xf32>
    %c5_484 = arith.constant 5 : index
    %c0_485 = arith.constant 0 : index
    %c0_486 = arith.constant 0 : index
    %522 = vector.load %arg11[%c5_484, %c0_485, %c0_486] : memref<9x64x64xf32, #tpu.memory_space<vmem>>, vector<1x64x64xf32>
    %523 = vector.shape_cast %522 : vector<1x64x64xf32> to vector<64x64xf32>
    %cst_487 = arith.constant dense<0.000000e+00> : vector<64x16xf32>
    %524 = tpu.matmul %523, %487, %cst_487 {dimension_numbers = #tpu.dot_dimension_numbers<[1], [0], [0], [1], [0, 0, 1, 1], [], []>} : vector<64x64xf32>, vector<64x16xf32>, vector<64x16xf32> -> vector<64x16xf32>
    %c50 = arith.constant 50 : index
    %c0_488 = arith.constant 0 : index
    %c0_489 = arith.constant 0 : index
    %525 = vector.load %arg7[%c50, %c0_488, %c0_489] : memref<54x16x16xf32, #tpu.memory_space<vmem>>, vector<1x16x16xf32>
    %526 = vector.shape_cast %525 : vector<1x16x16xf32> to vector<16x16xf32>
    %cst_490 = arith.constant dense<0.000000e+00> : vector<64x16xf32>
    %527 = tpu.matmul %524, %526, %cst_490 {dimension_numbers = #tpu.dot_dimension_numbers<[1], [0], [0], [1], [0, 0, 1, 1], [], []>} : vector<64x16xf32>, vector<16x16xf32>, vector<64x16xf32> -> vector<64x16xf32>
    %528 = arith.addf %521, %527 : vector<64x16xf32>
    %c6_491 = arith.constant 6 : index
    %c0_492 = arith.constant 0 : index
    %c0_493 = arith.constant 0 : index
    %529 = vector.load %arg11[%c6_491, %c0_492, %c0_493] : memref<9x64x64xf32, #tpu.memory_space<vmem>>, vector<1x64x64xf32>
    %530 = vector.shape_cast %529 : vector<1x64x64xf32> to vector<64x64xf32>
    %cst_494 = arith.constant dense<0.000000e+00> : vector<64x16xf32>
    %531 = tpu.matmul %530, %487, %cst_494 {dimension_numbers = #tpu.dot_dimension_numbers<[1], [0], [0], [1], [0, 0, 1, 1], [], []>} : vector<64x64xf32>, vector<64x16xf32>, vector<64x16xf32> -> vector<64x16xf32>
    %c51 = arith.constant 51 : index
    %c0_495 = arith.constant 0 : index
    %c0_496 = arith.constant 0 : index
    %532 = vector.load %arg7[%c51, %c0_495, %c0_496] : memref<54x16x16xf32, #tpu.memory_space<vmem>>, vector<1x16x16xf32>
    %533 = vector.shape_cast %532 : vector<1x16x16xf32> to vector<16x16xf32>
    %cst_497 = arith.constant dense<0.000000e+00> : vector<64x16xf32>
    %534 = tpu.matmul %531, %533, %cst_497 {dimension_numbers = #tpu.dot_dimension_numbers<[1], [0], [0], [1], [0, 0, 1, 1], [], []>} : vector<64x16xf32>, vector<16x16xf32>, vector<64x16xf32> -> vector<64x16xf32>
    %535 = arith.addf %528, %534 : vector<64x16xf32>
    %c7_498 = arith.constant 7 : index
    %c0_499 = arith.constant 0 : index
    %c0_500 = arith.constant 0 : index
    %536 = vector.load %arg11[%c7_498, %c0_499, %c0_500] : memref<9x64x64xf32, #tpu.memory_space<vmem>>, vector<1x64x64xf32>
    %537 = vector.shape_cast %536 : vector<1x64x64xf32> to vector<64x64xf32>
    %cst_501 = arith.constant dense<0.000000e+00> : vector<64x16xf32>
    %538 = tpu.matmul %537, %487, %cst_501 {dimension_numbers = #tpu.dot_dimension_numbers<[1], [0], [0], [1], [0, 0, 1, 1], [], []>} : vector<64x64xf32>, vector<64x16xf32>, vector<64x16xf32> -> vector<64x16xf32>
    %c52 = arith.constant 52 : index
    %c0_502 = arith.constant 0 : index
    %c0_503 = arith.constant 0 : index
    %539 = vector.load %arg7[%c52, %c0_502, %c0_503] : memref<54x16x16xf32, #tpu.memory_space<vmem>>, vector<1x16x16xf32>
    %540 = vector.shape_cast %539 : vector<1x16x16xf32> to vector<16x16xf32>
    %cst_504 = arith.constant dense<0.000000e+00> : vector<64x16xf32>
    %541 = tpu.matmul %538, %540, %cst_504 {dimension_numbers = #tpu.dot_dimension_numbers<[1], [0], [0], [1], [0, 0, 1, 1], [], []>} : vector<64x16xf32>, vector<16x16xf32>, vector<64x16xf32> -> vector<64x16xf32>
    %542 = arith.addf %535, %541 : vector<64x16xf32>
    %c8_505 = arith.constant 8 : index
    %c0_506 = arith.constant 0 : index
    %c0_507 = arith.constant 0 : index
    %543 = vector.load %arg11[%c8_505, %c0_506, %c0_507] : memref<9x64x64xf32, #tpu.memory_space<vmem>>, vector<1x64x64xf32>
    %544 = vector.shape_cast %543 : vector<1x64x64xf32> to vector<64x64xf32>
    %cst_508 = arith.constant dense<0.000000e+00> : vector<64x16xf32>
    %545 = tpu.matmul %544, %487, %cst_508 {dimension_numbers = #tpu.dot_dimension_numbers<[1], [0], [0], [1], [0, 0, 1, 1], [], []>} : vector<64x64xf32>, vector<64x16xf32>, vector<64x16xf32> -> vector<64x16xf32>
    %c53 = arith.constant 53 : index
    %c0_509 = arith.constant 0 : index
    %c0_510 = arith.constant 0 : index
    %546 = vector.load %arg7[%c53, %c0_509, %c0_510] : memref<54x16x16xf32, #tpu.memory_space<vmem>>, vector<1x16x16xf32>
    %547 = vector.shape_cast %546 : vector<1x16x16xf32> to vector<16x16xf32>
    %cst_511 = arith.constant dense<0.000000e+00> : vector<64x16xf32>
    %548 = tpu.matmul %545, %547, %cst_511 {dimension_numbers = #tpu.dot_dimension_numbers<[1], [0], [0], [1], [0, 0, 1, 1], [], []>} : vector<64x16xf32>, vector<16x16xf32>, vector<64x16xf32> -> vector<64x16xf32>
    %549 = arith.addf %542, %548 : vector<64x16xf32>
    %c5_512 = arith.constant 5 : index
    %c0_513 = arith.constant 0 : index
    %c0_514 = arith.constant 0 : index
    %550 = vector.load %arg8[%c5_512, %c0_513, %c0_514] : memref<6x1x16xf32, #tpu.memory_space<vmem>>, vector<1x1x16xf32>
    %551 = vector.shape_cast %550 : vector<1x1x16xf32> to vector<1x16xf32>
    %552 = vector.broadcast %551 : vector<1x16xf32> to vector<64x16xf32>
    %553 = arith.addf %549, %552 : vector<64x16xf32>
    %554 = arith.addf %553, %154 : vector<64x16xf32>
    %555 = tpu.concatenate %154, %406, %417, %554 in 1 : vector<64x16xf32>, vector<64x16xf32>, vector<64x16xf32>, vector<64x16xf32> -> vector<64x64xf32>
    %c0_515 = arith.constant 0 : index
    %c0_516 = arith.constant 0 : index
    %c0_517 = arith.constant 0 : index
    %556 = vector.load %arg14[%c0_515, %c0_516, %c0_517] : memref<1x64x64xf32, #tpu.memory_space<vmem>>, vector<1x64x64xf32>
    %557 = vector.shape_cast %556 : vector<1x64x64xf32> to vector<64x64xf32>
    %558 = vector.shape_cast %555 : vector<64x64xf32> to vector<1x64x64xf32>
    tpu.vector_store %arg14[%c0_515, %c0_516, %c0_517], %558 {strides = array<i32>} : memref<1x64x64xf32, #tpu.memory_space<vmem>>, vector<1x64x64xf32>,
    return
  }
  func.func @transform_0(%arg0: i32) -> (i32, i32, i32) {
    %c0_i32 = arith.constant 0 : i32
    %c0_i32_0 = arith.constant 0 : i32
    %c0_i32_1 = arith.constant 0 : i32
    return %arg0, %c0_i32, %c0_i32_0 : i32, i32, i32
  }
  func.func @transform_1(%arg0: i32) -> (i32, i32, i32) {
    %c0_i32 = arith.constant 0 : i32
    %c0_i32_0 = arith.constant 0 : i32
    %c0_i32_1 = arith.constant 0 : i32
    return %arg0, %c0_i32, %c0_i32_0 : i32, i32, i32
  }
  func.func @transform_2(%arg0: i32) -> (i32, i32) {
    %c0_i32 = arith.constant 0 : i32
    %c0_i32_0 = arith.constant 0 : i32
    %c0_i32_1 = arith.constant 0 : i32
    return %c0_i32, %c0_i32_0 : i32, i32
  }
  func.func @transform_3(%arg0: i32) -> (i32, i32) {
    %c0_i32 = arith.constant 0 : i32
    %c0_i32_0 = arith.constant 0 : i32
    %c0_i32_1 = arith.constant 0 : i32
    return %c0_i32, %c0_i32_0 : i32, i32
  }
  func.func @transform_4(%arg0: i32) -> (i32, i32) {
    %c0_i32 = arith.constant 0 : i32
    %c0_i32_0 = arith.constant 0 : i32
    %c0_i32_1 = arith.constant 0 : i32
    return %c0_i32, %c0_i32_0 : i32, i32
  }
  func.func @transform_5(%arg0: i32) -> (i32, i32) {
    %c0_i32 = arith.constant 0 : i32
    %c0_i32_0 = arith.constant 0 : i32
    %c0_i32_1 = arith.constant 0 : i32
    return %c0_i32, %c0_i32_0 : i32, i32
  }
  func.func @transform_6(%arg0: i32) -> (i32, i32, i32) {
    %c0_i32 = arith.constant 0 : i32
    %c0_i32_0 = arith.constant 0 : i32
    %c0_i32_1 = arith.constant 0 : i32
    %c0_i32_2 = arith.constant 0 : i32
    return %c0_i32, %c0_i32_0, %c0_i32_1 : i32, i32, i32
  }
  func.func @transform_7(%arg0: i32) -> (i32, i32, i32) {
    %c0_i32 = arith.constant 0 : i32
    %c0_i32_0 = arith.constant 0 : i32
    %c0_i32_1 = arith.constant 0 : i32
    %c0_i32_2 = arith.constant 0 : i32
    return %c0_i32, %c0_i32_0, %c0_i32_1 : i32, i32, i32
  }
  func.func @transform_8(%arg0: i32) -> (i32, i32, i32) {
    %c0_i32 = arith.constant 0 : i32
    %c0_i32_0 = arith.constant 0 : i32
    %c0_i32_1 = arith.constant 0 : i32
    %c0_i32_2 = arith.constant 0 : i32
    return %c0_i32, %c0_i32_0, %c0_i32_1 : i32, i32, i32
  }
  func.func @transform_9(%arg0: i32) -> (i32, i32, i32) {
    %c0_i32 = arith.constant 0 : i32
    %c0_i32_0 = arith.constant 0 : i32
    %c0_i32_1 = arith.constant 0 : i32
    %c0_i32_2 = arith.constant 0 : i32
    return %c0_i32, %c0_i32_0, %c0_i32_1 : i32, i32, i32
  }
  func.func @transform_10(%arg0: i32) -> (i32, i32, i32) {
    %c0_i32 = arith.constant 0 : i32
    %c0_i32_0 = arith.constant 0 : i32
    %c0_i32_1 = arith.constant 0 : i32
    %c0_i32_2 = arith.constant 0 : i32
    return %c0_i32, %c0_i32_0, %c0_i32_1 : i32, i32, i32
  }
  func.func @transform_11(%arg0: i32) -> (i32, i32, i32) {
    %c0_i32 = arith.constant 0 : i32
    %c0_i32_0 = arith.constant 0 : i32
    %c0_i32_1 = arith.constant 0 : i32
    %c0_i32_2 = arith.constant 0 : i32
    return %c0_i32, %c0_i32_0, %c0_i32_1 : i32, i32, i32
  }
  func.func @transform_12(%arg0: i32) -> (i32, i32) {
    %c0_i32 = arith.constant 0 : i32
    %c0_i32_0 = arith.constant 0 : i32
    %c0_i32_1 = arith.constant 0 : i32
    return %c0_i32, %c0_i32_0 : i32, i32
  }
  func.func @transform_13(%arg0: i32) -> (i32, i32, i32) {
    %c0_i32 = arith.constant 0 : i32
    %c0_i32_0 = arith.constant 0 : i32
    %c0_i32_1 = arith.constant 0 : i32
    return %arg0, %c0_i32, %c0_i32_0 : i32, i32, i32
  }
}

</mosaic_0001>

<bundles_post_ra>
// kernel: _forward_impl.1
= control target key start
LH: loop header
LB: loop body
LE: loop exit
PB: predicated region body
PF: predicated region fallthrough
CT: control target
= control target key end

     0   :  { %s25962_s0 = inlined_call_operand.hbm [shape: f32[2,64,16], index: 0, kind: input, shape index: {}]   ;;  %s25963_s1 = inlined_call_operand.hbm [shape: f32[2,64,16], index: 1, kind: input, shape index: {}]   ;;  %s25964_s2 = inlined_call_operand.hbm [shape: f32[16,16], index: 2, kind: input, shape index: {}]   ;;  %s25965_s3 = inlined_call_operand.vmem [shape: f32[1,16], index: 3, kind: input, shape index: {}]   ;;  %s25966_s4 = inlined_call_operand.vmem [shape: f32[16,16], index: 4, kind: input, shape index: {}]   ;;  %s25967_s5 = inlined_call_operand.vmem [shape: f32[1,16], index: 5, kind: input, shape index: {}]   ;;  %s25968_s6 = inlined_call_operand.hbm [shape: f32[54,16,16], index: 6, kind: input, shape index: {}]   ;;  %s25969_s7 = inlined_call_operand.vmem [shape: f32[6,1,16], index: 7, kind: input, shape index: {}]   ;;  %s25970_s8 = inlined_call_operand.vmem [shape: f32[2,1,16], index: 8, kind: input, shape index: {}]   ;;  %s25971_s9 = inlined_call_operand.vmem [shape: f32[2,1,16], index: 9, kind: input, shape index: {}]   ;;  %s25972_s10 = inlined_call_operand.hbm [shape: f32[9,64,64], index: 10, kind: input, shape index: {}]   ;;  %s25973_s11 = inlined_call_operand.hbm [shape: f32[9,64,1], index: 11, kind: input, shape index: {}]   ;;  %s25974_s12 = inlined_call_operand.hbm [shape: f32[64,64], index: 12, kind: input, shape index: {}]   ;;  %s25975_s13 = inlined_call_operand.hbm [shape: f32[2,64,64], index: 13, kind: output, shape index: {}]  }
   0x1   :  { %26125 = sst [smem:[#allocation131_spill]] %s25962_s0 }
   0x2   :  { %26126 = sst [smem:[#allocation132_spill]] %s25964_s2 }
   0x3   :  { %26127 = sst [smem:[#allocation133_spill]] %s25967_s5 }
   0x4   :  { %26128 = sst [smem:[#allocation134_spill]] %s25968_s6 }
   0x5   :  { %26129 = sst [smem:[#allocation135_spill]] %s25969_s7 }
   0x6   :  { %26130 = sst [smem:[#allocation136_spill]] %s25970_s8 }
   0x7   :  { %26131 = sst [smem:[#allocation137_spill]] %s25971_s9 }
   0x8   :  { %26132 = sst [smem:[#allocation138_spill]] %s25972_s10 }
   0x9   :  { %26133 = sst [smem:[#allocation139_spill]] %s25973_s11 }
   0xa   :  { %26134 = sst [smem:[#allocation140_spill]] %s25974_s12 }
   0xb   :  { %26135 = sst [smem:[#allocation141_spill]] %s25975_s13 }
   0xc   :  { %18 = vsyncpa [#allocation3], 0 }
   0xd   :  { %20 = vsyncpa [#allocation3 + $0x1], 0 }
   0xe   :  { %21 = vsyncpa [#allocation6], 0 }
   0xf   :  { %23 = vsyncpa [#allocation6 + $0x1], 0 }
  0x10   :  { %24 = vsyncpa [#allocation9], 0 }
  0x11   :  { %25 = vsyncpa [#allocation12], 0 }
  0x12   :  { %26 = vsyncpa [#allocation4], 0 }
  0x13   :  { %28 = vsyncpa [#allocation4 + $0x1], 0  ;;  %s22395_s25 = smov 0   ;;  %s22397_s26 = smov 0  }
  0x14   :  { %s22399_s27 = smov 0   ;;  %s22401_s28 = smov 0  }
  0x15 LB: > { %s22309_s29 = smov [#allocation7]   ;;  %s22416_s14 = sadd.s32 4294967295, %s22307_s28   ;;  %s22307_s28 = sphi %s22401_s28, %s26532_s28   ;;  %s22303_s27 = sphi %s22399_s27, %s26531_s27   ;;  %s22299_s26 = sphi %s22397_s26, %s26530_s26   ;;  %s22295_s25 = sphi %s22395_s25, %s26529_s25  }
  0x16   : > { %s360_s30 = sshll.u32 %s22309_s29, 4  ;;  %p15396_p0 = scmp.ge.s32.totalorder %s22307_s28, 1  ;;  %s22421_s30 = int_to_ptr.vmem [resolvable:$true] %s360_s30 }
  0x17   : > { %p25980_p1 = scmp.eq.s32.totalorder %s22416_s14, 0  ;;  %p348_p2 = scmp.lt.s32.totalorder %s22307_s28, 3 }
  0x18   : > { %s22310_s16 = smov [#allocation8]   ;;  %s22311_s19 = smov [#allocation11]  }
  0x19   : > { %p22423_p3 = pnand %p15396_p0, %p348_p2  ;;  %s382_s17 = sshll.u32 %s22310_s16, 4  ;;  %s22436_s17 = int_to_ptr.vmem [resolvable:$true] %s382_s17 }
  0x1a   : > { %s417_s20 = sshll.u32 %s22311_s19, 4  ;;  %s26138_s2 = sld [smem:[#allocation132_spill]]  ;;  %s22438_s20 = int_to_ptr.vmem [resolvable:$true] %s417_s20 }
  0x1b   : > { %s26136_s15 = scalar_select %p22423_p3, 1, 0 }
  0x1c   : > { %p21731_p5 = pneg %p22423_p3 }
  0x1e   : > { %p22432_p6 = pnand %p21731_p5, %p25980_p1 }
  0x20   : > { %s22025_s23 = scalar_lea.hbm %s26138_s2, 256  ;;  %p22448_p8 = pneg %p22432_p6 }
  0x21   : > { %p22026_p7 = scmp.ne.s32.totalorder %s26138_s2, %s22025_s23  ;;  %p22032_p11 = scmp.lt.u32.totalorder %s22025_s23, %s26138_s2 }
  0x23   : > { %p22028_p9 = pnand %p22448_p8, %p22026_p7 }
  0x25   : > { %p22029_p10 = pneg %p22028_p9 }
  0x27   : > { %p22034_p12 = pnand %p22032_p11, %p22029_p10 }
  0x29   : > { %22037 = shalt.err (!%p22034_p12)
}
  0x2a   : > { %s22038_s21 = scalar_lea.vmem %s22421_s30, 256  ;;  %p22046_p5 = scmp.lt.s32.totalorder %s22421_s30, %s22421_s30 }
  0x2b   : > { %p22039_p13 = scmp.ne.s32.totalorder %s22421_s30, %s22038_s21  ;;  %p22047_p4 = scmp.lt.s32.totalorder %s22038_s21, %s22038_s21 }
  0x2d   : > { %p22041_p0 = pnand %p22039_p13, %p22448_p8  ;;  %p22048_p7 = por %p22047_p4, %p22046_p5 }
  0x2f   : > { %p22042_p2 = pneg %p22041_p0 }
  0x31   : > { %p22049_p9 = pnand %p22048_p7, %p22042_p2 }
  0x33   : > { %22052 = shalt.err (!%p22049_p9)
}
  0x34   : > { %s25982_s22 = smov 128   ;;  %s25984_s13 = smov 8  }
  0x35   : > { %21734 = dma.hbm_to_vmem [thread:$0]  (!%p22432_p6), %s26138_s2, 256, %s22421_s30, [#allocation6], %s25982_s22, %s25982_s22, %s25984_s13  }
  0x36   : > { %s26140_s6 = sld [smem:[#allocation134_spill]] }
  0x3c   : > { %s22053_s21 = scalar_lea.hbm %s26140_s6, 13824 }
  0x3d   : > { %p22054_p4 = scmp.ne.s32.totalorder %s26140_s6, %s22053_s21  ;;  %p22060_p12 = scmp.lt.u32.totalorder %s22053_s21, %s26140_s6 }
  0x3f   : > { %p22056_p10 = pnand %p22054_p4, %p22448_p8 }
  0x41   : > { %p22057_p11 = pneg %p22056_p10 }
  0x43   : > { %p22062_p13 = pnand %p22060_p12, %p22057_p11 }
  0x45   : > { %22065 = shalt.err (!%p22062_p13)
}
  0x46   : > { %s22066_s30 = scalar_lea.vmem %s22436_s17, 13824  ;;  %p22074_p7 = scmp.lt.s32.totalorder %s22436_s17, %s22436_s17 }
  0x47   : > { %p22067_p0 = scmp.ne.s32.totalorder %s22436_s17, %s22066_s30  ;;  %p22075_p9 = scmp.lt.s32.totalorder %s22066_s30, %s22066_s30 }
  0x49   : > { %p22069_p2 = pnand %p22067_p0, %p22448_p8  ;;  %p22076_p4 = por %p22075_p9, %p22074_p7 }
  0x4b   : > { %p22070_p5 = pneg %p22069_p2 }
  0x4d   : > { %p22077_p10 = pnand %p22076_p4, %p22070_p5 }
  0x4f   : > { %22080 = shalt.err (!%p22077_p10)
}
  0x50   : > { %21737 = dma.hbm_to_vmem [thread:$0]  (!%p22432_p6), %s26140_s6, 13824, %s22436_s17, [#allocation9], %s25982_s22, %s25982_s22, %s25984_s13  }
  0x51   : > { %s26141_s11 = sld [smem:[#allocation139_spill]] }
  0x57   : > { %s22081_s23 = scalar_lea.hbm %s26141_s11, 9216 }
  0x58   : > { %p22082_p11 = scmp.ne.s32.totalorder %s26141_s11, %s22081_s23  ;;  %p22088_p0 = scmp.lt.u32.totalorder %s22081_s23, %s26141_s11 }
  0x5a   : > { %p22084_p12 = pnand %p22082_p11, %p22448_p8 }
  0x5c   : > { %p22085_p13 = pneg %p22084_p12 }
  0x5e   : > { %p22090_p2 = pnand %p22088_p0, %p22085_p13 }
  0x60   : > { %22093 = shalt.err (!%p22090_p2)
}
  0x61   : > { %s22094_s17 = scalar_lea.vmem %s22438_s20, 9216  ;;  %p22102_p4 = scmp.lt.s32.totalorder %s22438_s20, %s22438_s20 }
  0x62   : > { %p22095_p5 = scmp.ne.s32.totalorder %s22438_s20, %s22094_s17  ;;  %p22103_p10 = scmp.lt.s32.totalorder %s22094_s17, %s22094_s17 }
  0x64   : > { %p22097_p7 = pnand %p22095_p5, %p22448_p8  ;;  %p22104_p11 = por %p22103_p10, %p22102_p4 }
  0x66   : > { %p22098_p9 = pneg %p22097_p7 }
  0x68   : > { %p22105_p12 = pnand %p22104_p11, %p22098_p9 }
  0x6a   : > { %22108 = shalt.err (!%p22105_p12)
}
  0x6b   : > { %21743 = dma.hbm_to_vmem [thread:$0]  (!%p22432_p6), %s26141_s11, 9216, %s22438_s20, [#allocation12], %s25982_s22, %s25982_s22, %s25984_s13  }
  0x6c   : > { %s22314_s7 = smov [#allocation10]   ;;  %s22315_s9 = smov [#allocation13]  }
  0x6d   : > { %s404_s8 = sshll.u32 %s22314_s7, 4  ;;  %s430_s23 = sshll.u32 %s22315_s9, 4  ;;  %s405_s8 = int_to_ptr.vmem [resolvable:$true] %s404_s8  ;;  %s431_s23 = int_to_ptr.vmem [resolvable:$true] %s430_s23 }
  0x6e   : > { %s26142_s10 = sld [smem:[#allocation138_spill]] }
  0x74   : > { %s22109_s19 = scalar_lea.hbm %s26142_s10, 9216 }
  0x75   : > { %p22110_p13 = scmp.ne.s32.totalorder %s26142_s10, %s22109_s19  ;;  %p22116_p5 = scmp.lt.u32.totalorder %s22109_s19, %s26142_s10 }
  0x77   : > { %p22112_p0 = pnand %p22110_p13, %p22448_p8 }
  0x79   : > { %p22113_p2 = pneg %p22112_p0 }
  0x7b   : > { %p22118_p7 = pnand %p22116_p5, %p22113_p2 }
  0x7d   : > { %22121 = shalt.err (!%p22118_p7)
}
  0x7e   : > { %s22122_s20 = scalar_lea.vmem %s405_s8, 9216  ;;  %p22130_p11 = scmp.lt.s32.totalorder %s405_s8, %s405_s8 }
  0x7f   : > { %p22123_p9 = scmp.ne.s32.totalorder %s405_s8, %s22122_s20  ;;  %p22131_p12 = scmp.lt.s32.totalorder %s22122_s20, %s22122_s20 }
  0x81   : > { %p22125_p4 = pnand %p22123_p9, %p22448_p8  ;;  %p22132_p1 = por %p22131_p12, %p22130_p11 }
  0x83   : > { %p22126_p10 = pneg %p22125_p4 }
  0x85   : > { %p22133_p3 = pnand %p22132_p1, %p22126_p10 }
  0x87   : > { %22136 = shalt.err (!%p22133_p3)
}
  0x88   : > { %21740 = dma.hbm_to_vmem [thread:$0]  (!%p22432_p6), %s26142_s10, 9216, %s405_s8, [#allocation9], %s25982_s22, %s25982_s22, %s25984_s13  }
  0x89   : > { %s26143_s12 = sld [smem:[#allocation140_spill]] }
  0x8f   : > { %s22137_s24 = scalar_lea.hbm %s26143_s12, 1024 }
  0x90   : > { %p22138_p1 = scmp.ne.s32.totalorder %s26143_s12, %s22137_s24  ;;  %p22144_p0 = scmp.lt.u32.totalorder %s22137_s24, %s26143_s12 }
  0x92   : > { %p22140_p3 = pnand %p22138_p1, %p22448_p8 }
  0x94   : > { %p22141_p13 = pneg %p22140_p3 }
  0x96   : > { %p22146_p2 = pnand %p22144_p0, %p22141_p13 }
  0x98   : > { %22149 = shalt.err (!%p22146_p2)
}
  0x99   : > { %s22150_s30 = scalar_lea.vmem %s431_s23, 1024  ;;  %p22158_p4 = scmp.lt.s32.totalorder %s431_s23, %s431_s23 }
  0x9a   : > { %p22151_p5 = scmp.ne.s32.totalorder %s431_s23, %s22150_s30  ;;  %p22159_p10 = scmp.lt.s32.totalorder %s22150_s30, %s22150_s30 }
  0x9c   : > { %p22153_p7 = pnand %p22151_p5, %p22448_p8  ;;  %p22160_p11 = por %p22159_p10, %p22158_p4 }
  0x9e   : > { %p22154_p9 = pneg %p22153_p7 }
  0xa0   : > { %p22161_p12 = pnand %p22160_p11, %p22154_p9 }
  0xa2   : > { %22164 = shalt.err (!%p22161_p12)
}
  0xa3   : > { %21746 = dma.hbm_to_vmem [thread:$0]  (!%p22432_p6), %s26143_s12, 1024, %s431_s23, [#allocation12], %s25982_s22, %s25982_s22, %s25984_s13  }
  0xa4   : > { %s15395_s18 = sadd.s32 4294967294, %s22307_s28   ;;  %s22568_s16 = sadd.s32 1, %s22307_s28  }
  0xa5   : > { %s41_s2 = sadd.s32 1, %s22303_s27  ;;  %s38_s5 = ssub.s32 %s22307_s28, %s22568_s16 }
  0xa6   : > { %p48_p8 = scmp.ne.s32.totalorder %s22303_s27, %s22299_s26  ;;  %p39_p1 = scmp.eq.s32.totalorder %s38_s5, 0 }
  0xa7   : > { %p49_p3 = scmp.eq.s32.totalorder %s22307_s28, 0  ;;  %p54_p13 = scmp.ne.s32.totalorder %s22299_s26, %s22295_s25 }
  0xa8   : > { %p335_p0 = scmp.eq.s32.totalorder %s22416_s14, 1  ;;  %p26145_p5 = scmp.eq.s32.totalorder %s22416_s14, 0 }
  0xa9   : > { %s22580_s7 = scalar_select %p39_p1, %s22303_s27, %s41_s2  }
  0xaa   : > { %p50_p2 = por %p49_p3, %p48_p8  ;;  %p22584_p7 = por %p26145_p5, %p54_p13 }
  0xab   : > { %26144 = sst [smem:[#allocation21_spill]] %s22580_s7  ;;  %p22588_p6 = por %p335_p0, %p48_p8 }
  0xac   : > { %p341_p9 = scmp.eq.s32.totalorder %s15395_s18, 1  ;;  %p21763_p4 = scmp.lt.s32.totalorder %s22307_s28, 2 }
  0xad   : > { %s26147_s23 = scalar_select %p22588_p6, 1, 0 }
  0xae   : > { %s444_s24 = sand.u32 1, %s22303_s27   ;;  %p22594_p10 = por %p341_p9, %p54_p13 }
  0xaf   : > { %s22598_s19 = sshll.u32 %s444_s24, 6  ;;  %s16330_s21 = sshll.u32 %s22307_s28, 10 }
  0xb0   : > { %s26148_s29 = scalar_select %p22594_p10, 1, 0 }
  0xb1   : > { %s26149_s0 = sld [smem:[#allocation131_spill]]  ;;  %s448_s20 = scalar_lea.vmem [#allocation2], %s22598_s19 }
  0xb2   : > { %s455_s18 = sshll.u32 %s448_s20, 4  ;;  %p22607_p11 = pnand %p21763_p4, %p50_p2  ;;  %s22611_s18 = int_to_ptr.vmem [resolvable:$true] %s455_s18 }
  0xb3   : > { %s22616_s17 = scalar_lea.hbm %s25963_s1, %s16330_s21  ;;  %s22618_s30 = scalar_lea.sflag [#allocation3], %s444_s24 }
  0xb4   : > { %p22167_p8 = pneg %p22607_p11 }
  0xb7   : > { %s22604_s8 = scalar_lea.hbm %s26149_s0, %s16330_s21  ;;  %s22170_s10 = scalar_lea.hbm %s26149_s0, 2048 }
  0xb8   : > { %s22165_s13 = scalar_lea.hbm %s22604_s8, 1024  ;;  %p22171_p13 = scmp.lt.u32.totalorder %s22604_s8, %s26149_s0 }
  0xb9   : > { %p22166_p12 = scmp.ne.s32.totalorder %s22604_s8, %s22165_s13  ;;  %p22172_p0 = scmp.lt.u32.totalorder %s22170_s10, %s22165_s13 }
  0xba   : > { %p22174_p5 = scmp.lt.u32.totalorder %s22165_s13, %s22604_s8 }
  0xbb   : > { %p22168_p1 = pnand %p22167_p8, %p22166_p12  ;;  %p22173_p2 = por %p22172_p0, %p22171_p13 }
  0xbd   : > { %p22169_p3 = pneg %p22168_p1  ;;  %p22175_p9 = por %p22174_p5, %p22173_p2 }
  0xbf   : > { %p22176_p4 = pnand %p22175_p9, %p22169_p3 }
  0xc1   : > { %22179 = shalt.err (!%p22176_p4)
}
  0xc2   : > { %s22180_s22 = scalar_lea.vmem %s22611_s18, 1024  ;;  %s22316_s6 = smov [#allocation2]  }
  0xc3   : > { %p22181_p12 = scmp.ne.s32.totalorder %s22611_s18, %s22180_s22  ;;  %s22185_s24 = sshll.u32 %s22316_s6, 4  ;;  %s22186_s24 = int_to_ptr.vmem [resolvable:$false] %s22185_s24 }
  0xc4   : > { %s22187_s11 = scalar_lea.vmem %s22186_s24, 2048  ;;  %p22188_p6 = scmp.lt.s32.totalorder %s22611_s18, %s22186_s24 }
  0xc5   : > { %p22183_p1 = pnand %p22181_p12, %p22167_p8  ;;  %p22189_p13 = scmp.lt.s32.totalorder %s22187_s11, %s22180_s22 }
  0xc7   : > { %p22184_p10 = pneg %p22183_p1  ;;  %p22190_p0 = por %p22189_p13, %p22188_p6 }
  0xc9   : > { %p22191_p2 = pnand %p22190_p0, %p22184_p10 }
  0xcb   : > { %22194 = shalt.err (!%p22191_p2)
}
  0xcc   : > { %s26151_s10 = smov 8   ;;  %s26152_s12 = smov 128  }
  0xcd   : > { %21750 = dma.hbm_to_vmem [thread:$0]  (!%p22607_p11), %s22604_s8, 1024, %s22611_s18, %s22618_s30, %s26152_s12, %s26152_s12, %s26151_s10  }
  0xce   : > { %s469_s13 = scalar_lea.vmem [#allocation5], %s22598_s19  ;;  %s465_s5 = sand.u32 1, %s22307_s28  }
  0xcf   : > { %s476_s21 = sshll.u32 %s469_s13, 4  ;;  %s22653_s20 = scalar_lea.sflag [#allocation6], %s465_s5  ;;  %s22651_s21 = int_to_ptr.vmem [resolvable:$true] %s476_s21 }
  0xd0   : > { %s22195_s22 = scalar_lea.hbm %s22616_s17, 1024  ;;  %s22200_s11 = scalar_lea.hbm %s25963_s1, 2048 }
  0xd1   : > { %p22196_p6 = scmp.ne.s32.totalorder %s22616_s17, %s22195_s22  ;;  %p22201_p5 = scmp.lt.u32.totalorder %s22616_s17, %s25963_s1 }
  0xd2   : > { %p22202_p9 = scmp.lt.u32.totalorder %s22200_s11, %s22195_s22  ;;  %p22204_p12 = scmp.lt.u32.totalorder %s22195_s22, %s22616_s17 }
  0xd3   : > { %p22198_p10 = pnand %p22196_p6, %p22167_p8 }
  0xd4   : > { %p22203_p4 = por %p22202_p9, %p22201_p5 }
  0xd5   : > { %p22199_p3 = pneg %p22198_p10 }
  0xd6   : > { %p22205_p1 = por %p22204_p12, %p22203_p4 }
  0xd8   : > { %p22206_p13 = pnand %p22205_p1, %p22199_p3 }
  0xda   : > { %22209 = shalt.err (!%p22206_p13)
}
  0xdb   : > { %s22210_s19 = scalar_lea.vmem %s22651_s21, 1024  ;;  %s22317_s8 = smov [#allocation5]  }
  0xdc   : > { %p22211_p0 = scmp.ne.s32.totalorder %s22651_s21, %s22210_s19  ;;  %s22215_s18 = sshll.u32 %s22317_s8, 4  ;;  %s22216_s18 = int_to_ptr.vmem [resolvable:$false] %s22215_s18 }
  0xdd   : > { %s22217_s0 = scalar_lea.vmem %s22216_s18, 2048  ;;  %p22218_p10 = scmp.lt.s32.totalorder %s22651_s21, %s22216_s18 }
  0xde   : > { %p22213_p2 = pnand %p22211_p0, %p22167_p8  ;;  %p22219_p5 = scmp.lt.s32.totalorder %s22217_s0, %s22210_s19 }
  0xe0   : > { %p22214_p6 = pneg %p22213_p2  ;;  %p22220_p9 = por %p22219_p5, %p22218_p10 }
  0xe2   : > { %p22221_p4 = pnand %p22220_p9, %p22214_p6 }
  0xe4   : > { %22224 = shalt.err (!%p22221_p4)
}
  0xe5   : > { %21753 = dma.hbm_to_vmem [thread:$0]  (!%p22607_p11), %s22616_s17, 1024, %s22651_s21, %s22653_s20, %s26152_s12, %s26152_s12, %s26151_s10  }
  0xe6   : > { %p26153_p8 = scmp.ne.s32.totalorder %s26136_s15, 0 }
  0xe8   : > { %488 = sbr.rel (%p26153_p8) target bundleno = 3840 (0xf00), region = 72 }
  0xef   : > { %s22685_s7 = sand.u32 1, %s22299_s26  }
  0xf0   : > { %s22688_s30 = sshll.u32 %s22685_s7, 6  ;;  %s491_s2 = scalar_lea.sflag [#allocation3], %s22685_s7 }
  0xf1   : > { %s22692_s13 = scalar_lea.vmem [#allocation2], %s22688_s30 }
  0xf2   : > { %22270 = dma.done.wait (%p22584_p7), %s491_s2, 1024  }
  0xf3   : > { %22272 = vsyncadd (%p22584_p7), %s491_s2, 4294966272  ;;  %s499_s15 = sand.u32 1, %s22416_s14   ;;  %s22700_s10 = scalar_lea.vmem [#allocation5], %s22688_s30 }
  0xf4   : > { %s500_s17 = scalar_lea.sflag [#allocation6], %s499_s15 }
  0xf5   : > { %22274 = dma.done.wait (%p22584_p7), %s500_s17, 1024  }
  0xf6   : > { %22276 = vsyncadd (%p22584_p7), %s500_s17, 4294966272  ;;  %p26154_p11 = scmp.eq.s32.totalorder %s22416_s14, 0 }
  0xf8   : > { %22278 = dma.done.wait (%p26154_p11), [#allocation6], 256   ;;  %p26155_p3 = pmov %p26154_p11 }
  0xfa   : > { %22280 = vsyncadd (%p26155_p3), [#allocation6], 4294967040  ;;  %p26156_p12 = pmov %p26155_p3 }
  0xfb   : > { %p26157_p1 = pmov %p26155_p3 }
  0xfc   : > { %22282 = dma.done.wait (%p26156_p12), [#allocation9], 23040  }
  0xfd   : > { %22284 = vsyncadd (%p26157_p1), [#allocation9], 4294944256  ;;  %p26158_p13 = pmov %p26157_p1 }
  0xfe   : > { %p26159_p0 = pmov %p26157_p1 }
  0xff   : > { %22286 = dma.done.wait (%p26158_p13), [#allocation12], 10240  }
 0x100   : > { %22288 = vsyncadd (%p26159_p0), [#allocation12], 4294957056  ;;  %v587_v0 = vld [vmem:[#allocation7] sm:$0xff]  ;;  %v588_v1 = vld [vmem:[#allocation7 + $0x8] sm:$0xff]  ;;  %vm596_vm0 = vcmask 130048   ;;  %vm896_vm1 = vcmask 523264  }
 0x101   : > { %v571_v2 = vld [vmem:[%s22692_s13] sm:$0xff]  ;;  %v20209_v3 = vpack.c.bf16 %v588_v1, %v587_v0  ;;  %v572_v5 = vld [vmem:[%s22692_s13 + $0x8] sm:$0xff]  ;;  %v573_v6 = vld [vmem:[%s22692_s13 + $0x10] sm:$0xff]  ;;  %s26269_s11 = sld [smem:[#allocation135_spill]]  ;;  %s26363_s2 = sld [smem:[#allocation133_spill]] }
 0x102   : > { %v579_v4 = vmax.f32 %v571_v2, 0.0  ;;  %v580_v7 = vmax.f32 %v572_v5, 0.0  ;;  %v581_v8 = vmax.f32 %v573_v6, 0.0  ;;  %v574_v9 = vld [vmem:[%s22692_s13 + $0x18] sm:$0xff]  ;;  %v575_v10 = vld [vmem:[%s22692_s13 + $0x20] sm:$0xff]  ;;  %v576_v13 = vld [vmem:[%s22692_s13 + $0x28] sm:$0xff] }
 0x103   : > { %20210 = vmatprep.subr.bf16.mxu0 %v20209_v3  ;;  %v582_v11 = vmax.f32 %v574_v9, 0.0  ;;  %v583_v12 = vmax.f32 %v575_v10, 0.0  ;;  %v577_v14 = vld [vmem:[%s22692_s13 + $0x30] sm:$0xff]  ;;  %v584_v15 = vmax.f32 %v576_v13, 0.0  ;;  %v578_v17 = vld [vmem:[%s22692_s13 + $0x38] sm:$0xff]  ;;  %v742_v19 = vld [vmem:[%s25966_s4] sm:$0xff] }
 0x104   : > { %17777 = vmatprep.mubr.msk.f32.mxu0 %vm596_vm0, %v579_v4  ;;  %20212 = vmatpush3.bf16.msra.mxu0 %v20209_v3  ;;  %v585_v16 = vmax.f32 %v577_v14, 0.0  ;;  %v586_v18 = vmax.f32 %v578_v17, 0.0  ;;  %v743_v20 = vld [vmem:[%s25966_s4 + $0x8] sm:$0xff]  ;;  %v726_v22 = vld [vmem:[%s22700_s10] sm:$0xff]  ;;  %v728_v26 = vld [vmem:[%s22700_s10 + $0x10] sm:$0xff]  ;;  %s26483_s9 = sld [smem:[#allocation136_spill]] }
 0x105   : > { %v20213_v21 = vpack.c.bf16 %v743_v20, %v742_v19  ;;  %v734_v23 = vmax.f32 %v726_v22, 0.0  ;;  %v727_v24 = vld [vmem:[%s22700_s10 + $0x8] sm:$0xff]  ;;  %v736_v27 = vmax.f32 %v728_v26, 0.0  ;;  %v729_v28 = vld [vmem:[%s22700_s10 + $0x18] sm:$0xff]  ;;  %v730_v30 = vld [vmem:[%s22700_s10 + $0x20] sm:$0xff]  ;;  %s26484_s22 = sld [smem:[#allocation137_spill]] }
 0x106   : > { %v735_v25 = vmax.f32 %v727_v24, 0.0  ;;  %v737_v29 = vmax.f32 %v729_v28, 0.0  ;;  %v738_v31 = vmax.f32 %v730_v30, 0.0  ;;  %v731_v32 = vld [vmem:[%s22700_s10 + $0x28] sm:$0xff]  ;;  %v732_v34 = vld [vmem:[%s22700_s10 + $0x30] sm:$0xff]  ;;  %v733_v36 = vld [vmem:[%s22700_s10 + $0x38] sm:$0xff] }
 0x107   : > { %17778 = vmatmul.mubr.msk.f32.vlgmr.msra.gmra.mrb[0].mxu0 %vm596_vm0, %v580_v7  ;;  %20214 = vmatprep.subr.bf16.mxu1 %v20213_v21  ;;  %v739_v33 = vmax.f32 %v731_v32, 0.0  ;;  %v740_v35 = vmax.f32 %v732_v34, 0.0  ;;  %v741_v37 = vmax.f32 %v733_v36, 0.0  ;;  %v22756_v38 = vld [vmem:[#allocation10 + $0x40] sm:$0xff]  ;;  %v15418_v40 = vld [vmem:[%s25965_s3] ss:$0 sm:$0xff] }
 0x108   : > { %17780 = vmatprep.mubr.msk.f32.mxu0 %vm596_vm0, %v581_v8  ;;  %20216 = vmatpush3.bf16.msra.mxu1 %v20213_v21  ;;  %v22760_v39 = vld [vmem:[#allocation10] sm:$0xff]  ;;  %v1167_v5 = vld [vmem:[#allocation8 + $0x10] sm:$0xff]  ;;  %v1168_v6 = vld [vmem:[#allocation8 + $0x18] sm:$0xff]  ;;  %s22319_s6 = smov 16   ;;  %s22320_s0 = smov 32  }
 0x109   : > { %17793 = vmatprep.mubr.msk.f32.mxu1 %vm596_vm0, %v734_v23  ;;  %v22815_v7 = vld [vmem:[#allocation10 + $0x48] sm:$0xff]  ;;  %v20249_v9 = vpack.c.bf16 %v1168_v6, %v1167_v5  ;;  %v22820_v10 = vld [vmem:[#allocation10 + $0x50] sm:$0xff]  ;;  %v22833_v13 = vld [vmem:[#allocation10 + $0x18] sm:$0xff]  ;;  %s22321_s10 = smov 48   ;;  %s25868_s12 = scalar_lea.vmem [#allocation14], %s22688_s30 }
 0x10a   : > { %v22817_v8 = vld [vmem:[#allocation10 + $0x8] sm:$0xff]  ;;  %v22836_v14 = vld [vmem:[#allocation10 + $0x60] sm:$0xff]  ;;  %v22858_v19 = vld [vmem:[#allocation10 + $0x30] sm:$0xff]  ;;  %s15252_s30 = sshll.u32 %s25868_s12, 4  ;;  %s16332_s21 = sshll.u32 %s22416_s14, 10  ;;  %s25901_s30 = int_to_ptr.vmem [resolvable:$true] %s15252_s30 }
 0x10b   : > { %17781 = vmatmul.mubr.msk.f32.gmra.mrb[2].mxu0 %vm596_vm0, %v582_v11  ;;  %17794 = vmatmul.mubr.msk.f32.vlgmr.msra.gmra.mrb[0].mxu1 %vm596_vm0, %v735_v25  ;;  %v22822_v11 = vld [vmem:[#allocation10 + $0x10] sm:$0xff]  ;;  %v22851_v17 = vld [vmem:[#allocation10 + $0x28] sm:$0xff]  ;;  %v22867_v20 = vld [vmem:[#allocation10 + $0x78] sm:$0xff]  ;;  %s26524_s20 = sld [smem:[#allocation141_spill]]  ;;  %s15239_s24 = scalar_lea.sflag [#allocation4], %s22685_s7 }
 0x10c   : > { %17783 = vmatprep.mubr.msk.f32.mxu0 %vm596_vm0, %v583_v12  ;;  %17796 = vmatprep.mubr.msk.f32.mxu1 %vm596_vm0, %v736_v27  ;;  %v22831_v12 = vld [vmem:[#allocation10 + $0x58] sm:$0xff]  ;;  %v22872_v22 = vld [vmem:[#allocation10 + $0x80] sm:$0xff]  ;;  %v22883_v23 = vld [vmem:[#allocation10 + $0x88] sm:$0xff]  ;;  %s22225_s19 = scalar_lea.vmem %s25901_s30, 1024  ;;  %p26525_p2 = scmp.ne.s32.totalorder %s26147_s23, 0 }
 0x10d   : > { %v22869_v21 = vld [vmem:[#allocation10 + $0x38] sm:$0xff]  ;;  %v22886_v24 = vld [vmem:[#allocation10 + $0x90] sm:$0xff]  ;;  %v22896_v26 = vld [vmem:[#allocation10 + $0xa0] sm:$0xff]  ;;  %p22226_p7 = scmp.ne.s32.totalorder %s25901_s30, %s22225_s19  ;;  %s22322_s8 = smov [#allocation14]  }
 0x10e   : > { %v22893_v25 = vld [vmem:[#allocation10 + $0x98] sm:$0xff]  ;;  %v22903_v27 = vld [vmem:[#allocation10 + $0xa8] sm:$0xff]  ;;  %v22906_v28 = vld [vmem:[#allocation10 + $0xb0] sm:$0xff]  ;;  %s22229_s18 = sshll.u32 %s22322_s8, 4  ;;  %s22230_s18 = int_to_ptr.vmem [resolvable:$false] %s22229_s18 }
 0x10f   : > { %17784 = vmatmul.mubr.msk.f32.gmra.mrb[4].mxu0 %vm596_vm0, %v584_v15  ;;  %17797 = vmatmul.mubr.msk.f32.gmra.mrb[2].mxu1 %vm596_vm0, %v737_v29  ;;  %v22840_v15 = vld [vmem:[#allocation10 + $0x20] sm:$0xff]  ;;  %v22913_v29 = vld [vmem:[#allocation10 + $0xb8] sm:$0xff]  ;;  %v22926_v32 = vld [vmem:[#allocation10 + $0xd0] sm:$0xff]  ;;  %p22227_p6 = pnand %p22226_p7, %p26525_p2  ;;  %p22232_p5 = scmp.lt.s32.totalorder %s25901_s30, %s22230_s18 }
 0x110   : > { %17786 = vmatprep.mubr.msk.f32.mxu0 %vm596_vm0, %v585_v16  ;;  %17799 = vmatprep.mubr.msk.f32.mxu1 %vm596_vm0, %v738_v31  ;;  %v22849_v16 = vld [vmem:[#allocation10 + $0x68] sm:$0xff]  ;;  %v22916_v30 = vld [vmem:[#allocation10 + $0xc0] sm:$0xff]  ;;  %v22946_v36 = vld [vmem:[#allocation10 + $0xf0] sm:$0xff] }
 0x111   : > { %v22923_v31 = vld [vmem:[#allocation10 + $0xc8] sm:$0xff]  ;;  %v22936_v34 = vld [vmem:[#allocation10 + $0xe0] sm:$0xff]  ;;  %p22228_p10 = pneg %p22227_p6 }
 0x113   : > { %17787 = vmatmul.mubr.msk.f32.gmra.mrb[6].mxu0 %vm596_vm0, %v586_v18  ;;  %17800 = vmatmul.mubr.msk.f32.gmra.mrb[4].mxu1 %vm596_vm0, %v739_v33  ;;  %v22854_v18 = vld [vmem:[#allocation10 + $0x70] sm:$0xff]  ;;  %v22933_v33 = vld [vmem:[#allocation10 + $0xd8] sm:$0xff] }
 0x114   : > { %17802 = vmatprep.mubr.msk.f32.mxu1 %vm596_vm0, %v740_v35  ;;  %17821 = vmatprep.mubr.msk.f32.mxu0 %vm896_vm1, %v22760_v39  ;;  %v22943_v35 = vld [vmem:[#allocation10 + $0xe8] sm:$0xff] }
 0x117   : > { %17803 = vmatmul.mubr.msk.f32.gmra.mrb[6].mxu1 %vm596_vm0, %v741_v37  ;;  %v22953_v37 = vld [vmem:[#allocation10 + $0xf8] sm:$0xff] }
 0x118   : > { %17849 = vmatprep.mubr.msk.f32.mxu1 %vm896_vm1, %v22756_v38 }
 0x1da   : > { %v17779_v41 = vpop.f32.mrb[0].mxu0 }
 0x1db   : > { %v22767_v42 = vadd.f32 %v17779_v41, %v15418_v40  ;;  %v687_v43 = vpop.f32.mrb[1].mxu0  ;;  %v22963_v41 = vld [vmem:[#allocation10 + $0x108] sm:$0xff] }
 0x1dc   : > { %v22769_v44 = vadd.f32 %v15418_v40, %v687_v43  ;;  %v22966_v43 = vld [vmem:[#allocation10 + $0x110] sm:$0xff] }
 0x1dd   : > { %26160 = vst [vmem:[#allocation22_spill] sm:$0xff] %v22767_v42  ;;  %v881_v45 = vmax.f32 %v22767_v42, 0.0  ;;  %v23069_v42 = vld [vmem:[#allocation10 + $0x198] sm:$0xff] }
 0x1de   : > { %26161 = vst [vmem:[#allocation23_spill] sm:$0xff] %v22769_v44  ;;  %v880_v46 = vmax.f32 %v22769_v44, 0.0  ;;  %v17782_v47 = vpop.f32.mrb[2].mxu0  ;;  %26180 = vst [vmem:[#allocation42_spill] sm:$0xff] %v23069_v42 }
 0x1df   : > { %v22773_v48 = vadd.f32 %v17782_v47, %v15418_v40  ;;  %v697_v49 = vpop.f32.mrb[3].mxu0  ;;  %v22983_v47 = vld [vmem:[#allocation10 + $0x128] sm:$0xff] }
 0x1e0   : > { %v22775_v50 = vpack.c.bf16 %v881_v45, %v880_v46  ;;  %v22777_v51 = vadd.f32 %v15418_v40, %v697_v49  ;;  %v22973_v45 = vld [vmem:[#allocation10 + $0x118] sm:$0xff]  ;;  %v22976_v46 = vld [vmem:[#allocation10 + $0x120] sm:$0xff]  ;;  %v22986_v49 = vld [vmem:[#allocation10 + $0x130] sm:$0xff] }
 0x1e1   : > { %26162 = vst [vmem:[#allocation24_spill] sm:$0xff] %v22773_v48  ;;  %v883_v52 = vmax.f32 %v22773_v48, 0.0 }
 0x1e2   : > { %26163 = vst [vmem:[#allocation25_spill] sm:$0xff] %v22777_v51  ;;  %v882_v53 = vmax.f32 %v22777_v51, 0.0  ;;  %v17785_v54 = vpop.f32.mrb[4].mxu0  ;;  %20218 = vmatprep.subr.bf16.mxu0 %v22775_v50  ;;  %20234 = vmatprep.subr.bf16.mxu1 %v22775_v50  ;;  %v23058_v51 = vld [vmem:[#allocation10 + $0x190] sm:$0xff] }
 0x1e3   : > { %v22783_v55 = vadd.f32 %v17785_v54, %v15418_v40  ;;  %v707_v56 = vpop.f32.mrb[5].mxu0  ;;  %20220 = vmatpush3.bf16.msra.mxu0 %v22775_v50  ;;  %20236 = vmatpush3.bf16.msra.mxu1 %v22775_v50  ;;  %v23003_v54 = vld [vmem:[#allocation10 + $0x148] sm:$0xff]  ;;  %26177 = vst [vmem:[#allocation39_spill] sm:$0xff] %v23058_v51 }
 0x1e4   : > { %v22787_v57 = vpack.c.bf16 %v883_v52, %v882_v53  ;;  %v22789_v58 = vadd.f32 %v15418_v40, %v707_v56  ;;  %v22993_v52 = vld [vmem:[#allocation10 + $0x138] sm:$0xff]  ;;  %v22996_v53 = vld [vmem:[#allocation10 + $0x140] sm:$0xff]  ;;  %v23006_v56 = vld [vmem:[#allocation10 + $0x150] sm:$0xff] }
 0x1e5   : > { %26164 = vst [vmem:[#allocation26_spill] sm:$0xff] %v22783_v55  ;;  %v885_v59 = vmax.f32 %v22783_v55, 0.0  ;;  %v23055_v55 = vld [vmem:[#allocation10 + $0x188] sm:$0xff] }
 0x1e6   : > { %26165 = vst [vmem:[#allocation27_spill] sm:$0xff] %v22789_v58  ;;  %v884_v60 = vmax.f32 %v22789_v58, 0.0  ;;  %v17788_v61 = vpop.f32.mrb[6].mxu0  ;;  %20222 = vmatprep.subr.bf16.mxu0 %v22787_v57  ;;  %20238 = vmatprep.subr.bf16.mxu1 %v22787_v57  ;;  %26176 = vst [vmem:[#allocation38_spill] sm:$0xff] %v23055_v55 }
 0x1e7   : > { %v22795_v62 = vadd.f32 %v17788_v61, %v15418_v40  ;;  %v717_v63 = vpop.f32.mrb[7].mxu0  ;;  %20224 = vmatpush3.bf16.msra.mxu0 %v22787_v57  ;;  %20240 = vmatpush3.bf16.msra.mxu1 %v22787_v57  ;;  %v23018_v61 = vpop.f32.mrb[0].mxu1 }
 0x1e8   : > { %v22799_v0 = vpack.c.bf16 %v885_v59, %v884_v60  ;;  %v22801_v1 = vadd.f32 %v15418_v40, %v717_v63  ;;  %v22956_v40 = vld [vmem:[#allocation10 + $0x100] sm:$0xff]  ;;  %v23013_v59 = vld [vmem:[#allocation10 + $0x158] sm:$0xff]  ;;  %26168 = vst [vmem:[#allocation30_spill] sm:$0xff] %v23018_v61  ;;  %v23020_v63 = vpop.f32.mrb[1].mxu1 }
 0x1e9   : > { %26166 = vst [vmem:[#allocation28_spill] sm:$0xff] %v22795_v62  ;;  %v887_v2 = vmax.f32 %v22795_v62, 0.0  ;;  %v23016_v60 = vld [vmem:[#allocation10 + $0x160] sm:$0xff]  ;;  %26169 = vst [vmem:[#allocation31_spill] sm:$0xff] %v23020_v63  ;;  %v23032_v5 = vpop.f32.mrb[2].mxu1  ;;  %v23089_v63 = vld [vmem:[#allocation10 + $0x1b8] sm:$0xff] }
 0x1ea   : > { %26167 = vst [vmem:[#allocation29_spill] sm:$0xff] %v22801_v1  ;;  %v886_v3 = vmax.f32 %v22801_v1, 0.0  ;;  %20226 = vmatprep.subr.bf16.mxu0 %v22799_v0  ;;  %20242 = vmatprep.subr.bf16.mxu1 %v22799_v0  ;;  %26170 = vst [vmem:[#allocation32_spill] sm:$0xff] %v23032_v5  ;;  %v23034_v6 = vpop.f32.mrb[3].mxu1  ;;  %v23044_v1 = vld [vmem:[#allocation10 + $0x180] sm:$0xff] }
 0x1eb   : > { %20228 = vmatpush3.bf16.msra.mxu0 %v22799_v0  ;;  %20244 = vmatpush3.bf16.msra.mxu1 %v22799_v0  ;;  %26171 = vst [vmem:[#allocation33_spill] sm:$0xff] %v23034_v6  ;;  %26173 = vst [vmem:[#allocation35_spill] sm:$0xff] %v23044_v1  ;;  %v23046_v62 = vpop.f32.mrb[4].mxu1  ;;  %v1027_v6 = vld [vmem:[#allocation8 + $0x8] sm:$0xff]  ;;  %v23092_v61 = vld [vmem:[#allocation10 + $0x1c0] sm:$0xff] }
 0x1ec   : > { %v22809_v4 = vpack.c.bf16 %v887_v2, %v886_v3  ;;  %v23027_v2 = vld [vmem:[#allocation10 + $0x168] sm:$0xff]  ;;  %v23030_v3 = vld [vmem:[#allocation10 + $0x170] sm:$0xff]  ;;  %26174 = vst [vmem:[#allocation36_spill] sm:$0xff] %v23046_v62  ;;  %v23048_v58 = vpop.f32.mrb[5].mxu1  ;;  %v1026_v62 = vld [vmem:[#allocation8] sm:$0xff] }
 0x1ed   : > { %26175 = vst [vmem:[#allocation37_spill] sm:$0xff] %v23048_v58  ;;  %v23060_v48 = vpop.f32.mrb[6].mxu1  ;;  %v23072_v58 = vld [vmem:[#allocation10 + $0x1a0] sm:$0xff]  ;;  %v20253_v5 = vpack.c.bf16 %v1027_v6, %v1026_v62  ;;  %26184 = vst [vmem:[#allocation46_spill] sm:$0xff] %v23089_v63  ;;  %v23099_v62 = vld [vmem:[#allocation10 + $0x1c8] sm:$0xff] }
 0x1ee   : > { %20230 = vmatprep.subr.bf16.mxu0 %v22809_v4  ;;  %20246 = vmatprep.subr.bf16.mxu1 %v22809_v4  ;;  %26178 = vst [vmem:[#allocation40_spill] sm:$0xff] %v23060_v48  ;;  %v23062_v44 = vpop.f32.mrb[7].mxu1  ;;  %26181 = vst [vmem:[#allocation43_spill] sm:$0xff] %v23072_v58  ;;  %v23082_v48 = vld [vmem:[#allocation10 + $0x1b0] sm:$0xff] }
 0x1ef   : > { %20232 = vmatpush3.bf16.msra.mxu0 %v22809_v4  ;;  %20248 = vmatpush3.bf16.msra.mxu1 %v22809_v4  ;;  %26179 = vst [vmem:[#allocation41_spill] sm:$0xff] %v23062_v44  ;;  %v23079_v44 = vld [vmem:[#allocation10 + $0x1a8] sm:$0xff]  ;;  %26183 = vst [vmem:[#allocation45_spill] sm:$0xff] %v23082_v48  ;;  %v23102_v6 = vld [vmem:[#allocation10 + $0x1d0] sm:$0xff] }
 0x1f0   : > { %20258 = vmatprep.subr.bf16.mxu1 %v22775_v50  ;;  %20250 = vmatprep.subr.bf16.mxu0 %v20249_v9  ;;  %26182 = vst [vmem:[#allocation44_spill] sm:$0xff] %v23079_v44  ;;  %26185 = vst [vmem:[#allocation47_spill] sm:$0xff] %v23092_v61 }
 0x1f1   : > { %26186 = vst [vmem:[#allocation48_spill] sm:$0xff] %v23099_v62  ;;  %26187 = vst [vmem:[#allocation49_spill] sm:$0xff] %v23102_v6 }
 0x1f2   : > { %17850 = vmatmul.mubr.msk.f32.vlgmr.msra.gmra.mrb[8].mxu1 %vm896_vm1, %v22815_v7  ;;  %17822 = vmatmul.mubr.msk.f32.vlgmr.msra.gmra.mrb[8].mxu0 %vm896_vm1, %v22817_v8 }
 0x1f3   : > { %20260 = vmatpush3.bf16.msra.mxu1 %v22775_v50  ;;  %17852 = vmatprep.mubr.msk.f32.mxu1 %vm896_vm1, %v22820_v10 }
 0x1f4   : > { %20262 = vmatprep.subr.bf16.mxu1 %v22787_v57  ;;  %17824 = vmatprep.mubr.msk.f32.mxu0 %vm896_vm1, %v22822_v11 }
 0x1f5   : > { %20252 = vmatpush3.bf16.msra.mxu0 %v20249_v9  ;;  %v23041_v9 = vld [vmem:[#allocation10 + $0x178] sm:$0xff] }
 0x1f6   : > { %17853 = vmatmul.mubr.msk.f32.gmra.mrb[10].mxu1 %vm896_vm1, %v22831_v12  ;;  %17825 = vmatmul.mubr.msk.f32.gmra.mrb[10].mxu0 %vm896_vm1, %v22833_v13  ;;  %26172 = vst [vmem:[#allocation34_spill] sm:$0xff] %v23041_v9 }
 0x1f7   : > { %20264 = vmatpush3.bf16.msra.mxu1 %v22787_v57  ;;  %17855 = vmatprep.mubr.msk.f32.mxu1 %vm896_vm1, %v22836_v14 }
 0x1f8   : > { %20266 = vmatprep.subr.bf16.mxu1 %v22799_v0  ;;  %17827 = vmatprep.mubr.msk.f32.mxu0 %vm896_vm1, %v22840_v15 }
 0x1f9   : > { %20254 = vmatprep.subr.bf16.mxu0 %v20253_v5 }
 0x1fa   : > { %17856 = vmatmul.mubr.msk.f32.gmra.mrb[12].mxu1 %vm896_vm1, %v22849_v16  ;;  %17828 = vmatmul.mubr.msk.f32.gmra.mrb[12].mxu0 %vm896_vm1, %v22851_v17 }
 0x1fb   : > { %20268 = vmatpush3.bf16.msra.mxu1 %v22799_v0  ;;  %17858 = vmatprep.mubr.msk.f32.mxu1 %vm896_vm1, %v22854_v18 }
 0x1fc   : > { %20270 = vmatprep.subr.bf16.mxu1 %v22809_v4  ;;  %17830 = vmatprep.mubr.msk.f32.mxu0 %vm896_vm1, %v22858_v19 }
 0x1fe   : > { %17859 = vmatmul.mubr.msk.f32.gmra.mrb[14].mxu1 %vm896_vm1, %v22867_v20  ;;  %17831 = vmatmul.mubr.msk.f32.gmra.mrb[14].mxu0 %vm896_vm1, %v22869_v21 }
 0x1ff   : > { %20272 = vmatpush3.bf16.msra.mxu1 %v22809_v4  ;;  %17909 = vmatprep.mubr.msk.f32.mxu1 %vm896_vm1, %v22872_v22 }
 0x200   : > { %20278 = vmatprep.subr.bf16.mxu1 %v22775_v50 }
 0x202   : > { %17910 = vmatmul.mubr.msk.f32.vlgmr.msra.gmra.mrb[16].mxu1 %vm896_vm1, %v22883_v23 }
 0x203   : > { %20280 = vmatpush3.bf16.msra.mxu1 %v22775_v50  ;;  %17912 = vmatprep.mubr.msk.f32.mxu1 %vm896_vm1, %v22886_v24 }
 0x204   : > { %20282 = vmatprep.subr.bf16.mxu1 %v22787_v57 }
 0x206   : > { %17913 = vmatmul.mubr.msk.f32.gmra.mrb[18].mxu1 %vm896_vm1, %v22893_v25 }
 0x207   : > { %20284 = vmatpush3.bf16.msra.mxu1 %v22787_v57  ;;  %17915 = vmatprep.mubr.msk.f32.mxu1 %vm896_vm1, %v22896_v26 }
 0x208   : > { %20286 = vmatprep.subr.bf16.mxu1 %v22799_v0 }
 0x20a   : > { %17916 = vmatmul.mubr.msk.f32.gmra.mrb[20].mxu1 %vm896_vm1, %v22903_v27 }
 0x20b   : > { %20288 = vmatpush3.bf16.msra.mxu1 %v22799_v0  ;;  %17918 = vmatprep.mubr.msk.f32.mxu1 %vm896_vm1, %v22906_v28 }
 0x20c   : > { %20290 = vmatprep.subr.bf16.mxu1 %v22809_v4 }
 0x20e   : > { %17919 = vmatmul.mubr.msk.f32.gmra.mrb[22].mxu1 %vm896_vm1, %v22913_v29 }
 0x20f   : > { %20292 = vmatpush3.bf16.msra.mxu1 %v22809_v4  ;;  %17953 = vmatprep.mubr.msk.f32.mxu1 %vm896_vm1, %v22916_v30 }
 0x210   : > { %20298 = vmatprep.subr.bf16.mxu1 %v22775_v50 }
 0x212   : > { %17954 = vmatmul.mubr.msk.f32.vlgmr.msra.gmra.mrb[24].mxu1 %vm896_vm1, %v22923_v31 }
 0x213   : > { %20300 = vmatpush3.bf16.msra.mxu1 %v22775_v50  ;;  %17956 = vmatprep.mubr.msk.f32.mxu1 %vm896_vm1, %v22926_v32 }
 0x214   : > { %20302 = vmatprep.subr.bf16.mxu1 %v22787_v57 }
 0x216   : > { %17957 = vmatmul.mubr.msk.f32.gmra.mrb[26].mxu1 %vm896_vm1, %v22933_v33 }
 0x217   : > { %20304 = vmatpush3.bf16.msra.mxu1 %v22787_v57  ;;  %17959 = vmatprep.mubr.msk.f32.mxu1 %vm896_vm1, %v22936_v34 }
 0x218   : > { %20306 = vmatprep.subr.bf16.mxu1 %v22799_v0 }
 0x21a   : > { %17960 = vmatmul.mubr.msk.f32.gmra.mrb[28].mxu1 %vm896_vm1, %v22943_v35 }
 0x21b   : > { %20308 = vmatpush3.bf16.msra.mxu1 %v22799_v0  ;;  %17962 = vmatprep.mubr.msk.f32.mxu1 %vm896_vm1, %v22946_v36 }
 0x21c   : > { %20310 = vmatprep.subr.bf16.mxu1 %v22809_v4 }
 0x21e   : > { %17963 = vmatmul.mubr.msk.f32.gmra.mrb[30].mxu1 %vm896_vm1, %v22953_v37 }
 0x21f   : > { %20312 = vmatpush3.bf16.msra.mxu1 %v22809_v4  ;;  %17997 = vmatprep.mubr.msk.f32.mxu1 %vm896_vm1, %v22956_v40 }
 0x220   : > { %20318 = vmatprep.subr.bf16.mxu1 %v22775_v50 }
 0x222   : > { %17998 = vmatmul.mubr.msk.f32.vlgmr.msra.gmra.mrb[32].mxu1 %vm896_vm1, %v22963_v41 }
 0x223   : > { %20320 = vmatpush3.bf16.msra.mxu1 %v22775_v50  ;;  %18000 = vmatprep.mubr.msk.f32.mxu1 %vm896_vm1, %v22966_v43 }
 0x224   : > { %20322 = vmatprep.subr.bf16.mxu1 %v22787_v57 }
 0x226   : > { %18001 = vmatmul.mubr.msk.f32.gmra.mrb[34].mxu1 %vm896_vm1, %v22973_v45 }
 0x227   : > { %20324 = vmatpush3.bf16.msra.mxu1 %v22787_v57  ;;  %18003 = vmatprep.mubr.msk.f32.mxu1 %vm896_vm1, %v22976_v46 }
 0x228   : > { %20326 = vmatprep.subr.bf16.mxu1 %v22799_v0 }
 0x22a   : > { %18004 = vmatmul.mubr.msk.f32.gmra.mrb[36].mxu1 %vm896_vm1, %v22983_v47 }
 0x22b   : > { %20328 = vmatpush3.bf16.msra.mxu1 %v22799_v0  ;;  %18006 = vmatprep.mubr.msk.f32.mxu1 %vm896_vm1, %v22986_v49 }
 0x22c   : > { %20330 = vmatprep.subr.bf16.mxu1 %v22809_v4 }
 0x22e   : > { %18007 = vmatmul.mubr.msk.f32.gmra.mrb[38].mxu1 %vm896_vm1, %v22993_v52 }
 0x22f   : > { %20332 = vmatpush3.bf16.msra.mxu1 %v22809_v4  ;;  %18041 = vmatprep.mubr.msk.f32.mxu1 %vm896_vm1, %v22996_v53 }
 0x230   : > { %20338 = vmatprep.subr.bf16.mxu1 %v22775_v50 }
 0x232   : > { %18042 = vmatmul.mubr.msk.f32.vlgmr.msra.gmra.mrb[40].mxu1 %vm896_vm1, %v23003_v54 }
 0x233   : > { %20340 = vmatpush3.bf16.msra.mxu1 %v22775_v50  ;;  %18044 = vmatprep.mubr.msk.f32.mxu1 %vm896_vm1, %v23006_v56 }
 0x234   : > { %20342 = vmatprep.subr.bf16.mxu1 %v22787_v57 }
 0x236   : > { %18045 = vmatmul.mubr.msk.f32.gmra.mrb[42].mxu1 %vm896_vm1, %v23013_v59 }
 0x237   : > { %20344 = vmatpush3.bf16.msra.mxu1 %v22787_v57  ;;  %18047 = vmatprep.mubr.msk.f32.mxu1 %vm896_vm1, %v23016_v60 }
 0x238   : > { %20346 = vmatprep.subr.bf16.mxu1 %v22799_v0 }
 0x23a   : > { %18048 = vmatmul.mubr.msk.f32.gmra.mrb[44].mxu1 %vm896_vm1, %v23027_v2 }
 0x23b   : > { %20348 = vmatpush3.bf16.msra.mxu1 %v22799_v0  ;;  %18050 = vmatprep.mubr.msk.f32.mxu1 %vm896_vm1, %v23030_v3 }
 0x23c   : > { %20350 = vmatprep.subr.bf16.mxu1 %v22809_v4 }
 0x23e   : > { %18051 = vmatmul.mubr.msk.f32.gmra.mrb[46].mxu1 %vm896_vm1, %v23041_v9 }
 0x23f   : > { %20352 = vmatpush3.bf16.msra.mxu1 %v22809_v4  ;;  %18085 = vmatprep.mubr.msk.f32.mxu1 %vm896_vm1, %v23044_v1 }
 0x240   : > { %20358 = vmatprep.subr.bf16.mxu1 %v22775_v50 }
 0x242   : > { %18086 = vmatmul.mubr.msk.f32.vlgmr.msra.gmra.mrb[48].mxu1 %vm896_vm1, %v23055_v55 }
 0x243   : > { %20360 = vmatpush3.bf16.msra.mxu1 %v22775_v50  ;;  %18088 = vmatprep.mubr.msk.f32.mxu1 %vm896_vm1, %v23058_v51  ;;  %v1845_v51 = vld [vmem:[#allocation8 + $0x38] sm:$0xff] }
 0x244   : > { %20362 = vmatprep.subr.bf16.mxu1 %v22787_v57 }
 0x246   : > { %18089 = vmatmul.mubr.msk.f32.gmra.mrb[50].mxu1 %vm896_vm1, %v23069_v42  ;;  %v1844_v42 = vld [vmem:[#allocation8 + $0x30] sm:$0xff] }
 0x247   : > { %20364 = vmatpush3.bf16.msra.mxu1 %v22787_v57  ;;  %18091 = vmatprep.mubr.msk.f32.mxu1 %vm896_vm1, %v23072_v58  ;;  %v20293_v55 = vpack.c.bf16 %v1845_v51, %v1844_v42 }
 0x248   : > { %20366 = vmatprep.subr.bf16.mxu1 %v22799_v0 }
 0x24a   : > { %18092 = vmatmul.mubr.msk.f32.gmra.mrb[52].mxu1 %vm896_vm1, %v23079_v44 }
 0x24b   : > { %20368 = vmatpush3.bf16.msra.mxu1 %v22799_v0  ;;  %18094 = vmatprep.mubr.msk.f32.mxu1 %vm896_vm1, %v23082_v48  ;;  %v23112_v48 = vld [vmem:[#allocation10 + $0x1e0] sm:$0xff] }
 0x24c   : > { %20370 = vmatprep.subr.bf16.mxu1 %v22809_v4  ;;  %26189 = vst [vmem:[#allocation51_spill] sm:$0xff] %v23112_v48 }
 0x24e   : > { %18095 = vmatmul.mubr.msk.f32.gmra.mrb[54].mxu1 %vm896_vm1, %v23089_v63  ;;  %v23109_v63 = vld [vmem:[#allocation10 + $0x1d8] sm:$0xff] }
 0x24f   : > { %20372 = vmatpush3.bf16.msra.mxu1 %v22809_v4  ;;  %18129 = vmatprep.mubr.msk.f32.mxu1 %vm896_vm1, %v23092_v61  ;;  %26188 = vst [vmem:[#allocation50_spill] sm:$0xff] %v23109_v63 }
 0x250   : > { %20378 = vmatprep.subr.bf16.mxu1 %v22775_v50 }
 0x252   : > { %18130 = vmatmul.mubr.msk.f32.vlgmr.msra.gmra.mrb[56].mxu1 %vm896_vm1, %v23099_v62  ;;  %v23119_v62 = vld [vmem:[#allocation10 + $0x1e8] sm:$0xff] }
 0x253   : > { %20380 = vmatpush3.bf16.msra.mxu1 %v22775_v50  ;;  %18132 = vmatprep.mubr.msk.f32.mxu1 %vm896_vm1, %v23102_v6  ;;  %26190 = vst [vmem:[#allocation52_spill] sm:$0xff] %v23119_v62  ;;  %v23122_v50 = vld [vmem:[#allocation10 + $0x1f0] sm:$0xff] }
 0x254   : > { %20382 = vmatprep.subr.bf16.mxu1 %v22787_v57  ;;  %26191 = vst [vmem:[#allocation53_spill] sm:$0xff] %v23122_v50  ;;  %v3098_v6 = vld [vmem:[#allocation10 + $0x210] sm:$0xff] }
 0x256   : > { %18133 = vmatmul.mubr.msk.f32.gmra.mrb[58].mxu1 %vm896_vm1, %v23109_v63  ;;  %v23129_v63 = vld [vmem:[#allocation10 + $0x1f8] sm:$0xff] }
 0x257   : > { %20384 = vmatpush3.bf16.msra.mxu1 %v22787_v57  ;;  %18135 = vmatprep.mubr.msk.f32.mxu1 %vm896_vm1, %v23112_v48  ;;  %26192 = vst [vmem:[#allocation54_spill] sm:$0xff] %v23129_v63  ;;  %v3096_v57 = vld [vmem:[#allocation10 + $0x200] sm:$0xff]  ;;  %v3097_v48 = vld [vmem:[#allocation10 + $0x208] sm:$0xff] }
 0x258   : > { %20386 = vmatprep.subr.bf16.mxu1 %v22799_v0 }
 0x25a   : > { %18136 = vmatmul.mubr.msk.f32.gmra.mrb[60].mxu1 %vm896_vm1, %v23119_v62  ;;  %v23143_v62 = vld [vmem:[#allocation10 + $0x228] sm:$0xff] }
 0x25b   : > { %20388 = vmatpush3.bf16.msra.mxu1 %v22799_v0  ;;  %18138 = vmatprep.mubr.msk.f32.mxu1 %vm896_vm1, %v23122_v50  ;;  %v3099_v0 = vld [vmem:[#allocation10 + $0x218] sm:$0xff]  ;;  %v23138_v50 = vld [vmem:[#allocation10 + $0x220] sm:$0xff]  ;;  %26194 = vst [vmem:[#allocation56_spill] sm:$0xff] %v23143_v62 }
 0x25c   : > { %20390 = vmatprep.subr.bf16.mxu1 %v22809_v4  ;;  %26193 = vst [vmem:[#allocation55_spill] sm:$0xff] %v23138_v50 }
 0x25e   : > { %18139 = vmatmul.mubr.msk.f32.gmra.mrb[62].mxu1 %vm896_vm1, %v23129_v63  ;;  %v23145_v63 = vld [vmem:[#allocation10 + $0x230] sm:$0xff] }
 0x25f   : > { %20392 = vmatpush3.bf16.msra.mxu1 %v22809_v4  ;;  %18173 = vmatprep.mubr.msk.f32.mxu1 %vm896_vm1, %v3096_v57  ;;  %26195 = vst [vmem:[#allocation57_spill] sm:$0xff] %v23145_v63  ;;  %v1566_v4 = vld [vmem:[#allocation8 + $0x20] sm:$0xff] }
 0x262   : > { %18174 = vmatmul.mubr.msk.f32.vlgmr.msra.gmra.mrb[64].mxu1 %vm896_vm1, %v3097_v48  ;;  %v23151_v48 = vld [vmem:[#allocation10 + $0x238] sm:$0xff] }
 0x263   : > { %18176 = vmatprep.mubr.msk.f32.mxu1 %vm896_vm1, %v3098_v6  ;;  %26196 = vst [vmem:[#allocation58_spill] sm:$0xff] %v23151_v48  ;;  %v1567_v6 = vld [vmem:[#allocation8 + $0x28] sm:$0xff] }
 0x264   : > { %v20273_v61 = vpack.c.bf16 %v1567_v6, %v1566_v4 }
 0x266   : > { %18177 = vmatmul.mubr.msk.f32.gmra.mrb[66].mxu1 %vm896_vm1, %v3099_v0 }
 0x267   : > { %18179 = vmatprep.mubr.msk.f32.mxu1 %vm896_vm1, %v23138_v50 }
 0x26a   : > { %18180 = vmatmul.mubr.msk.f32.gmra.mrb[68].mxu1 %vm896_vm1, %v23143_v62 }
 0x26b   : > { %18182 = vmatprep.mubr.msk.f32.mxu1 %vm896_vm1, %v23145_v63 }
 0x26e   : > { %18183 = vmatmul.mubr.msk.f32.gmra.mrb[70].mxu1 %vm896_vm1, %v23151_v48 }
 0x26f   : > { %18217 = vmatprep.mubr.msk.f32.mxu1 %vm896_vm1, %v22760_v39 }
 0x2c5   : > { %v23157_v57 = vpop.f32.mrb[8].mxu1  ;;  %v23159_v0 = vpop.f32.mrb[8].mxu0 }
 0x2c6   : > { %26197 = vst [vmem:[#allocation59_spill] sm:$0xff] %v23157_v57  ;;  %26198 = vst [vmem:[#allocation60_spill] sm:$0xff] %v23159_v0  ;;  %v23161_v50 = vpop.f32.mrb[9].mxu1  ;;  %v23163_v62 = vpop.f32.mrb[9].mxu0 }
 0x2c7   : > { %26199 = vst [vmem:[#allocation61_spill] sm:$0xff] %v23161_v50  ;;  %26200 = vst [vmem:[#allocation62_spill] sm:$0xff] %v23163_v62  ;;  %17865 = vmatprep.mubr.msk.f32.mxu0 %vm596_vm0, %v23161_v50 }
 0x2c8   : > { %17866 = vmatmul.mubr.msk.f32.vlgmr.msra.gmra.mrb[16].mxu0 %vm596_vm0, %v23157_v57 }
 0x2c9   : > { %v23169_v48 = vpop.f32.mrb[10].mxu1  ;;  %20256 = vmatpush3.bf16.msra.mxu0 %v20253_v5  ;;  %v23171_v39 = vpop.f32.mrb[10].mxu0 }
 0x2ca   : > { %26201 = vst [vmem:[#allocation63_spill] sm:$0xff] %v23169_v48  ;;  %26202 = vst [vmem:[#allocation64_spill] sm:$0xff] %v23171_v39  ;;  %v23173_v63 = vpop.f32.mrb[11].mxu1  ;;  %20274 = vmatprep.subr.bf16.mxu0 %v20273_v61  ;;  %v23175_v44 = vpop.f32.mrb[11].mxu0 }
 0x2cb   : > { %26203 = vst [vmem:[#allocation65_spill] sm:$0xff] %v23173_v63  ;;  %26204 = vst [vmem:[#allocation66_spill] sm:$0xff] %v23175_v44  ;;  %17868 = vmatprep.mubr.msk.f32.mxu0 %vm596_vm0, %v23173_v63 }
 0x2cc   : > { %17869 = vmatmul.mubr.msk.f32.gmra.mrb[18].mxu0 %vm596_vm0, %v23169_v48 }
 0x2cd   : > { %v23181_v4 = vpop.f32.mrb[12].mxu1  ;;  %v23183_v6 = vpop.f32.mrb[12].mxu0 }
 0x2ce   : > { %26205 = vst [vmem:[#allocation67_spill] sm:$0xff] %v23181_v4  ;;  %26206 = vst [vmem:[#allocation68_spill] sm:$0xff] %v23183_v6  ;;  %v23185_v57 = vpop.f32.mrb[13].mxu1  ;;  %v23187_v5 = vpop.f32.mrb[13].mxu0 }
 0x2cf   : > { %26207 = vst [vmem:[#allocation69_spill] sm:$0xff] %v23185_v57  ;;  %26208 = vst [vmem:[#allocation70_spill] sm:$0xff] %v23187_v5  ;;  %17871 = vmatprep.mubr.msk.f32.mxu0 %vm596_vm0, %v23185_v57 }
 0x2d0   : > { %17872 = vmatmul.mubr.msk.f32.gmra.mrb[20].mxu0 %vm596_vm0, %v23181_v4 }
 0x2d1   : > { %v23193_v50 = vpop.f32.mrb[14].mxu1  ;;  %v23195_v63 = vpop.f32.mrb[14].mxu0 }
 0x2d2   : > { %26209 = vst [vmem:[#allocation71_spill] sm:$0xff] %v23193_v50  ;;  %26210 = vst [vmem:[#allocation72_spill] sm:$0xff] %v23195_v63  ;;  %v23197_v58 = vpop.f32.mrb[15].mxu1  ;;  %v23199_v48 = vpop.f32.mrb[15].mxu0 }
 0x2d3   : > { %26211 = vst [vmem:[#allocation73_spill] sm:$0xff] %v23197_v58  ;;  %26212 = vst [vmem:[#allocation74_spill] sm:$0xff] %v23199_v48  ;;  %17874 = vmatprep.mubr.msk.f32.mxu0 %vm596_vm0, %v23197_v58 }
 0x2d4   : > { %17875 = vmatmul.mubr.msk.f32.gmra.mrb[22].mxu0 %vm596_vm0, %v23193_v50 }
 0x2d5   : > { %17881 = vmatprep.mubr.msk.f32.mxu0 %vm596_vm0, %v23163_v62  ;;  %v23207_v4 = vpop.f32.mrb[16].mxu1 }
 0x2d6   : > { %26213 = vst [vmem:[#allocation75_spill] sm:$0xff] %v23207_v4  ;;  %v23209_v57 = vpop.f32.mrb[17].mxu1 }
 0x2d7   : > { %26214 = vst [vmem:[#allocation76_spill] sm:$0xff] %v23209_v57 }
 0x2d8   : > { %17882 = vmatmul.mubr.msk.f32.vlgmr.msra.gmra.mrb[16].mxu0 %vm596_vm0, %v23159_v0  ;;  %v2123_v0 = vld [vmem:[#allocation8 + $0x48] sm:$0xff] }
 0x2d9   : > { %20276 = vmatpush3.bf16.msra.mxu0 %v20273_v61  ;;  %17884 = vmatprep.mubr.msk.f32.mxu0 %vm596_vm0, %v23175_v44  ;;  %v23215_v58 = vpop.f32.mrb[18].mxu1  ;;  %v2122_v44 = vld [vmem:[#allocation8 + $0x40] sm:$0xff] }
 0x2da   : > { %26215 = vst [vmem:[#allocation77_spill] sm:$0xff] %v23215_v58  ;;  %20294 = vmatprep.subr.bf16.mxu0 %v20293_v55  ;;  %v23217_v1 = vpop.f32.mrb[19].mxu1 }
 0x2db   : > { %26216 = vst [vmem:[#allocation78_spill] sm:$0xff] %v23217_v1 }
 0x2dc   : > { %17885 = vmatmul.mubr.msk.f32.gmra.mrb[18].mxu0 %vm596_vm0, %v23171_v39 }
 0x2dd   : > { %17887 = vmatprep.mubr.msk.f32.mxu0 %vm596_vm0, %v23187_v5  ;;  %v23223_v62 = vpop.f32.mrb[20].mxu1 }
 0x2de   : > { %26217 = vst [vmem:[#allocation79_spill] sm:$0xff] %v23223_v62  ;;  %v23225_v42 = vpop.f32.mrb[21].mxu1 }
 0x2df   : > { %26218 = vst [vmem:[#allocation80_spill] sm:$0xff] %v23225_v42 }
 0x2e0   : > { %17888 = vmatmul.mubr.msk.f32.gmra.mrb[20].mxu0 %vm596_vm0, %v23183_v6  ;;  %v20313_v6 = vpack.c.bf16 %v2123_v0, %v2122_v44 }
 0x2e1   : > { %17890 = vmatprep.mubr.msk.f32.mxu0 %vm596_vm0, %v23199_v48  ;;  %v23231_v51 = vpop.f32.mrb[22].mxu1 }
 0x2e2   : > { %26219 = vst [vmem:[#allocation81_spill] sm:$0xff] %v23231_v51  ;;  %v23233_v61 = vpop.f32.mrb[23].mxu1 }
 0x2e3   : > { %26220 = vst [vmem:[#allocation82_spill] sm:$0xff] %v23233_v61 }
 0x2e4   : > { %17891 = vmatmul.mubr.msk.f32.gmra.mrb[22].mxu0 %vm596_vm0, %v23195_v63 }
 0x2e5   : > { %17925 = vmatprep.mubr.msk.f32.mxu0 %vm596_vm0, %v23209_v57  ;;  %v23239_v5 = vpop.f32.mrb[24].mxu1 }
 0x2e6   : > { %26221 = vst [vmem:[#allocation83_spill] sm:$0xff] %v23239_v5  ;;  %v23241_v39 = vpop.f32.mrb[25].mxu1 }
 0x2e7   : > { %26222 = vst [vmem:[#allocation84_spill] sm:$0xff] %v23241_v39 }
 0x2e8   : > { %17926 = vmatmul.mubr.msk.f32.vlgmr.msra.gmra.mrb[16].mxu0 %vm596_vm0, %v23207_v4  ;;  %v2401_v4 = vld [vmem:[#allocation8 + $0x58] sm:$0xff] }
 0x2e9   : > { %20296 = vmatpush3.bf16.msra.mxu0 %v20293_v55  ;;  %17928 = vmatprep.mubr.msk.f32.mxu0 %vm596_vm0, %v23217_v1  ;;  %v23247_v48 = vpop.f32.mrb[26].mxu1  ;;  %v2400_v1 = vld [vmem:[#allocation8 + $0x50] sm:$0xff] }
 0x2ea   : > { %26223 = vst [vmem:[#allocation85_spill] sm:$0xff] %v23247_v48  ;;  %20314 = vmatprep.subr.bf16.mxu0 %v20313_v6  ;;  %v23249_v50 = vpop.f32.mrb[27].mxu1 }
 0x2eb   : > { %26224 = vst [vmem:[#allocation86_spill] sm:$0xff] %v23249_v50 }
 0x2ec   : > { %17929 = vmatmul.mubr.msk.f32.gmra.mrb[18].mxu0 %vm596_vm0, %v23215_v58 }
 0x2ed   : > { %17931 = vmatprep.mubr.msk.f32.mxu0 %vm596_vm0, %v23225_v42  ;;  %v23255_v57 = vpop.f32.mrb[28].mxu1 }
 0x2ee   : > { %26225 = vst [vmem:[#allocation87_spill] sm:$0xff] %v23255_v57  ;;  %v23257_v44 = vpop.f32.mrb[29].mxu1 }
 0x2ef   : > { %26226 = vst [vmem:[#allocation88_spill] sm:$0xff] %v23257_v44 }
 0x2f0   : > { %17932 = vmatmul.mubr.msk.f32.gmra.mrb[20].mxu0 %vm596_vm0, %v23223_v62  ;;  %v20333_v62 = vpack.c.bf16 %v2401_v4, %v2400_v1 }
 0x2f1   : > { %17934 = vmatprep.mubr.msk.f32.mxu0 %vm596_vm0, %v23233_v61  ;;  %v23263_v55 = vpop.f32.mrb[30].mxu1 }
 0x2f2   : > { %26227 = vst [vmem:[#allocation89_spill] sm:$0xff] %v23263_v55  ;;  %v23265_v0 = vpop.f32.mrb[31].mxu1 }
 0x2f3   : > { %26228 = vst [vmem:[#allocation90_spill] sm:$0xff] %v23265_v0 }
 0x2f4   : > { %17935 = vmatmul.mubr.msk.f32.gmra.mrb[22].mxu0 %vm596_vm0, %v23231_v51 }
 0x2f5   : > { %17969 = vmatprep.mubr.msk.f32.mxu0 %vm596_vm0, %v23241_v39  ;;  %v23271_v42 = vpop.f32.mrb[32].mxu1 }
 0x2f6   : > { %26229 = vst [vmem:[#allocation91_spill] sm:$0xff] %v23271_v42  ;;  %v23273_v58 = vpop.f32.mrb[33].mxu1 }
 0x2f7   : > { %26230 = vst [vmem:[#allocation92_spill] sm:$0xff] %v23273_v58 }
 0x2f8   : > { %17970 = vmatmul.mubr.msk.f32.vlgmr.msra.gmra.mrb[16].mxu0 %vm596_vm0, %v23239_v5  ;;  %v2679_v5 = vld [vmem:[#allocation8 + $0x68] sm:$0xff] }
 0x2f9   : > { %20316 = vmatpush3.bf16.msra.mxu0 %v20313_v6  ;;  %17972 = vmatprep.mubr.msk.f32.mxu0 %vm596_vm0, %v23249_v50  ;;  %v23279_v61 = vpop.f32.mrb[34].mxu1  ;;  %v2678_v50 = vld [vmem:[#allocation8 + $0x60] sm:$0xff] }
 0x2fa   : > { %26231 = vst [vmem:[#allocation93_spill] sm:$0xff] %v23279_v61  ;;  %20334 = vmatprep.subr.bf16.mxu0 %v20333_v62  ;;  %v23281_v63 = vpop.f32.mrb[35].mxu1 }
 0x2fb   : > { %26232 = vst [vmem:[#allocation94_spill] sm:$0xff] %v23281_v63 }
 0x2fc   : > { %17973 = vmatmul.mubr.msk.f32.gmra.mrb[18].mxu0 %vm596_vm0, %v23247_v48 }
 0x2fd   : > { %17975 = vmatprep.mubr.msk.f32.mxu0 %vm596_vm0, %v23257_v44  ;;  %v23287_v39 = vpop.f32.mrb[36].mxu1 }
 0x2fe   : > { %26233 = vst [vmem:[#allocation95_spill] sm:$0xff] %v23287_v39  ;;  %v23289_v1 = vpop.f32.mrb[37].mxu1 }
 0x2ff   : > { %26234 = vst [vmem:[#allocation96_spill] sm:$0xff] %v23289_v1 }
 0x300   : > { %17976 = vmatmul.mubr.msk.f32.gmra.mrb[20].mxu0 %vm596_vm0, %v23255_v57  ;;  %v20353_v57 = vpack.c.bf16 %v2679_v5, %v2678_v50 }
 0x301   : > { %17978 = vmatprep.mubr.msk.f32.mxu0 %vm596_vm0, %v23265_v0  ;;  %v23295_v4 = vpop.f32.mrb[38].mxu1 }
 0x302   : > { %26235 = vst [vmem:[#allocation97_spill] sm:$0xff] %v23295_v4  ;;  %v23297_v6 = vpop.f32.mrb[39].mxu1 }
 0x303   : > { %26236 = vst [vmem:[#allocation98_spill] sm:$0xff] %v23297_v6 }
 0x304   : > { %17979 = vmatmul.mubr.msk.f32.gmra.mrb[22].mxu0 %vm596_vm0, %v23263_v55 }
 0x305   : > { %18013 = vmatprep.mubr.msk.f32.mxu0 %vm596_vm0, %v23273_v58  ;;  %v23303_v44 = vpop.f32.mrb[40].mxu1 }
 0x306   : > { %26237 = vst [vmem:[#allocation99_spill] sm:$0xff] %v23303_v44  ;;  %v23305_v48 = vpop.f32.mrb[41].mxu1 }
 0x307   : > { %26238 = vst [vmem:[#allocation100_spill] sm:$0xff] %v23305_v48 }
 0x308   : > { %18014 = vmatmul.mubr.msk.f32.vlgmr.msra.gmra.mrb[16].mxu0 %vm596_vm0, %v23271_v42  ;;  %v2957_v42 = vld [vmem:[#allocation8 + $0x78] sm:$0xff] }
 0x309   : > { %20336 = vmatpush3.bf16.msra.mxu0 %v20333_v62  ;;  %18016 = vmatprep.mubr.msk.f32.mxu0 %vm596_vm0, %v23281_v63  ;;  %v23311_v0 = vpop.f32.mrb[42].mxu1  ;;  %v2956_v63 = vld [vmem:[#allocation8 + $0x70] sm:$0xff] }
 0x30a   : > { %26239 = vst [vmem:[#allocation101_spill] sm:$0xff] %v23311_v0  ;;  %20354 = vmatprep.subr.bf16.mxu0 %v20353_v57  ;;  %v23313_v51 = vpop.f32.mrb[43].mxu1 }
 0x30b   : > { %26240 = vst [vmem:[#allocation102_spill] sm:$0xff] %v23313_v51 }
 0x30c   : > { %18017 = vmatmul.mubr.msk.f32.gmra.mrb[18].mxu0 %vm596_vm0, %v23279_v61 }
 0x30d   : > { %18019 = vmatprep.mubr.msk.f32.mxu0 %vm596_vm0, %v23289_v1  ;;  %v23319_v58 = vpop.f32.mrb[44].mxu1 }
 0x30e   : > { %26241 = vst [vmem:[#allocation103_spill] sm:$0xff] %v23319_v58  ;;  %v23321_v50 = vpop.f32.mrb[45].mxu1 }
 0x30f   : > { %26242 = vst [vmem:[#allocation104_spill] sm:$0xff] %v23321_v50 }
 0x310   : > { %18020 = vmatmul.mubr.msk.f32.gmra.mrb[20].mxu0 %vm596_vm0, %v23287_v39  ;;  %v20373_v39 = vpack.c.bf16 %v2957_v42, %v2956_v63 }
 0x311   : > { %18022 = vmatprep.mubr.msk.f32.mxu0 %vm596_vm0, %v23297_v6  ;;  %v23327_v62 = vpop.f32.mrb[46].mxu1 }
 0x312   : > { %26243 = vst [vmem:[#allocation105_spill] sm:$0xff] %v23327_v62  ;;  %v23329_v5 = vpop.f32.mrb[47].mxu1 }
 0x313   : > { %26244 = vst [vmem:[#allocation106_spill] sm:$0xff] %v23329_v5 }
 0x314   : > { %18023 = vmatmul.mubr.msk.f32.gmra.mrb[22].mxu0 %vm596_vm0, %v23295_v4 }
 0x315   : > { %18057 = vmatprep.mubr.msk.f32.mxu0 %vm596_vm0, %v23305_v48  ;;  %v23335_v1 = vpop.f32.mrb[48].mxu1 }
 0x316   : > { %26245 = vst [vmem:[#allocation107_spill] sm:$0xff] %v23335_v1  ;;  %v23337_v61 = vpop.f32.mrb[49].mxu1 }
 0x317   : > { %26246 = vst [vmem:[#allocation108_spill] sm:$0xff] %v23337_v61 }
 0x318   : > { %18058 = vmatmul.mubr.msk.f32.vlgmr.msra.gmra.mrb[16].mxu0 %vm596_vm0, %v23303_v44  ;;  %v3235_v44 = vld [vmem:[#allocation8 + $0x88] sm:$0xff] }
 0x319   : > { %20356 = vmatpush3.bf16.msra.mxu0 %v20353_v57  ;;  %18060 = vmatprep.mubr.msk.f32.mxu0 %vm596_vm0, %v23313_v51  ;;  %v23343_v6 = vpop.f32.mrb[50].mxu1  ;;  %v3234_v51 = vld [vmem:[#allocation8 + $0x80] sm:$0xff] }
 0x31a   : > { %26247 = vst [vmem:[#allocation109_spill] sm:$0xff] %v23343_v6  ;;  %20374 = vmatprep.subr.bf16.mxu0 %v20373_v39  ;;  %v23345_v55 = vpop.f32.mrb[51].mxu1 }
 0x31b   : > { %26248 = vst [vmem:[#allocation110_spill] sm:$0xff] %v23345_v55 }
 0x31c   : > { %18061 = vmatmul.mubr.msk.f32.gmra.mrb[18].mxu0 %vm596_vm0, %v23311_v0 }
 0x31d   : > { %18063 = vmatprep.mubr.msk.f32.mxu0 %vm596_vm0, %v23321_v50  ;;  %v23351_v48 = vpop.f32.mrb[52].mxu1 }
 0x31e   : > { %26249 = vst [vmem:[#allocation111_spill] sm:$0xff] %v23351_v48  ;;  %v23353_v63 = vpop.f32.mrb[53].mxu1 }
 0x31f   : > { %26250 = vst [vmem:[#allocation112_spill] sm:$0xff] %v23353_v63 }
 0x320   : > { %18064 = vmatmul.mubr.msk.f32.gmra.mrb[20].mxu0 %vm596_vm0, %v23319_v58  ;;  %v20393_v58 = vpack.c.bf16 %v3235_v44, %v3234_v51 }
 0x321   : > { %18066 = vmatprep.mubr.msk.f32.mxu0 %vm596_vm0, %v23329_v5  ;;  %v23359_v57 = vpop.f32.mrb[54].mxu1 }
 0x322   : > { %26251 = vst [vmem:[#allocation113_spill] sm:$0xff] %v23359_v57  ;;  %v23361_v42 = vpop.f32.mrb[55].mxu1 }
 0x323   : > { %26252 = vst [vmem:[#allocation114_spill] sm:$0xff] %v23361_v42 }
 0x324   : > { %18067 = vmatmul.mubr.msk.f32.gmra.mrb[22].mxu0 %vm596_vm0, %v23327_v62 }
 0x325   : > { %18101 = vmatprep.mubr.msk.f32.mxu0 %vm596_vm0, %v23337_v61  ;;  %v23367_v50 = vpop.f32.mrb[56].mxu1 }
 0x326   : > { %26253 = vst [vmem:[#allocation115_spill] sm:$0xff] %v23367_v50  ;;  %v23369_v0 = vpop.f32.mrb[57].mxu1 }
 0x327   : > { %26254 = vst [vmem:[#allocation116_spill] sm:$0xff] %v23369_v0 }
 0x328   : > { %18102 = vmatmul.mubr.msk.f32.vlgmr.msra.gmra.mrb[16].mxu0 %vm596_vm0, %v23335_v1 }
 0x329   : > { %20376 = vmatpush3.bf16.msra.mxu0 %v20373_v39  ;;  %18104 = vmatprep.mubr.msk.f32.mxu0 %vm596_vm0, %v23345_v55  ;;  %v23375_v5 = vpop.f32.mrb[58].mxu1 }
 0x32a   : > { %26255 = vst [vmem:[#allocation117_spill] sm:$0xff] %v23375_v5  ;;  %20394 = vmatprep.subr.bf16.mxu0 %v20393_v58  ;;  %v23377_v4 = vpop.f32.mrb[59].mxu1 }
 0x32b   : > { %26256 = vst [vmem:[#allocation118_spill] sm:$0xff] %v23377_v4 }
 0x32c   : > { %18105 = vmatmul.mubr.msk.f32.gmra.mrb[18].mxu0 %vm596_vm0, %v23343_v6 }
 0x32d   : > { %18107 = vmatprep.mubr.msk.f32.mxu0 %vm596_vm0, %v23353_v63  ;;  %v23383_v61 = vpop.f32.mrb[60].mxu1 }
 0x32e   : > { %26257 = vst [vmem:[#allocation119_spill] sm:$0xff] %v23383_v61  ;;  %v23385_v51 = vpop.f32.mrb[61].mxu1 }
 0x32f   : > { %26258 = vst [vmem:[#allocation120_spill] sm:$0xff] %v23385_v51 }
 0x330   : > { %18108 = vmatmul.mubr.msk.f32.gmra.mrb[20].mxu0 %vm596_vm0, %v23351_v48 }
 0x331   : > { %18110 = vmatprep.mubr.msk.f32.mxu0 %vm596_vm0, %v23361_v42  ;;  %v23391_v39 = vpop.f32.mrb[62].mxu1 }
 0x332   : > { %26259 = vst [vmem:[#allocation121_spill] sm:$0xff] %v23391_v39  ;;  %v23393_v44 = vpop.f32.mrb[63].mxu1 }
 0x333   : > { %26260 = vst [vmem:[#allocation122_spill] sm:$0xff] %v23393_v44 }
 0x334   : > { %18111 = vmatmul.mubr.msk.f32.gmra.mrb[22].mxu0 %vm596_vm0, %v23359_v57 }
 0x335   : > { %18145 = vmatprep.mubr.msk.f32.mxu0 %vm596_vm0, %v23369_v0  ;;  %v23399_v63 = vpop.f32.mrb[64].mxu1 }
 0x336   : > { %26261 = vst [vmem:[#allocation123_spill] sm:$0xff] %v23399_v63  ;;  %v23401_v6 = vpop.f32.mrb[65].mxu1 }
 0x337   : > { %26262 = vst [vmem:[#allocation124_spill] sm:$0xff] %v23401_v6 }
 0x338   : > { %18146 = vmatmul.mubr.msk.f32.vlgmr.msra.gmra.mrb[16].mxu0 %vm596_vm0, %v23367_v50 }
 0x339   : > { %20396 = vmatpush3.bf16.msra.mxu0 %v20393_v58  ;;  %18148 = vmatprep.mubr.msk.f32.mxu0 %vm596_vm0, %v23377_v4  ;;  %v23407_v42 = vpop.f32.mrb[66].mxu1 }
 0x33a   : > { %26263 = vst [vmem:[#allocation125_spill] sm:$0xff] %v23407_v42  ;;  %v23409_v48 = vpop.f32.mrb[67].mxu1 }
 0x33b   : > { %26264 = vst [vmem:[#allocation126_spill] sm:$0xff] %v23409_v48 }
 0x33c   : > { %18149 = vmatmul.mubr.msk.f32.gmra.mrb[18].mxu0 %vm596_vm0, %v23375_v5 }
 0x33d   : > { %18151 = vmatprep.mubr.msk.f32.mxu0 %vm596_vm0, %v23385_v51  ;;  %v23415_v0 = vpop.f32.mrb[68].mxu1 }
 0x33e   : > { %26265 = vst [vmem:[#allocation127_spill] sm:$0xff] %v23415_v0  ;;  %v23417_v57 = vpop.f32.mrb[69].mxu1 }
 0x33f   : > { %26266 = vst [vmem:[#allocation128_spill] sm:$0xff] %v23417_v57 }
 0x340   : > { %18152 = vmatmul.mubr.msk.f32.gmra.mrb[20].mxu0 %vm596_vm0, %v23383_v61 }
 0x341   : > { %18154 = vmatprep.mubr.msk.f32.mxu0 %vm596_vm0, %v23393_v44  ;;  %v23423_v58 = vpop.f32.mrb[70].mxu1 }
 0x342   : > { %26267 = vst [vmem:[#allocation129_spill] sm:$0xff] %v23423_v58  ;;  %v23425_v4 = vpop.f32.mrb[71].mxu1 }
 0x343   : > { %26268 = vst [vmem:[#allocation130_spill] sm:$0xff] %v23425_v4 }
 0x344   : > { %18155 = vmatmul.mubr.msk.f32.gmra.mrb[22].mxu0 %vm596_vm0, %v23391_v39 }
 0x345   : > { %18189 = vmatprep.mubr.msk.f32.mxu0 %vm596_vm0, %v23401_v6 }
 0x348   : > { %18190 = vmatmul.mubr.msk.f32.vlgmr.msra.gmra.mrb[16].mxu0 %vm596_vm0, %v23399_v63  ;;  %v15580_v63 = vld [vmem:[%s26269_s11] ss:$0 sm:$0xff] }
 0x349   : > { %18192 = vmatprep.mubr.msk.f32.mxu0 %vm596_vm0, %v23409_v48 }
 0x34c   : > { %18193 = vmatmul.mubr.msk.f32.gmra.mrb[18].mxu0 %vm596_vm0, %v23407_v42 }
 0x34d   : > { %18195 = vmatprep.mubr.msk.f32.mxu0 %vm596_vm0, %v23417_v57 }
 0x350   : > { %18196 = vmatmul.mubr.msk.f32.gmra.mrb[20].mxu0 %vm596_vm0, %v23415_v0 }
 0x351   : > { %18198 = vmatprep.mubr.msk.f32.mxu0 %vm596_vm0, %v23425_v4 }
 0x354   : > { %18199 = vmatmul.mubr.msk.f32.gmra.mrb[22].mxu0 %vm596_vm0, %v23423_v58 }
 0x41b   : > { %v18191_v48 = vpop.f32.mrb[16].mxu0 }
 0x41c   : > { %v3381_v6 = vadd.f32 %v18191_v48, %v15580_v63  ;;  %v3326_v39 = vpop.f32.mrb[17].mxu0 }
 0x41d   : > { %v3380_v42 = vadd.f32 %v15580_v63, %v3326_v39 }
 0x41e   : > { %v3389_v44 = vmax.f32 %v3381_v6, 0.0 }
 0x41f   : > { %v3388_v61 = vmax.f32 %v3380_v42, 0.0  ;;  %v18194_v57 = vpop.f32.mrb[18].mxu0 }
 0x420   : > { %v3383_v51 = vadd.f32 %v18194_v57, %v15580_v63  ;;  %v3336_v5 = vpop.f32.mrb[19].mxu0 }
 0x421   : > { %v23448_v0 = vpack.c.bf16 %v3389_v44, %v3388_v61  ;;  %v3382_v50 = vadd.f32 %v15580_v63, %v3336_v5  ;;  %v26302_v44 = vld [vmem:[#allocation64_spill] sm:$0xff] }
 0x422   : > { %v3391_v4 = vmax.f32 %v3383_v51, 0.0 }
 0x423   : > { %v3390_v55 = vmax.f32 %v3382_v50, 0.0  ;;  %v18197_v1 = vpop.f32.mrb[20].mxu0  ;;  %20398 = vmatprep.subr.bf16.mxu1 %v23448_v0 }
 0x424   : > { %v3385_v58 = vadd.f32 %v18197_v1, %v15580_v63  ;;  %v3346_v62 = vpop.f32.mrb[21].mxu0  ;;  %20400 = vmatpush3.bf16.msra.mxu1 %v23448_v0 }
 0x425   : > { %v23452_v48 = vpack.c.bf16 %v3391_v4, %v3390_v55  ;;  %v3384_v39 = vadd.f32 %v15580_v63, %v3346_v62  ;;  %v26300_v62 = vld [vmem:[#allocation60_spill] sm:$0xff] }
 0x426   : > { %v3393_v6 = vmax.f32 %v3385_v58, 0.0  ;;  %v26303_v58 = vld [vmem:[#allocation70_spill] sm:$0xff] }
 0x427   : > { %v3392_v42 = vmax.f32 %v3384_v39, 0.0  ;;  %v18200_v9 = vpop.f32.mrb[22].mxu0  ;;  %20402 = vmatprep.subr.bf16.mxu1 %v23452_v48  ;;  %v26304_v39 = vld [vmem:[#allocation68_spill] sm:$0xff] }
 0x428   : > { %v3387_v61 = vadd.f32 %v18200_v9, %v15580_v63  ;;  %v3356_v57 = vpop.f32.mrb[23].mxu0  ;;  %20404 = vmatpush3.bf16.msra.mxu1 %v23452_v48  ;;  %v26299_v9 = vld [vmem:[#allocation62_spill] sm:$0xff] }
 0x429   : > { %v23456_v50 = vpack.c.bf16 %v3393_v6, %v3392_v42  ;;  %v3386_v5 = vadd.f32 %v15580_v63, %v3356_v57  ;;  %v26301_v63 = vld [vmem:[#allocation66_spill] sm:$0xff]  ;;  %v26306_v57 = vld [vmem:[#allocation72_spill] sm:$0xff] }
 0x42a   : > { %v3395_v51 = vmax.f32 %v3387_v61, 0.0  ;;  %v26305_v6 = vld [vmem:[#allocation74_spill] sm:$0xff]  ;;  %v6059_v61 = vld [vmem:[#allocation8 + $0x168] sm:$0xff] }
 0x42b   : > { %v3394_v1 = vmax.f32 %v3386_v5, 0.0  ;;  %20406 = vmatprep.subr.bf16.mxu1 %v23456_v50  ;;  %v6058_v42 = vld [vmem:[#allocation8 + $0x160] sm:$0xff]  ;;  %v26307_v5 = vld [vmem:[#allocation76_spill] sm:$0xff] }
 0x42c   : > { %20408 = vmatpush3.bf16.msra.mxu1 %v23456_v50 }
 0x42d   : > { %v23460_v55 = vpack.c.bf16 %v3395_v51, %v3394_v1  ;;  %v20593_v51 = vpack.c.bf16 %v6059_v61, %v6058_v42  ;;  %v26308_v1 = vld [vmem:[#allocation75_spill] sm:$0xff]  ;;  %v26339_v61 = vld [vmem:[#allocation108_spill] sm:$0xff] }
 0x42e   : > { %v6523_v42 = vld [vmem:[#allocation8 + $0x1a8] sm:$0xff] }
 0x42f   : > { %20410 = vmatprep.subr.bf16.mxu1 %v23460_v55 }
 0x430   : > { %20412 = vmatpush3.bf16.msra.mxu1 %v23460_v55 }
 0x431   : > { %20414 = vmatprep.subr.bf16.mxu1 %v23448_v0 }
 0x433   : > { %18218 = vmatmul.mubr.msk.f32.vlgmr.msra.gmra.mrb[72].mxu1 %vm896_vm1, %v22817_v8 }
 0x434   : > { %20416 = vmatpush3.bf16.msra.mxu1 %v23448_v0  ;;  %18220 = vmatprep.mubr.msk.f32.mxu1 %vm896_vm1, %v22822_v11  ;;  %v26271_v11 = vld [vmem:[#allocation35_spill] sm:$0xff] }
 0x435   : > { %20418 = vmatprep.subr.bf16.mxu1 %v23452_v48 }
 0x437   : > { %18221 = vmatmul.mubr.msk.f32.gmra.mrb[74].mxu1 %vm896_vm1, %v22833_v13  ;;  %v26273_v13 = vld [vmem:[#allocation39_spill] sm:$0xff] }
 0x438   : > { %20420 = vmatpush3.bf16.msra.mxu1 %v23452_v48  ;;  %18223 = vmatprep.mubr.msk.f32.mxu1 %vm896_vm1, %v22840_v15  ;;  %v26275_v15 = vld [vmem:[#allocation43_spill] sm:$0xff] }
 0x439   : > { %20422 = vmatprep.subr.bf16.mxu1 %v23456_v50 }
 0x43b   : > { %18224 = vmatmul.mubr.msk.f32.gmra.mrb[76].mxu1 %vm896_vm1, %v22851_v17  ;;  %v3503_v17 = vld [vmem:[#allocation8 + $0x98] sm:$0xff] }
 0x43c   : > { %20424 = vmatpush3.bf16.msra.mxu1 %v23456_v50  ;;  %18226 = vmatprep.mubr.msk.f32.mxu1 %vm896_vm1, %v22858_v19  ;;  %v26276_v19 = vld [vmem:[#allocation44_spill] sm:$0xff] }
 0x43d   : > { %20426 = vmatprep.subr.bf16.mxu1 %v23460_v55 }
 0x43f   : > { %18227 = vmatmul.mubr.msk.f32.gmra.mrb[78].mxu1 %vm896_vm1, %v22869_v21  ;;  %v26278_v21 = vld [vmem:[#allocation46_spill] sm:$0xff] }
 0x440   : > { %20428 = vmatpush3.bf16.msra.mxu1 %v23460_v55  ;;  %18245 = vmatprep.mubr.msk.f32.mxu1 %vm896_vm1, %v22756_v38  ;;  %v3610_v38 = vld [vmem:[#allocation8 + $0xa0] sm:$0xff] }
 0x441   : > { %20438 = vmatprep.subr.bf16.mxu1 %v23448_v0 }
 0x443   : > { %18246 = vmatmul.mubr.msk.f32.vlgmr.msra.gmra.mrb[80].mxu1 %vm896_vm1, %v22815_v7  ;;  %v3611_v7 = vld [vmem:[#allocation8 + $0xa8] sm:$0xff] }
 0x444   : > { %20440 = vmatpush3.bf16.msra.mxu1 %v23448_v0  ;;  %18248 = vmatprep.mubr.msk.f32.mxu1 %vm896_vm1, %v22820_v10  ;;  %v20429_v8 = vpack.c.bf16 %v3611_v7, %v3610_v38  ;;  %v26270_v10 = vld [vmem:[#allocation34_spill] sm:$0xff]  ;;  %v26310_v7 = vld [vmem:[#allocation77_spill] sm:$0xff] }
 0x445   : > { %20442 = vmatprep.subr.bf16.mxu1 %v23452_v48  ;;  %v26309_v38 = vld [vmem:[#allocation78_spill] sm:$0xff] }
 0x446   : > { %20430 = vmatprep.subr.bf16.mxu0 %v20429_v8 }
 0x447   : > { %18249 = vmatmul.mubr.msk.f32.gmra.mrb[82].mxu1 %vm896_vm1, %v22831_v12  ;;  %20432 = vmatpush3.bf16.msra.mxu0 %v20429_v8  ;;  %v26272_v12 = vld [vmem:[#allocation38_spill] sm:$0xff]  ;;  %v26311_v8 = vld [vmem:[#allocation80_spill] sm:$0xff] }
 0x448   : > { %20444 = vmatpush3.bf16.msra.mxu1 %v23452_v48  ;;  %18251 = vmatprep.mubr.msk.f32.mxu1 %vm896_vm1, %v22836_v14  ;;  %v26274_v14 = vld [vmem:[#allocation42_spill] sm:$0xff] }
 0x449   : > { %20446 = vmatprep.subr.bf16.mxu1 %v23456_v50 }
 0x44b   : > { %18252 = vmatmul.mubr.msk.f32.gmra.mrb[84].mxu1 %vm896_vm1, %v22849_v16  ;;  %v3502_v16 = vld [vmem:[#allocation8 + $0x90] sm:$0xff] }
 0x44c   : > { %20448 = vmatpush3.bf16.msra.mxu1 %v23456_v50  ;;  %18254 = vmatprep.mubr.msk.f32.mxu1 %vm896_vm1, %v22854_v18  ;;  %v23621_v18 = vpack.c.bf16 %v3503_v17, %v3502_v16  ;;  %v26316_v17 = vld [vmem:[#allocation83_spill] sm:$0xff] }
 0x44d   : > { %20450 = vmatprep.subr.bf16.mxu1 %v23460_v55 }
 0x44e   : > { %20434 = vmatprep.subr.bf16.mxu0 %v23621_v18 }
 0x44f   : > { %18255 = vmatmul.mubr.msk.f32.gmra.mrb[86].mxu1 %vm896_vm1, %v22867_v20  ;;  %v26277_v20 = vld [vmem:[#allocation45_spill] sm:$0xff] }
 0x450   : > { %20452 = vmatpush3.bf16.msra.mxu1 %v23460_v55  ;;  %18305 = vmatprep.mubr.msk.f32.mxu1 %vm896_vm1, %v22872_v22  ;;  %v26279_v22 = vld [vmem:[#allocation47_spill] sm:$0xff] }
 0x451   : > { %20458 = vmatprep.subr.bf16.mxu1 %v23448_v0 }
 0x453   : > { %18306 = vmatmul.mubr.msk.f32.vlgmr.msra.gmra.mrb[88].mxu1 %vm896_vm1, %v22883_v23  ;;  %v26280_v23 = vld [vmem:[#allocation48_spill] sm:$0xff] }
 0x454   : > { %20460 = vmatpush3.bf16.msra.mxu1 %v23448_v0  ;;  %18308 = vmatprep.mubr.msk.f32.mxu1 %vm896_vm1, %v22886_v24  ;;  %v26281_v24 = vld [vmem:[#allocation49_spill] sm:$0xff] }
 0x455   : > { %20462 = vmatprep.subr.bf16.mxu1 %v23452_v48 }
 0x457   : > { %18309 = vmatmul.mubr.msk.f32.gmra.mrb[90].mxu1 %vm896_vm1, %v22893_v25  ;;  %v26282_v25 = vld [vmem:[#allocation50_spill] sm:$0xff] }
 0x458   : > { %20464 = vmatpush3.bf16.msra.mxu1 %v23452_v48  ;;  %18311 = vmatprep.mubr.msk.f32.mxu1 %vm896_vm1, %v22896_v26  ;;  %v26283_v26 = vld [vmem:[#allocation51_spill] sm:$0xff] }
 0x459   : > { %20466 = vmatprep.subr.bf16.mxu1 %v23456_v50 }
 0x45b   : > { %18312 = vmatmul.mubr.msk.f32.gmra.mrb[92].mxu1 %vm896_vm1, %v22903_v27  ;;  %v5613_v27 = vld [vmem:[#allocation8 + $0x130] sm:$0xff] }
 0x45c   : > { %20468 = vmatpush3.bf16.msra.mxu1 %v23456_v50  ;;  %18314 = vmatprep.mubr.msk.f32.mxu1 %vm896_vm1, %v22906_v28  ;;  %v5614_v28 = vld [vmem:[#allocation8 + $0x138] sm:$0xff] }
 0x45d   : > { %20470 = vmatprep.subr.bf16.mxu1 %v23460_v55 }
 0x45f   : > { %18315 = vmatmul.mubr.msk.f32.gmra.mrb[94].mxu1 %vm896_vm1, %v22913_v29  ;;  %v26284_v29 = vld [vmem:[#allocation52_spill] sm:$0xff] }
 0x460   : > { %20472 = vmatpush3.bf16.msra.mxu1 %v23460_v55  ;;  %18349 = vmatprep.mubr.msk.f32.mxu1 %vm896_vm1, %v22916_v30  ;;  %v26285_v30 = vld [vmem:[#allocation53_spill] sm:$0xff] }
 0x461   : > { %20478 = vmatprep.subr.bf16.mxu1 %v23448_v0 }
 0x463   : > { %18350 = vmatmul.mubr.msk.f32.vlgmr.msra.gmra.mrb[96].mxu1 %vm896_vm1, %v22923_v31  ;;  %v20577_v31 = vpack.c.bf16 %v5614_v28, %v5613_v27  ;;  %v26323_v27 = vld [vmem:[#allocation92_spill] sm:$0xff] }
 0x464   : > { %20480 = vmatpush3.bf16.msra.mxu1 %v23448_v0  ;;  %18352 = vmatprep.mubr.msk.f32.mxu1 %vm896_vm1, %v22926_v32  ;;  %v5610_v32 = vld [vmem:[#allocation8 + $0x120] sm:$0xff] }
 0x465   : > { %20482 = vmatprep.subr.bf16.mxu1 %v23452_v48 }
 0x467   : > { %18353 = vmatmul.mubr.msk.f32.gmra.mrb[98].mxu1 %vm896_vm1, %v22933_v33  ;;  %v5611_v33 = vld [vmem:[#allocation8 + $0x128] sm:$0xff] }
 0x468   : > { %20484 = vmatpush3.bf16.msra.mxu1 %v23452_v48  ;;  %18355 = vmatprep.mubr.msk.f32.mxu1 %vm896_vm1, %v22936_v34  ;;  %v26286_v34 = vld [vmem:[#allocation54_spill] sm:$0xff] }
 0x469   : > { %20486 = vmatprep.subr.bf16.mxu1 %v23456_v50 }
 0x46b   : > { %18356 = vmatmul.mubr.msk.f32.gmra.mrb[100].mxu1 %vm896_vm1, %v22943_v35  ;;  %v26287_v35 = vld [vmem:[#allocation55_spill] sm:$0xff] }
 0x46c   : > { %20488 = vmatpush3.bf16.msra.mxu1 %v23456_v50  ;;  %18358 = vmatprep.mubr.msk.f32.mxu1 %vm896_vm1, %v22946_v36  ;;  %v20581_v36 = vpack.c.bf16 %v5611_v33, %v5610_v32  ;;  %v26327_v32 = vld [vmem:[#allocation96_spill] sm:$0xff]  ;;  %v26328_v33 = vld [vmem:[#allocation95_spill] sm:$0xff] }
 0x46d   : > { %20490 = vmatprep.subr.bf16.mxu1 %v23460_v55 }
 0x46f   : > { %18359 = vmatmul.mubr.msk.f32.gmra.mrb[102].mxu1 %vm896_vm1, %v22953_v37  ;;  %v26288_v37 = vld [vmem:[#allocation56_spill] sm:$0xff] }
 0x470   : > { %20492 = vmatpush3.bf16.msra.mxu1 %v23460_v55  ;;  %18393 = vmatprep.mubr.msk.f32.mxu1 %vm896_vm1, %v22956_v40  ;;  %v26289_v40 = vld [vmem:[#allocation57_spill] sm:$0xff] }
 0x471   : > { %20498 = vmatprep.subr.bf16.mxu1 %v23448_v0 }
 0x473   : > { %18394 = vmatmul.mubr.msk.f32.vlgmr.msra.gmra.mrb[104].mxu1 %vm896_vm1, %v22963_v41  ;;  %v5826_v41 = vld [vmem:[#allocation8 + $0x140] sm:$0xff] }
 0x474   : > { %20500 = vmatpush3.bf16.msra.mxu1 %v23448_v0  ;;  %18396 = vmatprep.mubr.msk.f32.mxu1 %vm896_vm1, %v22966_v43  ;;  %v5827_v43 = vld [vmem:[#allocation8 + $0x148] sm:$0xff] }
 0x475   : > { %20502 = vmatprep.subr.bf16.mxu1 %v23452_v48 }
 0x477   : > { %18397 = vmatmul.mubr.msk.f32.gmra.mrb[106].mxu1 %vm896_vm1, %v22973_v45  ;;  %v26290_v45 = vld [vmem:[#allocation58_spill] sm:$0xff] }
 0x478   : > { %20504 = vmatpush3.bf16.msra.mxu1 %v23452_v48  ;;  %18399 = vmatprep.mubr.msk.f32.mxu1 %vm896_vm1, %v22976_v46  ;;  %v26291_v46 = vld [vmem:[#allocation61_spill] sm:$0xff] }
 0x479   : > { %20506 = vmatprep.subr.bf16.mxu1 %v23456_v50 }
 0x47b   : > { %18400 = vmatmul.mubr.msk.f32.gmra.mrb[108].mxu1 %vm896_vm1, %v22983_v47  ;;  %v20585_v47 = vpack.c.bf16 %v5827_v43, %v5826_v41  ;;  %v26330_v41 = vld [vmem:[#allocation97_spill] sm:$0xff]  ;;  %v26331_v43 = vld [vmem:[#allocation100_spill] sm:$0xff] }
 0x47c   : > { %20508 = vmatpush3.bf16.msra.mxu1 %v23456_v50  ;;  %18402 = vmatprep.mubr.msk.f32.mxu1 %vm896_vm1, %v22986_v49  ;;  %v26292_v49 = vld [vmem:[#allocation59_spill] sm:$0xff] }
 0x47d   : > { %20510 = vmatprep.subr.bf16.mxu1 %v23460_v55 }
 0x47f   : > { %18403 = vmatmul.mubr.msk.f32.gmra.mrb[110].mxu1 %vm896_vm1, %v22993_v52  ;;  %v26293_v52 = vld [vmem:[#allocation65_spill] sm:$0xff] }
 0x480   : > { %20512 = vmatpush3.bf16.msra.mxu1 %v23460_v55  ;;  %18437 = vmatprep.mubr.msk.f32.mxu1 %vm896_vm1, %v22996_v53  ;;  %v26294_v53 = vld [vmem:[#allocation63_spill] sm:$0xff] }
 0x481   : > { %20518 = vmatprep.subr.bf16.mxu1 %v23448_v0 }
 0x483   : > { %18438 = vmatmul.mubr.msk.f32.vlgmr.msra.gmra.mrb[112].mxu1 %vm896_vm1, %v23003_v54  ;;  %v26295_v54 = vld [vmem:[#allocation69_spill] sm:$0xff] }
 0x484   : > { %20520 = vmatpush3.bf16.msra.mxu1 %v23448_v0  ;;  %18440 = vmatprep.mubr.msk.f32.mxu1 %vm896_vm1, %v23006_v56  ;;  %v26296_v56 = vld [vmem:[#allocation67_spill] sm:$0xff] }
 0x485   : > { %20522 = vmatprep.subr.bf16.mxu1 %v23452_v48 }
 0x487   : > { %18441 = vmatmul.mubr.msk.f32.gmra.mrb[114].mxu1 %vm896_vm1, %v23013_v59  ;;  %v26297_v59 = vld [vmem:[#allocation73_spill] sm:$0xff] }
 0x488   : > { %20524 = vmatpush3.bf16.msra.mxu1 %v23452_v48  ;;  %18443 = vmatprep.mubr.msk.f32.mxu1 %vm896_vm1, %v23016_v60  ;;  %v5942_v60 = vld [vmem:[#allocation8 + $0x150] sm:$0xff] }
 0x489   : > { %20526 = vmatprep.subr.bf16.mxu1 %v23456_v50 }
 0x48b   : > { %18444 = vmatmul.mubr.msk.f32.gmra.mrb[116].mxu1 %vm896_vm1, %v23027_v2  ;;  %v5943_v2 = vld [vmem:[#allocation8 + $0x158] sm:$0xff] }
 0x48c   : > { %20528 = vmatpush3.bf16.msra.mxu1 %v23456_v50  ;;  %18446 = vmatprep.mubr.msk.f32.mxu1 %vm896_vm1, %v23030_v3  ;;  %v26298_v3 = vld [vmem:[#allocation71_spill] sm:$0xff]  ;;  %v20589_v4 = vpack.c.bf16 %v5943_v2, %v5942_v60 }
 0x48d   : > { %20530 = vmatprep.subr.bf16.mxu1 %v23460_v55 }
 0x48f   : > { %18447 = vmatmul.mubr.msk.f32.gmra.mrb[118].mxu1 %vm896_vm1, %v26270_v10  ;;  %v26312_v10 = vld [vmem:[#allocation79_spill] sm:$0xff] }
 0x490   : > { %20532 = vmatpush3.bf16.msra.mxu1 %v23460_v55  ;;  %18481 = vmatprep.mubr.msk.f32.mxu1 %vm896_vm1, %v26271_v11  ;;  %v26313_v11 = vld [vmem:[#allocation82_spill] sm:$0xff] }
 0x491   : > { %20538 = vmatprep.subr.bf16.mxu1 %v23448_v0 }
 0x493   : > { %18482 = vmatmul.mubr.msk.f32.vlgmr.msra.gmra.mrb[120].mxu1 %vm896_vm1, %v26272_v12  ;;  %v6174_v12 = vld [vmem:[#allocation8 + $0x170] sm:$0xff] }
 0x494   : > { %20540 = vmatpush3.bf16.msra.mxu1 %v23448_v0  ;;  %18484 = vmatprep.mubr.msk.f32.mxu1 %vm896_vm1, %v26273_v13  ;;  %v6175_v13 = vld [vmem:[#allocation8 + $0x178] sm:$0xff] }
 0x495   : > { %20542 = vmatprep.subr.bf16.mxu1 %v23452_v48  ;;  %v20597_v16 = vpack.c.bf16 %v6175_v13, %v6174_v12  ;;  %v26344_v13 = vld [vmem:[#allocation111_spill] sm:$0xff] }
 0x497   : > { %18485 = vmatmul.mubr.msk.f32.gmra.mrb[122].mxu1 %vm896_vm1, %v26274_v14  ;;  %v26314_v14 = vld [vmem:[#allocation81_spill] sm:$0xff] }
 0x498   : > { %20544 = vmatpush3.bf16.msra.mxu1 %v23452_v48  ;;  %18487 = vmatprep.mubr.msk.f32.mxu1 %vm896_vm1, %v26275_v15  ;;  %v26315_v15 = vld [vmem:[#allocation84_spill] sm:$0xff] }
 0x499   : > { %20546 = vmatprep.subr.bf16.mxu1 %v23456_v50 }
 0x49b   : > { %18488 = vmatmul.mubr.msk.f32.gmra.mrb[124].mxu1 %vm896_vm1, %v26276_v19  ;;  %v26317_v19 = vld [vmem:[#allocation86_spill] sm:$0xff] }
 0x49c   : > { %20548 = vmatpush3.bf16.msra.mxu1 %v23456_v50  ;;  %18490 = vmatprep.mubr.msk.f32.mxu1 %vm896_vm1, %v26277_v20  ;;  %v26318_v20 = vld [vmem:[#allocation85_spill] sm:$0xff] }
 0x49d   : > { %20550 = vmatprep.subr.bf16.mxu1 %v23460_v55 }
 0x49f   : > { %18491 = vmatmul.mubr.msk.f32.gmra.mrb[126].mxu1 %vm896_vm1, %v26278_v21  ;;  %v26319_v21 = vld [vmem:[#allocation88_spill] sm:$0xff] }
 0x4a0   : > { %20552 = vmatpush3.bf16.msra.mxu1 %v23460_v55  ;;  %18525 = vmatprep.mubr.msk.f32.mxu1 %vm896_vm1, %v26279_v22  ;;  %v26320_v22 = vld [vmem:[#allocation87_spill] sm:$0xff] }
 0x4a1   : > { %21313 = vmatprep.subr.bf16.mxu1 %v23448_v0 }
 0x4a3   : > { %18526 = vmatmul.mubr.msk.f32.vlgmr.msra.gmra.mrb[128].mxu1 %vm896_vm1, %v26280_v23  ;;  %v26321_v23 = vld [vmem:[#allocation90_spill] sm:$0xff] }
 0x4a4   : > { %21317 = vmatpush3.bf16.msra.mxu1 %v23448_v0  ;;  %18528 = vmatprep.mubr.msk.f32.mxu1 %vm896_vm1, %v26281_v24  ;;  %v6290_v24 = vld [vmem:[#allocation8 + $0x180] sm:$0xff] }
 0x4a5   : > { %21314 = vmatprep.subr.bf16.mxu1 %v23452_v48 }
 0x4a7   : > { %18529 = vmatmul.mubr.msk.f32.gmra.mrb[130].mxu1 %vm896_vm1, %v26282_v25  ;;  %v6291_v25 = vld [vmem:[#allocation8 + $0x188] sm:$0xff] }
 0x4a8   : > { %21318 = vmatpush3.bf16.msra.mxu1 %v23452_v48  ;;  %18531 = vmatprep.mubr.msk.f32.mxu1 %vm896_vm1, %v26283_v26  ;;  %v26322_v26 = vld [vmem:[#allocation89_spill] sm:$0xff]  ;;  %v20601_v28 = vpack.c.bf16 %v6291_v25, %v6290_v24  ;;  %v26348_v24 = vld [vmem:[#allocation115_spill] sm:$0xff] }
 0x4a9   : > { %21315 = vmatprep.subr.bf16.mxu1 %v23456_v50 }
 0x4ab   : > { %18532 = vmatmul.mubr.msk.f32.gmra.mrb[132].mxu1 %vm896_vm1, %v26284_v29  ;;  %v26324_v29 = vld [vmem:[#allocation91_spill] sm:$0xff] }
 0x4ac   : > { %21319 = vmatpush3.bf16.msra.mxu1 %v23456_v50  ;;  %18534 = vmatprep.mubr.msk.f32.mxu1 %vm896_vm1, %v26285_v30  ;;  %v26325_v30 = vld [vmem:[#allocation94_spill] sm:$0xff] }
 0x4ad   : > { %21316 = vmatprep.subr.bf16.mxu1 %v23460_v55 }
 0x4af   : > { %18535 = vmatmul.mubr.msk.f32.gmra.mrb[134].mxu1 %vm896_vm1, %v26286_v34  ;;  %v26329_v34 = vld [vmem:[#allocation98_spill] sm:$0xff] }
 0x4b0   : > { %21320 = vmatpush3.bf16.msra.mxu1 %v23460_v55  ;;  %18575 = vmatprep.mubr.msk.f32.mxu1 %vm896_vm1, %v26287_v35 }
 0x4b1   : > { %20578 = vmatprep.subr.bf16.mxu1 %v20577_v31 }
 0x4b3   : > { %18576 = vmatmul.mubr.msk.f32.vlgmr.msra.gmra.mrb[136].mxu1 %vm896_vm1, %v26288_v37  ;;  %v6407_v37 = vld [vmem:[#allocation8 + $0x198] sm:$0xff] }
 0x4b4   : > { %18578 = vmatprep.mubr.msk.f32.mxu1 %vm896_vm1, %v26289_v40  ;;  %20580 = vmatpush3.bf16.msra.mxu1 %v20577_v31  ;;  %v26326_v31 = vld [vmem:[#allocation93_spill] sm:$0xff] }
 0x4b5   : > { %20582 = vmatprep.subr.bf16.mxu1 %v20581_v36 }
 0x4b7   : > { %18579 = vmatmul.mubr.msk.f32.gmra.mrb[138].mxu1 %vm896_vm1, %v26290_v45 }
 0x4b8   : > { %18601 = vmatprep.mubr.msk.f32.mxu1 %vm596_vm0, %v26291_v46 }
 0x4bb   : > { %18602 = vmatmul.mubr.msk.f32.vlgmr.msra.gmra.mrb[140].mxu1 %vm596_vm0, %v26292_v49  ;;  %v26332_v49 = vld [vmem:[#allocation99_spill] sm:$0xff] }
 0x4bc   : > { %18604 = vmatprep.mubr.msk.f32.mxu1 %vm596_vm0, %v26293_v52  ;;  %20584 = vmatpush3.bf16.msra.mxu1 %v20581_v36  ;;  %v6406_v36 = vld [vmem:[#allocation8 + $0x190] sm:$0xff]  ;;  %v26333_v52 = vld [vmem:[#allocation102_spill] sm:$0xff] }
 0x4bd   : > { %20586 = vmatprep.subr.bf16.mxu1 %v20585_v47  ;;  %v20605_v45 = vpack.c.bf16 %v6407_v37, %v6406_v36  ;;  %v4467_v36 = vld [vmem:[#allocation8 + $0xd8] sm:$0xff] }
 0x4bf   : > { %18605 = vmatmul.mubr.msk.f32.gmra.mrb[142].mxu1 %vm596_vm0, %v26294_v53 }
 0x4c0   : > { %18607 = vmatprep.mubr.msk.f32.mxu1 %vm596_vm0, %v26295_v54 }
 0x4c3   : > { %18608 = vmatmul.mubr.msk.f32.gmra.mrb[144].mxu1 %vm596_vm0, %v26296_v56  ;;  %v26334_v56 = vld [vmem:[#allocation101_spill] sm:$0xff] }
 0x4c4   : > { %18610 = vmatprep.mubr.msk.f32.mxu1 %vm596_vm0, %v26297_v59  ;;  %v26335_v59 = vld [vmem:[#allocation104_spill] sm:$0xff] }
 0x4c7   : > { %18611 = vmatmul.mubr.msk.f32.gmra.mrb[146].mxu1 %vm596_vm0, %v26298_v3  ;;  %v26336_v3 = vld [vmem:[#allocation103_spill] sm:$0xff] }
 0x4c8   : > { %18617 = vmatprep.mubr.msk.f32.mxu1 %vm596_vm0, %v26299_v9  ;;  %v26337_v9 = vld [vmem:[#allocation106_spill] sm:$0xff] }
 0x4cb   : > { %18618 = vmatmul.mubr.msk.f32.vlgmr.msra.gmra.mrb[140].mxu1 %vm596_vm0, %v26300_v62  ;;  %v3977_v62 = vld [vmem:[#allocation8 + $0xb8] sm:$0xff] }
 0x4cc   : > { %18620 = vmatprep.mubr.msk.f32.mxu1 %vm596_vm0, %v26301_v63  ;;  %20588 = vmatpush3.bf16.msra.mxu1 %v20585_v47 }
 0x4cd   : > { %20590 = vmatprep.subr.bf16.mxu1 %v20589_v4 }
 0x4cf   : > { %18621 = vmatmul.mubr.msk.f32.gmra.mrb[142].mxu1 %vm596_vm0, %v26302_v44 }
 0x4d0   : > { %18623 = vmatprep.mubr.msk.f32.mxu1 %vm596_vm0, %v26303_v58  ;;  %v26338_v58 = vld [vmem:[#allocation105_spill] sm:$0xff] }
 0x4d3   : > { %18624 = vmatmul.mubr.msk.f32.gmra.mrb[144].mxu1 %vm596_vm0, %v26304_v39 }
 0x4d4   : > { %18626 = vmatprep.mubr.msk.f32.mxu1 %vm596_vm0, %v26305_v6  ;;  %v6522_v6 = vld [vmem:[#allocation8 + $0x1a0] sm:$0xff] }
 0x4d7   : > { %18627 = vmatmul.mubr.msk.f32.gmra.mrb[146].mxu1 %vm596_vm0, %v26306_v57 }
 0x4d8   : > { %18633 = vmatprep.mubr.msk.f32.mxu1 %vm596_vm0, %v26307_v5  ;;  %v20609_v5 = vpack.c.bf16 %v6523_v42, %v6522_v6  ;;  %v23847_v6 = vld [vmem:[#allocation10 + $0x100] sm:$0xff] }
 0x4db   : > { %18634 = vmatmul.mubr.msk.f32.vlgmr.msra.gmra.mrb[140].mxu1 %vm596_vm0, %v26308_v1  ;;  %v26340_v1 = vld [vmem:[#allocation107_spill] sm:$0xff] }
 0x4dc   : > { %18636 = vmatprep.mubr.msk.f32.mxu1 %vm596_vm0, %v26309_v38  ;;  %20592 = vmatpush3.bf16.msra.mxu1 %v20589_v4  ;;  %v3976_v4 = vld [vmem:[#allocation8 + $0xb0] sm:$0xff]  ;;  %v26341_v38 = vld [vmem:[#allocation110_spill] sm:$0xff] }
 0x4dd   : > { %20594 = vmatprep.subr.bf16.mxu1 %v20593_v51  ;;  %v20453_v39 = vpack.c.bf16 %v3977_v62, %v3976_v4  ;;  %v4711_v4 = vld [vmem:[#allocation8 + $0xe0] sm:$0xff]  ;;  %v4712_v62 = vld [vmem:[#allocation8 + $0xe8] sm:$0xff] }
 0x4df   : > { %18637 = vmatmul.mubr.msk.f32.gmra.mrb[142].mxu1 %vm596_vm0, %v26310_v7 }
 0x4e0   : > { %18639 = vmatprep.mubr.msk.f32.mxu1 %vm596_vm0, %v26311_v8 }
 0x4e3   : > { %18640 = vmatmul.mubr.msk.f32.gmra.mrb[144].mxu1 %vm596_vm0, %v26312_v10  ;;  %v26342_v10 = vld [vmem:[#allocation109_spill] sm:$0xff] }
 0x4e4   : > { %18642 = vmatprep.mubr.msk.f32.mxu1 %vm596_vm0, %v26313_v11 }
 0x4e7   : > { %18643 = vmatmul.mubr.msk.f32.gmra.mrb[146].mxu1 %vm596_vm0, %v26314_v14  ;;  %v26345_v14 = vld [vmem:[#allocation114_spill] sm:$0xff] }
 0x4e8   : > { %18649 = vmatprep.mubr.msk.f32.mxu1 %vm596_vm0, %v26315_v15  ;;  %v4221_v15 = vld [vmem:[#allocation8 + $0xc0] sm:$0xff] }
 0x4eb   : > { %18650 = vmatmul.mubr.msk.f32.vlgmr.msra.gmra.mrb[140].mxu1 %vm596_vm0, %v26316_v17 }
 0x4ec   : > { %18652 = vmatprep.mubr.msk.f32.mxu1 %vm596_vm0, %v26317_v19  ;;  %20596 = vmatpush3.bf16.msra.mxu1 %v20593_v51  ;;  %v26346_v19 = vld [vmem:[#allocation113_spill] sm:$0xff] }
 0x4ed   : > { %20598 = vmatprep.subr.bf16.mxu1 %v20597_v16 }
 0x4ef   : > { %18653 = vmatmul.mubr.msk.f32.gmra.mrb[142].mxu1 %vm596_vm0, %v26318_v20 }
 0x4f0   : > { %18655 = vmatprep.mubr.msk.f32.mxu1 %vm596_vm0, %v26319_v21 }
 0x4f3   : > { %18656 = vmatmul.mubr.msk.f32.gmra.mrb[144].mxu1 %vm596_vm0, %v26320_v22  ;;  %v26347_v22 = vld [vmem:[#allocation116_spill] sm:$0xff] }
 0x4f4   : > { %18658 = vmatprep.mubr.msk.f32.mxu1 %vm596_vm0, %v26321_v23 }
 0x4f7   : > { %18659 = vmatmul.mubr.msk.f32.gmra.mrb[146].mxu1 %vm596_vm0, %v26322_v26  ;;  %v26349_v26 = vld [vmem:[#allocation118_spill] sm:$0xff] }
 0x4f8   : > { %18665 = vmatprep.mubr.msk.f32.mxu1 %vm596_vm0, %v26323_v27 }
 0x4fb   : > { %18666 = vmatmul.mubr.msk.f32.vlgmr.msra.gmra.mrb[140].mxu1 %vm596_vm0, %v26324_v29 }
 0x4fc   : > { %18668 = vmatprep.mubr.msk.f32.mxu1 %vm596_vm0, %v26325_v30  ;;  %20600 = vmatpush3.bf16.msra.mxu1 %v20597_v16  ;;  %v4222_v16 = vld [vmem:[#allocation8 + $0xc8] sm:$0xff]  ;;  %v26351_v30 = vld [vmem:[#allocation120_spill] sm:$0xff] }
 0x4fd   : > { %20602 = vmatprep.subr.bf16.mxu1 %v20601_v28  ;;  %v20473_v21 = vpack.c.bf16 %v4222_v16, %v4221_v15 }
 0x4ff   : > { %18669 = vmatmul.mubr.msk.f32.gmra.mrb[142].mxu1 %vm596_vm0, %v26326_v31 }
 0x500   : > { %18671 = vmatprep.mubr.msk.f32.mxu1 %vm596_vm0, %v26327_v32  ;;  %v26352_v32 = vld [vmem:[#allocation119_spill] sm:$0xff] }
 0x503   : > { %18672 = vmatmul.mubr.msk.f32.gmra.mrb[144].mxu1 %vm596_vm0, %v26328_v33 }
 0x504   : > { %18674 = vmatprep.mubr.msk.f32.mxu1 %vm596_vm0, %v26329_v34  ;;  %v26353_v34 = vld [vmem:[#allocation122_spill] sm:$0xff] }
 0x506   : > { %v23743_v35 = vpop.f32.mrb[72].mxu1 }
 0x507   : > { %v3462_v40 = vpop.f32.mrb[73].mxu1  ;;  %18675 = vmatmul.mubr.msk.f32.gmra.mrb[146].mxu1 %vm596_vm0, %v26330_v41 }
 0x508   : > { %18681 = vmatprep.mubr.msk.f32.mxu1 %vm596_vm0, %v26331_v43 }
 0x50a   : > { %v23749_v46 = vpop.f32.mrb[74].mxu1 }
 0x50b   : > { %v3472_v47 = vpop.f32.mrb[75].mxu1  ;;  %18682 = vmatmul.mubr.msk.f32.vlgmr.msra.gmra.mrb[140].mxu1 %vm596_vm0, %v26332_v49 }
 0x50c   : > { %18684 = vmatprep.mubr.msk.f32.mxu1 %vm596_vm0, %v26333_v52  ;;  %20604 = vmatpush3.bf16.msra.mxu1 %v20601_v28  ;;  %v26350_v28 = vld [vmem:[#allocation117_spill] sm:$0xff]  ;;  %v26357_v52 = vld [vmem:[#allocation126_spill] sm:$0xff] }
 0x50d   : > { %20606 = vmatprep.subr.bf16.mxu1 %v20605_v45 }
 0x50e   : > { %v23755_v53 = vpop.f32.mrb[76].mxu1 }
 0x50f   : > { %v3482_v54 = vpop.f32.mrb[77].mxu1  ;;  %18685 = vmatmul.mubr.msk.f32.gmra.mrb[142].mxu1 %vm596_vm0, %v26334_v56 }
 0x510   : > { %18687 = vmatprep.mubr.msk.f32.mxu1 %vm596_vm0, %v26335_v59  ;;  %v26359_v59 = vld [vmem:[#allocation128_spill] sm:$0xff] }
 0x512   : > { %v23761_v60 = vpop.f32.mrb[78].mxu1 }
 0x513   : > { %v3492_v2 = vpop.f32.mrb[79].mxu1  ;;  %18688 = vmatmul.mubr.msk.f32.gmra.mrb[144].mxu1 %vm596_vm0, %v26336_v3 }
 0x514   : > { %18690 = vmatprep.mubr.msk.f32.mxu1 %vm596_vm0, %v26337_v9  ;;  %v26361_v9 = vld [vmem:[#allocation130_spill] sm:$0xff] }
 0x516   : > { %v18247_v63 = vpop.f32.mrb[80].mxu1 }
 0x517   : > { %v3570_v44 = vpop.f32.mrb[81].mxu1  ;;  %18691 = vmatmul.mubr.msk.f32.gmra.mrb[146].mxu1 %vm596_vm0, %v26338_v58 }
 0x518   : > { %18261 = vmatprep.mubr.msk.f32.mxu0 %vm596_vm0, %v3570_v44  ;;  %18697 = vmatprep.mubr.msk.f32.mxu1 %vm596_vm0, %v26339_v61  ;;  %v26362_v44 = vld [vmem:[#allocation129_spill] sm:$0xff] }
 0x519   : > { %18262 = vmatmul.mubr.msk.f32.vlgmr.msra.gmra.mrb[24].mxu0 %vm596_vm0, %v18247_v63 }
 0x51a   : > { %v18250_v57 = vpop.f32.mrb[82].mxu1  ;;  %20436 = vmatpush3.bf16.msra.mxu0 %v23621_v18  ;;  %v26343_v18 = vld [vmem:[#allocation112_spill] sm:$0xff] }
 0x51b   : > { %v3580_v51 = vpop.f32.mrb[83].mxu1  ;;  %18698 = vmatmul.mubr.msk.f32.vlgmr.msra.gmra.mrb[140].mxu1 %vm596_vm0, %v26340_v1  ;;  %20454 = vmatprep.subr.bf16.mxu0 %v20453_v39 }
 0x51c   : > { %18264 = vmatprep.mubr.msk.f32.mxu0 %vm596_vm0, %v3580_v51  ;;  %18700 = vmatprep.mubr.msk.f32.mxu1 %vm596_vm0, %v26341_v38  ;;  %v4956_v38 = vld [vmem:[#allocation8 + $0xf0] sm:$0xff] }
 0x51d   : > { %18265 = vmatmul.mubr.msk.f32.gmra.mrb[26].mxu0 %vm596_vm0, %v18250_v57  ;;  %20608 = vmatpush3.bf16.msra.mxu1 %v20605_v45  ;;  %v26355_v45 = vld [vmem:[#allocation124_spill] sm:$0xff] }
 0x51e   : > { %v18253_v7 = vpop.f32.mrb[84].mxu1  ;;  %20610 = vmatprep.subr.bf16.mxu1 %v20609_v5 }
 0x51f   : > { %v3590_v8 = vpop.f32.mrb[85].mxu1  ;;  %18701 = vmatmul.mubr.msk.f32.gmra.mrb[142].mxu1 %vm596_vm0, %v26342_v10 }
 0x520   : > { %18267 = vmatprep.mubr.msk.f32.mxu0 %vm596_vm0, %v3590_v8  ;;  %18703 = vmatprep.mubr.msk.f32.mxu1 %vm596_vm0, %v26343_v18 }
 0x521   : > { %18268 = vmatmul.mubr.msk.f32.gmra.mrb[28].mxu0 %vm596_vm0, %v18253_v7  ;;  %v4957_v7 = vld [vmem:[#allocation8 + $0xf8] sm:$0xff] }
 0x522   : > { %v18256_v11 = vpop.f32.mrb[86].mxu1  ;;  %v20533_v18 = vpack.c.bf16 %v4957_v7, %v4956_v38 }
 0x523   : > { %v3600_v12 = vpop.f32.mrb[87].mxu1  ;;  %18704 = vmatmul.mubr.msk.f32.gmra.mrb[144].mxu1 %vm596_vm0, %v26344_v13 }
 0x524   : > { %18270 = vmatprep.mubr.msk.f32.mxu0 %vm596_vm0, %v3600_v12  ;;  %18706 = vmatprep.mubr.msk.f32.mxu1 %vm596_vm0, %v26345_v14 }
 0x525   : > { %18271 = vmatmul.mubr.msk.f32.gmra.mrb[30].mxu0 %vm596_vm0, %v18256_v11 }
 0x526   : > { %18277 = vmatprep.mubr.msk.f32.mxu0 %vm596_vm0, %v3462_v40  ;;  %v18307_v17 = vpop.f32.mrb[88].mxu1  ;;  %v26354_v40 = vld [vmem:[#allocation121_spill] sm:$0xff] }
 0x527   : > { %18707 = vmatmul.mubr.msk.f32.gmra.mrb[146].mxu1 %vm596_vm0, %v26346_v19  ;;  %v3936_v20 = vpop.f32.mrb[89].mxu1  ;;  %v5202_v19 = vld [vmem:[#allocation8 + $0x108] sm:$0xff] }
 0x528   : > { %18713 = vmatprep.mubr.msk.f32.mxu1 %vm596_vm0, %v26347_v22 }
 0x529   : > { %18278 = vmatmul.mubr.msk.f32.vlgmr.msra.gmra.mrb[24].mxu0 %vm596_vm0, %v23743_v35  ;;  %v4466_v35 = vld [vmem:[#allocation8 + $0xd0] sm:$0xff] }
 0x52a   : > { %18280 = vmatprep.mubr.msk.f32.mxu0 %vm596_vm0, %v3472_v47  ;;  %20456 = vmatpush3.bf16.msra.mxu0 %v20453_v39  ;;  %v18310_v23 = vpop.f32.mrb[90].mxu1  ;;  %v20493_v43 = vpack.c.bf16 %v4467_v36, %v4466_v35  ;;  %v26356_v47 = vld [vmem:[#allocation123_spill] sm:$0xff]  ;;  %v20513_v39 = vpack.c.bf16 %v4712_v62, %v4711_v4 }
 0x52b   : > { %18714 = vmatmul.mubr.msk.f32.vlgmr.msra.gmra.mrb[140].mxu1 %vm596_vm0, %v26348_v24  ;;  %20474 = vmatprep.subr.bf16.mxu0 %v20473_v21  ;;  %v3946_v25 = vpop.f32.mrb[91].mxu1 }
 0x52c   : > { %18716 = vmatprep.mubr.msk.f32.mxu1 %vm596_vm0, %v26349_v26  ;;  %20612 = vmatpush3.bf16.msra.mxu1 %v20609_v5 }
 0x52d   : > { %18281 = vmatmul.mubr.msk.f32.gmra.mrb[26].mxu0 %vm596_vm0, %v23749_v46 }
 0x52e   : > { %18283 = vmatprep.mubr.msk.f32.mxu0 %vm596_vm0, %v3482_v54  ;;  %v18313_v27 = vpop.f32.mrb[92].mxu1  ;;  %v26358_v54 = vld [vmem:[#allocation125_spill] sm:$0xff] }
 0x52f   : > { %18717 = vmatmul.mubr.msk.f32.gmra.mrb[142].mxu1 %vm596_vm0, %v26350_v28  ;;  %v3956_v29 = vpop.f32.mrb[93].mxu1 }
 0x530   : > { %18719 = vmatprep.mubr.msk.f32.mxu1 %vm596_vm0, %v26351_v30 }
 0x531   : > { %18284 = vmatmul.mubr.msk.f32.gmra.mrb[28].mxu0 %vm596_vm0, %v23755_v53 }
 0x532   : > { %18286 = vmatprep.mubr.msk.f32.mxu0 %vm596_vm0, %v3492_v2  ;;  %v18316_v31 = vpop.f32.mrb[94].mxu1  ;;  %v26360_v2 = vld [vmem:[#allocation127_spill] sm:$0xff] }
 0x533   : > { %18720 = vmatmul.mubr.msk.f32.gmra.mrb[144].mxu1 %vm596_vm0, %v26352_v32  ;;  %v3966_v33 = vpop.f32.mrb[95].mxu1 }
 0x534   : > { %18722 = vmatprep.mubr.msk.f32.mxu1 %vm596_vm0, %v26353_v34 }
 0x535   : > { %18287 = vmatmul.mubr.msk.f32.gmra.mrb[30].mxu0 %vm596_vm0, %v23761_v60 }
 0x536   : > { %18321 = vmatprep.mubr.msk.f32.mxu0 %vm596_vm0, %v3936_v20  ;;  %v18351_v37 = vpop.f32.mrb[96].mxu1 }
 0x537   : > { %18723 = vmatmul.mubr.msk.f32.gmra.mrb[146].mxu1 %vm596_vm0, %v26354_v40  ;;  %v4181_v41 = vpop.f32.mrb[97].mxu1 }
 0x538   : > { %18729 = vmatprep.mubr.msk.f32.mxu1 %vm596_vm0, %v26355_v45  ;;  %v5447_v45 = vld [vmem:[#allocation8 + $0x118] sm:$0xff] }
 0x539   : > { %18322 = vmatmul.mubr.msk.f32.vlgmr.msra.gmra.mrb[24].mxu0 %vm596_vm0, %v18307_v17  ;;  %v5201_v17 = vld [vmem:[#allocation8 + $0x100] sm:$0xff] }
 0x53a   : > { %20476 = vmatpush3.bf16.msra.mxu0 %v20473_v21  ;;  %18324 = vmatprep.mubr.msk.f32.mxu0 %vm596_vm0, %v3946_v25  ;;  %v18354_v46 = vpop.f32.mrb[98].mxu1  ;;  %v20553_v22 = vpack.c.bf16 %v5202_v19, %v5201_v17  ;;  %v23963_v17 = vld [vmem:[#allocation10 + $0x128] sm:$0xff]  ;;  %v23968_v19 = vld [vmem:[#allocation10 + $0x130] sm:$0xff] }
 0x53b   : > { %18730 = vmatmul.mubr.msk.f32.vlgmr.msra.gmra.mrb[140].mxu1 %vm596_vm0, %v26356_v47  ;;  %20494 = vmatprep.subr.bf16.mxu0 %v20493_v43  ;;  %v4191_v49 = vpop.f32.mrb[99].mxu1  ;;  %v23910_v47 = vld [vmem:[#allocation10 + $0x208] sm:$0xff] }
 0x53c   : > { %18732 = vmatprep.mubr.msk.f32.mxu1 %vm596_vm0, %v26357_v52 }
 0x53d   : > { %18325 = vmatmul.mubr.msk.f32.gmra.mrb[26].mxu0 %vm596_vm0, %v18310_v23 }
 0x53e   : > { %18327 = vmatprep.mubr.msk.f32.mxu0 %vm596_vm0, %v3956_v29  ;;  %v18357_v53 = vpop.f32.mrb[100].mxu1 }
 0x53f   : > { %18733 = vmatmul.mubr.msk.f32.gmra.mrb[142].mxu1 %vm596_vm0, %v26358_v54  ;;  %v4201_v56 = vpop.f32.mrb[101].mxu1 }
 0x540   : > { %18735 = vmatprep.mubr.msk.f32.mxu1 %vm596_vm0, %v26359_v59 }
 0x541   : > { %18328 = vmatmul.mubr.msk.f32.gmra.mrb[28].mxu0 %vm596_vm0, %v18313_v27 }
 0x542   : > { %18330 = vmatprep.mubr.msk.f32.mxu0 %vm596_vm0, %v3966_v33  ;;  %v18360_v60 = vpop.f32.mrb[102].mxu1 }
 0x543   : > { %18736 = vmatmul.mubr.msk.f32.gmra.mrb[144].mxu1 %vm596_vm0, %v26360_v2  ;;  %v4211_v3 = vpop.f32.mrb[103].mxu1 }
 0x544   : > { %18738 = vmatprep.mubr.msk.f32.mxu1 %vm596_vm0, %v26361_v9 }
 0x545   : > { %18331 = vmatmul.mubr.msk.f32.gmra.mrb[30].mxu0 %vm596_vm0, %v18316_v31 }
 0x546   : > { %18365 = vmatprep.mubr.msk.f32.mxu0 %vm596_vm0, %v4181_v41  ;;  %v18395_v63 = vpop.f32.mrb[104].mxu1 }
 0x547   : > { %18739 = vmatmul.mubr.msk.f32.gmra.mrb[146].mxu1 %vm596_vm0, %v26362_v44  ;;  %v4426_v58 = vpop.f32.mrb[105].mxu1 }
 0x548   : > { %18933 = vmatprep.mubr.msk.f32.mxu1 %vm896_vm1, %v23847_v6 }
 0x549   : > { %18366 = vmatmul.mubr.msk.f32.vlgmr.msra.gmra.mrb[24].mxu0 %vm596_vm0, %v18351_v37 }
 0x54a   : > { %20496 = vmatpush3.bf16.msra.mxu0 %v20493_v43  ;;  %18368 = vmatprep.mubr.msk.f32.mxu0 %vm596_vm0, %v4191_v49  ;;  %v18398_v42 = vpop.f32.mrb[106].mxu1  ;;  %v23918_v49 = vld [vmem:[#allocation10 + $0x218] sm:$0xff] }
 0x54b   : > { %20514 = vmatprep.subr.bf16.mxu0 %v20513_v39  ;;  %v4436_v61 = vpop.f32.mrb[107].mxu1 }
 0x54d   : > { %18369 = vmatmul.mubr.msk.f32.gmra.mrb[26].mxu0 %vm596_vm0, %v18354_v46 }
 0x54e   : > { %18371 = vmatprep.mubr.msk.f32.mxu0 %vm596_vm0, %v4201_v56  ;;  %v18401_v57 = vpop.f32.mrb[108].mxu1 }
 0x54f   : > { %v4446_v5 = vpop.f32.mrb[109].mxu1 }
 0x551   : > { %18372 = vmatmul.mubr.msk.f32.gmra.mrb[28].mxu0 %vm596_vm0, %v18357_v53 }
 0x552   : > { %18374 = vmatprep.mubr.msk.f32.mxu0 %vm596_vm0, %v4211_v3  ;;  %v18404_v51 = vpop.f32.mrb[110].mxu1 }
 0x553   : > { %v4456_v1 = vpop.f32.mrb[111].mxu1 }
 0x555   : > { %18375 = vmatmul.mubr.msk.f32.gmra.mrb[30].mxu0 %vm596_vm0, %v18360_v60 }
 0x556   : > { %18409 = vmatprep.mubr.msk.f32.mxu0 %vm596_vm0, %v4426_v58  ;;  %v18439_v8 = vpop.f32.mrb[112].mxu1 }
 0x557   : > { %v4671_v10 = vpop.f32.mrb[113].mxu1 }
 0x559   : > { %18410 = vmatmul.mubr.msk.f32.vlgmr.msra.gmra.mrb[24].mxu0 %vm596_vm0, %v18395_v63 }
 0x55a   : > { %20516 = vmatpush3.bf16.msra.mxu0 %v20513_v39  ;;  %18412 = vmatprep.mubr.msk.f32.mxu0 %vm596_vm0, %v4436_v61  ;;  %v18442_v11 = vpop.f32.mrb[114].mxu1 }
 0x55b   : > { %20534 = vmatprep.subr.bf16.mxu0 %v20533_v18  ;;  %v4681_v12 = vpop.f32.mrb[115].mxu1 }
 0x55d   : > { %18413 = vmatmul.mubr.msk.f32.gmra.mrb[26].mxu0 %vm596_vm0, %v18398_v42 }
 0x55e   : > { %18415 = vmatprep.mubr.msk.f32.mxu0 %vm596_vm0, %v4446_v5  ;;  %v18445_v13 = vpop.f32.mrb[116].mxu1 }
 0x55f   : > { %v4691_v14 = vpop.f32.mrb[117].mxu1 }
 0x561   : > { %18416 = vmatmul.mubr.msk.f32.gmra.mrb[28].mxu0 %vm596_vm0, %v18401_v57 }
 0x562   : > { %18418 = vmatprep.mubr.msk.f32.mxu0 %vm596_vm0, %v4456_v1  ;;  %v18448_v15 = vpop.f32.mrb[118].mxu1 }
 0x563   : > { %v4701_v16 = vpop.f32.mrb[119].mxu1 }
 0x565   : > { %18419 = vmatmul.mubr.msk.f32.gmra.mrb[30].mxu0 %vm596_vm0, %v18404_v51 }
 0x566   : > { %18453 = vmatprep.mubr.msk.f32.mxu0 %vm596_vm0, %v4671_v10  ;;  %v18483_v20 = vpop.f32.mrb[120].mxu1 }
 0x567   : > { %v4916_v21 = vpop.f32.mrb[121].mxu1 }
 0x569   : > { %18454 = vmatmul.mubr.msk.f32.vlgmr.msra.gmra.mrb[24].mxu0 %vm596_vm0, %v18439_v8 }
 0x56a   : > { %20536 = vmatpush3.bf16.msra.mxu0 %v20533_v18  ;;  %18456 = vmatprep.mubr.msk.f32.mxu0 %vm596_vm0, %v4681_v12  ;;  %v18486_v23 = vpop.f32.mrb[122].mxu1 }
 0x56b   : > { %20554 = vmatprep.subr.bf16.mxu0 %v20553_v22  ;;  %v4926_v24 = vpop.f32.mrb[123].mxu1 }
 0x56d   : > { %18457 = vmatmul.mubr.msk.f32.gmra.mrb[26].mxu0 %vm596_vm0, %v18442_v11 }
 0x56e   : > { %18459 = vmatprep.mubr.msk.f32.mxu0 %vm596_vm0, %v4691_v14  ;;  %v18489_v25 = vpop.f32.mrb[124].mxu1  ;;  %v23948_v14 = vld [vmem:[#allocation10 + $0x110] sm:$0xff] }
 0x56f   : > { %v4936_v26 = vpop.f32.mrb[125].mxu1 }
 0x571   : > { %18460 = vmatmul.mubr.msk.f32.gmra.mrb[28].mxu0 %vm596_vm0, %v18445_v13  ;;  %v23943_v13 = vld [vmem:[#allocation10 + $0x108] sm:$0xff] }
 0x572   : > { %18462 = vmatprep.mubr.msk.f32.mxu0 %vm596_vm0, %v4701_v16  ;;  %v18492_v27 = vpop.f32.mrb[126].mxu1  ;;  %v23958_v16 = vld [vmem:[#allocation10 + $0x120] sm:$0xff] }
 0x573   : > { %v4946_v28 = vpop.f32.mrb[127].mxu1 }
 0x575   : > { %18463 = vmatmul.mubr.msk.f32.gmra.mrb[30].mxu0 %vm596_vm0, %v18448_v15  ;;  %v23953_v15 = vld [vmem:[#allocation10 + $0x118] sm:$0xff] }
 0x576   : > { %18497 = vmatprep.mubr.msk.f32.mxu0 %vm596_vm0, %v4916_v21  ;;  %v18527_v29 = vpop.f32.mrb[128].mxu1  ;;  %v21829_v21 = vld [vmem:[#allocation10 + $0x140] sm:$0xff] }
 0x577   : > { %v5161_v30 = vpop.f32.mrb[129].mxu1 }
 0x579   : > { %18498 = vmatmul.mubr.msk.f32.vlgmr.msra.gmra.mrb[24].mxu0 %vm596_vm0, %v18483_v20  ;;  %v23973_v20 = vld [vmem:[#allocation10 + $0x138] sm:$0xff] }
 0x57a   : > { %20556 = vmatpush3.bf16.msra.mxu0 %v20553_v22  ;;  %18500 = vmatprep.mubr.msk.f32.mxu0 %vm596_vm0, %v4926_v24  ;;  %v18530_v31 = vpop.f32.mrb[130].mxu1  ;;  %v21830_v22 = vld [vmem:[#allocation10 + $0x148] sm:$0xff]  ;;  %v21832_v24 = vld [vmem:[#allocation10 + $0x158] sm:$0xff] }
 0x57b   : > { %20558 = vmatprep.subr.bf16.mxu0 %v23448_v0  ;;  %v5171_v32 = vpop.f32.mrb[131].mxu1 }
 0x57d   : > { %18501 = vmatmul.mubr.msk.f32.gmra.mrb[26].mxu0 %vm596_vm0, %v18486_v23  ;;  %v21831_v23 = vld [vmem:[#allocation10 + $0x150] sm:$0xff] }
 0x57e   : > { %18503 = vmatprep.mubr.msk.f32.mxu0 %vm596_vm0, %v4936_v26  ;;  %v18533_v33 = vpop.f32.mrb[132].mxu1  ;;  %v21834_v26 = vld [vmem:[#allocation10 + $0x168] sm:$0xff] }
 0x57f   : > { %v5181_v34 = vpop.f32.mrb[133].mxu1 }
 0x581   : > { %18504 = vmatmul.mubr.msk.f32.gmra.mrb[28].mxu0 %vm596_vm0, %v18489_v25  ;;  %v21833_v25 = vld [vmem:[#allocation10 + $0x160] sm:$0xff] }
 0x582   : > { %18506 = vmatprep.mubr.msk.f32.mxu0 %vm596_vm0, %v4946_v28  ;;  %v18536_v35 = vpop.f32.mrb[134].mxu1  ;;  %v21836_v28 = vld [vmem:[#allocation10 + $0x178] sm:$0xff] }
 0x583   : > { %v5191_v36 = vpop.f32.mrb[135].mxu1 }
 0x585   : > { %18507 = vmatmul.mubr.msk.f32.gmra.mrb[30].mxu0 %vm596_vm0, %v18492_v27  ;;  %v21835_v27 = vld [vmem:[#allocation10 + $0x170] sm:$0xff] }
 0x586   : > { %18541 = vmatprep.mubr.msk.f32.mxu0 %vm596_vm0, %v5161_v30  ;;  %v23884_v37 = vpop.f32.mrb[136].mxu1  ;;  %v23999_v30 = vld [vmem:[#allocation10 + $0x188] sm:$0xff] }
 0x587   : > { %v23886_v40 = vpop.f32.mrb[137].mxu1 }
 0x589   : > { %18542 = vmatmul.mubr.msk.f32.vlgmr.msra.gmra.mrb[24].mxu0 %vm596_vm0, %v18527_v29  ;;  %v23994_v29 = vld [vmem:[#allocation10 + $0x180] sm:$0xff] }
 0x58a   : > { %20560 = vmatpush3.bf16.msra.mxu0 %v23448_v0  ;;  %18544 = vmatprep.mubr.msk.f32.mxu0 %vm596_vm0, %v5171_v32  ;;  %v23891_v41 = vpop.f32.mrb[138].mxu1  ;;  %v5446_v0 = vld [vmem:[#allocation8 + $0x110] sm:$0xff]  ;;  %v24009_v32 = vld [vmem:[#allocation10 + $0x198] sm:$0xff] }
 0x58b   : > { %20562 = vmatprep.subr.bf16.mxu0 %v23452_v48  ;;  %v23894_v43 = vpop.f32.mrb[139].mxu1  ;;  %v20573_v46 = vpack.c.bf16 %v5447_v45, %v5446_v0  ;;  %v21845_v0 = vld [vmem:[#allocation10 + $0x1c0] sm:$0xff]  ;;  %v21846_v45 = vld [vmem:[#allocation10 + $0x1c8] sm:$0xff] }
 0x58d   : > { %18545 = vmatmul.mubr.msk.f32.gmra.mrb[26].mxu0 %vm596_vm0, %v18530_v31  ;;  %v24004_v31 = vld [vmem:[#allocation10 + $0x190] sm:$0xff] }
 0x58e   : > { %20564 = vmatpush3.bf16.msra.mxu0 %v23452_v48  ;;  %18547 = vmatprep.mubr.msk.f32.mxu0 %vm596_vm0, %v5181_v34  ;;  %v23906_v48 = vld [vmem:[#allocation10 + $0x200] sm:$0xff]  ;;  %v24019_v34 = vld [vmem:[#allocation10 + $0x1a8] sm:$0xff] }
 0x58f   : > { %20566 = vmatprep.subr.bf16.mxu0 %v23456_v50 }
 0x591   : > { %18548 = vmatmul.mubr.msk.f32.gmra.mrb[28].mxu0 %vm596_vm0, %v18533_v33  ;;  %v24014_v33 = vld [vmem:[#allocation10 + $0x1a0] sm:$0xff] }
 0x592   : > { %20568 = vmatpush3.bf16.msra.mxu0 %v23456_v50  ;;  %18550 = vmatprep.mubr.msk.f32.mxu0 %vm596_vm0, %v5191_v36  ;;  %v23914_v50 = vld [vmem:[#allocation10 + $0x210] sm:$0xff]  ;;  %v24029_v36 = vld [vmem:[#allocation10 + $0x1b8] sm:$0xff] }
 0x593   : > { %20570 = vmatprep.subr.bf16.mxu0 %v23460_v55 }
 0x595   : > { %18551 = vmatmul.mubr.msk.f32.gmra.mrb[30].mxu0 %vm596_vm0, %v18536_v35  ;;  %v24024_v35 = vld [vmem:[#allocation10 + $0x1b0] sm:$0xff] }
 0x596   : > { %20572 = vmatpush3.bf16.msra.mxu0 %v23460_v55  ;;  %18569 = vmatprep.mubr.msk.f32.mxu0 %vm896_vm1, %v23906_v48  ;;  %v15800_v55 = vld [vmem:[%s26269_s11 + $0x2] ss:$0 sm:$0xff] }
 0x597   : > { %20574 = vmatprep.subr.bf16.mxu0 %v20573_v46 }
 0x599   : > { %18570 = vmatmul.mubr.msk.f32.vlgmr.msra.gmra.mrb[32].mxu0 %vm896_vm1, %v23910_v47 }
 0x59a   : > { %18572 = vmatprep.mubr.msk.f32.mxu0 %vm896_vm1, %v23914_v50  ;;  %20576 = vmatpush3.bf16.msra.mxu0 %v20573_v46  ;;  %v21847_v46 = vld [vmem:[#allocation10 + $0x1d0] sm:$0xff] }
 0x59d   : > { %18573 = vmatmul.mubr.msk.f32.gmra.mrb[34].mxu0 %vm896_vm1, %v23918_v49 }
 0x60e   : > { %v18731_v52 = vpop.f32.mrb[140].mxu1 }
 0x60f   : > { %v6646_v53 = vadd.f32 %v18731_v52, %v15800_v55  ;;  %v6590_v54 = vpop.f32.mrb[141].mxu1  ;;  %v15427_v52 = vld [vmem:[%s26363_s2] ss:$0 sm:$0xff] }
 0x610   : > { %v6645_v56 = vadd.f32 %v15800_v55, %v6590_v54  ;;  %v26364_v54 = vld [vmem:[#allocation30_spill] sm:$0xff] }
 0x611   : > { %v6654_v59 = vmax.f32 %v6646_v53, 0.0  ;;  %v21849_v53 = vld [vmem:[#allocation10 + $0x1e0] sm:$0xff] }
 0x612   : > { %v6653_v60 = vmax.f32 %v6645_v56, 0.0  ;;  %v18734_v2 = vpop.f32.mrb[142].mxu1  ;;  %v24048_v56 = vadd.f32 %v26364_v54, %v15427_v52  ;;  %v24206_v54 = vld [vmem:[#allocation10 + $0x88] sm:$0xff] }
 0x613   : > { %v6648_v3 = vadd.f32 %v18734_v2, %v15800_v55  ;;  %v6600_v9 = vpop.f32.mrb[143].mxu1  ;;  %v21850_v2 = vld [vmem:[#allocation10 + $0x1e8] sm:$0xff] }
 0x614   : > { %v23925_v4 = vpack.c.bf16 %v6654_v59, %v6653_v60  ;;  %v6647_v62 = vadd.f32 %v15800_v55, %v6600_v9  ;;  %26365 = vst [vmem:[#allocation34_spill] sm:$0xff] %v24048_v56  ;;  %v26366_v59 = vld [vmem:[#allocation31_spill] sm:$0xff] }
 0x615   : > { %v6656_v63 = vmax.f32 %v6648_v3, 0.0  ;;  %v24051_v60 = vadd.f32 %v15427_v52, %v26366_v59  ;;  %v21851_v3 = vld [vmem:[#allocation10 + $0x1f0] sm:$0xff] }
 0x616   : > { %v6655_v44 = vmax.f32 %v6647_v62, 0.0  ;;  %v18737_v58 = vpop.f32.mrb[144].mxu1  ;;  %20614 = vmatprep.subr.bf16.mxu0 %v23925_v4  ;;  %20694 = vmatprep.subr.bf16.mxu1 %v23925_v4  ;;  %v26368_v62 = vld [vmem:[#allocation32_spill] sm:$0xff] }
 0x617   : > { %v6650_v39 = vadd.f32 %v18737_v58, %v15800_v55  ;;  %v6610_v42 = vpop.f32.mrb[145].mxu1  ;;  %20696 = vmatpush3.bf16.msra.mxu1 %v23925_v4  ;;  %26367 = vst [vmem:[#allocation35_spill] sm:$0xff] %v24051_v60  ;;  %v24059_v9 = vpack.c.bf16 %v24048_v56, %v24051_v60  ;;  %v24216_v59 = vld [vmem:[#allocation10 + $0x90] sm:$0xff] }
 0x618   : > { %v23930_v61 = vpack.c.bf16 %v6656_v63, %v6655_v44  ;;  %v6649_v57 = vadd.f32 %v15800_v55, %v6610_v42  ;;  %v24062_v63 = vadd.f32 %v26368_v62, %v15427_v52  ;;  %v26370_v44 = vld [vmem:[#allocation33_spill] sm:$0xff]  ;;  %v24230_v62 = vld [vmem:[#allocation10 + $0xa0] sm:$0xff] }
 0x619   : > { %v6658_v5 = vmax.f32 %v6650_v39, 0.0  ;;  %v24065_v58 = vadd.f32 %v15427_v52, %v26370_v44  ;;  %v21852_v39 = vld [vmem:[#allocation10 + $0x1f8] sm:$0xff]  ;;  %v21871_v44 = vld [vmem:[#allocation10 + $0x48] sm:$0xff] }
 0x61a   : > { %v6657_v51 = vmax.f32 %v6649_v57, 0.0  ;;  %v18740_v1 = vpop.f32.mrb[146].mxu1  ;;  %20698 = vmatprep.subr.bf16.mxu1 %v23930_v61  ;;  %26369 = vst [vmem:[#allocation38_spill] sm:$0xff] %v24062_v63  ;;  %v26372_v57 = vld [vmem:[#allocation36_spill] sm:$0xff] }
 0x61b   : > { %v6652_v38 = vadd.f32 %v18740_v1, %v15800_v55  ;;  %v6620_v7 = vpop.f32.mrb[147].mxu1  ;;  %20700 = vmatpush3.bf16.msra.mxu1 %v23930_v61  ;;  %26371 = vst [vmem:[#allocation39_spill] sm:$0xff] %v24065_v58  ;;  %v24074_v42 = vpack.c.bf16 %v24062_v63, %v24065_v58 }
 0x61c   : > { %v23934_v8 = vpack.c.bf16 %v6658_v5, %v6657_v51  ;;  %v6651_v10 = vadd.f32 %v15800_v55, %v6620_v7  ;;  %v21848_v55 = vld [vmem:[#allocation10 + $0x1d8] sm:$0xff]  ;;  %v24077_v5 = vadd.f32 %v26372_v57, %v15427_v52  ;;  %v26376_v7 = vld [vmem:[#allocation40_spill] sm:$0xff] }
 0x61d   : > { %v6660_v18 = vmax.f32 %v6652_v38, 0.0  ;;  %v26374_v51 = vld [vmem:[#allocation37_spill] sm:$0xff]  ;;  %v21873_v57 = vld [vmem:[#allocation10 + $0x50] sm:$0xff] }
 0x61e   : > { %v6659_v11 = vmax.f32 %v6651_v10, 0.0  ;;  %20702 = vmatprep.subr.bf16.mxu1 %v23934_v8  ;;  %26373 = vst [vmem:[#allocation42_spill] sm:$0xff] %v24077_v5  ;;  %v24080_v1 = vadd.f32 %v15427_v52, %v26374_v51  ;;  %v24093_v10 = vadd.f32 %v26376_v7, %v15427_v52  ;;  %v24242_v51 = vld [vmem:[#allocation10 + $0xb0] sm:$0xff]  ;;  %v21875_v7 = vld [vmem:[#allocation10 + $0x58] sm:$0xff] }
 0x61f   : > { %20704 = vmatpush3.bf16.msra.mxu1 %v23934_v8 }
 0x620   : > { %v23938_v12 = vpack.c.bf16 %v6660_v18, %v6659_v11  ;;  %26375 = vst [vmem:[#allocation43_spill] sm:$0xff] %v24080_v1  ;;  %v24090_v38 = vpack.c.bf16 %v24077_v5, %v24080_v1  ;;  %26377 = vst [vmem:[#allocation44_spill] sm:$0xff] %v24093_v10  ;;  %v26378_v18 = vld [vmem:[#allocation41_spill] sm:$0xff] }
 0x621   : > { %v24096_v11 = vadd.f32 %v15427_v52, %v26378_v18  ;;  %v24190_v52 = vld [vmem:[#allocation10 + $0x38] sm:$0xff] }
 0x622   : > { %20706 = vmatprep.subr.bf16.mxu1 %v23938_v12  ;;  %v24247_v18 = vld [vmem:[#allocation10 + $0xb8] sm:$0xff] }
 0x623   : > { %20708 = vmatpush3.bf16.msra.mxu1 %v23938_v12  ;;  %26379 = vst [vmem:[#allocation45_spill] sm:$0xff] %v24096_v11 }
 0x624   : > { %20714 = vmatprep.subr.bf16.mxu1 %v23925_v4 }
 0x626   : > { %18934 = vmatmul.mubr.msk.f32.vlgmr.msra.gmra.mrb[148].mxu1 %vm896_vm1, %v23943_v13 }
 0x627   : > { %20716 = vmatpush3.bf16.msra.mxu1 %v23925_v4  ;;  %18936 = vmatprep.mubr.msk.f32.mxu1 %vm896_vm1, %v23948_v14 }
 0x628   : > { %20718 = vmatprep.subr.bf16.mxu1 %v23930_v61 }
 0x62a   : > { %18937 = vmatmul.mubr.msk.f32.gmra.mrb[150].mxu1 %vm896_vm1, %v23953_v15 }
 0x62b   : > { %20720 = vmatpush3.bf16.msra.mxu1 %v23930_v61  ;;  %18939 = vmatprep.mubr.msk.f32.mxu1 %vm896_vm1, %v23958_v16 }
 0x62c   : > { %20722 = vmatprep.subr.bf16.mxu1 %v23934_v8 }
 0x62e   : > { %18940 = vmatmul.mubr.msk.f32.gmra.mrb[152].mxu1 %vm896_vm1, %v23963_v17 }
 0x62f   : > { %20724 = vmatpush3.bf16.msra.mxu1 %v23934_v8  ;;  %18942 = vmatprep.mubr.msk.f32.mxu1 %vm896_vm1, %v23968_v19 }
 0x630   : > { %20726 = vmatprep.subr.bf16.mxu1 %v23938_v12 }
 0x632   : > { %18943 = vmatmul.mubr.msk.f32.gmra.mrb[154].mxu1 %vm896_vm1, %v23973_v20 }
 0x633   : > { %20728 = vmatpush3.bf16.msra.mxu1 %v23938_v12  ;;  %18977 = vmatprep.mubr.msk.f32.mxu1 %vm896_vm1, %v21829_v21  ;;  %v24101_v21 = vld [vmem:[#allocation10 + $0x220] sm:$0xff] }
 0x634   : > { %20734 = vmatprep.subr.bf16.mxu1 %v23925_v4 }
 0x636   : > { %18978 = vmatmul.mubr.msk.f32.vlgmr.msra.gmra.mrb[156].mxu1 %vm896_vm1, %v21830_v22 }
 0x637   : > { %20736 = vmatpush3.bf16.msra.mxu1 %v23925_v4  ;;  %18980 = vmatprep.mubr.msk.f32.mxu1 %vm896_vm1, %v21831_v23 }
 0x638   : > { %20738 = vmatprep.subr.bf16.mxu1 %v23930_v61 }
 0x63a   : > { %18981 = vmatmul.mubr.msk.f32.gmra.mrb[158].mxu1 %vm896_vm1, %v21832_v24  ;;  %v24108_v24 = vpack.c.bf16 %v24093_v10, %v24096_v11 }
 0x63b   : > { %20740 = vmatpush3.bf16.msra.mxu1 %v23930_v61  ;;  %18983 = vmatprep.mubr.msk.f32.mxu1 %vm896_vm1, %v21833_v25  ;;  %v24111_v25 = vld [vmem:[#allocation10 + $0x228] sm:$0xff] }
 0x63c   : > { %20742 = vmatprep.subr.bf16.mxu1 %v23934_v8 }
 0x63e   : > { %18984 = vmatmul.mubr.msk.f32.gmra.mrb[160].mxu1 %vm896_vm1, %v21834_v26 }
 0x63f   : > { %20744 = vmatpush3.bf16.msra.mxu1 %v23934_v8  ;;  %18986 = vmatprep.mubr.msk.f32.mxu1 %vm896_vm1, %v21835_v27 }
 0x640   : > { %20746 = vmatprep.subr.bf16.mxu1 %v23938_v12 }
 0x642   : > { %18987 = vmatmul.mubr.msk.f32.gmra.mrb[162].mxu1 %vm896_vm1, %v21836_v28  ;;  %v24120_v28 = vld [vmem:[#allocation10 + $0x230] sm:$0xff] }
 0x643   : > { %20748 = vmatpush3.bf16.msra.mxu1 %v23938_v12  ;;  %19021 = vmatprep.mubr.msk.f32.mxu1 %vm896_vm1, %v23994_v29 }
 0x644   : > { %20754 = vmatprep.subr.bf16.mxu1 %v23925_v4 }
 0x646   : > { %19022 = vmatmul.mubr.msk.f32.vlgmr.msra.gmra.mrb[164].mxu1 %vm896_vm1, %v23999_v30 }
 0x647   : > { %20756 = vmatpush3.bf16.msra.mxu1 %v23925_v4  ;;  %19024 = vmatprep.mubr.msk.f32.mxu1 %vm896_vm1, %v24004_v31 }
 0x648   : > { %20758 = vmatprep.subr.bf16.mxu1 %v23930_v61 }
 0x64a   : > { %19025 = vmatmul.mubr.msk.f32.gmra.mrb[166].mxu1 %vm896_vm1, %v24009_v32 }
 0x64b   : > { %20760 = vmatpush3.bf16.msra.mxu1 %v23930_v61  ;;  %19027 = vmatprep.mubr.msk.f32.mxu1 %vm896_vm1, %v24014_v33 }
 0x64c   : > { %20762 = vmatprep.subr.bf16.mxu1 %v23934_v8 }
 0x64e   : > { %19028 = vmatmul.mubr.msk.f32.gmra.mrb[168].mxu1 %vm896_vm1, %v24019_v34 }
 0x64f   : > { %20764 = vmatpush3.bf16.msra.mxu1 %v23934_v8  ;;  %19030 = vmatprep.mubr.msk.f32.mxu1 %vm896_vm1, %v24024_v35 }
 0x650   : > { %20766 = vmatprep.subr.bf16.mxu1 %v23938_v12 }
 0x652   : > { %19031 = vmatmul.mubr.msk.f32.gmra.mrb[170].mxu1 %vm896_vm1, %v24029_v36 }
 0x653   : > { %20768 = vmatpush3.bf16.msra.mxu1 %v23938_v12  ;;  %19065 = vmatprep.mubr.msk.f32.mxu1 %vm896_vm1, %v21845_v0  ;;  %v24125_v0 = vld [vmem:[#allocation10 + $0x238] sm:$0xff] }
 0x654   : > { %20774 = vmatprep.subr.bf16.mxu1 %v23925_v4 }
 0x656   : > { %19066 = vmatmul.mubr.msk.f32.vlgmr.msra.gmra.mrb[172].mxu1 %vm896_vm1, %v21846_v45  ;;  %v24136_v45 = vld [vmem:[#allocation10] sm:$0xff] }
 0x657   : > { %20776 = vmatpush3.bf16.msra.mxu1 %v23925_v4  ;;  %19068 = vmatprep.mubr.msk.f32.mxu1 %vm896_vm1, %v21847_v46  ;;  %v24142_v46 = vld [vmem:[#allocation10 + $0x8] sm:$0xff] }
 0x658   : > { %20778 = vmatprep.subr.bf16.mxu1 %v23930_v61 }
 0x65a   : > { %19069 = vmatmul.mubr.msk.f32.gmra.mrb[174].mxu1 %vm896_vm1, %v21848_v55  ;;  %v24184_v55 = vld [vmem:[#allocation10 + $0x30] sm:$0xff] }
 0x65b   : > { %20780 = vmatpush3.bf16.msra.mxu1 %v23930_v61  ;;  %19071 = vmatprep.mubr.msk.f32.mxu1 %vm896_vm1, %v21849_v53  ;;  %v24200_v53 = vld [vmem:[#allocation10 + $0x80] sm:$0xff] }
 0x65c   : > { %20782 = vmatprep.subr.bf16.mxu1 %v23934_v8 }
 0x65e   : > { %19072 = vmatmul.mubr.msk.f32.gmra.mrb[176].mxu1 %vm896_vm1, %v21850_v2  ;;  %v24222_v2 = vld [vmem:[#allocation10 + $0x98] sm:$0xff] }
 0x65f   : > { %20784 = vmatpush3.bf16.msra.mxu1 %v23934_v8  ;;  %19074 = vmatprep.mubr.msk.f32.mxu1 %vm896_vm1, %v21851_v3  ;;  %v21869_v3 = vld [vmem:[#allocation10 + $0x40] sm:$0xff] }
 0x660   : > { %20786 = vmatprep.subr.bf16.mxu1 %v23938_v12 }
 0x662   : > { %19075 = vmatmul.mubr.msk.f32.gmra.mrb[178].mxu1 %vm896_vm1, %v21852_v39  ;;  %v24235_v39 = vld [vmem:[#allocation10 + $0xa8] sm:$0xff] }
 0x663   : > { %20788 = vmatpush3.bf16.msra.mxu1 %v23938_v12  ;;  %19109 = vmatprep.mubr.msk.f32.mxu1 %vm896_vm1, %v23906_v48 }
 0x664   : > { %20794 = vmatprep.subr.bf16.mxu1 %v24059_v9 }
 0x666   : > { %19110 = vmatmul.mubr.msk.f32.vlgmr.msra.gmra.mrb[180].mxu1 %vm896_vm1, %v23910_v47 }
 0x667   : > { %20796 = vmatpush3.bf16.msra.mxu1 %v24059_v9  ;;  %19112 = vmatprep.mubr.msk.f32.mxu1 %vm896_vm1, %v23914_v50 }
 0x668   : > { %20798 = vmatprep.subr.bf16.mxu1 %v24074_v42 }
 0x66a   : > { %19113 = vmatmul.mubr.msk.f32.gmra.mrb[182].mxu1 %vm896_vm1, %v23918_v49 }
 0x66b   : > { %20800 = vmatpush3.bf16.msra.mxu1 %v24074_v42  ;;  %19115 = vmatprep.mubr.msk.f32.mxu1 %vm896_vm1, %v24101_v21 }
 0x66c   : > { %v18571_v22 = vpop.f32.mrb[32].mxu0  ;;  %20802 = vmatprep.subr.bf16.mxu1 %v24090_v38 }
 0x66d   : > { %v5406_v23 = vpop.f32.mrb[33].mxu0 }
 0x66e   : > { %18585 = vmatprep.mubr.msk.f32.mxu0 %vm596_vm0, %v5406_v23  ;;  %19116 = vmatmul.mubr.msk.f32.gmra.mrb[184].mxu1 %vm896_vm1, %v24111_v25  ;;  %v21878_v23 = vld [vmem:[#allocation10 + $0x68] sm:$0xff] }
 0x66f   : > { %18586 = vmatmul.mubr.msk.f32.vlgmr.msra.gmra.mrb[24].mxu0 %vm596_vm0, %v18571_v22  ;;  %20804 = vmatpush3.bf16.msra.mxu1 %v24090_v38  ;;  %v21877_v22 = vld [vmem:[#allocation10 + $0x60] sm:$0xff] }
 0x670   : > { %20616 = vmatpush3.bf16.msra.mxu0 %v23925_v4  ;;  %v18574_v26 = vpop.f32.mrb[34].mxu0  ;;  %20806 = vmatprep.subr.bf16.mxu1 %v24108_v24 }
 0x671   : > { %20618 = vmatprep.subr.bf16.mxu0 %v23930_v61  ;;  %v5416_v27 = vpop.f32.mrb[35].mxu0  ;;  %19118 = vmatprep.mubr.msk.f32.mxu1 %vm896_vm1, %v24120_v28 }
 0x672   : > { %18588 = vmatprep.mubr.msk.f32.mxu0 %vm596_vm0, %v5416_v27  ;;  %19119 = vmatmul.mubr.msk.f32.gmra.mrb[186].mxu1 %vm896_vm1, %v24125_v0  ;;  %v21880_v27 = vld [vmem:[#allocation10 + $0x78] sm:$0xff] }
 0x673   : > { %18589 = vmatmul.mubr.msk.f32.gmra.mrb[26].mxu0 %vm596_vm0, %v18574_v26  ;;  %20808 = vmatpush3.bf16.msra.mxu1 %v24108_v24  ;;  %v21879_v26 = vld [vmem:[#allocation10 + $0x70] sm:$0xff] }
 0x674   : > { %20620 = vmatpush3.bf16.msra.mxu0 %v23930_v61  ;;  %18591 = vmatprep.mubr.msk.f32.mxu0 %vm596_vm0, %v23886_v40  ;;  %v24152_v40 = vld [vmem:[#allocation10 + $0x10] sm:$0xff] }
 0x675   : > { %20622 = vmatprep.subr.bf16.mxu0 %v23934_v8  ;;  %20826 = vmatprep.subr.bf16.mxu1 %v24059_v9 }
 0x676   : > { %19153 = vmatprep.mubr.msk.f32.mxu1 %vm896_vm1, %v24136_v45 }
 0x677   : > { %18592 = vmatmul.mubr.msk.f32.gmra.mrb[28].mxu0 %vm596_vm0, %v23884_v37  ;;  %19154 = vmatmul.mubr.msk.f32.vlgmr.msra.gmra.mrb[188].mxu1 %vm896_vm1, %v24142_v46  ;;  %v24158_v37 = vld [vmem:[#allocation10 + $0x18] sm:$0xff] }
 0x678   : > { %20624 = vmatpush3.bf16.msra.mxu0 %v23934_v8  ;;  %20828 = vmatpush3.bf16.msra.mxu1 %v24059_v9 }
 0x679   : > { %18594 = vmatprep.mubr.msk.f32.mxu0 %vm596_vm0, %v23894_v43  ;;  %20626 = vmatprep.subr.bf16.mxu0 %v23938_v12  ;;  %v24168_v43 = vld [vmem:[#allocation10 + $0x20] sm:$0xff] }
 0x67a   : > { %20830 = vmatprep.subr.bf16.mxu1 %v24074_v42  ;;  %19156 = vmatprep.mubr.msk.f32.mxu1 %vm896_vm1, %v24152_v40 }
 0x67b   : > { %18595 = vmatmul.mubr.msk.f32.gmra.mrb[30].mxu0 %vm596_vm0, %v23891_v41  ;;  %19157 = vmatmul.mubr.msk.f32.gmra.mrb[190].mxu1 %vm896_vm1, %v24158_v37  ;;  %v24174_v41 = vld [vmem:[#allocation10 + $0x28] sm:$0xff] }
 0x67c   : > { %20628 = vmatpush3.bf16.msra.mxu0 %v23938_v12  ;;  %20832 = vmatpush3.bf16.msra.mxu1 %v24074_v42 }
 0x67d   : > { %20630 = vmatprep.subr.bf16.mxu0 %v23925_v4  ;;  %20834 = vmatprep.subr.bf16.mxu1 %v24090_v38 }
 0x67e   : > { %18757 = vmatprep.mubr.msk.f32.mxu0 %vm896_vm1, %v24136_v45  ;;  %19159 = vmatprep.mubr.msk.f32.mxu1 %vm896_vm1, %v24168_v43 }
 0x67f   : > { %18758 = vmatmul.mubr.msk.f32.vlgmr.msra.gmra.mrb[36].mxu0 %vm896_vm1, %v24142_v46  ;;  %19160 = vmatmul.mubr.msk.f32.gmra.mrb[192].mxu1 %vm896_vm1, %v24174_v41 }
 0x680   : > { %20632 = vmatpush3.bf16.msra.mxu0 %v23925_v4  ;;  %20836 = vmatpush3.bf16.msra.mxu1 %v24090_v38 }
 0x681   : > { %20634 = vmatprep.subr.bf16.mxu0 %v23930_v61  ;;  %20838 = vmatprep.subr.bf16.mxu1 %v24108_v24 }
 0x682   : > { %18760 = vmatprep.mubr.msk.f32.mxu0 %vm896_vm1, %v24152_v40  ;;  %19162 = vmatprep.mubr.msk.f32.mxu1 %vm896_vm1, %v24184_v55 }
 0x683   : > { %18761 = vmatmul.mubr.msk.f32.gmra.mrb[38].mxu0 %vm896_vm1, %v24158_v37  ;;  %19163 = vmatmul.mubr.msk.f32.gmra.mrb[194].mxu1 %vm896_vm1, %v24190_v52 }
 0x684   : > { %20636 = vmatpush3.bf16.msra.mxu0 %v23930_v61  ;;  %20840 = vmatpush3.bf16.msra.mxu1 %v24108_v24 }
 0x685   : > { %20638 = vmatprep.subr.bf16.mxu0 %v23934_v8  ;;  %20858 = vmatprep.subr.bf16.mxu1 %v24059_v9 }
 0x686   : > { %18763 = vmatprep.mubr.msk.f32.mxu0 %vm896_vm1, %v24168_v43  ;;  %19209 = vmatprep.mubr.msk.f32.mxu1 %vm896_vm1, %v24200_v53 }
 0x687   : > { %18764 = vmatmul.mubr.msk.f32.gmra.mrb[40].mxu0 %vm896_vm1, %v24174_v41  ;;  %19210 = vmatmul.mubr.msk.f32.vlgmr.msra.gmra.mrb[196].mxu1 %vm896_vm1, %v24206_v54 }
 0x688   : > { %20640 = vmatpush3.bf16.msra.mxu0 %v23934_v8  ;;  %20860 = vmatpush3.bf16.msra.mxu1 %v24059_v9 }
 0x689   : > { %20642 = vmatprep.subr.bf16.mxu0 %v23938_v12  ;;  %20862 = vmatprep.subr.bf16.mxu1 %v24074_v42 }
 0x68a   : > { %18766 = vmatprep.mubr.msk.f32.mxu0 %vm896_vm1, %v24184_v55  ;;  %19212 = vmatprep.mubr.msk.f32.mxu1 %vm896_vm1, %v24216_v59 }
 0x68b   : > { %18767 = vmatmul.mubr.msk.f32.gmra.mrb[42].mxu0 %vm896_vm1, %v24190_v52  ;;  %19213 = vmatmul.mubr.msk.f32.gmra.mrb[198].mxu1 %vm896_vm1, %v24222_v2 }
 0x68c   : > { %20644 = vmatpush3.bf16.msra.mxu0 %v23938_v12  ;;  %20864 = vmatpush3.bf16.msra.mxu1 %v24074_v42 }
 0x68d   : > { %20866 = vmatprep.subr.bf16.mxu1 %v24090_v38  ;;  %18785 = vmatprep.mubr.msk.f32.mxu0 %vm896_vm1, %v21869_v3 }
 0x68e   : > { %19215 = vmatprep.mubr.msk.f32.mxu1 %vm896_vm1, %v24230_v62 }
 0x68f   : > { %18786 = vmatmul.mubr.msk.f32.vlgmr.msra.gmra.mrb[44].mxu0 %vm896_vm1, %v21871_v44  ;;  %19216 = vmatmul.mubr.msk.f32.gmra.mrb[200].mxu1 %vm896_vm1, %v24235_v39 }
 0x690   : > { %20868 = vmatpush3.bf16.msra.mxu1 %v24090_v38  ;;  %18788 = vmatprep.mubr.msk.f32.mxu0 %vm896_vm1, %v21873_v57 }
 0x691   : > { %20870 = vmatprep.subr.bf16.mxu1 %v24108_v24  ;;  %19218 = vmatprep.mubr.msk.f32.mxu1 %vm896_vm1, %v24242_v51 }
 0x693   : > { %18789 = vmatmul.mubr.msk.f32.gmra.mrb[46].mxu0 %vm896_vm1, %v21875_v7  ;;  %19219 = vmatmul.mubr.msk.f32.gmra.mrb[202].mxu1 %vm896_vm1, %v24247_v18 }
 0x694   : > { %20872 = vmatpush3.bf16.msra.mxu1 %v24108_v24  ;;  %18791 = vmatprep.mubr.msk.f32.mxu0 %vm896_vm1, %v21877_v22 }
 0x695   : > { %20890 = vmatprep.subr.bf16.mxu1 %v24059_v9  ;;  %19265 = vmatprep.mubr.msk.f32.mxu1 %vm896_vm1, %v23847_v6  ;;  %v10675_v6 = vmax.f32 %v24048_v56, 0.0  ;;  %v8867_v56 = vld [vmem:[#allocation11 + $0x8] sm:$0xff] }
 0x696   : > { %vm8875_vm5 = vcmp.gt.f32.partialorder %v8867_v56, 0.5 }
 0x697   : > { %18792 = vmatmul.mubr.msk.f32.gmra.mrb[48].mxu0 %vm896_vm1, %v21878_v23  ;;  %19266 = vmatmul.mubr.msk.f32.vlgmr.msra.gmra.mrb[204].mxu1 %vm896_vm1, %v23943_v13  ;;  %v10674_v13 = vmax.f32 %v24051_v60, 0.0  ;;  %v8869_v60 = vld [vmem:[#allocation11 + $0x18] sm:$0xff] }
 0x698   : > { %20892 = vmatpush3.bf16.msra.mxu1 %v24059_v9  ;;  %18794 = vmatprep.mubr.msk.f32.mxu0 %vm896_vm1, %v21879_v26  ;;  %vm8877_vm4 = vcmp.gt.f32.partialorder %v8869_v60, 0.5  ;;  %v8872_v60 = vld [vmem:[#allocation11 + $0x30] sm:$0xff] }
 0x699   : > { %20894 = vmatprep.subr.bf16.mxu1 %v24074_v42  ;;  %19268 = vmatprep.mubr.msk.f32.mxu1 %vm896_vm1, %v23948_v14  ;;  %v24303_v14 = vpack.c.bf16 %v10675_v6, %v10674_v13  ;;  %vm8880_vm9 = vcmp.gt.f32.partialorder %v8872_v60, 0.5  ;;  %v7976_v60 = vld [vmem:[#allocation8 + $0x200] sm:$0xff] }
 0x69b   : > { %18795 = vmatmul.mubr.msk.f32.gmra.mrb[50].mxu0 %vm896_vm1, %v21880_v27  ;;  %19269 = vmatmul.mubr.msk.f32.gmra.mrb[206].mxu1 %vm896_vm1, %v23953_v15  ;;  %26380 = vst [vmem:[#allocation46_spill] sm:$0xff] %v24303_v14  ;;  %v10677_v15 = vmax.f32 %v24062_v63, 0.0 }
 0x69c   : > { %20896 = vmatpush3.bf16.msra.mxu1 %v24074_v42  ;;  %19271 = vmatprep.mubr.msk.f32.mxu1 %vm896_vm1, %v23958_v16  ;;  %v10676_v16 = vmax.f32 %v24065_v58, 0.0 }
 0x69d   : > { %20898 = vmatprep.subr.bf16.mxu1 %v24090_v38 }
 0x69f   : > { %19272 = vmatmul.mubr.msk.f32.gmra.mrb[208].mxu1 %vm896_vm1, %v23963_v17  ;;  %v24313_v17 = vpack.c.bf16 %v10677_v15, %v10676_v16  ;;  %v7241_v15 = vld [vmem:[#allocation8 + $0x1d0] sm:$0xff]  ;;  %v7242_v16 = vld [vmem:[#allocation8 + $0x1d8] sm:$0xff] }
 0x6a0   : > { %20900 = vmatpush3.bf16.msra.mxu1 %v24090_v38  ;;  %19274 = vmatprep.mubr.msk.f32.mxu1 %vm896_vm1, %v23968_v19  ;;  %v10679_v19 = vmax.f32 %v24077_v5, 0.0  ;;  %v22318_v5 = vmov 0  }
 0x6a1   : > { %20902 = vmatprep.subr.bf16.mxu1 %v24108_v24  ;;  %26381 = vst [vmem:[#allocation47_spill] sm:$0xff] %v24313_v17  ;;  %21816 = vset.pattern.permute.xlu1 %v22318_v5  ;;  %v8993_v56 = vsel %vm8880_vm9, 1, %v22318_v5 }
 0x6a2   : > { %21815 = vset.pattern.permute.xlu0 %v22318_v5 }
 0x6a3   : > { %19275 = vmatmul.mubr.msk.f32.gmra.mrb[210].mxu1 %vm896_vm1, %v23973_v20  ;;  %v10678_v20 = vmax.f32 %v24080_v1, 0.0 }
 0x6a4   : > { %20904 = vmatpush3.bf16.msra.mxu1 %v24108_v24  ;;  %19321 = vmatprep.mubr.msk.f32.mxu1 %vm896_vm1, %v23994_v29 }
 0x6a5   : > { %20922 = vmatprep.subr.bf16.mxu1 %v24059_v9  ;;  %v24323_v29 = vpack.c.bf16 %v10679_v19, %v10678_v20  ;;  %v20669_v19 = vpack.c.bf16 %v7242_v16, %v7241_v15 }
 0x6a7   : > { %19322 = vmatmul.mubr.msk.f32.vlgmr.msra.gmra.mrb[212].mxu1 %vm896_vm1, %v23999_v30  ;;  %26382 = vst [vmem:[#allocation48_spill] sm:$0xff] %v24323_v29  ;;  %v10680_v30 = vmax.f32 %v24096_v11, 0.0 }
 0x6a8   : > { %20924 = vmatpush3.bf16.msra.mxu1 %v24059_v9  ;;  %19324 = vmatprep.mubr.msk.f32.mxu1 %vm896_vm1, %v24004_v31 }
 0x6a9   : > { %20926 = vmatprep.subr.bf16.mxu1 %v24074_v42 }
 0x6ab   : > { %19325 = vmatmul.mubr.msk.f32.gmra.mrb[214].mxu1 %vm896_vm1, %v24009_v32  ;;  %v6767_v32 = vld [vmem:[#allocation8 + $0x1b0] sm:$0xff] }
 0x6ac   : > { %20928 = vmatpush3.bf16.msra.mxu1 %v24074_v42  ;;  %19327 = vmatprep.mubr.msk.f32.mxu1 %vm896_vm1, %v24014_v33  ;;  %v6768_v33 = vld [vmem:[#allocation8 + $0x1b8] sm:$0xff] }
 0x6ad   : > { %20930 = vmatprep.subr.bf16.mxu1 %v24090_v38 }
 0x6af   : > { %19328 = vmatmul.mubr.msk.f32.gmra.mrb[216].mxu1 %vm896_vm1, %v24019_v34  ;;  %v20649_v34 = vpack.c.bf16 %v6768_v33, %v6767_v32  ;;  %v24460_v32 = vld [vmem:[#allocation10 + $0xf8] sm:$0xff]  ;;  %v7731_v33 = vld [vmem:[#allocation8 + $0x1f0] sm:$0xff] }
 0x6b0   : > { %20932 = vmatpush3.bf16.msra.mxu1 %v24090_v38  ;;  %19330 = vmatprep.mubr.msk.f32.mxu1 %vm896_vm1, %v24024_v35  ;;  %26393 = vst [vmem:[#allocation61_spill] sm:$0xff] %v24460_v32 }
 0x6b1   : > { %20934 = vmatprep.subr.bf16.mxu1 %v24108_v24 }
 0x6b3   : > { %19331 = vmatmul.mubr.msk.f32.gmra.mrb[218].mxu1 %vm896_vm1, %v24029_v36 }
 0x6b4   : > { %20936 = vmatpush3.bf16.msra.mxu1 %v24108_v24  ;;  %19377 = vmatprep.mubr.msk.f32.mxu1 %vm896_vm1, %v23906_v48  ;;  %v10681_v48 = vmax.f32 %v24093_v10, 0.0 }
 0x6b5   : > { %20954 = vmatprep.subr.bf16.mxu1 %v24303_v14 }
 0x6b7   : > { %19378 = vmatmul.mubr.msk.f32.vlgmr.msra.gmra.mrb[220].mxu1 %vm896_vm1, %v23910_v47  ;;  %v24333_v47 = vpack.c.bf16 %v10681_v48, %v10680_v30  ;;  %v24436_v30 = vld [vmem:[#allocation10 + $0xc8] sm:$0xff] }
 0x6b8   : > { %20956 = vmatpush3.bf16.msra.mxu1 %v24303_v14  ;;  %19380 = vmatprep.mubr.msk.f32.mxu1 %vm896_vm1, %v23914_v50  ;;  %v6875_v50 = vld [vmem:[#allocation8 + $0x1c0] sm:$0xff] }
 0x6b9   : > { %20958 = vmatprep.subr.bf16.mxu1 %v24313_v17  ;;  %26383 = vst [vmem:[#allocation49_spill] sm:$0xff] %v24333_v47 }
 0x6bb   : > { %19381 = vmatmul.mubr.msk.f32.gmra.mrb[222].mxu1 %vm896_vm1, %v23918_v49  ;;  %v6876_v49 = vld [vmem:[#allocation8 + $0x1c8] sm:$0xff] }
 0x6bc   : > { %20960 = vmatpush3.bf16.msra.mxu1 %v24313_v17  ;;  %19383 = vmatprep.mubr.msk.f32.mxu1 %vm896_vm1, %v24101_v21  ;;  %v20645_v31 = vpack.c.bf16 %v6876_v49, %v6875_v50  ;;  %v24444_v50 = vld [vmem:[#allocation10 + $0xd8] sm:$0xff]  ;;  %v24452_v49 = vld [vmem:[#allocation10 + $0xe8] sm:$0xff] }
 0x6bd   : > { %20962 = vmatprep.subr.bf16.mxu1 %v24323_v29 }
 0x6be   : > { %20646 = vmatprep.subr.bf16.mxu0 %v20645_v31 }
 0x6bf   : > { %19384 = vmatmul.mubr.msk.f32.gmra.mrb[224].mxu1 %vm896_vm1, %v24111_v25  ;;  %20648 = vmatpush3.bf16.msra.mxu0 %v20645_v31  ;;  %v24456_v31 = vld [vmem:[#allocation10 + $0xf0] sm:$0xff] }
 0x6c0   : > { %20964 = vmatpush3.bf16.msra.mxu1 %v24323_v29  ;;  %19386 = vmatprep.mubr.msk.f32.mxu1 %vm896_vm1, %v24120_v28  ;;  %26392 = vst [vmem:[#allocation58_spill] sm:$0xff] %v24456_v31 }
 0x6c1   : > { %20966 = vmatprep.subr.bf16.mxu1 %v24333_v47  ;;  %20650 = vmatprep.subr.bf16.mxu0 %v20649_v34 }
 0x6c3   : > { %19387 = vmatmul.mubr.msk.f32.gmra.mrb[226].mxu1 %vm896_vm1, %v24125_v0 }
 0x6c4   : > { %20968 = vmatpush3.bf16.msra.mxu1 %v24333_v47  ;;  %19433 = vmatprep.mubr.msk.f32.mxu1 %vm896_vm1, %v24136_v45 }
 0x6c7   : > { %19434 = vmatmul.mubr.msk.f32.vlgmr.msra.gmra.mrb[228].mxu1 %vm896_vm1, %v24142_v46 }
 0x6c8   : > { %19436 = vmatprep.mubr.msk.f32.mxu1 %vm896_vm1, %v24152_v40 }
 0x6cb   : > { %19437 = vmatmul.mubr.msk.f32.gmra.mrb[230].mxu1 %vm896_vm1, %v24158_v37 }
 0x6cc   : > { %19439 = vmatprep.mubr.msk.f32.mxu1 %vm896_vm1, %v24168_v43 }
 0x6cf   : > { %19440 = vmatmul.mubr.msk.f32.gmra.mrb[232].mxu1 %vm896_vm1, %v24174_v41 }
 0x6d0   : > { %19442 = vmatprep.mubr.msk.f32.mxu1 %vm896_vm1, %v24184_v55 }
 0x6d3   : > { %19443 = vmatmul.mubr.msk.f32.gmra.mrb[234].mxu1 %vm896_vm1, %v24190_v52 }
 0x742   : > { %v24360_v35 = vpop.f32.mrb[24].mxu0 }
 0x743   : > { %26384 = vst [vmem:[#allocation50_spill] sm:$0xff] %v24360_v35  ;;  %v24362_v36 = vpop.f32.mrb[25].mxu0 }
 0x744   : > { %26385 = vst [vmem:[#allocation51_spill] sm:$0xff] %v24362_v36  ;;  %v8871_v36 = vld [vmem:[#allocation11 + $0x28] sm:$0xff] }
 0x745   : > { %vm8879_vm6 = vcmp.gt.f32.partialorder %v8871_v36, 0.5  ;;  %v9036_v36 = vld [vmem:[#allocation11 + $0x40] sm:$0xff] }
 0x746   : > { %v24364_v21 = vpop.f32.mrb[26].mxu0  ;;  %v8992_v35 = vsel %vm8879_vm6, 1, %v22318_v5  ;;  %vm9044_vm11 = vcmp.gt.f32.partialorder %v9036_v36, 0.5  ;;  %v9040_v36 = vld [vmem:[#allocation11 + $0x60] sm:$0xff] }
 0x747   : > { %26386 = vst [vmem:[#allocation52_spill] sm:$0xff] %v24364_v21  ;;  %v24366_v25 = vpop.f32.mrb[27].mxu0  ;;  %v8988_v21 = vsel %vm8875_vm5, 1, %v22318_v5  ;;  %vm9048_vm15 = vcmp.gt.f32.partialorder %v9040_v36, 0.5 }
 0x748   : > { %26387 = vst [vmem:[#allocation53_spill] sm:$0xff] %v24366_v25  ;;  %v8990_v25 = vsel %vm8877_vm4, 1, %v22318_v5 }
 0x74a   : > { %v24368_v28 = vpop.f32.mrb[28].mxu0 }
 0x74b   : > { %26388 = vst [vmem:[#allocation54_spill] sm:$0xff] %v24368_v28  ;;  %v24370_v0 = vpop.f32.mrb[29].mxu0  ;;  %v8866_v28 = vld [vmem:[#allocation11] sm:$0xff] }
 0x74c   : > { %26389 = vst [vmem:[#allocation55_spill] sm:$0xff] %v24370_v0  ;;  %v8868_v0 = vld [vmem:[#allocation11 + $0x10] sm:$0xff]  ;;  %vm8874_vm3 = vcmp.gt.f32.partialorder %v8866_v28, 0.5 }
 0x74d   : > { %vm8876_vm2 = vcmp.gt.f32.partialorder %v8868_v0, 0.5  ;;  %v8987_v63 = vsel %vm8874_vm3, 1, %v22318_v5  ;;  %v8870_v0 = vld [vmem:[#allocation11 + $0x20] sm:$0xff] }
 0x74e   : > { %v24372_v45 = vpop.f32.mrb[30].mxu0  ;;  %v8989_v58 = vsel %vm8876_vm2, 1, %v22318_v5  ;;  %8996 = vperm.xlu0 %21815, %v8987_v63   ;;  %vm8878_vm7 = vcmp.gt.f32.partialorder %v8870_v0, 0.5  ;;  %v8873_v63 = vld [vmem:[#allocation11 + $0x38] sm:$0xff] }
 0x74f   : > { %26390 = vst [vmem:[#allocation56_spill] sm:$0xff] %v24372_v45  ;;  %v24374_v46 = vpop.f32.mrb[31].mxu0  ;;  %9002 = vperm.xlu1 %21816, %v8989_v58   ;;  %v8991_v58 = vsel %vm8878_vm7, 1, %v22318_v5  ;;  %vm8881_vm8 = vcmp.gt.f32.partialorder %v8873_v63, 0.5  ;;  %v9039_v0 = vld [vmem:[#allocation11 + $0x58] sm:$0xff] }
 0x750   : > { %26391 = vst [vmem:[#allocation57_spill] sm:$0xff] %v24374_v46  ;;  %v8994_v28 = vsel %vm8881_vm8, 1, %v22318_v5  ;;  %vm9047_vm12 = vcmp.gt.f32.partialorder %v9039_v0, 0.5  ;;  %v9161_v0 = vsel %vm9048_vm15, 1, %v22318_v5 }
 0x751   : > { %v9160_v63 = vsel %vm9047_vm12, 1, %v22318_v5 }
 0x752   : > { %v18759_v40 = vpop.f32.mrb[36].mxu0  ;;  %8999 = vperm.xlu0 %21815, %v8988_v21   ;;  %v9037_v21 = vld [vmem:[#allocation11 + $0x48] sm:$0xff] }
 0x753   : > { %v6727_v37 = vpop.f32.mrb[37].mxu0  ;;  %9005 = vperm.xlu1 %21816, %v8990_v25   ;;  %vm9045_vm10 = vcmp.gt.f32.partialorder %v9037_v21, 0.5  ;;  %v9041_v21 = vld [vmem:[#allocation11 + $0x68] sm:$0xff] }
 0x754   : > { %v9158_v25 = vsel %vm9045_vm10, 1, %v22318_v5  ;;  %vm9049_vm14 = vcmp.gt.f32.partialorder %v9041_v21, 0.5 }
 0x756   : > { %v18762_v43 = vpop.f32.mrb[38].mxu0  ;;  %9008 = vperm.xlu0 %21815, %v8991_v58   ;;  %v9038_v58 = vld [vmem:[#allocation11 + $0x50] sm:$0xff] }
 0x757   : > { %v6737_v41 = vpop.f32.mrb[39].mxu0  ;;  %9011 = vperm.xlu1 %21816, %v8992_v35   ;;  %v9157_v35 = vsel %vm9044_vm11, 1, %v22318_v5  ;;  %vm9046_vm13 = vcmp.gt.f32.partialorder %v9038_v58, 0.5  ;;  %v9043_v58 = vld [vmem:[#allocation11 + $0x78] sm:$0xff] }
 0x758   : > { %vm9051_vm2 = vcmp.gt.f32.partialorder %v9043_v58, 0.5  ;;  %v9217_v58 = vld [vmem:[#allocation11 + $0x98] sm:$0xff] }
 0x759   : > { %vm9225_vm6 = vcmp.gt.f32.partialorder %v9217_v58, 0.5 }
 0x75a   : > { %v18765_v55 = vpop.f32.mrb[40].mxu0  ;;  %9014 = vperm.xlu0 %21815, %v8993_v56   ;;  %v9159_v56 = vsel %vm9046_vm13, 1, %v22318_v5 }
 0x75b   : > { %v6747_v52 = vpop.f32.mrb[41].mxu0  ;;  %9017 = vperm.xlu1 %21816, %v8994_v28   ;;  %v7977_v28 = vld [vmem:[#allocation8 + $0x208] sm:$0xff] }
 0x75e   : > { %v18768_v3 = vpop.f32.mrb[42].mxu0  ;;  %9166 = vperm.xlu0 %21815, %v9157_v35   ;;  %v9162_v35 = vsel %vm9049_vm14, 1, %v22318_v5 }
 0x75f   : > { %v6757_v44 = vpop.f32.mrb[43].mxu0  ;;  %9169 = vperm.xlu1 %21816, %v9158_v25  }
 0x762   : > { %v18787_v57 = vpop.f32.mrb[44].mxu0  ;;  %9172 = vperm.xlu0 %21815, %v9159_v56   ;;  %v9042_v56 = vld [vmem:[#allocation11 + $0x70] sm:$0xff] }
 0x763   : > { %v6835_v7 = vpop.f32.mrb[45].mxu0  ;;  %9175 = vperm.xlu1 %21816, %v9160_v63   ;;  %vm9050_vm3 = vcmp.gt.f32.partialorder %v9042_v56, 0.5 }
 0x764   : > { %18801 = vmatprep.mubr.msk.f32.mxu0 %vm596_vm0, %v6835_v7 }
 0x765   : > { %18802 = vmatmul.mubr.msk.f32.vlgmr.msra.gmra.mrb[52].mxu0 %vm596_vm0, %v18787_v57 }
 0x766   : > { %20652 = vmatpush3.bf16.msra.mxu0 %v20649_v34  ;;  %v18790_v22 = vpop.f32.mrb[46].mxu0  ;;  %v7732_v34 = vld [vmem:[#allocation8 + $0x1f8] sm:$0xff]  ;;  %9178 = vperm.xlu0 %21815, %v9161_v0  }
 0x767   : > { %20654 = vmatprep.subr.bf16.mxu0 %v23925_v4  ;;  %v6845_v23 = vpop.f32.mrb[47].mxu0  ;;  %9181 = vperm.xlu1 %21816, %v9162_v35  }
 0x768   : > { %18804 = vmatprep.mubr.msk.f32.mxu0 %vm596_vm0, %v6845_v23 }
 0x769   : > { %18805 = vmatmul.mubr.msk.f32.gmra.mrb[54].mxu0 %vm596_vm0, %v18790_v22 }
 0x76a   : > { %v18793_v26 = vpop.f32.mrb[48].mxu0 }
 0x76b   : > { %v6855_v27 = vpop.f32.mrb[49].mxu0 }
 0x76c   : > { %18807 = vmatprep.mubr.msk.f32.mxu0 %vm596_vm0, %v6855_v27 }
 0x76d   : > { %18808 = vmatmul.mubr.msk.f32.gmra.mrb[56].mxu0 %vm596_vm0, %v18793_v26 }
 0x76e   : > { %v18796_v6 = vpop.f32.mrb[50].mxu0 }
 0x76f   : > { %v6865_v13 = vpop.f32.mrb[51].mxu0 }
 0x770   : > { %18810 = vmatprep.mubr.msk.f32.mxu0 %vm596_vm0, %v6865_v13 }
 0x771   : > { %18811 = vmatmul.mubr.msk.f32.gmra.mrb[58].mxu0 %vm596_vm0, %v18796_v6 }
 0x772   : > { %18817 = vmatprep.mubr.msk.f32.mxu0 %vm596_vm0, %v6727_v37  ;;  %v24467_v37 = vpop.f32.mrb[148].mxu1 }
 0x775   : > { %18818 = vmatmul.mubr.msk.f32.vlgmr.msra.gmra.mrb[52].mxu0 %vm596_vm0, %v18759_v40  ;;  %v24464_v40 = vpack.c.bf16 %v7732_v34, %v7731_v33 }
 0x776   : > { %20656 = vmatpush3.bf16.msra.mxu0 %v23925_v4  ;;  %18820 = vmatprep.mubr.msk.f32.mxu0 %vm596_vm0, %v6737_v41 }
 0x777   : > { %20658 = vmatprep.subr.bf16.mxu0 %v23930_v61 }
 0x779   : > { %18821 = vmatmul.mubr.msk.f32.gmra.mrb[54].mxu0 %vm596_vm0, %v18762_v43  ;;  %v24469_v43 = vpop.f32.mrb[149].mxu1 }
 0x77a   : > { %20660 = vmatpush3.bf16.msra.mxu0 %v23930_v61  ;;  %18823 = vmatprep.mubr.msk.f32.mxu0 %vm596_vm0, %v6747_v52  ;;  %v24471_v41 = vpop.f32.mrb[150].mxu1 }
 0x77b   : > { %20662 = vmatprep.subr.bf16.mxu0 %v23934_v8 }
 0x77d   : > { %18824 = vmatmul.mubr.msk.f32.gmra.mrb[56].mxu0 %vm596_vm0, %v18765_v55  ;;  %v24473_v55 = vpop.f32.mrb[151].mxu1 }
 0x77e   : > { %20664 = vmatpush3.bf16.msra.mxu0 %v23934_v8  ;;  %18826 = vmatprep.mubr.msk.f32.mxu0 %vm596_vm0, %v6757_v44  ;;  %v24475_v52 = vpop.f32.mrb[152].mxu1 }
 0x77f   : > { %20666 = vmatprep.subr.bf16.mxu0 %v23938_v12 }
 0x781   : > { %18827 = vmatmul.mubr.msk.f32.gmra.mrb[58].mxu0 %vm596_vm0, %v18768_v3  ;;  %v24477_v3 = vpop.f32.mrb[153].mxu1 }
 0x782   : > { %20668 = vmatpush3.bf16.msra.mxu0 %v23938_v12  ;;  %18845 = vmatprep.mubr.msk.f32.mxu0 %vm896_vm1, %v24200_v53  ;;  %v24479_v44 = vpop.f32.mrb[154].mxu1 }
 0x783   : > { %20670 = vmatprep.subr.bf16.mxu0 %v20669_v19  ;;  %v24481_v57 = vpop.f32.mrb[155].mxu1 }
 0x784   : > { %v24483_v7 = vpop.f32.mrb[156].mxu1 }
 0x785   : > { %18846 = vmatmul.mubr.msk.f32.vlgmr.msra.gmra.mrb[60].mxu0 %vm896_vm1, %v24206_v54  ;;  %v24485_v22 = vpop.f32.mrb[157].mxu1 }
 0x786   : > { %20672 = vmatpush3.bf16.msra.mxu0 %v20669_v19  ;;  %18848 = vmatprep.mubr.msk.f32.mxu0 %vm896_vm1, %v24216_v59  ;;  %v24487_v23 = vpop.f32.mrb[158].mxu1 }
 0x787   : > { %20674 = vmatprep.subr.bf16.mxu0 %v23925_v4  ;;  %v24489_v26 = vpop.f32.mrb[159].mxu1 }
 0x788   : > { %v24491_v27 = vpop.f32.mrb[160].mxu1 }
 0x789   : > { %18849 = vmatmul.mubr.msk.f32.gmra.mrb[62].mxu0 %vm896_vm1, %v24222_v2  ;;  %v24493_v6 = vpop.f32.mrb[161].mxu1 }
 0x78a   : > { %18851 = vmatprep.mubr.msk.f32.mxu0 %vm896_vm1, %v24230_v62  ;;  %v24495_v13 = vpop.f32.mrb[162].mxu1 }
 0x78b   : > { %v24497_v15 = vpop.f32.mrb[163].mxu1 }
 0x78c   : > { %v24499_v16 = vpop.f32.mrb[164].mxu1 }
 0x78d   : > { %18852 = vmatmul.mubr.msk.f32.gmra.mrb[64].mxu0 %vm896_vm1, %v24235_v39  ;;  %v24501_v19 = vpop.f32.mrb[165].mxu1 }
 0x78e   : > { %18854 = vmatprep.mubr.msk.f32.mxu0 %vm896_vm1, %v24242_v51  ;;  %v7486_v51 = vld [vmem:[#allocation8 + $0x1e0] sm:$0xff] }
 0x791   : > { %18855 = vmatmul.mubr.msk.f32.gmra.mrb[66].mxu0 %vm896_vm1, %v24247_v18  ;;  %v7487_v18 = vld [vmem:[#allocation8 + $0x1e8] sm:$0xff] }
 0x792   : > { %v20689_v48 = vpack.c.bf16 %v7487_v18, %v7486_v51 }
 0x858   : > { %v18847_v53 = vpop.f32.mrb[60].mxu0 }
 0x859   : > { %v7201_v54 = vpop.f32.mrb[61].mxu0 }
 0x85a   : > { %18861 = vmatprep.mubr.msk.f32.mxu0 %vm596_vm0, %v7201_v54 }
 0x85b   : > { %18862 = vmatmul.mubr.msk.f32.vlgmr.msra.gmra.mrb[52].mxu0 %vm596_vm0, %v18847_v53  ;;  %v24503_v53 = vpop.f32.mrb[166].mxu1 }
 0x85c   : > { %20676 = vmatpush3.bf16.msra.mxu0 %v23925_v4  ;;  %v18850_v59 = vpop.f32.mrb[62].mxu0  ;;  %v24505_v54 = vpop.f32.mrb[167].mxu1 }
 0x85d   : > { %20678 = vmatprep.subr.bf16.mxu0 %v23930_v61  ;;  %v7211_v2 = vpop.f32.mrb[63].mxu0 }
 0x85e   : > { %18864 = vmatprep.mubr.msk.f32.mxu0 %vm596_vm0, %v7211_v2 }
 0x85f   : > { %18865 = vmatmul.mubr.msk.f32.gmra.mrb[54].mxu0 %vm596_vm0, %v18850_v59  ;;  %v24507_v59 = vpop.f32.mrb[168].mxu1 }
 0x860   : > { %20680 = vmatpush3.bf16.msra.mxu0 %v23930_v61  ;;  %v18853_v62 = vpop.f32.mrb[64].mxu0  ;;  %v24432_v61 = vld [vmem:[#allocation10 + $0xc0] sm:$0xff]  ;;  %v24509_v2 = vpop.f32.mrb[169].mxu1 }
 0x861   : > { %20682 = vmatprep.subr.bf16.mxu0 %v23934_v8  ;;  %v7221_v39 = vpop.f32.mrb[65].mxu0 }
 0x862   : > { %18867 = vmatprep.mubr.msk.f32.mxu0 %vm596_vm0, %v7221_v39 }
 0x863   : > { %18868 = vmatmul.mubr.msk.f32.gmra.mrb[56].mxu0 %vm596_vm0, %v18853_v62  ;;  %v24511_v62 = vpop.f32.mrb[170].mxu1 }
 0x864   : > { %20684 = vmatpush3.bf16.msra.mxu0 %v23934_v8  ;;  %v18856_v4 = vpop.f32.mrb[66].mxu0  ;;  %v24440_v8 = vld [vmem:[#allocation10 + $0xd0] sm:$0xff]  ;;  %v24513_v39 = vpop.f32.mrb[171].mxu1 }
 0x865   : > { %20686 = vmatprep.subr.bf16.mxu0 %v23938_v12  ;;  %v7231_v20 = vpop.f32.mrb[67].mxu0  ;;  %v24515_v51 = vpop.f32.mrb[172].mxu1 }
 0x866   : > { %18870 = vmatprep.mubr.msk.f32.mxu0 %vm596_vm0, %v7231_v20  ;;  %v24517_v18 = vpop.f32.mrb[173].mxu1 }
 0x867   : > { %18871 = vmatmul.mubr.msk.f32.gmra.mrb[58].mxu0 %vm596_vm0, %v18856_v4  ;;  %v24519_v4 = vpop.f32.mrb[174].mxu1 }
 0x868   : > { %20688 = vmatpush3.bf16.msra.mxu0 %v23938_v12  ;;  %18889 = vmatprep.mubr.msk.f32.mxu0 %vm896_vm1, %v24432_v61  ;;  %v24448_v12 = vld [vmem:[#allocation10 + $0xe0] sm:$0xff]  ;;  %v24521_v20 = vpop.f32.mrb[175].mxu1 }
 0x869   : > { %20690 = vmatprep.subr.bf16.mxu0 %v20689_v48 }
 0x86b   : > { %18890 = vmatmul.mubr.msk.f32.vlgmr.msra.gmra.mrb[68].mxu0 %vm896_vm1, %v24436_v30 }
 0x86c   : > { %18892 = vmatprep.mubr.msk.f32.mxu0 %vm896_vm1, %v24440_v8  ;;  %20692 = vmatpush3.bf16.msra.mxu0 %v20689_v48  ;;  %v24523_v48 = vpop.f32.mrb[176].mxu1 }
 0x86d   : > { %20710 = vmatprep.subr.bf16.mxu0 %v24464_v40  ;;  %v24525_v33 = vpop.f32.mrb[177].mxu1 }
 0x86e   : > { %v24527_v34 = vpop.f32.mrb[178].mxu1 }
 0x86f   : > { %18893 = vmatmul.mubr.msk.f32.gmra.mrb[70].mxu0 %vm896_vm1, %v24444_v50  ;;  %v24529_v47 = vpop.f32.mrb[179].mxu1 }
 0x870   : > { %18895 = vmatprep.mubr.msk.f32.mxu0 %vm896_vm1, %v24448_v12  ;;  %v24531_v29 = vpop.f32.mrb[180].mxu1 }
 0x871   : > { %v24533_v17 = vpop.f32.mrb[181].mxu1 }
 0x872   : > { %v24535_v14 = vpop.f32.mrb[182].mxu1 }
 0x873   : > { %18896 = vmatmul.mubr.msk.f32.gmra.mrb[72].mxu0 %vm896_vm1, %v24452_v49  ;;  %v24537_v11 = vpop.f32.mrb[183].mxu1 }
 0x874   : > { %18898 = vmatprep.mubr.msk.f32.mxu0 %vm896_vm1, %v24456_v31  ;;  %v24539_v10 = vpop.f32.mrb[184].mxu1  ;;  %v20729_v31 = vpack.c.bf16 %v7977_v28, %v7976_v60  ;;  %v9164_v60 = vsel %vm9051_vm2, 1, %v22318_v5  ;;  %v9163_v28 = vsel %vm9050_vm3, 1, %v22318_v5 }
 0x875   : > { %v24541_v46 = vpop.f32.mrb[185].mxu1  ;;  %9187 = vperm.xlu1 %21816, %v9164_v60   ;;  %9184 = vperm.xlu0 %21815, %v9163_v28   ;;  %v9338_v60 = vsel %vm9225_vm6, 1, %v22318_v5  ;;  %v8221_v28 = vld [vmem:[#allocation8 + $0x210] sm:$0xff] }
 0x876   : > { %v24543_v45 = vpop.f32.mrb[186].mxu1 }
 0x877   : > { %18899 = vmatmul.mubr.msk.f32.gmra.mrb[74].mxu0 %vm896_vm1, %v24460_v32  ;;  %v24545_v1 = vpop.f32.mrb[187].mxu1 }
 0x93e   : > { %v18891_v32 = vpop.f32.mrb[68].mxu0 }
 0x93f   : > { %v7446_v25 = vpop.f32.mrb[69].mxu0 }
 0x940   : > { %18905 = vmatprep.mubr.msk.f32.mxu0 %vm596_vm0, %v7446_v25  ;;  %v9214_v25 = vld [vmem:[#allocation11 + $0x80] sm:$0xff] }
 0x941   : > { %18906 = vmatmul.mubr.msk.f32.vlgmr.msra.gmra.mrb[52].mxu0 %vm596_vm0, %v18891_v32  ;;  %v9215_v32 = vld [vmem:[#allocation11 + $0x88] sm:$0xff]  ;;  %vm9222_vm5 = vcmp.gt.f32.partialorder %v9214_v25, 0.5 }
 0x942   : > { %v18894_v63 = vpop.f32.mrb[70].mxu0  ;;  %20712 = vmatpush3.bf16.msra.mxu0 %v24464_v40  ;;  %vm9223_vm4 = vcmp.gt.f32.partialorder %v9215_v32, 0.5  ;;  %v9335_v0 = vsel %vm9222_vm5, 1, %v22318_v5  ;;  %v8222_v32 = vld [vmem:[#allocation8 + $0x218] sm:$0xff] }
 0x943   : > { %v7456_v21 = vpop.f32.mrb[71].mxu0  ;;  %20730 = vmatprep.subr.bf16.mxu0 %v20729_v31  ;;  %v9336_v35 = vsel %vm9223_vm4, 1, %v22318_v5  ;;  %9344 = vperm.xlu0 %21815, %v9335_v0  }
 0x944   : > { %18908 = vmatprep.mubr.msk.f32.mxu0 %vm596_vm0, %v7456_v21  ;;  %9347 = vperm.xlu1 %21816, %v9336_v35   ;;  %v20749_v35 = vpack.c.bf16 %v8222_v32, %v8221_v28  ;;  %v9395_v28 = vld [vmem:[#allocation11 + $0xd8] sm:$0xff]  ;;  %v8466_v32 = vld [vmem:[#allocation8 + $0x220] sm:$0xff] }
 0x945   : > { %18909 = vmatmul.mubr.msk.f32.gmra.mrb[54].mxu0 %vm596_vm0, %v18894_v63  ;;  %v9216_v63 = vld [vmem:[#allocation11 + $0x90] sm:$0xff]  ;;  %vm9403_vm14 = vcmp.gt.f32.partialorder %v9395_v28, 0.5 }
 0x946   : > { %v18897_v36 = vpop.f32.mrb[72].mxu0  ;;  %vm9224_vm7 = vcmp.gt.f32.partialorder %v9216_v63, 0.5  ;;  %v9221_v63 = vld [vmem:[#allocation11 + $0xb8] sm:$0xff] }
 0x947   : > { %v7466_v40 = vpop.f32.mrb[73].mxu0  ;;  %v9337_v25 = vsel %vm9224_vm7, 1, %v22318_v5  ;;  %vm9229_vm10 = vcmp.gt.f32.partialorder %v9221_v63, 0.5  ;;  %v9399_v63 = vld [vmem:[#allocation11 + $0xf8] sm:$0xff] }
 0x948   : > { %18911 = vmatprep.mubr.msk.f32.mxu0 %vm596_vm0, %v7466_v40  ;;  %9353 = vperm.xlu1 %21816, %v9338_v60   ;;  %v9218_v40 = vld [vmem:[#allocation11 + $0xa0] sm:$0xff]  ;;  %vm9407_vm4 = vcmp.gt.f32.partialorder %v9399_v63, 0.5 }
 0x949   : > { %18912 = vmatmul.mubr.msk.f32.gmra.mrb[56].mxu0 %vm596_vm0, %v18897_v36  ;;  %9350 = vperm.xlu0 %21815, %v9337_v25   ;;  %v9219_v36 = vld [vmem:[#allocation11 + $0xa8] sm:$0xff]  ;;  %vm9226_vm9 = vcmp.gt.f32.partialorder %v9218_v40, 0.5 }
 0x94a   : > { %v18900_v56 = vpop.f32.mrb[74].mxu0  ;;  %vm9227_vm8 = vcmp.gt.f32.partialorder %v9219_v36, 0.5  ;;  %v9339_v58 = vsel %vm9226_vm9, 1, %v22318_v5  ;;  %v8467_v25 = vld [vmem:[#allocation8 + $0x228] sm:$0xff] }
 0x94b   : > { %v7476_v21 = vpop.f32.mrb[75].mxu0  ;;  %v9340_v0 = vsel %vm9227_vm8, 1, %v22318_v5  ;;  %v20769_v40 = vpack.c.bf16 %v8467_v25, %v8466_v32  ;;  %v9748_v25 = vld [vmem:[#allocation11 + $0x140] sm:$0xff] }
 0x94c   : > { %18914 = vmatprep.mubr.msk.f32.mxu0 %vm596_vm0, %v7476_v21  ;;  %9359 = vperm.xlu1 %21816, %v9340_v0  }
 0x94d   : > { %18915 = vmatmul.mubr.msk.f32.gmra.mrb[58].mxu0 %vm596_vm0, %v18900_v56  ;;  %9356 = vperm.xlu0 %21815, %v9339_v58   ;;  %v9342_v56 = vsel %vm9229_vm10, 1, %v22318_v5 }
 0x94e   : > { %18949 = vmatprep.mubr.msk.f32.mxu0 %vm596_vm0, %v24469_v43  ;;  %v9220_v43 = vld [vmem:[#allocation11 + $0xb0] sm:$0xff] }
 0x94f   : > { %vm9228_vm11 = vcmp.gt.f32.partialorder %v9220_v43, 0.5 }
 0x950   : > { %9365 = vperm.xlu1 %21816, %v9342_v56   ;;  %v9341_v21 = vsel %vm9228_vm11, 1, %v22318_v5 }
 0x951   : > { %18950 = vmatmul.mubr.msk.f32.vlgmr.msra.gmra.mrb[52].mxu0 %vm596_vm0, %v24467_v37  ;;  %9362 = vperm.xlu0 %21815, %v9341_v21   ;;  %v9393_v37 = vld [vmem:[#allocation11 + $0xc8] sm:$0xff]  ;;  %v9573_v21 = vld [vmem:[#allocation11 + $0x118] sm:$0xff] }
 0x952   : > { %20732 = vmatpush3.bf16.msra.mxu0 %v20729_v31  ;;  %18952 = vmatprep.mubr.msk.f32.mxu0 %vm596_vm0, %v24473_v55  ;;  %vm9401_vm12 = vcmp.gt.f32.partialorder %v9393_v37, 0.5  ;;  %v9392_v31 = vld [vmem:[#allocation11 + $0xc0] sm:$0xff]  ;;  %vm9581_vm8 = vcmp.gt.f32.partialorder %v9573_v21, 0.5  ;;  %v8711_v37 = vld [vmem:[#allocation8 + $0x230] sm:$0xff] }
 0x953   : > { %20750 = vmatprep.subr.bf16.mxu0 %v20749_v35  ;;  %v9514_v55 = vsel %vm9401_vm12, 1, %v22318_v5  ;;  %vm9400_vm13 = vcmp.gt.f32.partialorder %v9392_v31, 0.5  ;;  %v8712_v31 = vld [vmem:[#allocation8 + $0x238] sm:$0xff] }
 0x954   : > { %9525 = vperm.xlu1 %21816, %v9514_v55   ;;  %v9513_v60 = vsel %vm9400_vm13, 1, %v22318_v5 }
 0x955   : > { %18953 = vmatmul.mubr.msk.f32.gmra.mrb[54].mxu0 %vm596_vm0, %v24471_v41  ;;  %9522 = vperm.xlu0 %21815, %v9513_v60   ;;  %v9394_v41 = vld [vmem:[#allocation11 + $0xd0] sm:$0xff]  ;;  %v20789_v60 = vpack.c.bf16 %v8712_v31, %v8711_v37 }
 0x956   : > { %18955 = vmatprep.mubr.msk.f32.mxu0 %vm596_vm0, %v24477_v3  ;;  %v9516_v3 = vsel %vm9403_vm14, 1, %v22318_v5  ;;  %vm9402_vm15 = vcmp.gt.f32.partialorder %v9394_v41, 0.5 }
 0x957   : > { %v9515_v36 = vsel %vm9402_vm15, 1, %v22318_v5  ;;  %vm9756_vm15 = vcmp.gt.f32.partialorder %v9748_v25, 0.5  ;;  %v10282_v25 = vld [vmem:[#allocation11 + $0x200] sm:$0xff] }
 0x958   : > { %9531 = vperm.xlu1 %21816, %v9516_v3   ;;  %v9577_v3 = vld [vmem:[#allocation11 + $0x138] sm:$0xff] }
 0x959   : > { %18956 = vmatmul.mubr.msk.f32.gmra.mrb[56].mxu0 %vm596_vm0, %v24475_v52  ;;  %9528 = vperm.xlu0 %21815, %v9515_v36   ;;  %v9397_v52 = vld [vmem:[#allocation11 + $0xe8] sm:$0xff]  ;;  %vm9585_vm12 = vcmp.gt.f32.partialorder %v9577_v3, 0.5  ;;  %v9869_v36 = vsel %vm9756_vm15, 1, %v22318_v5 }
 0x95a   : > { %18958 = vmatprep.mubr.msk.f32.mxu0 %vm596_vm0, %v24481_v57  ;;  %vm9405_vm2 = vcmp.gt.f32.partialorder %v9397_v52, 0.5  ;;  %v9396_v57 = vld [vmem:[#allocation11 + $0xe0] sm:$0xff]  ;;  %v9751_v52 = vld [vmem:[#allocation11 + $0x158] sm:$0xff] }
 0x95b   : > { %v9518_v0 = vsel %vm9405_vm2, 1, %v22318_v5  ;;  %vm9404_vm3 = vcmp.gt.f32.partialorder %v9396_v57, 0.5  ;;  %vm9759_vm2 = vcmp.gt.f32.partialorder %v9751_v52, 0.5  ;;  %v24737_v52 = vld [vmem:[#allocation10 + $0x68] sm:$0xff] }
 0x95c   : > { %9537 = vperm.xlu1 %21816, %v9518_v0   ;;  %v9517_v58 = vsel %vm9404_vm3, 1, %v22318_v5 }
 0x95d   : > { %18959 = vmatmul.mubr.msk.f32.gmra.mrb[58].mxu0 %vm596_vm0, %v24479_v44  ;;  %9534 = vperm.xlu0 %21815, %v9517_v58   ;;  %v9398_v44 = vld [vmem:[#allocation11 + $0xf0] sm:$0xff]  ;;  %v9755_v58 = vld [vmem:[#allocation11 + $0x178] sm:$0xff] }
 0x95e   : > { %18993 = vmatprep.mubr.msk.f32.mxu0 %vm596_vm0, %v24485_v22  ;;  %v9520_v22 = vsel %vm9407_vm4, 1, %v22318_v5  ;;  %vm9406_vm5 = vcmp.gt.f32.partialorder %v9398_v44, 0.5 }
 0x95f   : > { %v9519_v43 = vsel %vm9406_vm5, 1, %v22318_v5 }
 0x960   : > { %9543 = vperm.xlu1 %21816, %v9520_v22  }
 0x961   : > { %18994 = vmatmul.mubr.msk.f32.vlgmr.msra.gmra.mrb[52].mxu0 %vm596_vm0, %v24483_v7  ;;  %9540 = vperm.xlu0 %21815, %v9519_v43   ;;  %v9571_v7 = vld [vmem:[#allocation11 + $0x108] sm:$0xff]  ;;  %v9929_v43 = vld [vmem:[#allocation11 + $0x198] sm:$0xff] }
 0x962   : > { %20752 = vmatpush3.bf16.msra.mxu0 %v20749_v35  ;;  %18996 = vmatprep.mubr.msk.f32.mxu0 %vm596_vm0, %v24489_v26  ;;  %vm9579_vm6 = vcmp.gt.f32.partialorder %v9571_v7, 0.5  ;;  %v9570_v35 = vld [vmem:[#allocation11 + $0x100] sm:$0xff] }
 0x963   : > { %20770 = vmatprep.subr.bf16.mxu0 %v20769_v40  ;;  %v9692_v26 = vsel %vm9579_vm6, 1, %v22318_v5  ;;  %vm9578_vm7 = vcmp.gt.f32.partialorder %v9570_v35, 0.5  ;;  %vm9763_vm6 = vcmp.gt.f32.partialorder %v9755_v58, 0.5  ;;  %v9931_v35 = vld [vmem:[#allocation11 + $0x1a8] sm:$0xff]  ;;  %v10286_v58 = vld [vmem:[#allocation11 + $0x220] sm:$0xff] }
 0x964   : > { %9703 = vperm.xlu1 %21816, %v9692_v26   ;;  %v9691_v56 = vsel %vm9578_vm7, 1, %v22318_v5 }
 0x965   : > { %18997 = vmatmul.mubr.msk.f32.gmra.mrb[54].mxu0 %vm596_vm0, %v24487_v23  ;;  %9700 = vperm.xlu0 %21815, %v9691_v56   ;;  %v9572_v23 = vld [vmem:[#allocation11 + $0x110] sm:$0xff]  ;;  %v9933_v56 = vld [vmem:[#allocation11 + $0x1b8] sm:$0xff] }
 0x966   : > { %18999 = vmatprep.mubr.msk.f32.mxu0 %vm596_vm0, %v24493_v6  ;;  %v9694_v6 = vsel %vm9581_vm8, 1, %v22318_v5  ;;  %vm9580_vm9 = vcmp.gt.f32.partialorder %v9572_v23, 0.5 }
 0x967   : > { %v9693_v55 = vsel %vm9580_vm9, 1, %v22318_v5 }
 0x968   : > { %9709 = vperm.xlu1 %21816, %v9694_v6  }
 0x969   : > { %19000 = vmatmul.mubr.msk.f32.gmra.mrb[56].mxu0 %vm596_vm0, %v24491_v27  ;;  %9706 = vperm.xlu0 %21815, %v9693_v55   ;;  %v9575_v27 = vld [vmem:[#allocation11 + $0x128] sm:$0xff]  ;;  %v24706_v55 = vld [vmem:[#allocation10 + $0x40] sm:$0xff] }
 0x96a   : > { %19002 = vmatprep.mubr.msk.f32.mxu0 %vm596_vm0, %v24497_v15  ;;  %vm9583_vm10 = vcmp.gt.f32.partialorder %v9575_v27, 0.5  ;;  %v9574_v15 = vld [vmem:[#allocation11 + $0x120] sm:$0xff] }
 0x96b   : > { %v9696_v28 = vsel %vm9583_vm10, 1, %v22318_v5  ;;  %vm9582_vm11 = vcmp.gt.f32.partialorder %v9574_v15, 0.5  ;;  %vm9937_vm10 = vcmp.gt.f32.partialorder %v9929_v43, 0.5 }
 0x96c   : > { %9715 = vperm.xlu1 %21816, %v9696_v28   ;;  %v9695_v41 = vsel %vm9582_vm11, 1, %v22318_v5  ;;  %v24718_v28 = vld [vmem:[#allocation10 + $0x50] sm:$0xff] }
 0x96d   : > { %19003 = vmatmul.mubr.msk.f32.gmra.mrb[58].mxu0 %vm596_vm0, %v24495_v13  ;;  %9712 = vperm.xlu0 %21815, %v9695_v41   ;;  %v9576_v13 = vld [vmem:[#allocation11 + $0x130] sm:$0xff] }
 0x96e   : > { %19037 = vmatprep.mubr.msk.f32.mxu0 %vm596_vm0, %v24501_v19  ;;  %v9698_v19 = vsel %vm9585_vm12, 1, %v22318_v5  ;;  %vm9584_vm13 = vcmp.gt.f32.partialorder %v9576_v13, 0.5  ;;  %vm9939_vm12 = vcmp.gt.f32.partialorder %v9931_v35, 0.5  ;;  %v10110_v41 = vld [vmem:[#allocation11 + $0x1f0] sm:$0xff] }
 0x96f   : > { %v9697_v32 = vsel %vm9584_vm13, 1, %v22318_v5 }
 0x970   : > { %9721 = vperm.xlu1 %21816, %v9698_v19   ;;  %v24725_v19 = vld [vmem:[#allocation10 + $0x58] sm:$0xff] }
 0x971   : > { %19038 = vmatmul.mubr.msk.f32.vlgmr.msra.gmra.mrb[52].mxu0 %vm596_vm0, %v24499_v16  ;;  %9718 = vperm.xlu0 %21815, %v9697_v32   ;;  %v9749_v16 = vld [vmem:[#allocation11 + $0x148] sm:$0xff] }
 0x972   : > { %20772 = vmatpush3.bf16.msra.mxu0 %v20769_v40  ;;  %19040 = vmatprep.mubr.msk.f32.mxu0 %vm596_vm0, %v24505_v54  ;;  %vm9757_vm14 = vcmp.gt.f32.partialorder %v9749_v16, 0.5  ;;  %v9753_v40 = vld [vmem:[#allocation11 + $0x168] sm:$0xff]  ;;  %v24730_v16 = vld [vmem:[#allocation10 + $0x60] sm:$0xff] }
 0x973   : > { %20790 = vmatprep.subr.bf16.mxu0 %v20789_v60  ;;  %v9870_v54 = vsel %vm9757_vm14, 1, %v22318_v5  ;;  %vm9761_vm4 = vcmp.gt.f32.partialorder %v9753_v40, 0.5  ;;  %vm9941_vm14 = vcmp.gt.f32.partialorder %v9933_v56, 0.5  ;;  %v10283_v32 = vld [vmem:[#allocation11 + $0x208] sm:$0xff] }
 0x974   : > { %9881 = vperm.xlu1 %21816, %v9870_v54  }
 0x975   : > { %19041 = vmatmul.mubr.msk.f32.gmra.mrb[54].mxu0 %vm596_vm0, %v24503_v53  ;;  %9878 = vperm.xlu0 %21815, %v9869_v36   ;;  %v9750_v53 = vld [vmem:[#allocation11 + $0x150] sm:$0xff] }
 0x976   : > { %19043 = vmatprep.mubr.msk.f32.mxu0 %vm596_vm0, %v24509_v2  ;;  %v9872_v2 = vsel %vm9759_vm2, 1, %v22318_v5  ;;  %vm9758_vm3 = vcmp.gt.f32.partialorder %v9750_v53, 0.5  ;;  %v10285_v53 = vld [vmem:[#allocation11 + $0x218] sm:$0xff] }
 0x977   : > { %v9871_v57 = vsel %vm9758_vm3, 1, %v22318_v5 }
 0x978   : > { %9887 = vperm.xlu1 %21816, %v9872_v2   ;;  %v24742_v2 = vld [vmem:[#allocation10 + $0x70] sm:$0xff] }
 0x979   : > { %19044 = vmatmul.mubr.msk.f32.gmra.mrb[56].mxu0 %vm596_vm0, %v24507_v59  ;;  %9884 = vperm.xlu0 %21815, %v9871_v57   ;;  %v9752_v59 = vld [vmem:[#allocation11 + $0x160] sm:$0xff]  ;;  %v10284_v57 = vld [vmem:[#allocation11 + $0x210] sm:$0xff] }
 0x97a   : > { %19046 = vmatprep.mubr.msk.f32.mxu0 %vm596_vm0, %v24513_v39  ;;  %v9874_v39 = vsel %vm9761_vm4, 1, %v22318_v5  ;;  %vm9760_vm5 = vcmp.gt.f32.partialorder %v9752_v59, 0.5 }
 0x97b   : > { %v9873_v0 = vsel %vm9760_vm5, 1, %v22318_v5 }
 0x97c   : > { %9893 = vperm.xlu1 %21816, %v9874_v39   ;;  %v24749_v39 = vld [vmem:[#allocation10 + $0x78] sm:$0xff] }
 0x97d   : > { %19047 = vmatmul.mubr.msk.f32.gmra.mrb[58].mxu0 %vm596_vm0, %v24511_v62  ;;  %9890 = vperm.xlu0 %21815, %v9873_v0   ;;  %v9754_v62 = vld [vmem:[#allocation11 + $0x170] sm:$0xff]  ;;  %v10287_v0 = vld [vmem:[#allocation11 + $0x228] sm:$0xff] }
 0x97e   : > { %19081 = vmatprep.mubr.msk.f32.mxu0 %vm596_vm0, %v24517_v18  ;;  %v9876_v18 = vsel %vm9763_vm6, 1, %v22318_v5  ;;  %vm9762_vm7 = vcmp.gt.f32.partialorder %v9754_v62, 0.5 }
 0x97f   : > { %v9875_v63 = vsel %vm9762_vm7, 1, %v22318_v5 }
 0x980   : > { %9899 = vperm.xlu1 %21816, %v9876_v18  }
 0x981   : > { %19082 = vmatmul.mubr.msk.f32.vlgmr.msra.gmra.mrb[52].mxu0 %vm596_vm0, %v24515_v51  ;;  %9896 = vperm.xlu0 %21815, %v9875_v63   ;;  %v9927_v51 = vld [vmem:[#allocation11 + $0x188] sm:$0xff]  ;;  %v10289_v63 = vld [vmem:[#allocation11 + $0x238] sm:$0xff] }
 0x982   : > { %20792 = vmatpush3.bf16.msra.mxu0 %v20789_v60  ;;  %19084 = vmatprep.mubr.msk.f32.mxu0 %vm596_vm0, %v24521_v20  ;;  %vm9935_vm8 = vcmp.gt.f32.partialorder %v9927_v51, 0.5  ;;  %v9926_v20 = vld [vmem:[#allocation11 + $0x180] sm:$0xff]  ;;  %v10111_v60 = vld [vmem:[#allocation11 + $0x1f8] sm:$0xff] }
 0x983   : > { %20810 = vmatprep.subr.bf16.mxu0 %v24059_v9  ;;  %v10048_v44 = vsel %vm9935_vm8, 1, %v22318_v5  ;;  %vm9934_vm9 = vcmp.gt.f32.partialorder %v9926_v20, 0.5  ;;  %vm10119_vm8 = vcmp.gt.f32.partialorder %v10111_v60, 0.5 }
 0x984   : > { %10059 = vperm.xlu1 %21816, %v10048_v44   ;;  %v10047_v22 = vsel %vm9934_vm9, 1, %v22318_v5  ;;  %v10232_v3 = vsel %vm10119_vm8, 1, %v22318_v5  ;;  %vm10118_vm9 = vcmp.gt.f32.partialorder %v10110_v41, 0.5  ;;  %v15726_v44 = vld [vmem:[%s26269_s11 + $0x1] ss:$0 sm:$0xff]  ;;  %v24850_v41 = vld [vmem:[#allocation10 + $0x178] sm:$0xff] }
 0x985   : > { %19085 = vmatmul.mubr.msk.f32.gmra.mrb[54].mxu0 %vm596_vm0, %v24519_v4  ;;  %10056 = vperm.xlu0 %21815, %v10047_v22   ;;  %v9928_v4 = vld [vmem:[#allocation11 + $0x190] sm:$0xff]  ;;  %v10231_v13 = vsel %vm10118_vm9, 1, %v22318_v5 }
 0x986   : > { %19087 = vmatprep.mubr.msk.f32.mxu0 %vm596_vm0, %v24525_v33  ;;  %v10050_v33 = vsel %vm9937_vm10, 1, %v22318_v5  ;;  %vm9936_vm11 = vcmp.gt.f32.partialorder %v9928_v4, 0.5  ;;  %vm10291_vm10 = vcmp.gt.f32.partialorder %v10283_v32, 0.5  ;;  %v24799_v22 = vld [vmem:[#allocation10 + $0x150] sm:$0xff]  ;;  %v26396_v4 = vld [vmem:[#allocation50_spill] sm:$0xff] }
 0x987   : > { %v10049_v7 = vsel %vm9936_vm11, 1, %v22318_v5  ;;  %v10404_v54 = vsel %vm10291_vm10, 1, %v22318_v5  ;;  %vm10290_vm11 = vcmp.gt.f32.partialorder %v10282_v25, 0.5 }
 0x988   : > { %10065 = vperm.xlu1 %21816, %v10050_v33   ;;  %v10403_v36 = vsel %vm10290_vm11, 1, %v22318_v5  ;;  %v5594_v33 = vadd.f32 %v26396_v4, %v15726_v44 }
 0x989   : > { %19088 = vmatmul.mubr.msk.f32.gmra.mrb[56].mxu0 %vm596_vm0, %v24523_v48  ;;  %10062 = vperm.xlu0 %21815, %v10049_v7   ;;  %v9930_v48 = vld [vmem:[#allocation11 + $0x1a0] sm:$0xff]  ;;  %v26397_v7 = vld [vmem:[#allocation51_spill] sm:$0xff] }
 0x98a   : > { %19090 = vmatprep.mubr.msk.f32.mxu0 %vm596_vm0, %v24529_v47  ;;  %v10052_v47 = vsel %vm9939_vm12, 1, %v22318_v5  ;;  %vm9938_vm13 = vcmp.gt.f32.partialorder %v9930_v48, 0.5  ;;  %vm10293_vm12 = vcmp.gt.f32.partialorder %v10285_v53, 0.5  ;;  %v5593_v35 = vadd.f32 %v15726_v44, %v26397_v7  ;;  %v24808_v48 = vld [vmem:[#allocation10 + $0x158] sm:$0xff]  ;;  %v26412_v53 = vld [vmem:[#allocation43_spill] sm:$0xff] }
 0x98b   : > { %v10051_v26 = vsel %vm9938_vm13, 1, %v22318_v5  ;;  %v10406_v40 = vsel %vm10293_vm12, 1, %v22318_v5  ;;  %vm10292_vm13 = vcmp.gt.f32.partialorder %v10284_v57, 0.5  ;;  %v24903_v7 = vld [vmem:[#allocation10 + $0x1e8] sm:$0xff] }
 0x98c   : > { %10071 = vperm.xlu1 %21816, %v10052_v47   ;;  %v10405_v59 = vsel %vm10292_vm13, 1, %v22318_v5 }
 0x98d   : > { %19091 = vmatmul.mubr.msk.f32.gmra.mrb[58].mxu0 %vm596_vm0, %v24527_v34  ;;  %10068 = vperm.xlu0 %21815, %v10051_v26   ;;  %v10054_v34 = vsel %vm9941_vm14, 1, %v22318_v5  ;;  %vm10295_vm14 = vcmp.gt.f32.partialorder %v10287_v0, 0.5  ;;  %v26398_v26 = vld [vmem:[#allocation52_spill] sm:$0xff] }
 0x98e   : > { %19125 = vmatprep.mubr.msk.f32.mxu0 %vm596_vm0, %v24533_v17  ;;  %v9932_v17 = vld [vmem:[#allocation11 + $0x1b0] sm:$0xff]  ;;  %v10408_v62 = vsel %vm10295_vm14, 1, %v22318_v5  ;;  %v5596_v56 = vadd.f32 %v26398_v26, %v15726_v44 }
 0x98f   : > { %vm9940_vm15 = vcmp.gt.f32.partialorder %v9932_v17, 0.5  ;;  %v26399_v17 = vld [vmem:[#allocation53_spill] sm:$0xff]  ;;  %v24909_v26 = vld [vmem:[#allocation10 + $0x1f0] sm:$0xff] }
 0x990   : > { %10077 = vperm.xlu1 %21816, %v10054_v34   ;;  %v10053_v21 = vsel %vm9940_vm15, 1, %v22318_v5  ;;  %vm10294_vm15 = vcmp.gt.f32.partialorder %v10286_v58, 0.5  ;;  %v5595_v34 = vadd.f32 %v15726_v44, %v26399_v17  ;;  %v24873_v58 = vld [vmem:[#allocation10 + $0x1c8] sm:$0xff] }
 0x991   : > { %19126 = vmatmul.mubr.msk.f32.vlgmr.msra.gmra.mrb[52].mxu0 %vm596_vm0, %v24531_v29  ;;  %10074 = vperm.xlu0 %21815, %v10053_v21   ;;  %v10105_v29 = vld [vmem:[#allocation11 + $0x1c8] sm:$0xff]  ;;  %v10407_v18 = vsel %vm10294_vm15, 1, %v22318_v5  ;;  %v26400_v21 = vld [vmem:[#allocation34_spill] sm:$0xff] }
 0x992   : > { %20812 = vmatpush3.bf16.msra.mxu0 %v24059_v9  ;;  %19128 = vmatprep.mubr.msk.f32.mxu0 %vm596_vm0, %v24537_v11  ;;  %vm10113_vm2 = vcmp.gt.f32.partialorder %v10105_v29, 0.5  ;;  %v10104_v11 = vld [vmem:[#allocation11 + $0x1c0] sm:$0xff]  ;;  %v24823_v29 = vadd.f32 %v5594_v33, %v26400_v21 }
 0x993   : > { %20814 = vmatprep.subr.bf16.mxu0 %v24074_v42  ;;  %v10226_v23 = vsel %vm10113_vm2, 1, %v22318_v5  ;;  %vm10112_vm3 = vcmp.gt.f32.partialorder %v10104_v11, 0.5  ;;  %vm10297_vm2 = vcmp.gt.f32.partialorder %v10289_v63, 0.5  ;;  %v26402_v11 = vld [vmem:[#allocation35_spill] sm:$0xff]  ;;  %v26416_v63 = vld [vmem:[#allocation44_spill] sm:$0xff] }
 0x994   : > { %10237 = vperm.xlu1 %21816, %v10226_v23   ;;  %v10225_v6 = vsel %vm10112_vm3, 1, %v22318_v5  ;;  %v10410_v51 = vsel %vm10297_vm2, 1, %v22318_v5  ;;  %26401 = vst [vmem:[#allocation59_spill] sm:$0xff] %v24823_v29  ;;  %v24826_v23 = vadd.f32 %v5593_v35, %v26402_v11  ;;  %v10498_v11 = vld [vmem:[#allocation13 + $0x8] sm:$0xff] }
 0x995   : > { %19129 = vmatmul.mubr.msk.f32.gmra.mrb[54].mxu0 %vm596_vm0, %v24535_v14  ;;  %10234 = vperm.xlu0 %21815, %v10225_v6   ;;  %v10107_v14 = vld [vmem:[#allocation11 + $0x1d8] sm:$0xff]  ;;  %v24828_v6 = vld [vmem:[#allocation10 + $0x168] sm:$0xff] }
 0x996   : > { %20816 = vmatpush3.bf16.msra.mxu0 %v24074_v42  ;;  %19131 = vmatprep.mubr.msk.f32.mxu0 %vm596_vm0, %v24541_v46  ;;  %vm10115_vm4 = vcmp.gt.f32.partialorder %v10107_v14, 0.5  ;;  %v10106_v46 = vld [vmem:[#allocation11 + $0x1d0] sm:$0xff]  ;;  %26403 = vst [vmem:[#allocation65_spill] sm:$0xff] %v24826_v23 }
 0x997   : > { %20818 = vmatprep.subr.bf16.mxu0 %v24090_v38  ;;  %v10228_v37 = vsel %vm10115_vm4, 1, %v22318_v5  ;;  %vm10114_vm5 = vcmp.gt.f32.partialorder %v10106_v46, 0.5 }
 0x998   : > { %10243 = vperm.xlu1 %21816, %v10228_v37   ;;  %v10227_v31 = vsel %vm10114_vm5, 1, %v22318_v5  ;;  %v26404_v37 = vld [vmem:[#allocation38_spill] sm:$0xff] }
 0x999   : > { %19132 = vmatmul.mubr.msk.f32.gmra.mrb[56].mxu0 %vm596_vm0, %v24539_v10  ;;  %10240 = vperm.xlu0 %21815, %v10227_v31   ;;  %v10109_v10 = vld [vmem:[#allocation11 + $0x1e8] sm:$0xff]  ;;  %v24843_v31 = vadd.f32 %v5596_v56, %v26404_v37  ;;  %v10497_v56 = vld [vmem:[#allocation13] sm:$0xff] }
 0x99a   : > { %20820 = vmatpush3.bf16.msra.mxu0 %v24090_v38  ;;  %19134 = vmatprep.mubr.msk.f32.mxu0 %vm596_vm0, %v24545_v1  ;;  %vm10117_vm6 = vcmp.gt.f32.partialorder %v10109_v10, 0.5  ;;  %v10108_v1 = vld [vmem:[#allocation11 + $0x1e0] sm:$0xff]  ;;  %v26406_v10 = vld [vmem:[#allocation39_spill] sm:$0xff] }
 0x99b   : > { %20822 = vmatprep.subr.bf16.mxu0 %v24108_v24  ;;  %v10230_v27 = vsel %vm10117_vm6, 1, %v22318_v5  ;;  %vm10116_vm7 = vcmp.gt.f32.partialorder %v10108_v1, 0.5  ;;  %26405 = vst [vmem:[#allocation63_spill] sm:$0xff] %v24843_v31  ;;  %v24846_v1 = vadd.f32 %v5595_v34, %v26406_v10  ;;  %v24915_v34 = vld [vmem:[#allocation10 + $0x1f8] sm:$0xff]  ;;  %v26420_v37 = vld [vmem:[#allocation46_spill] sm:$0xff]  ;;  %v10499_v10 = vld [vmem:[#allocation13 + $0x10] sm:$0xff] }
 0x99c   : > { %10249 = vperm.xlu1 %21816, %v10230_v27   ;;  %v10229_v15 = vsel %vm10116_vm7, 1, %v22318_v5  ;;  %v26408_v27 = vld [vmem:[#allocation54_spill] sm:$0xff] }
 0x99d   : > { %19135 = vmatmul.mubr.msk.f32.gmra.mrb[58].mxu0 %vm596_vm0, %v24543_v45  ;;  %v24713_v45 = vld [vmem:[#allocation10 + $0x48] sm:$0xff]  ;;  %10246 = vperm.xlu0 %21815, %v10229_v15   ;;  %26407 = vst [vmem:[#allocation69_spill] sm:$0xff] %v24846_v1  ;;  %v5598_v15 = vadd.f32 %v26408_v27, %v15726_v44  ;;  %v20941_v32 = vpack.c.bf16 %v24843_v31, %v24846_v1  ;;  %v10500_v27 = vld [vmem:[#allocation13 + $0x18] sm:$0xff] }
 0x99e   : > { %20824 = vmatpush3.bf16.msra.mxu0 %v24108_v24  ;;  %19181 = vmatprep.mubr.msk.f32.mxu0 %vm896_vm1, %v24706_v55 }
 0x99f   : > { %20842 = vmatprep.subr.bf16.mxu0 %v24059_v9 }
 0x9a0   : > { %10255 = vperm.xlu1 %21816, %v10232_v3   ;;  %v20937_v3 = vpack.c.bf16 %v24823_v29, %v24826_v23  ;;  %v21930_v23 = vld [vmem:[#allocation10 + $0x108] sm:$0xff] }
 0x9a1   : > { %19182 = vmatmul.mubr.msk.f32.vlgmr.msra.gmra.mrb[76].mxu0 %vm896_vm1, %v24713_v45  ;;  %10252 = vperm.xlu0 %21815, %v10231_v13   ;;  %v24857_v13 = vld [vmem:[#allocation10 + $0x1c0] sm:$0xff] }
 0x9a2   : > { %20844 = vmatpush3.bf16.msra.mxu0 %v24059_v9  ;;  %19184 = vmatprep.mubr.msk.f32.mxu0 %vm896_vm1, %v24718_v28 }
 0x9a3   : > { %20846 = vmatprep.subr.bf16.mxu0 %v24074_v42 }
 0x9a4   : > { %10415 = vperm.xlu1 %21816, %v10404_v54   ;;  %v26410_v54 = vld [vmem:[#allocation42_spill] sm:$0xff] }
 0x9a5   : > { %19185 = vmatmul.mubr.msk.f32.gmra.mrb[78].mxu0 %vm896_vm1, %v24725_v19  ;;  %10412 = vperm.xlu0 %21815, %v10403_v36   ;;  %v24866_v36 = vadd.f32 %v5598_v15, %v26410_v54  ;;  %v26422_v54 = vld [vmem:[#allocation48_spill] sm:$0xff] }
 0x9a6   : > { %20848 = vmatpush3.bf16.msra.mxu0 %v24074_v42  ;;  %19187 = vmatprep.mubr.msk.f32.mxu0 %vm896_vm1, %v24730_v16 }
 0x9a7   : > { %20850 = vmatprep.subr.bf16.mxu0 %v24090_v38  ;;  %26411 = vst [vmem:[#allocation67_spill] sm:$0xff] %v24866_v36 }
 0x9a8   : > { %10421 = vperm.xlu1 %21816, %v10406_v40   ;;  %v26414_v40 = vld [vmem:[#allocation56_spill] sm:$0xff] }
 0x9a9   : > { %19188 = vmatmul.mubr.msk.f32.gmra.mrb[80].mxu0 %vm896_vm1, %v24737_v52  ;;  %10418 = vperm.xlu0 %21815, %v10405_v59   ;;  %v5600_v59 = vadd.f32 %v26414_v40, %v15726_v44 }
 0x9aa   : > { %20852 = vmatpush3.bf16.msra.mxu0 %v24090_v38  ;;  %19190 = vmatprep.mubr.msk.f32.mxu0 %vm896_vm1, %v24742_v2 }
 0x9ab   : > { %20854 = vmatprep.subr.bf16.mxu0 %v24108_v24 }
 0x9ac   : > { %10427 = vperm.xlu1 %21816, %v10408_v62  }
 0x9ad   : > { %19191 = vmatmul.mubr.msk.f32.gmra.mrb[82].mxu0 %vm896_vm1, %v24749_v39  ;;  %10424 = vperm.xlu0 %21815, %v10407_v18   ;;  %v24879_v18 = vld [vmem:[#allocation10 + $0x1d0] sm:$0xff] }
 0x9ae   : > { %20856 = vmatpush3.bf16.msra.mxu0 %v24108_v24  ;;  %19237 = vmatprep.mubr.msk.f32.mxu0 %vm896_vm1, %v24432_v61  ;;  %v10288_v61 = vld [vmem:[#allocation11 + $0x230] sm:$0xff] }
 0x9af   : > { %20874 = vmatprep.subr.bf16.mxu0 %v24059_v9  ;;  %vm10296_vm3 = vcmp.gt.f32.partialorder %v10288_v61, 0.5  ;;  %v24884_v61 = vadd.f32 %v5600_v59, %v26416_v63 }
 0x9b0   : > { %10433 = vperm.xlu1 %21816, %v10410_v51   ;;  %v10409_v20 = vsel %vm10296_vm3, 1, %v22318_v5  ;;  %v26395_v5 = vld [vmem:[#allocation61_spill] sm:$0xff] }
 0x9b1   : > { %19238 = vmatmul.mubr.msk.f32.vlgmr.msra.gmra.mrb[84].mxu0 %vm896_vm1, %v24436_v30  ;;  %10430 = vperm.xlu0 %21815, %v10409_v20   ;;  %v26394_v30 = vld [vmem:[#allocation58_spill] sm:$0xff]  ;;  %26417 = vst [vmem:[#allocation71_spill] sm:$0xff] %v24884_v61  ;;  %v26418_v51 = vld [vmem:[#allocation45_spill] sm:$0xff] }
 0x9b2   : > { %20876 = vmatpush3.bf16.msra.mxu0 %v24059_v9  ;;  %19240 = vmatprep.mubr.msk.f32.mxu0 %vm896_vm1, %v24440_v8  ;;  %v24782_v8 = vld [vmem:[#allocation10 + $0x140] sm:$0xff] }
 0x9b3   : > { %20878 = vmatprep.subr.bf16.mxu0 %v24074_v42 }
 0x9b5   : > { %19241 = vmatmul.mubr.msk.f32.gmra.mrb[86].mxu0 %vm896_vm1, %v24444_v50  ;;  %v24786_v50 = vpop.permute.xlu1 %9002 }
 0x9b6   : > { %20880 = vmatpush3.bf16.msra.mxu0 %v24074_v42  ;;  %19243 = vmatprep.mubr.msk.f32.mxu0 %vm896_vm1, %v24448_v12  ;;  %v24789_v12 = vpop.permute.xlu0 %8996  ;;  %vm9021_vm7 = vcmp.eq.s32.totalorder %v24786_v50, 1 }
 0x9b7   : > { %20882 = vmatprep.subr.bf16.mxu0 %v24090_v38  ;;  %vm9019_vm5 = vcmp.eq.s32.totalorder %v24789_v12, 1 }
 0x9b9   : > { %19244 = vmatmul.mubr.msk.f32.gmra.mrb[88].mxu0 %vm896_vm1, %v24452_v49  ;;  %v24791_v49 = vld [vmem:[#allocation10 + $0x148] sm:$0xff]  ;;  %v24804_v43 = vpop.permute.xlu1 %9005 }
 0x9ba   : > { %20884 = vmatpush3.bf16.msra.mxu0 %v24090_v38  ;;  %19246 = vmatprep.mubr.msk.f32.mxu0 %vm896_vm1, %v26394_v30  ;;  %v24812_v47 = vpop.permute.xlu0 %8999  ;;  %v24889_v30 = vld [vmem:[#allocation10 + $0x1d8] sm:$0xff]  ;;  %vm9022_vm6 = vcmp.eq.s32.totalorder %v24804_v43, 1 }
 0x9bb   : > { %20886 = vmatprep.subr.bf16.mxu0 %v24108_v24  ;;  %vm9020_vm4 = vcmp.eq.s32.totalorder %v24812_v47, 1 }
 0x9bd   : > { %19247 = vmatmul.mubr.msk.f32.gmra.mrb[90].mxu0 %vm896_vm1, %v26395_v5  ;;  %v24837_v14 = vpop.permute.xlu1 %9011 }
 0x9be   : > { %20888 = vmatpush3.bf16.msra.mxu0 %v24108_v24  ;;  %19293 = vmatprep.mubr.msk.f32.mxu0 %vm896_vm1, %v24782_v8  ;;  %v24840_v46 = vpop.permute.xlu0 %9008  ;;  %vm9024_vm8 = vcmp.eq.s32.totalorder %v24837_v14, 1 }
 0x9bf   : > { %20906 = vmatprep.subr.bf16.mxu0 %v24059_v9  ;;  %vm9023_vm9 = vcmp.eq.s32.totalorder %v24840_v46, 1 }
 0x9c1   : > { %19294 = vmatmul.mubr.msk.f32.vlgmr.msra.gmra.mrb[92].mxu0 %vm896_vm1, %v24791_v49  ;;  %v24863_v25 = vpop.permute.xlu1 %9017 }
 0x9c2   : > { %20908 = vmatpush3.bf16.msra.mxu0 %v24059_v9  ;;  %19296 = vmatprep.mubr.msk.f32.mxu0 %vm896_vm1, %v24799_v22  ;;  %v24815_v9 = vld [vmem:[#allocation10 + $0x160] sm:$0xff]  ;;  %v24877_v62 = vpop.permute.xlu0 %9014  ;;  %vm9026_vm10 = vcmp.eq.s32.totalorder %v24863_v25, 1 }
 0x9c3   : > { %20910 = vmatprep.subr.bf16.mxu0 %v24074_v42  ;;  %vm9025_vm11 = vcmp.eq.s32.totalorder %v24877_v62, 1 }
 0x9c5   : > { %19297 = vmatmul.mubr.msk.f32.gmra.mrb[94].mxu0 %vm896_vm1, %v24808_v48  ;;  %v24899_v4 = vpop.permute.xlu1 %9169 }
 0x9c6   : > { %20912 = vmatpush3.bf16.msra.mxu0 %v24074_v42  ;;  %19299 = vmatprep.mubr.msk.f32.mxu0 %vm896_vm1, %v24815_v9  ;;  %v24833_v42 = vld [vmem:[#allocation10 + $0x170] sm:$0xff]  ;;  %v24901_v33 = vpop.permute.xlu0 %9166 }
 0x9c7   : > { %20914 = vmatprep.subr.bf16.mxu0 %v24090_v38 }
 0x9c9   : > { %19300 = vmatmul.mubr.msk.f32.gmra.mrb[96].mxu0 %vm896_vm1, %v24828_v6  ;;  %v24913_v17 = vpop.permute.xlu1 %9175 }
 0x9ca   : > { %20916 = vmatpush3.bf16.msra.mxu0 %v24090_v38  ;;  %19302 = vmatprep.mubr.msk.f32.mxu0 %vm896_vm1, %v24833_v42  ;;  %v26409_v38 = vld [vmem:[#allocation55_spill] sm:$0xff]  ;;  %v24919_v21 = vpop.permute.xlu0 %9172 }
 0x9cb   : > { %20918 = vmatprep.subr.bf16.mxu0 %v24108_v24  ;;  %v5597_v60 = vadd.f32 %v15726_v44, %v26409_v38  ;;  %v26421_v38 = vld [vmem:[#allocation47_spill] sm:$0xff] }
 0x9cd   : > { %19303 = vmatmul.mubr.msk.f32.gmra.mrb[98].mxu0 %vm896_vm1, %v24850_v41  ;;  %v24869_v57 = vadd.f32 %v5597_v60, %v26412_v53  ;;  %v24926_v15 = vpop.permute.xlu1 %9181  ;;  %v10501_v60 = vld [vmem:[#allocation13 + $0x20] sm:$0xff]  ;;  %v10503_v53 = vld [vmem:[#allocation13 + $0x30] sm:$0xff] }
 0x9ce   : > { %20920 = vmatpush3.bf16.msra.mxu0 %v24108_v24  ;;  %19349 = vmatprep.mubr.msk.f32.mxu0 %vm896_vm1, %v24857_v13  ;;  %v26415_v24 = vld [vmem:[#allocation57_spill] sm:$0xff] }
 0x9cf   : > { %20938 = vmatprep.subr.bf16.mxu0 %v20937_v3  ;;  %26413 = vst [vmem:[#allocation73_spill] sm:$0xff] %v24869_v57  ;;  %v5599_v0 = vadd.f32 %v15726_v44, %v26415_v24  ;;  %v20945_v5 = vpack.c.bf16 %v24866_v36, %v24869_v57  ;;  %v24895_v44 = vld [vmem:[#allocation10 + $0x1e0] sm:$0xff]  ;;  %v10504_v24 = vld [vmem:[#allocation13 + $0x38] sm:$0xff] }
 0x9d0   : > { %v21929_v36 = vld [vmem:[#allocation10 + $0x100] sm:$0xff] }
 0x9d1   : > { %19350 = vmatmul.mubr.msk.f32.vlgmr.msra.gmra.mrb[100].mxu0 %vm896_vm1, %v24873_v58  ;;  %v24887_v20 = vadd.f32 %v5599_v0, %v26418_v51  ;;  %v24935_v40 = vpop.permute.xlu1 %9187  ;;  %v26423_v0 = vld [vmem:[#allocation49_spill] sm:$0xff]  ;;  %v19155_v51 = vpop.f32.mrb[188].mxu1 }
 0x9d2   : > { %20940 = vmatpush3.bf16.msra.mxu0 %v20937_v3  ;;  %19352 = vmatprep.mubr.msk.f32.mxu0 %vm896_vm1, %v24879_v18  ;;  %v24929_v3 = vpop.permute.xlu0 %9178 }
 0x9d3   : > { %20942 = vmatprep.subr.bf16.mxu0 %v20941_v32  ;;  %26419 = vst [vmem:[#allocation62_spill] sm:$0xff] %v24887_v20  ;;  %v20949_v35 = vpack.c.bf16 %v24884_v61, %v24887_v20  ;;  %v21927_v61 = vld [vmem:[#allocation10 + $0xf0] sm:$0xff] }
 0x9d5   : > { %19353 = vmatmul.mubr.msk.f32.gmra.mrb[102].mxu0 %vm896_vm1, %v24889_v30  ;;  %v9348_v63 = vpop.permute.xlu1 %9347 }
 0x9d6   : > { %20944 = vmatpush3.bf16.msra.mxu0 %v20941_v32  ;;  %19355 = vmatprep.mubr.msk.f32.mxu0 %vm896_vm1, %v24895_v44  ;;  %v10502_v32 = vld [vmem:[#allocation13 + $0x28] sm:$0xff]  ;;  %v24938_v59 = vpop.permute.xlu0 %9184  ;;  %vm9368_vm12 = vcmp.eq.s32.totalorder %v9348_v63, 1 }
 0x9d7   : > { %20946 = vmatprep.subr.bf16.mxu0 %v20945_v5 }
 0x9d9   : > { %19356 = vmatmul.mubr.msk.f32.gmra.mrb[104].mxu0 %vm896_vm1, %v24903_v7  ;;  %v9354_v14 = vpop.permute.xlu1 %9353 }
 0x9da   : > { %20948 = vmatpush3.bf16.msra.mxu0 %v20945_v5  ;;  %19358 = vmatprep.mubr.msk.f32.mxu0 %vm896_vm1, %v24909_v26  ;;  %v9345_v5 = vpop.permute.xlu0 %9344  ;;  %vm9370_vm14 = vcmp.eq.s32.totalorder %v9354_v14, 1 }
 0x9db   : > { %20950 = vmatprep.subr.bf16.mxu0 %v20949_v35  ;;  %vm9367_vm13 = vcmp.eq.s32.totalorder %v9345_v5, 1 }
 0x9dd   : > { %19359 = vmatmul.mubr.msk.f32.gmra.mrb[106].mxu0 %vm896_vm1, %v24915_v34 }
 0x9de   : > { %20952 = vmatpush3.bf16.msra.mxu0 %v20949_v35  ;;  %19405 = vmatprep.mubr.msk.f32.mxu0 %vm896_vm1, %v10497_v56  ;;  %v24951_v35 = vsel %vm9020_vm4, %v19155_v51, -inf  ;;  %v8948_v56 = vpop.f32.mrb[189].mxu1 }
 0x9df   : > { %20970 = vmatprep.subr.bf16.mxu0 %v26420_v37  ;;  %v24954_v47 = vsel %vm9019_vm5, %v8948_v56, -inf }
 0x9e1   : > { %19406 = vmatmul.mubr.msk.f32.vlgmr.msra.gmra.mrb[108].mxu0 %vm896_vm1, %v10498_v11 }
 0x9e2   : > { %20972 = vmatpush3.bf16.msra.mxu0 %v26420_v37  ;;  %19408 = vmatprep.mubr.msk.f32.mxu0 %vm896_vm1, %v10499_v10 }
 0x9e3   : > { %20974 = vmatprep.subr.bf16.mxu0 %v26421_v38 }
 0x9e5   : > { %19409 = vmatmul.mubr.msk.f32.gmra.mrb[110].mxu0 %vm896_vm1, %v10500_v27 }
 0x9e6   : > { %20976 = vmatpush3.bf16.msra.mxu0 %v26421_v38  ;;  %19411 = vmatprep.mubr.msk.f32.mxu0 %vm896_vm1, %v10501_v60 }
 0x9e7   : > { %20978 = vmatprep.subr.bf16.mxu0 %v26422_v54 }
 0x9e9   : > { %19412 = vmatmul.mubr.msk.f32.gmra.mrb[112].mxu0 %vm896_vm1, %v10502_v32 }
 0x9ea   : > { %20980 = vmatpush3.bf16.msra.mxu0 %v26422_v54  ;;  %19414 = vmatprep.mubr.msk.f32.mxu0 %vm896_vm1, %v10503_v53 }
 0x9eb   : > { %20982 = vmatprep.subr.bf16.mxu0 %v26423_v0 }
 0x9ed   : > { %19415 = vmatmul.mubr.msk.f32.gmra.mrb[114].mxu0 %vm896_vm1, %v10504_v24 }
 0x9ee   : > { %20984 = vmatpush3.bf16.msra.mxu0 %v26423_v0  ;;  %19461 = vmatprep.mubr.msk.f32.mxu0 %vm896_vm1, %v24706_v55  ;;  %v19158_v55 = vpop.f32.mrb[190].mxu1 }
 0x9ef   : > { %20994 = vmatprep.subr.bf16.mxu0 %v26420_v37  ;;  %v24963_v12 = vsel %vm9022_vm6, %v19158_v55, -inf  ;;  %v8958_v43 = vpop.f32.mrb[191].mxu1  ;;  %v21913_v55 = vld [vmem:[#allocation10 + $0x80] sm:$0xff]  ;;  %vm9190_vm6 = vcmp.eq.s32.totalorder %v24899_v4, 1 }
 0x9f0   : > { %v24967_v50 = vsel %vm9021_vm7, %v8958_v43, -inf  ;;  %vm9189_vm7 = vcmp.eq.s32.totalorder %v24901_v33, 1 }
 0x9f1   : > { %19462 = vmatmul.mubr.msk.f32.vlgmr.msra.gmra.mrb[116].mxu0 %vm896_vm1, %v24713_v45  ;;  %v19161_v45 = vpop.f32.mrb[192].mxu1 }
 0x9f2   : > { %20996 = vmatpush3.bf16.msra.mxu0 %v26420_v37  ;;  %19464 = vmatprep.mubr.msk.f32.mxu0 %vm896_vm1, %v24718_v28  ;;  %v24970_v11 = vsel %vm9024_vm8, %v19161_v45, -inf  ;;  %v8968_v10 = vpop.f32.mrb[193].mxu1  ;;  %v9351_v28 = vpop.permute.xlu0 %9350  ;;  %vm9192_vm8 = vcmp.eq.s32.totalorder %v24913_v17, 1 }
 0x9f3   : > { %20998 = vmatprep.subr.bf16.mxu0 %v26421_v38  ;;  %v24974_v46 = vsel %vm9023_vm9, %v8968_v10, -inf  ;;  %v19164_v27 = vpop.f32.mrb[194].mxu1  ;;  %vm9369_vm15 = vcmp.eq.s32.totalorder %v9351_v28, 1  ;;  %v21914_v10 = vld [vmem:[#allocation10 + $0x88] sm:$0xff]  ;;  %vm9191_vm9 = vcmp.eq.s32.totalorder %v24919_v21, 1 }
 0x9f4   : > { %v24979_v25 = vsel %vm9026_vm10, %v19164_v27, -inf  ;;  %v8978_v62 = vpop.f32.mrb[195].mxu1  ;;  %v21915_v27 = vld [vmem:[#allocation10 + $0x90] sm:$0xff]  ;;  %vm9194_vm10 = vcmp.eq.s32.totalorder %v24926_v15, 1 }
 0x9f5   : > { %19465 = vmatmul.mubr.msk.f32.gmra.mrb[118].mxu0 %vm896_vm1, %v24725_v19  ;;  %v24982_v60 = vsel %vm9025_vm11, %v8978_v62, -inf  ;;  %v19211_v32 = vpop.f32.mrb[196].mxu1  ;;  %vm9193_vm11 = vcmp.eq.s32.totalorder %v24929_v3, 1 }
 0x9f6   : > { %21000 = vmatpush3.bf16.msra.mxu0 %v26421_v38  ;;  %19467 = vmatprep.mubr.msk.f32.mxu0 %vm896_vm1, %v24730_v16  ;;  %v24984_v19 = vsel %vm9368_vm12, %v19211_v32, -inf  ;;  %v9296_v53 = vpop.f32.mrb[197].mxu1  ;;  %v9360_v16 = vpop.permute.xlu1 %9359  ;;  %vm9196_vm12 = vcmp.eq.s32.totalorder %v24935_v40, 1 }
 0x9f7   : > { %21002 = vmatprep.subr.bf16.mxu0 %v26422_v54  ;;  %v24988_v24 = vsel %vm9367_vm13, %v9296_v53, -inf  ;;  %v9357_v63 = vpop.permute.xlu0 %9356  ;;  %v19214_v51 = vpop.f32.mrb[198].mxu1  ;;  %vm9372_vm2 = vcmp.eq.s32.totalorder %v9360_v16, 1  ;;  %v21916_v16 = vld [vmem:[#allocation10 + $0x98] sm:$0xff]  ;;  %vm9195_vm13 = vcmp.eq.s32.totalorder %v24938_v59, 1 }
 0x9f8   : > { %v24994_v5 = vsel %vm9370_vm14, %v19214_v51, -inf  ;;  %v9306_v56 = vpop.f32.mrb[199].mxu1  ;;  %vm9371_vm3 = vcmp.eq.s32.totalorder %v9357_v63, 1  ;;  %v21917_v51 = vld [vmem:[#allocation10 + $0xa0] sm:$0xff] }
 0x9f9   : > { %19468 = vmatmul.mubr.msk.f32.gmra.mrb[120].mxu0 %vm896_vm1, %v24737_v52  ;;  %v24998_v52 = vsel %vm9369_vm15, %v9306_v56, -inf }
 0x9fa   : > { %21004 = vmatpush3.bf16.msra.mxu0 %v26422_v54  ;;  %19470 = vmatprep.mubr.msk.f32.mxu0 %vm896_vm1, %v24742_v2  ;;  %v19217_v2 = vpop.f32.mrb[200].mxu1  ;;  %v9366_v43 = vpop.permute.xlu1 %9365 }
 0x9fb   : > { %21006 = vmatprep.subr.bf16.mxu0 %v26423_v0  ;;  %v25003_v45 = vsel %vm9372_vm2, %v19217_v2, -inf  ;;  %v9316_v14 = vpop.f32.mrb[201].mxu1  ;;  %vm9374_vm4 = vcmp.eq.s32.totalorder %v9366_v43, 1  ;;  %v21918_v2 = vld [vmem:[#allocation10 + $0xa8] sm:$0xff]  ;;  %v21919_v43 = vld [vmem:[#allocation10 + $0xb0] sm:$0xff] }
 0x9fc   : > { %v25006_v28 = vsel %vm9371_vm3, %v9316_v14, -inf  ;;  %v19220_v62 = vpop.f32.mrb[202].mxu1 }
 0x9fd   : > { %19471 = vmatmul.mubr.msk.f32.gmra.mrb[122].mxu0 %vm896_vm1, %v24749_v39  ;;  %v9363_v39 = vpop.permute.xlu0 %9362  ;;  %v25011_v32 = vsel %vm9374_vm4, %v19220_v62, -inf  ;;  %v9326_v53 = vpop.f32.mrb[203].mxu1 }
 0x9fe   : > { %21008 = vmatpush3.bf16.msra.mxu0 %v26423_v0  ;;  %19521 = vmatprep.mubr.msk.f32.mxu0 %vm896_vm1, %v21913_v55  ;;  %vm9373_vm5 = vcmp.eq.s32.totalorder %v9363_v39, 1  ;;  %v25019_v56 = vpop.f32.mrb[204].mxu1  ;;  %v21920_v39 = vld [vmem:[#allocation10 + $0xb8] sm:$0xff] }
 0x9ff   : > { %21014 = vmatprep.subr.bf16.mxu0 %v26420_v37  ;;  %v25014_v63 = vsel %vm9373_vm5, %v9326_v53, -inf  ;;  %v25021_v55 = vpop.f32.mrb[205].mxu1 }
 0xa00   : > { %v25027_v14 = vpop.f32.mrb[206].mxu1 }
 0xa01   : > { %19522 = vmatmul.mubr.msk.f32.vlgmr.msra.gmra.mrb[124].mxu0 %vm896_vm1, %v21914_v10  ;;  %v25029_v10 = vpop.f32.mrb[207].mxu1  ;;  %v25069_v1 = vpop.permute.xlu0 %9522 }
 0xa02   : > { %21016 = vmatpush3.bf16.msra.mxu0 %v26420_v37  ;;  %19524 = vmatprep.mubr.msk.f32.mxu0 %vm896_vm1, %v21915_v27  ;;  %v21921_v27 = vld [vmem:[#allocation10 + $0xc0] sm:$0xff]  ;;  %v25035_v62 = vpop.f32.mrb[208].mxu1  ;;  %vm9545_vm2 = vcmp.eq.s32.totalorder %v25069_v1, 1 }
 0xa03   : > { %21018 = vmatprep.subr.bf16.mxu0 %v26421_v38  ;;  %v25037_v53 = vpop.f32.mrb[209].mxu1 }
 0xa05   : > { %19525 = vmatmul.mubr.msk.f32.gmra.mrb[126].mxu0 %vm896_vm1, %v21916_v16  ;;  %v21922_v16 = vld [vmem:[#allocation10 + $0xc8] sm:$0xff] }
 0xa06   : > { %21020 = vmatpush3.bf16.msra.mxu0 %v26421_v38  ;;  %19527 = vmatprep.mubr.msk.f32.mxu0 %vm896_vm1, %v21917_v51  ;;  %v21923_v51 = vld [vmem:[#allocation10 + $0xd0] sm:$0xff] }
 0xa07   : > { %21022 = vmatprep.subr.bf16.mxu0 %v26422_v54 }
 0xa09   : > { %19528 = vmatmul.mubr.msk.f32.gmra.mrb[128].mxu0 %vm896_vm1, %v21918_v2  ;;  %v25043_v2 = vpop.f32.mrb[210].mxu1 }
 0xa0a   : > { %21024 = vmatpush3.bf16.msra.mxu0 %v26422_v54  ;;  %19530 = vmatprep.mubr.msk.f32.mxu0 %vm896_vm1, %v21919_v43  ;;  %26424 = vst [vmem:[#allocation60_spill] sm:$0xff] %v25043_v2  ;;  %v25045_v43 = vpop.f32.mrb[211].mxu1 }
 0xa0b   : > { %21026 = vmatprep.subr.bf16.mxu0 %v26423_v0  ;;  %26425 = vst [vmem:[#allocation66_spill] sm:$0xff] %v25045_v43  ;;  %v21942_v43 = vld [vmem:[#allocation10 + $0x1a8] sm:$0xff] }
 0xa0d   : > { %19531 = vmatmul.mubr.msk.f32.gmra.mrb[130].mxu0 %vm896_vm1, %v21920_v39  ;;  %v21924_v39 = vld [vmem:[#allocation10 + $0xd8] sm:$0xff] }
 0xa0e   : > { %21028 = vmatpush3.bf16.msra.mxu0 %v26423_v0  ;;  %19565 = vmatprep.mubr.msk.f32.mxu0 %vm896_vm1, %v21921_v27  ;;  %v21925_v27 = vld [vmem:[#allocation10 + $0xe0] sm:$0xff] }
 0xa0f   : > { %21034 = vmatprep.subr.bf16.mxu0 %v26420_v37 }
 0xa11   : > { %19566 = vmatmul.mubr.msk.f32.vlgmr.msra.gmra.mrb[132].mxu0 %vm896_vm1, %v21922_v16  ;;  %v25051_v16 = vpop.f32.mrb[212].mxu1 }
 0xa12   : > { %21036 = vmatpush3.bf16.msra.mxu0 %v26420_v37  ;;  %19568 = vmatprep.mubr.msk.f32.mxu0 %vm896_vm1, %v21923_v51  ;;  %26426 = vst [vmem:[#allocation64_spill] sm:$0xff] %v25051_v16  ;;  %v25053_v20 = vpop.f32.mrb[213].mxu1  ;;  %v21926_v51 = vld [vmem:[#allocation10 + $0xe8] sm:$0xff]  ;;  %v21936_v16 = vld [vmem:[#allocation10 + $0x138] sm:$0xff] }
 0xa13   : > { %21038 = vmatprep.subr.bf16.mxu0 %v26421_v38  ;;  %26427 = vst [vmem:[#allocation70_spill] sm:$0xff] %v25053_v20 }
 0xa15   : > { %19569 = vmatmul.mubr.msk.f32.gmra.mrb[134].mxu0 %vm896_vm1, %v21924_v39  ;;  %v25059_v39 = vpop.f32.mrb[214].mxu1 }
 0xa16   : > { %21040 = vmatpush3.bf16.msra.mxu0 %v26421_v38  ;;  %19571 = vmatprep.mubr.msk.f32.mxu0 %vm896_vm1, %v21925_v27  ;;  %26428 = vst [vmem:[#allocation68_spill] sm:$0xff] %v25059_v39  ;;  %v25061_v57 = vpop.f32.mrb[215].mxu1  ;;  %v21928_v27 = vld [vmem:[#allocation10 + $0xf8] sm:$0xff] }
 0xa17   : > { %21042 = vmatprep.subr.bf16.mxu0 %v26422_v54  ;;  %26429 = vst [vmem:[#allocation74_spill] sm:$0xff] %v25061_v57  ;;  %v21932_v39 = vld [vmem:[#allocation10 + $0x118] sm:$0xff] }
 0xa19   : > { %19572 = vmatmul.mubr.msk.f32.gmra.mrb[136].mxu0 %vm896_vm1, %v21926_v51  ;;  %v25066_v51 = vpop.permute.xlu1 %9525 }
 0xa1a   : > { %21044 = vmatpush3.bf16.msra.mxu0 %v26422_v54  ;;  %19574 = vmatprep.mubr.msk.f32.mxu0 %vm896_vm1, %v21927_v61  ;;  %v25071_v61 = vpop.f32.mrb[216].mxu1  ;;  %vm9546_vm14 = vcmp.eq.s32.totalorder %v25066_v51, 1 }
 0xa1b   : > { %21046 = vmatprep.subr.bf16.mxu0 %v26423_v0  ;;  %26430 = vst [vmem:[#allocation72_spill] sm:$0xff] %v25071_v61  ;;  %v25073_v31 = vpop.f32.mrb[217].mxu1  ;;  %v21934_v61 = vld [vmem:[#allocation10 + $0x128] sm:$0xff] }
 0xa1c   : > { %26431 = vst [vmem:[#allocation76_spill] sm:$0xff] %v25073_v31  ;;  %v25086_v31 = vpop.permute.xlu0 %9528 }
 0xa1d   : > { %19575 = vmatmul.mubr.msk.f32.gmra.mrb[138].mxu0 %vm896_vm1, %v21928_v27  ;;  %v21931_v27 = vld [vmem:[#allocation10 + $0x110] sm:$0xff]  ;;  %v25081_v29 = vpop.permute.xlu1 %9531 }
 0xa1e   : > { %21048 = vmatpush3.bf16.msra.mxu0 %v26423_v0  ;;  %19609 = vmatprep.mubr.msk.f32.mxu0 %vm896_vm1, %v21929_v36  ;;  %v25079_v36 = vpop.f32.mrb[218].mxu1  ;;  %vm9548_vm4 = vcmp.eq.s32.totalorder %v25081_v29, 1 }
 0xa1f   : > { %21054 = vmatprep.subr.bf16.mxu0 %v26420_v37  ;;  %26432 = vst [vmem:[#allocation75_spill] sm:$0xff] %v25079_v36  ;;  %v25083_v57 = vpop.f32.mrb[219].mxu1 }
 0xa20   : > { %26433 = vst [vmem:[#allocation78_spill] sm:$0xff] %v25083_v57  ;;  %v21935_v57 = vld [vmem:[#allocation10 + $0x130] sm:$0xff]  ;;  %v25101_v20 = vpop.permute.xlu0 %9534 }
 0xa21   : > { %19610 = vmatmul.mubr.msk.f32.vlgmr.msra.gmra.mrb[140].mxu0 %vm896_vm1, %v21930_v23  ;;  %v21933_v23 = vld [vmem:[#allocation10 + $0x120] sm:$0xff] }
 0xa22   : > { %21056 = vmatpush3.bf16.msra.mxu0 %v26420_v37  ;;  %19612 = vmatprep.mubr.msk.f32.mxu0 %vm896_vm1, %v21931_v27  ;;  %v25091_v27 = vpop.f32.mrb[220].mxu1 }
 0xa23   : > { %21058 = vmatprep.subr.bf16.mxu0 %v26421_v38  ;;  %26434 = vst [vmem:[#allocation77_spill] sm:$0xff] %v25091_v27  ;;  %v25094_v36 = vpop.f32.mrb[221].mxu1 }
 0xa24   : > { %26435 = vst [vmem:[#allocation80_spill] sm:$0xff] %v25094_v36 }
 0xa25   : > { %19613 = vmatmul.mubr.msk.f32.gmra.mrb[142].mxu0 %vm896_vm1, %v21932_v39  ;;  %v25098_v39 = vpop.permute.xlu1 %9537 }
 0xa26   : > { %21060 = vmatpush3.bf16.msra.mxu0 %v26421_v38  ;;  %19615 = vmatprep.mubr.msk.f32.mxu0 %vm896_vm1, %v21933_v23  ;;  %v25103_v23 = vpop.f32.mrb[222].mxu1 }
 0xa27   : > { %21062 = vmatprep.subr.bf16.mxu0 %v26422_v54  ;;  %26436 = vst [vmem:[#allocation79_spill] sm:$0xff] %v25103_v23  ;;  %v25106_v27 = vpop.f32.mrb[223].mxu1  ;;  %v25118_v23 = vpop.permute.xlu0 %9540 }
 0xa28   : > { %26437 = vst [vmem:[#allocation82_spill] sm:$0xff] %v25106_v27 }
 0xa29   : > { %19616 = vmatmul.mubr.msk.f32.gmra.mrb[144].mxu0 %vm896_vm1, %v21934_v61  ;;  %v25114_v61 = vpop.f32.mrb[224].mxu1 }
 0xa2a   : > { %21064 = vmatpush3.bf16.msra.mxu0 %v26422_v54  ;;  %19618 = vmatprep.mubr.msk.f32.mxu0 %vm896_vm1, %v21935_v57  ;;  %v25112_v57 = vpop.permute.xlu1 %9543  ;;  %26438 = vst [vmem:[#allocation81_spill] sm:$0xff] %v25114_v61  ;;  %v25120_v36 = vpop.f32.mrb[225].mxu1  ;;  %v10789_v61 = vld [vmem:[#allocation8 + $0x248] sm:$0xff] }
 0xa2b   : > { %21066 = vmatprep.subr.bf16.mxu0 %v26423_v0  ;;  %26439 = vst [vmem:[#allocation84_spill] sm:$0xff] %v25120_v36  ;;  %v25138_v36 = vpop.permute.xlu0 %9700 }
 0xa2c   : > { %vm9723_vm3 = vcmp.eq.s32.totalorder %v25138_v36, 1 }
 0xa2d   : > { %19619 = vmatmul.mubr.msk.f32.gmra.mrb[146].mxu0 %vm896_vm1, %v21936_v16 }
 0xa2e   : > { %21068 = vmatpush3.bf16.msra.mxu0 %v26423_v0  ;;  %19653 = vmatprep.mubr.msk.f32.mxu0 %vm896_vm1, %v24782_v8  ;;  %v25126_v8 = vpop.f32.mrb[226].mxu1 }
 0xa2f   : > { %21074 = vmatprep.subr.bf16.mxu0 %v26420_v37  ;;  %26440 = vst [vmem:[#allocation83_spill] sm:$0xff] %v25126_v8  ;;  %v25130_v16 = vpop.f32.mrb[227].mxu1  ;;  %v10897_v8 = vld [vmem:[#allocation8 + $0x258] sm:$0xff] }
 0xa30   : > { %26441 = vst [vmem:[#allocation86_spill] sm:$0xff] %v25130_v16  ;;  %v25150_v16 = vpop.permute.xlu0 %9706 }
 0xa31   : > { %19654 = vmatmul.mubr.msk.f32.vlgmr.msra.gmra.mrb[148].mxu0 %vm896_vm1, %v24791_v49  ;;  %v25135_v49 = vpop.permute.xlu1 %9703 }
 0xa32   : > { %21076 = vmatpush3.bf16.msra.mxu0 %v26420_v37  ;;  %19656 = vmatprep.mubr.msk.f32.mxu0 %vm896_vm1, %v24799_v22  ;;  %v10896_v22 = vld [vmem:[#allocation8 + $0x250] sm:$0xff]  ;;  %vm9724_vm15 = vcmp.eq.s32.totalorder %v25135_v49, 1 }
 0xa33   : > { %21078 = vmatprep.subr.bf16.mxu0 %v26421_v38 }
 0xa35   : > { %19657 = vmatmul.mubr.msk.f32.gmra.mrb[150].mxu0 %vm896_vm1, %v24808_v48  ;;  %v20985_v48 = vpack.c.bf16 %v10897_v8, %v10896_v22  ;;  %v21939_v8 = vld [vmem:[#allocation10 + $0x190] sm:$0xff] }
 0xa36   : > { %21080 = vmatpush3.bf16.msra.mxu0 %v26421_v38  ;;  %19659 = vmatprep.mubr.msk.f32.mxu0 %vm896_vm1, %v24815_v9  ;;  %v25146_v9 = vpop.permute.xlu1 %9709 }
 0xa37   : > { %21082 = vmatprep.subr.bf16.mxu0 %v26422_v54  ;;  %20986 = vmatprep.subr.bf16.mxu1 %v20985_v48  ;;  %vm9726_vm5 = vcmp.eq.s32.totalorder %v25146_v9, 1 }
 0xa38   : > { %20988 = vmatpush3.bf16.msra.mxu1 %v20985_v48  ;;  %v21940_v48 = vld [vmem:[#allocation10 + $0x198] sm:$0xff] }
 0xa39   : > { %19660 = vmatmul.mubr.msk.f32.gmra.mrb[152].mxu0 %vm896_vm1, %v24828_v6  ;;  %v21937_v6 = vld [vmem:[#allocation10 + $0x180] sm:$0xff] }
 0xa3a   : > { %21084 = vmatpush3.bf16.msra.mxu0 %v26422_v54  ;;  %19662 = vmatprep.mubr.msk.f32.mxu0 %vm896_vm1, %v24833_v42  ;;  %v21938_v42 = vld [vmem:[#allocation10 + $0x188] sm:$0xff]  ;;  %v25158_v22 = vpop.permute.xlu1 %9715 }
 0xa3b   : > { %21086 = vmatprep.subr.bf16.mxu0 %v26423_v0 }
 0xa3d   : > { %19663 = vmatmul.mubr.msk.f32.gmra.mrb[154].mxu0 %vm896_vm1, %v24850_v41  ;;  %v25161_v41 = vpop.permute.xlu0 %9712 }
 0xa3e   : > { %21088 = vmatpush3.bf16.msra.mxu0 %v26423_v0  ;;  %19697 = vmatprep.mubr.msk.f32.mxu0 %vm896_vm1, %v21937_v6  ;;  %v21941_v6 = vld [vmem:[#allocation10 + $0x1a0] sm:$0xff]  ;;  %v25167_v27 = vpop.permute.xlu1 %9721 }
 0xa3f   : > { %21094 = vmatprep.subr.bf16.mxu0 %v26420_v37 }
 0xa41   : > { %19698 = vmatmul.mubr.msk.f32.vlgmr.msra.gmra.mrb[156].mxu0 %vm896_vm1, %v21938_v42  ;;  %v10788_v42 = vld [vmem:[#allocation8 + $0x240] sm:$0xff]  ;;  %v25172_v2 = vpop.permute.xlu0 %9718 }
 0xa42   : > { %21096 = vmatpush3.bf16.msra.mxu0 %v26420_v37  ;;  %19700 = vmatprep.mubr.msk.f32.mxu0 %vm896_vm1, %v21939_v8  ;;  %v25169_v8 = vpack.c.bf16 %v10789_v61, %v10788_v42  ;;  %v25192_v42 = vpop.f32.mrb[228].mxu1 }
 0xa43   : > { %21098 = vmatprep.subr.bf16.mxu0 %v26421_v38  ;;  %26443 = vst [vmem:[#allocation88_spill] sm:$0xff] %v25192_v42 }
 0xa44   : > { %26442 = vst [vmem:[#allocation85_spill] sm:$0xff] %v25169_v8  ;;  %20990 = vmatprep.subr.bf16.mxu1 %v25169_v8 }
 0xa45   : > { %19701 = vmatmul.mubr.msk.f32.gmra.mrb[158].mxu0 %vm896_vm1, %v21940_v48  ;;  %v21943_v48 = vld [vmem:[#allocation10 + $0x1b0] sm:$0xff]  ;;  %v25185_v61 = vpop.permute.xlu0 %9878 }
 0xa46   : > { %21100 = vmatpush3.bf16.msra.mxu0 %v26421_v38  ;;  %19703 = vmatprep.mubr.msk.f32.mxu0 %vm896_vm1, %v21941_v6  ;;  %v21944_v6 = vld [vmem:[#allocation10 + $0x1b8] sm:$0xff] }
 0xa47   : > { %21102 = vmatprep.subr.bf16.mxu0 %v26422_v54 }
 0xa49   : > { %19704 = vmatmul.mubr.msk.f32.gmra.mrb[160].mxu0 %vm896_vm1, %v21942_v43  ;;  %v25182_v43 = vpop.permute.xlu1 %9881  ;;  %v25203_v8 = vpop.permute.xlu0 %9884 }
 0xa4a   : > { %21104 = vmatpush3.bf16.msra.mxu0 %v26422_v54  ;;  %19706 = vmatprep.mubr.msk.f32.mxu0 %vm896_vm1, %v21943_v48  ;;  %v25195_v48 = vpop.f32.mrb[229].mxu1 }
 0xa4b   : > { %21106 = vmatprep.subr.bf16.mxu0 %v26423_v0  ;;  %26444 = vst [vmem:[#allocation87_spill] sm:$0xff] %v25195_v48  ;;  %v21950_v48 = vld [vmem:[#allocation10 + $0x228] sm:$0xff] }
 0xa4d   : > { %19707 = vmatmul.mubr.msk.f32.gmra.mrb[162].mxu0 %vm896_vm1, %v21944_v6  ;;  %v25199_v6 = vpop.f32.mrb[230].mxu1 }
 0xa4e   : > { %21108 = vmatpush3.bf16.msra.mxu0 %v26423_v0  ;;  %19741 = vmatprep.mubr.msk.f32.mxu0 %vm896_vm1, %v24857_v13  ;;  %v25197_v13 = vpop.permute.xlu1 %9887  ;;  %26445 = vst [vmem:[#allocation90_spill] sm:$0xff] %v25199_v6 }
 0xa4f   : > { %21114 = vmatprep.subr.bf16.mxu0 %v26420_v37 }
 0xa51   : > { %19742 = vmatmul.mubr.msk.f32.vlgmr.msra.gmra.mrb[164].mxu0 %vm896_vm1, %v24873_v58  ;;  %v25209_v58 = vpop.f32.mrb[231].mxu1 }
 0xa52   : > { %21116 = vmatpush3.bf16.msra.mxu0 %v26420_v37  ;;  %19744 = vmatprep.mubr.msk.f32.mxu0 %vm896_vm1, %v24879_v18  ;;  %26446 = vst [vmem:[#allocation89_spill] sm:$0xff] %v25209_v58  ;;  %v25211_v18 = vpop.f32.mrb[232].mxu1  ;;  %v25221_v37 = vpop.permute.xlu0 %9890 }
 0xa53   : > { %21118 = vmatprep.subr.bf16.mxu0 %v26421_v38  ;;  %26447 = vst [vmem:[#allocation92_spill] sm:$0xff] %v25211_v18  ;;  %26449 = vst [vmem:[#allocation94_spill] sm:$0xff] %v25221_v37  ;;  %v21946_v18 = vld [vmem:[#allocation10 + $0x208] sm:$0xff] }
 0xa55   : > { %19745 = vmatmul.mubr.msk.f32.gmra.mrb[166].mxu0 %vm896_vm1, %v24889_v30  ;;  %v25218_v30 = vpop.permute.xlu1 %9893 }
 0xa56   : > { %21120 = vmatpush3.bf16.msra.mxu0 %v26421_v38  ;;  %19747 = vmatprep.mubr.msk.f32.mxu0 %vm896_vm1, %v24895_v44  ;;  %26448 = vst [vmem:[#allocation91_spill] sm:$0xff] %v25218_v30  ;;  %v25223_v44 = vpop.f32.mrb[233].mxu1  ;;  %v25236_v6 = vpop.permute.xlu0 %9896 }
 0xa57   : > { %21122 = vmatprep.subr.bf16.mxu0 %v26422_v54  ;;  %26450 = vst [vmem:[#allocation93_spill] sm:$0xff] %v25223_v44  ;;  %v25225_v38 = vpop.f32.mrb[234].mxu1  ;;  %26454 = vst [vmem:[#allocation97_spill] sm:$0xff] %v25236_v6  ;;  %v21947_v44 = vld [vmem:[#allocation10 + $0x210] sm:$0xff] }
 0xa58   : > { %26451 = vst [vmem:[#allocation96_spill] sm:$0xff] %v25225_v38 }
 0xa59   : > { %19748 = vmatmul.mubr.msk.f32.gmra.mrb[168].mxu0 %vm896_vm1, %v24903_v7  ;;  %v21945_v7 = vld [vmem:[#allocation10 + $0x200] sm:$0xff] }
 0xa5a   : > { %21124 = vmatpush3.bf16.msra.mxu0 %v26422_v54  ;;  %19750 = vmatprep.mubr.msk.f32.mxu0 %vm896_vm1, %v24909_v26  ;;  %v25231_v54 = vpop.f32.mrb[235].mxu1  ;;  %v25233_v26 = vpop.permute.xlu1 %9899 }
 0xa5b   : > { %21126 = vmatprep.subr.bf16.mxu0 %v26423_v0  ;;  %26452 = vst [vmem:[#allocation95_spill] sm:$0xff] %v25231_v54  ;;  %26453 = vst [vmem:[#allocation98_spill] sm:$0xff] %v25233_v26  ;;  %v25247_v58 = vpop.permute.xlu0 %10056 }
 0xa5d   : > { %19751 = vmatmul.mubr.msk.f32.gmra.mrb[170].mxu0 %vm896_vm1, %v24915_v34 }
 0xa5e   : > { %21128 = vmatpush3.bf16.msra.mxu0 %v26423_v0  ;;  %19785 = vmatprep.mubr.msk.f32.mxu0 %vm896_vm1, %v21945_v7  ;;  %v21948_v0 = vld [vmem:[#allocation10 + $0x218] sm:$0xff]  ;;  %v21949_v7 = vld [vmem:[#allocation10 + $0x220] sm:$0xff]  ;;  %v25245_v54 = vpop.permute.xlu1 %10059 }
 0xa5f   : > { %v25262_v6 = vpop.permute.xlu0 %10062 }
 0xa61   : > { %19786 = vmatmul.mubr.msk.f32.vlgmr.msra.gmra.mrb[172].mxu0 %vm896_vm1, %v21946_v18 }
 0xa62   : > { %19788 = vmatprep.mubr.msk.f32.mxu0 %vm896_vm1, %v21947_v44  ;;  %v21951_v44 = vld [vmem:[#allocation10 + $0x230] sm:$0xff] }
 0xa64   : > { %v25239_v38 = vpop.f32.mrb[52].mxu0 }
 0xa65   : > { %26455 = vst [vmem:[#allocation100_spill] sm:$0xff] %v25239_v38  ;;  %v25241_v34 = vpop.f32.mrb[53].mxu0  ;;  %19789 = vmatmul.mubr.msk.f32.gmra.mrb[174].mxu0 %vm896_vm1, %v21948_v0  ;;  %v25257_v0 = vpop.permute.xlu1 %10065 }
 0xa66   : > { %26456 = vst [vmem:[#allocation99_spill] sm:$0xff] %v25241_v34  ;;  %19791 = vmatprep.mubr.msk.f32.mxu0 %vm896_vm1, %v21949_v7  ;;  %v21952_v7 = vld [vmem:[#allocation10 + $0x238] sm:$0xff] }
 0xa68   : > { %v25249_v18 = vpop.f32.mrb[54].mxu0 }
 0xa69   : > { %26457 = vst [vmem:[#allocation102_spill] sm:$0xff] %v25249_v18  ;;  %v25251_v42 = vpop.f32.mrb[55].mxu0  ;;  %19792 = vmatmul.mubr.msk.f32.gmra.mrb[176].mxu0 %vm896_vm1, %v21950_v48  ;;  %v21953_v18 = vld [vmem:[#allocation10] sm:$0xff] }
 0xa6a   : > { %26458 = vst [vmem:[#allocation101_spill] sm:$0xff] %v25251_v42  ;;  %19794 = vmatprep.mubr.msk.f32.mxu0 %vm896_vm1, %v21951_v44  ;;  %v25270_v44 = vpop.permute.xlu1 %10071 }
 0xa6b   : > { %26463 = vst [vmem:[#allocation108_spill] sm:$0xff] %v25270_v44 }
 0xa6c   : > { %v25255_v34 = vpop.f32.mrb[56].mxu0 }
 0xa6d   : > { %26459 = vst [vmem:[#allocation104_spill] sm:$0xff] %v25255_v34  ;;  %v25259_v38 = vpop.f32.mrb[57].mxu0  ;;  %19795 = vmatmul.mubr.msk.f32.gmra.mrb[178].mxu0 %vm896_vm1, %v21952_v7  ;;  %v25273_v34 = vpop.permute.xlu0 %10068 }
 0xa6e   : > { %26460 = vst [vmem:[#allocation103_spill] sm:$0xff] %v25259_v38  ;;  %19829 = vmatprep.mubr.msk.f32.mxu0 %vm896_vm1, %v21953_v18  ;;  %26464 = vst [vmem:[#allocation107_spill] sm:$0xff] %v25273_v34  ;;  %v25280_v44 = vpop.permute.xlu1 %10077 }
 0xa70   : > { %v25265_v42 = vpop.f32.mrb[58].mxu0 }
 0xa71   : > { %26461 = vst [vmem:[#allocation106_spill] sm:$0xff] %v25265_v42  ;;  %v25267_v48 = vpop.f32.mrb[59].mxu0 }
 0xa72   : > { %26462 = vst [vmem:[#allocation105_spill] sm:$0xff] %v25267_v48  ;;  %v25293_v15 = vpop.permute.xlu1 %10237 }
 0xa74   : > { %v19183_v38 = vpop.f32.mrb[76].mxu0 }
 0xa75   : > { %v9198_v26 = vsel %vm9190_vm6, %v19183_v38, -inf  ;;  %v9118_v7 = vpop.f32.mrb[77].mxu0  ;;  %v25283_v38 = vpop.permute.xlu0 %10074  ;;  %vm9547_vm6 = vcmp.eq.s32.totalorder %v25086_v31, 1 }
 0xa76   : > { %v9206_v37 = vmax.f32 %v24951_v35, %v9198_v26  ;;  %v9197_v18 = vsel %vm9189_vm7, %v9118_v7, -inf  ;;  %vm9725_vm7 = vcmp.eq.s32.totalorder %v25150_v16, 1 }
 0xa77   : > { %v9205_v48 = vmax.f32 %v24954_v47, %v9197_v18  ;;  %v9733_v16 = vsel %vm9725_vm7, %v25029_v10, -inf  ;;  %vm10082_vm7 = vcmp.eq.s32.totalorder %v25257_v0, 1 }
 0xa78   : > { %v9384_v4 = vmax.f32 %v9206_v37, %v24984_v19  ;;  %v19186_v42 = vpop.f32.mrb[78].mxu0 }
 0xa79   : > { %v9383_v33 = vmax.f32 %v9205_v48, %v24988_v24  ;;  %v9200_v34 = vsel %vm9192_vm8, %v19186_v42, -inf  ;;  %v9128_v30 = vpop.f32.mrb[79].mxu0  ;;  %vm9550_vm8 = vcmp.eq.s32.totalorder %v25098_v39, 1 }
 0xa7a   : > { %v9208_v17 = vmax.f32 %v24963_v12, %v9200_v34  ;;  %v9199_v35 = vsel %vm9191_vm9, %v9128_v30, -inf  ;;  %v25297_v12 = vpop.permute.xlu0 %10234  ;;  %vm9728_vm9 = vcmp.eq.s32.totalorder %v25158_v22, 1 }
 0xa7b   : > { %v9207_v21 = vmax.f32 %v24967_v50, %v9199_v35  ;;  %v9736_v10 = vsel %vm9728_vm9, %v25035_v62, -inf  ;;  %vm10081_vm9 = vcmp.eq.s32.totalorder %v25262_v6, 1 }
 0xa7c   : > { %v9386_v47 = vmax.f32 %v9208_v17, %v24994_v5  ;;  %v19189_v19 = vpop.f32.mrb[80].mxu0 }
 0xa7d   : > { %v9385_v37 = vmax.f32 %v9207_v21, %v24998_v52  ;;  %v9202_v26 = vsel %vm9194_vm10, %v19189_v19, -inf  ;;  %v9138_v24 = vpop.f32.mrb[81].mxu0  ;;  %vm9549_vm10 = vcmp.eq.s32.totalorder %v25101_v20, 1 }
 0xa7e   : > { %v9210_v42 = vmax.f32 %v24970_v11, %v9202_v26  ;;  %v9201_v48 = vsel %vm9193_vm11, %v9138_v24, -inf  ;;  %v25315_v18 = vpop.permute.xlu0 %10240  ;;  %vm9727_vm11 = vcmp.eq.s32.totalorder %v25161_v41, 1 }
 0xa7f   : > { %v9209_v3 = vmax.f32 %v24974_v46, %v9201_v48  ;;  %v9735_v41 = vsel %vm9727_vm11, %v25037_v53, -inf }
 0xa80   : > { %v9388_v50 = vmax.f32 %v9210_v42, %v25003_v45  ;;  %v19192_v5 = vpop.f32.mrb[82].mxu0 }
 0xa81   : > { %v9387_v52 = vmax.f32 %v9209_v3, %v25006_v28  ;;  %v9204_v30 = vsel %vm9196_vm12, %v19192_v5, -inf  ;;  %v9148_v34 = vpop.f32.mrb[83].mxu0  ;;  %v25310_v28 = vpop.permute.xlu1 %10243  ;;  %vm9552_vm12 = vcmp.eq.s32.totalorder %v25112_v57, 1 }
 0xa82   : > { %v9212_v40 = vmax.f32 %v24979_v25, %v9204_v30  ;;  %v9203_v11 = vsel %vm9195_vm13, %v9148_v34, -inf  ;;  %v9732_v25 = vsel %vm9724_vm15, %v25019_v56, -inf  ;;  %v25335_v19 = vpop.permute.xlu0 %10246  ;;  %vm9730_vm13 = vcmp.eq.s32.totalorder %v25167_v27, 1 }
 0xa83   : > { %v9211_v59 = vmax.f32 %v24982_v60, %v9203_v11  ;;  %vm9729_vm15 = vcmp.eq.s32.totalorder %v25172_v2, 1 }
 0xa84   : > { %v25308_v46 = vmax.f32 %v9212_v40, %v25011_v32  ;;  %v19239_v45 = vpop.f32.mrb[84].mxu0  ;;  %v9731_v32 = vsel %vm9723_vm3, %v25021_v55, -inf  ;;  %vm10080_vm3 = vcmp.eq.s32.totalorder %v25245_v54, 1 }
 0xa85   : > { %v9389_v51 = vmax.f32 %v9211_v59, %v25014_v63  ;;  %v9554_v49 = vsel %vm9546_vm14, %v19239_v45, -inf  ;;  %v9474_v7 = vpop.f32.mrb[85].mxu0  ;;  %vm9551_vm14 = vcmp.eq.s32.totalorder %v25118_v23, 1 }
 0xa86   : > { %v9562_v1 = vmax.f32 %v9384_v4, %v9554_v49  ;;  %v9553_v60 = vsel %vm9545_vm2, %v9474_v7, -inf  ;;  %v9734_v4 = vsel %vm9726_vm5, %v25027_v14, -inf  ;;  %vm9902_vm2 = vcmp.eq.s32.totalorder %v25182_v43, 1  ;;  %v25355_v53 = vpop.permute.xlu0 %10252 }
 0xa87   : > { %v9561_v36 = vmax.f32 %v9383_v33, %v9553_v60  ;;  %v25331_v33 = vpop.permute.xlu1 %10249  ;;  %vm10079_vm5 = vcmp.eq.s32.totalorder %v25247_v58, 1  ;;  %v26468_v58 = vld [vmem:[#allocation70_spill] sm:$0xff] }
 0xa88   : > { %v25321_v17 = vmax.f32 %v9562_v1, %v9732_v25  ;;  %v19242_v63 = vpop.f32.mrb[86].mxu0 }
 0xa89   : > { %v25324_v35 = vmax.f32 %v9561_v36, %v9731_v32  ;;  %v9556_v56 = vsel %vm9548_vm4, %v19242_v63, -inf  ;;  %v9484_v9 = vpop.f32.mrb[87].mxu0  ;;  %vm9901_vm4 = vcmp.eq.s32.totalorder %v25185_v61, 1  ;;  %v26469_v32 = vld [vmem:[#allocation91_spill] sm:$0xff]  ;;  %v26470_v63 = vld [vmem:[#allocation68_spill] sm:$0xff] }
 0xa8a   : > { %v9564_v55 = vmax.f32 %v9386_v47, %v9556_v56  ;;  %v9555_v31 = vsel %vm9547_vm6, %v9484_v9, -inf  ;;  %vm9904_vm6 = vcmp.eq.s32.totalorder %v25197_v13, 1  ;;  %v10413_v1 = vpop.permute.xlu0 %10412  ;;  %v10090_v56 = vsel %vm10082_vm7, %v26470_v63, -inf  ;;  %v26471_v9 = vld [vmem:[#allocation108_spill] sm:$0xff] }
 0xa8b   : > { %v9563_v21 = vmax.f32 %v9385_v37, %v9555_v31  ;;  %v25349_v3 = vpop.permute.xlu1 %10255  ;;  %vm10084_vm11 = vcmp.eq.s32.totalorder %v26471_v9, 1  ;;  %v26474_v31 = vld [vmem:[#allocation107_spill] sm:$0xff]  ;;  %vm10257_vm7 = vcmp.eq.s32.totalorder %v25297_v12, 1 }
 0xa8c   : > { %v9742_v29 = vmax.f32 %v9564_v55, %v9734_v4  ;;  %v19245_v26 = vpop.f32.mrb[88].mxu0  ;;  %v26472_v4 = vld [vmem:[#allocation74_spill] sm:$0xff] }
 0xa8d   : > { %v25338_v14 = vmax.f32 %v9563_v21, %v9733_v16  ;;  %v9558_v22 = vsel %vm9550_vm8, %v19245_v26, -inf  ;;  %v9494_v47 = vpop.f32.mrb[89].mxu0  ;;  %vm9903_vm8 = vcmp.eq.s32.totalorder %v25203_v8, 1  ;;  %v26473_v55 = vld [vmem:[#allocation94_spill] sm:$0xff] }
 0xa8e   : > { %v9566_v20 = vmax.f32 %v9388_v50, %v9558_v22  ;;  %v9557_v24 = vsel %vm9549_vm10, %v9494_v47, -inf  ;;  %v26465_v50 = vld [vmem:[#allocation60_spill] sm:$0xff]  ;;  %vm9906_vm10 = vcmp.eq.s32.totalorder %v26469_v32, 1  ;;  %v26475_v21 = vld [vmem:[#allocation98_spill] sm:$0xff] }
 0xa8f   : > { %v9565_v37 = vmax.f32 %v9387_v52, %v9557_v24  ;;  %v9738_v5 = vsel %vm9730_vm13, %v26465_v50, -inf  ;;  %v26466_v52 = vld [vmem:[#allocation66_spill] sm:$0xff]  ;;  %v10416_v7 = vpop.permute.xlu1 %10415  ;;  %vm10083_vm13 = vcmp.eq.s32.totalorder %v26474_v31, 1  ;;  %v25438_v32 = vld [vmem:[%s26269_s11 + $0x3] ss:$0 sm:$0xff] }
 0xa90   : > { %v25347_v42 = vmax.f32 %v9566_v20, %v9736_v10  ;;  %v19248_v48 = vpop.f32.mrb[90].mxu0  ;;  %v9737_v30 = vsel %vm9729_vm15, %v26466_v52, -inf  ;;  %vm10086_vm15 = vcmp.eq.s32.totalorder %v25280_v44, 1  ;;  %v26476_v20 = vld [vmem:[#allocation72_spill] sm:$0xff] }
 0xa91   : > { %v9743_v39 = vmax.f32 %v9565_v37, %v9735_v41  ;;  %v9560_v62 = vsel %vm9552_vm12, %v19248_v48, -inf  ;;  %v9504_v27 = vpop.f32.mrb[91].mxu0  ;;  %vm9905_vm12 = vcmp.eq.s32.totalorder %v26473_v55, 1  ;;  %v10092_v24 = vsel %vm10084_vm11, %v26476_v20, -inf  ;;  %v10419_v41 = vpop.permute.xlu0 %10418  ;;  %v26477_v48 = vld [vmem:[#allocation76_spill] sm:$0xff] }
 0xa92   : > { %v9568_v2 = vmax.f32 %v25308_v46, %v9560_v62  ;;  %v9559_v23 = vsel %vm9551_vm14, %v9504_v27, -inf  ;;  %v26467_v46 = vld [vmem:[#allocation64_spill] sm:$0xff]  ;;  %vm9908_vm14 = vcmp.eq.s32.totalorder %v26475_v21, 1  ;;  %v10091_v62 = vsel %vm10083_vm13, %v26477_v48, -inf  ;;  %v26478_v27 = vld [vmem:[#allocation97_spill] sm:$0xff] }
 0xa93   : > { %v9567_v34 = vmax.f32 %v9389_v51, %v9559_v23  ;;  %v10088_v45 = vsel %vm10080_vm3, %v26467_v46, -inf  ;;  %v10087_v51 = vsel %vm10079_vm5, %v26468_v58, -inf  ;;  %v10422_v22 = vpop.permute.xlu1 %10421  ;;  %vm9907_vm3 = vcmp.eq.s32.totalorder %v26478_v27, 1 }
 0xa94   : > { %v25362_v40 = vmax.f32 %v9568_v2, %v9738_v5  ;;  %v19295_v57 = vpop.f32.mrb[92].mxu0  ;;  %vm10436_vm5 = vcmp.eq.s32.totalorder %v10416_v7, 1  ;;  %vm10437_vm11 = vcmp.eq.s32.totalorder %v10419_v41, 1  ;;  %vm10261_vm13 = vcmp.eq.s32.totalorder %v25335_v19, 1 }
 0xa95   : > { %v25365_v11 = vmax.f32 %v9567_v34, %v9737_v30  ;;  %v9910_v54 = vsel %vm9902_vm2, %v19295_v57, -inf  ;;  %v9830_v59 = vpop.f32.mrb[93].mxu0  ;;  %vm10085_vm2 = vcmp.eq.s32.totalorder %v25283_v38, 1  ;;  %v26479_v38 = vld [vmem:[#allocation75_spill] sm:$0xff]  ;;  %v26480_v34 = vld [vmem:[#allocation78_spill] sm:$0xff] }
 0xa96   : > { %v9918_v61 = vmax.f32 %v25321_v17, %v9910_v54  ;;  %v9909_v49 = vsel %vm9901_vm4, %v9830_v59, -inf  ;;  %vm10258_vm4 = vcmp.eq.s32.totalorder %v25293_v15, 1  ;;  %v10093_v57 = vsel %vm10085_vm2, %v26480_v34, -inf  ;;  %v25433_v15 = vld [vmem:[%s26483_s9] ss:$0 sm:$0xff] }
 0xa97   : > { %v9917_v25 = vmax.f32 %v25324_v35, %v9909_v49  ;;  %v10089_v35 = vsel %vm10081_vm9, %v26472_v4, -inf  ;;  %v10428_v59 = vpop.permute.xlu1 %10427  ;;  %vm10259_vm9 = vcmp.eq.s32.totalorder %v25315_v18, 1  ;;  %vm10263_vm2 = vcmp.eq.s32.totalorder %v25355_v53, 1  ;;  %v26486_v4 = vld [vmem:[#allocation82_spill] sm:$0xff]  ;;  %v26490_v18 = vld [vmem:[#allocation99_spill] sm:$0xff] }
 0xa98   : > { %v25376_v43 = vmax.f32 %v9918_v61, %v10088_v45  ;;  %v19298_v60 = vpop.f32.mrb[94].mxu0  ;;  %v10425_v45 = vpop.permute.xlu0 %10424  ;;  %v8858_v48 = vadd.f32 %v25438_v32, %v26490_v18 }
 0xa99   : > { %v25379_v36 = vmax.f32 %v9917_v25, %v10087_v51  ;;  %v9912_v0 = vsel %vm9904_vm6, %v19298_v60, -inf  ;;  %v9840_v17 = vpop.f32.mrb[95].mxu0  ;;  %vm10435_vm6 = vcmp.eq.s32.totalorder %v10413_v1, 1  ;;  %v26481_v51 = vld [vmem:[#allocation77_spill] sm:$0xff]  ;;  %v26482_v25 = vld [vmem:[#allocation80_spill] sm:$0xff] }
 0xa9a   : > { %v9920_v8 = vmax.f32 %v9742_v29, %v9912_v0  ;;  %v9911_v6 = vsel %vm9903_vm8, %v9840_v17, -inf  ;;  %vm10260_vm8 = vcmp.eq.s32.totalorder %v25310_v28, 1  ;;  %v10444_v7 = vsel %vm10436_vm5, %v26481_v51, -inf }
 0xa9b   : > { %v9919_v16 = vmax.f32 %v25338_v14, %v9911_v6  ;;  %v10443_v12 = vsel %vm10435_vm6, %v26482_v25, -inf  ;;  %v10434_v17 = vpop.permute.xlu1 %10433  ;;  %vm15212_vm6 = vcmask 261120  }
 0xa9c   : > { %v25390_v26 = vmax.f32 %v9920_v8, %v10090_v56  ;;  %v19301_v13 = vpop.f32.mrb[96].mxu0  ;;  %v26485_v8 = vld [vmem:[#allocation79_spill] sm:$0xff]  ;;  %v10431_v55 = vpop.permute.xlu0 %10430 }
 0xa9d   : > { %v25393_v47 = vmax.f32 %v9919_v16, %v10089_v35  ;;  %v9914_v29 = vsel %vm9906_vm10, %v19301_v13, -inf  ;;  %v9850_v10 = vpop.f32.mrb[97].mxu0  ;;  %vm10438_vm10 = vcmp.eq.s32.totalorder %v10422_v22, 1  ;;  %v10445_v35 = vsel %vm10437_vm11, %v26486_v4, -inf  ;;  %v26487_v13 = vld [vmem:[#allocation81_spill] sm:$0xff]  ;;  %v26488_v22 = vld [vmem:[#allocation84_spill] sm:$0xff] }
 0xa9e   : > { %v9922_v14 = vmax.f32 %v25347_v42, %v9914_v29  ;;  %v9913_v37 = vsel %vm9905_vm12, %v9850_v10, -inf  ;;  %v10094_v42 = vsel %vm10086_vm15, %v26479_v38, -inf  ;;  %vm10262_vm12 = vcmp.eq.s32.totalorder %v25331_v33, 1  ;;  %v26492_v33 = vld [vmem:[#allocation102_spill] sm:$0xff] }
 0xa9f   : > { %v9921_v50 = vmax.f32 %v9743_v39, %v9913_v37  ;;  %vm10264_vm15 = vcmp.eq.s32.totalorder %v25349_v3, 1  ;;  %v10446_v6 = vsel %vm10438_vm10, %v26485_v8, -inf  ;;  %vm10441_vm5 = vcmp.eq.s32.totalorder %v10431_v55, 1 }
 0xaa0   : > { %v25403_v5 = vmax.f32 %v9922_v14, %v10092_v24  ;;  %v19304_v2 = vpop.f32.mrb[98].mxu0  ;;  %v26489_v24 = vld [vmem:[#allocation100_spill] sm:$0xff] }
 0xaa1   : > { %v25405_v23 = vmax.f32 %v9921_v50, %v10091_v62  ;;  %v9916_v52 = vsel %vm9908_vm14, %v19304_v2, -inf  ;;  %v9860_v30 = vpop.f32.mrb[99].mxu0  ;;  %vm10440_vm14 = vcmp.eq.s32.totalorder %v10428_v59, 1  ;;  %v8859_v41 = vadd.f32 %v26489_v24, %v25438_v32 }
 0xaa2   : > { %v9924_v54 = vmax.f32 %v25362_v40, %v9916_v52  ;;  %v9915_v39 = vsel %vm9907_vm3, %v9860_v30, -inf  ;;  %vm10439_vm3 = vcmp.eq.s32.totalorder %v10425_v45, 1  ;;  %v10448_v29 = vsel %vm10440_vm14, %v26487_v13, -inf }
 0xaa3   : > { %v9923_v46 = vmax.f32 %v25365_v11, %v9915_v39  ;;  %v10447_v20 = vsel %vm10439_vm3, %v26488_v22, -inf  ;;  %v8861_v59 = vadd.f32 %v26492_v33, %v25438_v32  ;;  %v26497_v22 = vld [vmem:[#allocation106_spill] sm:$0xff] }
 0xaa4   : > { %v25418_v61 = vmax.f32 %v9924_v54, %v10094_v42  ;;  %v19351_v44 = vpop.f32.mrb[100].mxu0  ;;  %v26491_v54 = vld [vmem:[#allocation83_spill] sm:$0xff] }
 0xaa5   : > { %v25420_v49 = vmax.f32 %v9923_v46, %v10093_v57  ;;  %v10266_v40 = vsel %vm10258_vm4, %v19351_v44, -inf  ;;  %v10186_v58 = vpop.f32.mrb[101].mxu0  ;;  %vm10442_vm4 = vcmp.eq.s32.totalorder %v10434_v17, 1 }
 0xaa6   : > { %v10274_v11 = vmax.f32 %v25376_v43, %v10266_v40  ;;  %v10265_v1 = vsel %vm10257_vm7, %v10186_v58, -inf  ;;  %v10450_v39 = vsel %vm10442_vm4, %v26491_v54, -inf  ;;  %v26494_v40 = vld [vmem:[#allocation101_spill] sm:$0xff]  ;;  %vm15221_vm7 = vcmask 392192  }
 0xaa7   : > { %v10273_v60 = vmax.f32 %v25379_v36, %v10265_v1  ;;  %v25445_v36 = vld [vmem:[%s26484_s22] ss:$0 sm:$0xff] }
 0xaa8   : > { %v10452_v43 = vmax.f32 %v10274_v11, %v10444_v7  ;;  %v19354_v0 = vpop.f32.mrb[102].mxu0 }
 0xaa9   : > { %v10451_v63 = vmax.f32 %v10273_v60, %v10443_v12  ;;  %v10268_v56 = vsel %vm10260_vm8, %v19354_v0, -inf  ;;  %v10196_v9 = vpop.f32.mrb[103].mxu0 }
 0xaaa   : > { %v10467_v31 = vmul.f32 %v25433_v15, %v10452_v43  ;;  %v10276_v16 = vmax.f32 %v25390_v26, %v10268_v56  ;;  %v10267_v21 = vsel %vm10259_vm9, %v10196_v9, -inf  ;;  %v16030_v43 = vld [vmem:[%s26483_s9 + $0x1] ss:$0 sm:$0xff] }
 0xaab   : > { %v10466_v28 = vmul.f32 %v25433_v15, %v10451_v63  ;;  %v10275_v10 = vmax.f32 %v25393_v47, %v10267_v21  ;;  %v26495_v63 = vld [vmem:[#allocation104_spill] sm:$0xff] }
 0xaac   : > { %v10482_v14 = vadd.f32 %v25445_v36, %v10467_v31  ;;  %v10454_v37 = vmax.f32 %v10276_v16, %v10446_v6  ;;  %v19357_v26 = vpop.f32.mrb[104].mxu0  ;;  %v8863_v56 = vadd.f32 %v26495_v63, %v25438_v32  ;;  %v26496_v6 = vld [vmem:[#allocation103_spill] sm:$0xff] }
 0xaad   : > { %v10481_v62 = vadd.f32 %v25445_v36, %v10466_v28  ;;  %v10453_v27 = vmax.f32 %v10275_v10, %v10445_v35  ;;  %v10270_v47 = vsel %vm10262_vm12, %v19357_v26, -inf  ;;  %v10206_v50 = vpop.f32.mrb[105].mxu0  ;;  %v8862_v4 = vadd.f32 %v25438_v32, %v26496_v6 }
 0xaae   : > { %v10469_v2 = vmul.f32 %v25433_v15, %v10454_v37  ;;  %v10278_v52 = vmax.f32 %v25403_v5, %v10270_v47  ;;  %v10269_v30 = vsel %vm10261_vm13, %v10206_v50, -inf  ;;  %v10490_v38 = vadd.f32 %v10482_v14, %v8859_v41  ;;  %v26493_v5 = vld [vmem:[#allocation86_spill] sm:$0xff]  ;;  %v26498_v37 = vld [vmem:[#allocation105_spill] sm:$0xff]  ;;  %v26500_v47 = vld [vmem:[#allocation23_spill] sm:$0xff] }
 0xaaf   : > { %v10468_v42 = vmul.f32 %v25433_v15, %v10453_v27  ;;  %v10277_v34 = vmax.f32 %v25405_v23, %v10269_v30  ;;  %v10489_v57 = vadd.f32 %v10481_v62, %v8858_v48  ;;  %v10449_v44 = vsel %vm10441_vm5, %v26493_v5, -inf  ;;  %v11263_v5 = vld [vmem:[#allocation8 + $0x268] sm:$0xff] }
 0xab0   : > { %v10484_v46 = vadd.f32 %v25445_v36, %v10469_v2  ;;  %v10456_v45 = vmax.f32 %v10278_v52, %v10448_v29  ;;  %15118 = vrot.lane.b32.xlu1 %v10490_v38, %s22319_s6  ;;  %v19360_v19 = vpop.f32.mrb[106].mxu0  ;;  %v8860_v23 = vadd.f32 %v25438_v32, %v26494_v40  ;;  %v8864_v26 = vadd.f32 %v25438_v32, %v26498_v37  ;;  %v26513_v37 = vld [vmem:[#allocation92_spill] sm:$0xff] }
 0xab1   : > { %v10483_v58 = vadd.f32 %v25445_v36, %v10468_v42  ;;  %v10455_v51 = vmax.f32 %v10277_v34, %v10447_v20  ;;  %v10272_v7 = vsel %vm10264_vm15, %v19360_v19, -inf  ;;  %15116 = vrot.lane.b32.xlu0 %v10489_v57, %s22319_s6  ;;  %v10216_v25 = vpop.f32.mrb[107].mxu0  ;;  %v8865_v20 = vadd.f32 %v26497_v22, %v25438_v32  ;;  %v11262_v19 = vld [vmem:[#allocation8 + $0x260] sm:$0xff] }
 0xab2   : > { %v10471_v12 = vmul.f32 %v25433_v15, %v10456_v45  ;;  %v10280_v11 = vmax.f32 %v25418_v61, %v10272_v7  ;;  %v10271_v1 = vsel %vm10263_vm2, %v10216_v25, -inf  ;;  %v10492_v60 = vadd.f32 %v10484_v46, %v8861_v59  ;;  %v16032_v61 = vld [vmem:[%s26484_s22 + $0x1] ss:$0 sm:$0xff] }
 0xab3   : > { %v10470_v0 = vmul.f32 %v25433_v15, %v10455_v51  ;;  %v10279_v3 = vmax.f32 %v25420_v49, %v10271_v1  ;;  %v10491_v17 = vadd.f32 %v10483_v58, %v8860_v23  ;;  %v26501_v46 = vld [vmem:[#allocation24_spill] sm:$0xff]  ;;  %v26502_v23 = vld [vmem:[#allocation25_spill] sm:$0xff]  ;;  %v21009_v25 = vpack.c.bf16 %v11263_v5, %v11262_v19 }
 0xab4   : > { %v10486_v9 = vadd.f32 %v25445_v36, %v10471_v12  ;;  %v10458_v8 = vmax.f32 %v10280_v11, %v10450_v39  ;;  %15122 = vrot.lane.b32.xlu1 %v10492_v60, %s22319_s6  ;;  %v19407_v53 = vpop.f32.mrb[108].mxu0  ;;  %v26503_v11 = vld [vmem:[#allocation26_spill] sm:$0xff] }
 0xab5   : > { %v10485_v35 = vadd.f32 %v25445_v36, %v10470_v0  ;;  %v10457_v49 = vmax.f32 %v10279_v3, %v10449_v44  ;;  %v10643_v55 = vmul.f32 %v19407_v53, %v16030_v43  ;;  %15120 = vrot.lane.b32.xlu0 %v10491_v17, %s22319_s6  ;;  %v10595_v31 = vpop.f32.mrb[109].mxu0  ;;  %v26504_v0 = vld [vmem:[#allocation27_spill] sm:$0xff]  ;;  %v26505_v17 = vld [vmem:[#allocation85_spill] sm:$0xff] }
 0xab6   : > { %v10473_v16 = vmul.f32 %v25433_v15, %v10458_v8  ;;  %v10642_v21 = vmul.f32 %v16030_v43, %v10595_v31  ;;  %v10494_v13 = vadd.f32 %v10486_v9, %v8863_v56  ;;  %v26506_v56 = vld [vmem:[#allocation28_spill] sm:$0xff]  ;;  %v26507_v8 = vld [vmem:[#allocation29_spill] sm:$0xff]  ;;  %v26508_v31 = vld [vmem:[#allocation87_spill] sm:$0xff] }
 0xab7   : > { %v10472_v29 = vmul.f32 %v25433_v15, %v10457_v49  ;;  %v10659_v28 = vadd.f32 %v16032_v61, %v10643_v55  ;;  %v10493_v10 = vadd.f32 %v10485_v35, %v8862_v4  ;;  %v26499_v15 = vld [vmem:[#allocation22_spill] sm:$0xff]  ;;  %v11507_v49 = vld [vmem:[#allocation8 + $0x270] sm:$0xff]  ;;  %v11508_v55 = vld [vmem:[#allocation8 + $0x278] sm:$0xff] }
 0xab8   : > { %v10488_v24 = vadd.f32 %v25445_v36, %v10473_v16  ;;  %v10658_v41 = vadd.f32 %v16032_v61, %v10642_v21  ;;  %15126 = vrot.lane.b32.xlu1 %v10494_v13, %s22319_s6  ;;  %v19410_v14 = vpop.f32.mrb[110].mxu0  ;;  %v21029_v13 = vpack.c.bf16 %v11508_v55, %v11507_v49  ;;  %v12733_v49 = vld [vmem:[#allocation8 + $0x2c8] sm:$0xff] }
 0xab9   : > { %v10487_v18 = vadd.f32 %v25445_v36, %v10472_v29  ;;  %15124 = vrot.lane.b32.xlu0 %v10493_v10, %s22319_s6  ;;  %v10605_v48 = vpop.f32.mrb[111].mxu0  ;;  %v10667_v62 = vadd.f32 %v10659_v28, %v26499_v15  ;;  %v10645_v27 = vmul.f32 %v19410_v14, %v16030_v43  ;;  %v26509_v29 = vld [vmem:[#allocation88_spill] sm:$0xff]  ;;  %v26510_v28 = vld [vmem:[#allocation89_spill] sm:$0xff]  ;;  %v11752_v15 = vld [vmem:[#allocation8 + $0x280] sm:$0xff] }
 0xaba   : > { %v10666_v50 = vadd.f32 %v10658_v41, %v26500_v47  ;;  %v10496_v2 = vadd.f32 %v10488_v24, %v8865_v20  ;;  %v10644_v52 = vmul.f32 %v16030_v43, %v10605_v48  ;;  %v26511_v20 = vld [vmem:[#allocation90_spill] sm:$0xff]  ;;  %v26512_v24 = vld [vmem:[#allocation93_spill] sm:$0xff] }
 0xabb   : > { %v10495_v30 = vadd.f32 %v10487_v18, %v8864_v26  ;;  %v10661_v42 = vadd.f32 %v16032_v61, %v10645_v27  ;;  %v26514_v26 = vld [vmem:[#allocation95_spill] sm:$0xff]  ;;  %v26515_v27 = vld [vmem:[#allocation96_spill] sm:$0xff] }
 0xabc   : > { %15150 = vrot.lane.b32.xlu1 %v10667_v62, %s22320_s0  ;;  %v19413_v38 = vpop.f32.mrb[112].mxu0  ;;  %v10660_v34 = vadd.f32 %v16032_v61, %v10644_v52  ;;  %v11753_v62 = vld [vmem:[#allocation8 + $0x288] sm:$0xff] }
 0xabd   : > { %15148 = vrot.lane.b32.xlu0 %v10666_v50, %s22320_s0  ;;  %v10615_v32 = vpop.f32.mrb[113].mxu0  ;;  %v10647_v36 = vmul.f32 %v19413_v38, %v16030_v43  ;;  %v10669_v45 = vadd.f32 %v10661_v42, %v26501_v46 }
 0xabe   : > { %v10646_v57 = vmul.f32 %v16030_v43, %v10615_v32  ;;  %v10668_v58 = vadd.f32 %v10660_v34, %v26502_v23  ;;  %v11997_v34 = vld [vmem:[#allocation8 + $0x290] sm:$0xff]  ;;  %v12243_v23 = vld [vmem:[#allocation8 + $0x2a8] sm:$0xff] }
 0xabf   : > { %v10663_v33 = vadd.f32 %v16032_v61, %v10647_v36 }
 0xac0   : > { %15130 = vrot.lane.b32.xlu1 %v10496_v2, %s22319_s6  ;;  %v19416_v54 = vpop.f32.mrb[114].mxu0  ;;  %v10662_v44 = vadd.f32 %v16032_v61, %v10646_v57  ;;  %v21049_v2 = vpack.c.bf16 %v11753_v62, %v11752_v15  ;;  %v11998_v57 = vld [vmem:[#allocation8 + $0x298] sm:$0xff]  ;;  %v16178_v15 = vld [vmem:[%s26269_s11 + $0x4] ss:$0 sm:$0xff] }
 0xac1   : > { %15128 = vrot.lane.b32.xlu0 %v10495_v30, %s22319_s6  ;;  %v10625_v39 = vpop.f32.mrb[115].mxu0  ;;  %v10649_v59 = vmul.f32 %v19416_v54, %v16030_v43  ;;  %v10671_v1 = vadd.f32 %v10663_v33, %v26503_v11  ;;  %v21069_v33 = vpack.c.bf16 %v11998_v57, %v11997_v34  ;;  %s25911_s6 = scalar_lea.hbm %s26524_s20, %s16332_s21 }
 0xac2   : > { %v10648_v40 = vmul.f32 %v16030_v43, %v10625_v39  ;;  %v10670_v3 = vadd.f32 %v10662_v44, %v26504_v0 }
 0xac3   : > { %v10665_v12 = vadd.f32 %v16032_v61, %v10649_v59 }
 0xac4   : > { %15154 = vrot.lane.b32.xlu1 %v10669_v45, %s22320_s0  ;;  %v19463_v51 = vpop.f32.mrb[116].mxu0  ;;  %v10664_v60 = vadd.f32 %v16032_v61, %v10648_v40  ;;  %v12242_v40 = vld [vmem:[#allocation8 + $0x2a0] sm:$0xff] }
 0xac5   : > { %15152 = vrot.lane.b32.xlu0 %v10668_v58, %s22320_s0  ;;  %v10856_v7 = vpop.f32.mrb[117].mxu0  ;;  %v10673_v9 = vadd.f32 %v10665_v12, %v26506_v56 }
 0xac6   : > { %19477 = vmatprep.mubr.msk.f32.mxu1 %vm596_vm0, %v10856_v7  ;;  %v10672_v53 = vadd.f32 %v10664_v60, %v26507_v8  ;;  %v21089_v7 = vpack.c.bf16 %v12243_v23, %v12242_v40 }
 0xac7   : > { %19478 = vmatmul.mubr.msk.f32.vlgmr.msra.gmra.mrb[236].mxu1 %vm596_vm0, %v19463_v51 }
 0xac8   : > { %15158 = vrot.lane.b32.xlu1 %v10671_v1, %s22320_s0  ;;  %v19466_v43 = vpop.f32.mrb[118].mxu0  ;;  %20992 = vmatpush3.bf16.msra.mxu1 %v26505_v17 }
 0xac9   : > { %15156 = vrot.lane.b32.xlu0 %v10670_v3, %s22320_s0  ;;  %v10866_v63 = vpop.f32.mrb[119].mxu0  ;;  %21010 = vmatprep.subr.bf16.mxu1 %v21009_v25  ;;  %v12487_v3 = vld [vmem:[#allocation8 + $0x2b0] sm:$0xff] }
 0xaca   : > { %19480 = vmatprep.mubr.msk.f32.mxu1 %vm596_vm0, %v10866_v63 }
 0xacb   : > { %19481 = vmatmul.mubr.msk.f32.gmra.mrb[238].mxu1 %vm596_vm0, %v19466_v43  ;;  %v12488_v43 = vld [vmem:[#allocation8 + $0x2b8] sm:$0xff] }
 0xacc   : > { %15162 = vrot.lane.b32.xlu1 %v10673_v9, %s22320_s0  ;;  %v19469_v61 = vpop.f32.mrb[120].mxu0  ;;  %v21109_v56 = vpack.c.bf16 %v12488_v43, %v12487_v3  ;;  %v21959_v3 = vld [vmem:[#allocation10 + $0x30] sm:$0xff]  ;;  %v21960_v43 = vld [vmem:[#allocation10 + $0x38] sm:$0xff] }
 0xacd   : > { %v10876_v6 = vpop.f32.mrb[121].mxu0  ;;  %15160 = vrot.lane.b32.xlu0 %v10672_v53, %s22320_s0  ;;  %s22231_s0 = scalar_lea.vmem %s22230_s18, 2048 }
 0xace   : > { %19483 = vmatprep.mubr.msk.f32.mxu1 %vm596_vm0, %v10876_v6  ;;  %p22233_p9 = scmp.lt.s32.totalorder %s22231_s0, %s22225_s19 }
 0xacf   : > { %19484 = vmatmul.mubr.msk.f32.gmra.mrb[240].mxu1 %vm596_vm0, %v19469_v61 }
 0xad0   : > { %v19472_v4 = vpop.f32.mrb[122].mxu0  ;;  %p22234_p4 = por %p22233_p9, %p22232_p5 }
 0xad1   : > { %v10886_v35 = vpop.f32.mrb[123].mxu0 }
 0xad2   : > { %19486 = vmatprep.mubr.msk.f32.mxu1 %vm596_vm0, %v10886_v35  ;;  %v12732_v35 = vld [vmem:[#allocation8 + $0x2c0] sm:$0xff]  ;;  %p22235_p8 = pnand %p22234_p4, %p22228_p10 }
 0xad3   : > { %19487 = vmatmul.mubr.msk.f32.gmra.mrb[242].mxu1 %vm596_vm0, %v19472_v4 }
 0xad4   : > { %19493 = vmatprep.mubr.msk.f32.mxu1 %vm596_vm0, %v26508_v31  ;;  %v19523_v16 = vpop.f32.mrb[124].mxu0 }
 0xad5   : > { %v11222_v21 = vpop.f32.mrb[125].mxu0 }
 0xad7   : > { %19494 = vmatmul.mubr.msk.f32.vlgmr.msra.gmra.mrb[236].mxu1 %vm596_vm0, %v26509_v29 }
 0xad8   : > { %21012 = vmatpush3.bf16.msra.mxu1 %v21009_v25  ;;  %19496 = vmatprep.mubr.msk.f32.mxu1 %vm596_vm0, %v26510_v28  ;;  %v19526_v10 = vpop.f32.mrb[126].mxu0 }
 0xad9   : > { %21030 = vmatprep.subr.bf16.mxu1 %v21029_v13  ;;  %v11232_v22 = vpop.f32.mrb[127].mxu0 }
 0xadb   : > { %19497 = vmatmul.mubr.msk.f32.gmra.mrb[238].mxu1 %vm596_vm0, %v26511_v20 }
 0xadc   : > { %19499 = vmatprep.mubr.msk.f32.mxu1 %vm596_vm0, %v26512_v24  ;;  %v19529_v41 = vpop.f32.mrb[128].mxu0 }
 0xadd   : > { %v11242_v14 = vpop.f32.mrb[129].mxu0 }
 0xadf   : > { %19500 = vmatmul.mubr.msk.f32.gmra.mrb[240].mxu1 %vm596_vm0, %v26513_v37 }
 0xae0   : > { %19502 = vmatprep.mubr.msk.f32.mxu1 %vm596_vm0, %v26514_v26  ;;  %v19532_v18 = vpop.f32.mrb[130].mxu0 }
 0xae1   : > { %v11252_v48 = vpop.f32.mrb[131].mxu0 }
 0xae3   : > { %19503 = vmatmul.mubr.msk.f32.gmra.mrb[242].mxu1 %vm596_vm0, %v26515_v27 }
 0xae4   : > { %19537 = vmatprep.mubr.msk.f32.mxu1 %vm596_vm0, %v11222_v21  ;;  %v19567_v47 = vpop.f32.mrb[132].mxu0 }
 0xae5   : > { %v11467_v50 = vpop.f32.mrb[133].mxu0 }
 0xae7   : > { %19538 = vmatmul.mubr.msk.f32.vlgmr.msra.gmra.mrb[236].mxu1 %vm596_vm0, %v19523_v16  ;;  %v21129_v16 = vpack.c.bf16 %v12733_v49, %v12732_v35  ;;  %v21970_v35 = vld [vmem:[#allocation10 + $0x88] sm:$0xff]  ;;  %v21971_v49 = vld [vmem:[#allocation10 + $0x90] sm:$0xff] }
 0xae8   : > { %21032 = vmatpush3.bf16.msra.mxu1 %v21029_v13  ;;  %19540 = vmatprep.mubr.msk.f32.mxu1 %vm596_vm0, %v11232_v22  ;;  %v19570_v52 = vpop.f32.mrb[134].mxu0 }
 0xae9   : > { %21050 = vmatprep.subr.bf16.mxu1 %v21049_v2  ;;  %v11477_v30 = vpop.f32.mrb[135].mxu0 }
 0xaeb   : > { %19541 = vmatmul.mubr.msk.f32.gmra.mrb[238].mxu1 %vm596_vm0, %v19526_v10 }
 0xaec   : > { %19543 = vmatprep.mubr.msk.f32.mxu1 %vm596_vm0, %v11242_v14  ;;  %v19573_v38 = vpop.f32.mrb[136].mxu0 }
 0xaed   : > { %v11487_v32 = vpop.f32.mrb[137].mxu0 }
 0xaef   : > { %19544 = vmatmul.mubr.msk.f32.gmra.mrb[240].mxu1 %vm596_vm0, %v19529_v41 }
 0xaf0   : > { %19546 = vmatprep.mubr.msk.f32.mxu1 %vm596_vm0, %v11252_v48  ;;  %v19576_v42 = vpop.f32.mrb[138].mxu0 }
 0xaf1   : > { %v11497_v36 = vpop.f32.mrb[139].mxu0 }
 0xaf3   : > { %19547 = vmatmul.mubr.msk.f32.gmra.mrb[242].mxu1 %vm596_vm0, %v19532_v18 }
 0xaf4   : > { %19581 = vmatprep.mubr.msk.f32.mxu1 %vm596_vm0, %v11467_v50  ;;  %v19611_v54 = vpop.f32.mrb[140].mxu0 }
 0xaf5   : > { %v11712_v39 = vpop.f32.mrb[141].mxu0 }
 0xaf7   : > { %19582 = vmatmul.mubr.msk.f32.vlgmr.msra.gmra.mrb[236].mxu1 %vm596_vm0, %v19567_v47 }
 0xaf8   : > { %21052 = vmatpush3.bf16.msra.mxu1 %v21049_v2  ;;  %19584 = vmatprep.mubr.msk.f32.mxu1 %vm596_vm0, %v11477_v30  ;;  %v19614_v59 = vpop.f32.mrb[142].mxu0 }
 0xaf9   : > { %21070 = vmatprep.subr.bf16.mxu1 %v21069_v33  ;;  %v11722_v46 = vpop.f32.mrb[143].mxu0 }
 0xafb   : > { %19585 = vmatmul.mubr.msk.f32.gmra.mrb[238].mxu1 %vm596_vm0, %v19570_v52 }
 0xafc   : > { %19587 = vmatprep.mubr.msk.f32.mxu1 %vm596_vm0, %v11487_v32  ;;  %v19617_v45 = vpop.f32.mrb[144].mxu0 }
 0xafd   : > { %v11732_v19 = vpop.f32.mrb[145].mxu0 }
 0xaff   : > { %19588 = vmatmul.mubr.msk.f32.gmra.mrb[240].mxu1 %vm596_vm0, %v19573_v38 }
 0xb00   : > { %19590 = vmatprep.mubr.msk.f32.mxu1 %vm596_vm0, %v11497_v36  ;;  %v19620_v5 = vpop.f32.mrb[146].mxu0 }
 0xb01   : > { %v11742_v44 = vpop.f32.mrb[147].mxu0 }
 0xb03   : > { %19591 = vmatmul.mubr.msk.f32.gmra.mrb[242].mxu1 %vm596_vm0, %v19576_v42 }
 0xb04   : > { %19625 = vmatprep.mubr.msk.f32.mxu1 %vm596_vm0, %v11712_v39  ;;  %v19655_v58 = vpop.f32.mrb[148].mxu0 }
 0xb05   : > { %v11957_v51 = vpop.f32.mrb[149].mxu0 }
 0xb07   : > { %19626 = vmatmul.mubr.msk.f32.vlgmr.msra.gmra.mrb[236].mxu1 %vm596_vm0, %v19611_v54 }
 0xb08   : > { %21072 = vmatpush3.bf16.msra.mxu1 %v21069_v33  ;;  %19628 = vmatprep.mubr.msk.f32.mxu1 %vm596_vm0, %v11722_v46  ;;  %v19658_v25 = vpop.f32.mrb[150].mxu0 }
 0xb09   : > { %21090 = vmatprep.subr.bf16.mxu1 %v21089_v7  ;;  %v11967_v12 = vpop.f32.mrb[151].mxu0 }
 0xb0b   : > { %19629 = vmatmul.mubr.msk.f32.gmra.mrb[238].mxu1 %vm596_vm0, %v19614_v59 }
 0xb0c   : > { %19631 = vmatprep.mubr.msk.f32.mxu1 %vm596_vm0, %v11732_v19  ;;  %v19661_v11 = vpop.f32.mrb[152].mxu0 }
 0xb0d   : > { %v11977_v1 = vpop.f32.mrb[153].mxu0 }
 0xb0f   : > { %19632 = vmatmul.mubr.msk.f32.gmra.mrb[240].mxu1 %vm596_vm0, %v19617_v45 }
 0xb10   : > { %19634 = vmatprep.mubr.msk.f32.mxu1 %vm596_vm0, %v11742_v44  ;;  %v19664_v60 = vpop.f32.mrb[154].mxu0 }
 0xb11   : > { %v11987_v0 = vpop.f32.mrb[155].mxu0 }
 0xb13   : > { %19635 = vmatmul.mubr.msk.f32.gmra.mrb[242].mxu1 %vm596_vm0, %v19620_v5 }
 0xb14   : > { %19669 = vmatprep.mubr.msk.f32.mxu1 %vm596_vm0, %v11957_v51  ;;  %v19699_v17 = vpop.f32.mrb[156].mxu0 }
 0xb15   : > { %v12202_v63 = vpop.f32.mrb[157].mxu0 }
 0xb17   : > { %19670 = vmatmul.mubr.msk.f32.vlgmr.msra.gmra.mrb[236].mxu1 %vm596_vm0, %v19655_v58 }
 0xb18   : > { %21092 = vmatpush3.bf16.msra.mxu1 %v21089_v7  ;;  %19672 = vmatprep.mubr.msk.f32.mxu1 %vm596_vm0, %v11967_v12  ;;  %v19702_v9 = vpop.f32.mrb[158].mxu0  ;;  %v21954_v12 = vld [vmem:[#allocation10 + $0x8] sm:$0xff] }
 0xb19   : > { %21110 = vmatprep.subr.bf16.mxu1 %v21109_v56  ;;  %v12212_v8 = vpop.f32.mrb[159].mxu0 }
 0xb1b   : > { %19673 = vmatmul.mubr.msk.f32.gmra.mrb[238].mxu1 %vm596_vm0, %v19658_v25 }
 0xb1c   : > { %19675 = vmatprep.mubr.msk.f32.mxu1 %vm596_vm0, %v11977_v1  ;;  %v19705_v53 = vpop.f32.mrb[160].mxu0  ;;  %v21956_v1 = vld [vmem:[#allocation10 + $0x18] sm:$0xff] }
 0xb1d   : > { %v12222_v61 = vpop.f32.mrb[161].mxu0 }
 0xb1f   : > { %19676 = vmatmul.mubr.msk.f32.gmra.mrb[240].mxu1 %vm596_vm0, %v19661_v11  ;;  %v21955_v11 = vld [vmem:[#allocation10 + $0x10] sm:$0xff] }
 0xb20   : > { %19678 = vmatprep.mubr.msk.f32.mxu1 %vm596_vm0, %v11987_v0  ;;  %v19708_v6 = vpop.f32.mrb[162].mxu0  ;;  %v21958_v0 = vld [vmem:[#allocation10 + $0x28] sm:$0xff] }
 0xb21   : > { %v12232_v4 = vpop.f32.mrb[163].mxu0 }
 0xb23   : > { %19679 = vmatmul.mubr.msk.f32.gmra.mrb[242].mxu1 %vm596_vm0, %v19664_v60  ;;  %v21957_v60 = vld [vmem:[#allocation10 + $0x20] sm:$0xff] }
 0xb24   : > { %19713 = vmatprep.mubr.msk.f32.mxu1 %vm596_vm0, %v12202_v63  ;;  %v19743_v55 = vpop.f32.mrb[164].mxu0  ;;  %v21962_v63 = vld [vmem:[#allocation10 + $0x48] sm:$0xff] }
 0xb25   : > { %v12447_v31 = vpop.f32.mrb[165].mxu0 }
 0xb27   : > { %19714 = vmatmul.mubr.msk.f32.vlgmr.msra.gmra.mrb[236].mxu1 %vm596_vm0, %v19699_v17  ;;  %v21961_v17 = vld [vmem:[#allocation10 + $0x40] sm:$0xff] }
 0xb28   : > { %21112 = vmatpush3.bf16.msra.mxu1 %v21109_v56  ;;  %19716 = vmatprep.mubr.msk.f32.mxu1 %vm596_vm0, %v12212_v8  ;;  %v19746_v21 = vpop.f32.mrb[166].mxu0  ;;  %v21963_v56 = vld [vmem:[#allocation10 + $0x50] sm:$0xff]  ;;  %v21965_v8 = vld [vmem:[#allocation10 + $0x60] sm:$0xff] }
 0xb29   : > { %21130 = vmatprep.subr.bf16.mxu1 %v21129_v16  ;;  %v12457_v13 = vpop.f32.mrb[167].mxu0 }
 0xb2b   : > { %19717 = vmatmul.mubr.msk.f32.gmra.mrb[238].mxu1 %vm596_vm0, %v19702_v9  ;;  %v21964_v9 = vld [vmem:[#allocation10 + $0x58] sm:$0xff] }
 0xb2c   : > { %19719 = vmatprep.mubr.msk.f32.mxu1 %vm596_vm0, %v12222_v61  ;;  %v19749_v29 = vpop.f32.mrb[168].mxu0  ;;  %v21967_v61 = vld [vmem:[#allocation10 + $0x70] sm:$0xff] }
 0xb2d   : > { %v12467_v28 = vpop.f32.mrb[169].mxu0 }
 0xb2f   : > { %19720 = vmatmul.mubr.msk.f32.gmra.mrb[240].mxu1 %vm596_vm0, %v19705_v53  ;;  %v21966_v53 = vld [vmem:[#allocation10 + $0x68] sm:$0xff] }
 0xb30   : > { %19722 = vmatprep.mubr.msk.f32.mxu1 %vm596_vm0, %v12232_v4  ;;  %v19752_v10 = vpop.f32.mrb[170].mxu0  ;;  %v21969_v4 = vld [vmem:[#allocation10 + $0x80] sm:$0xff] }
 0xb31   : > { %v12477_v22 = vpop.f32.mrb[171].mxu0 }
 0xb33   : > { %19723 = vmatmul.mubr.msk.f32.gmra.mrb[242].mxu1 %vm596_vm0, %v19708_v6  ;;  %v21968_v6 = vld [vmem:[#allocation10 + $0x78] sm:$0xff] }
 0xb34   : > { %19757 = vmatprep.mubr.msk.f32.mxu1 %vm596_vm0, %v12447_v31  ;;  %v19787_v20 = vpop.f32.mrb[172].mxu0  ;;  %v21973_v31 = vld [vmem:[#allocation10 + $0xa0] sm:$0xff] }
 0xb35   : > { %v12692_v24 = vpop.f32.mrb[173].mxu0 }
 0xb37   : > { %19758 = vmatmul.mubr.msk.f32.vlgmr.msra.gmra.mrb[236].mxu1 %vm596_vm0, %v19743_v55  ;;  %v21972_v55 = vld [vmem:[#allocation10 + $0x98] sm:$0xff] }
 0xb38   : > { %21132 = vmatpush3.bf16.msra.mxu1 %v21129_v16  ;;  %19760 = vmatprep.mubr.msk.f32.mxu1 %vm596_vm0, %v12457_v13  ;;  %v19790_v41 = vpop.f32.mrb[174].mxu0  ;;  %v21974_v16 = vld [vmem:[#allocation10 + $0xa8] sm:$0xff]  ;;  %v21976_v13 = vld [vmem:[#allocation10 + $0xb8] sm:$0xff] }
 0xb39   : > { %v12702_v14 = vpop.f32.mrb[175].mxu0 }
 0xb3b   : > { %19761 = vmatmul.mubr.msk.f32.gmra.mrb[238].mxu1 %vm596_vm0, %v19746_v21  ;;  %v21975_v21 = vld [vmem:[#allocation10 + $0xb0] sm:$0xff] }
 0xb3c   : > { %19763 = vmatprep.mubr.msk.f32.mxu1 %vm596_vm0, %v12467_v28  ;;  %v19793_v37 = vpop.f32.mrb[176].mxu0  ;;  %v21978_v28 = vld [vmem:[#allocation10 + $0xc8] sm:$0xff] }
 0xb3d   : > { %v12712_v26 = vpop.f32.mrb[177].mxu0 }
 0xb3f   : > { %19764 = vmatmul.mubr.msk.f32.gmra.mrb[240].mxu1 %vm596_vm0, %v19749_v29  ;;  %v21977_v29 = vld [vmem:[#allocation10 + $0xc0] sm:$0xff] }
 0xb40   : > { %19766 = vmatprep.mubr.msk.f32.mxu1 %vm596_vm0, %v12477_v22  ;;  %v19796_v18 = vpop.f32.mrb[178].mxu0  ;;  %v21980_v22 = vld [vmem:[#allocation10 + $0xd8] sm:$0xff] }
 0xb41   : > { %v12722_v48 = vpop.f32.mrb[179].mxu0 }
 0xb43   : > { %19767 = vmatmul.mubr.msk.f32.gmra.mrb[242].mxu1 %vm596_vm0, %v19752_v10  ;;  %v21979_v10 = vld [vmem:[#allocation10 + $0xd0] sm:$0xff] }
 0xb44   : > { %19801 = vmatprep.mubr.msk.f32.mxu1 %vm596_vm0, %v12692_v24  ;;  %v21982_v24 = vld [vmem:[#allocation10 + $0xe8] sm:$0xff] }
 0xb47   : > { %19802 = vmatmul.mubr.msk.f32.vlgmr.msra.gmra.mrb[236].mxu1 %vm596_vm0, %v19787_v20  ;;  %v21981_v20 = vld [vmem:[#allocation10 + $0xe0] sm:$0xff] }
 0xb48   : > { %19804 = vmatprep.mubr.msk.f32.mxu1 %vm596_vm0, %v12702_v14  ;;  %v21984_v14 = vld [vmem:[#allocation10 + $0xf8] sm:$0xff] }
 0xb4b   : > { %19805 = vmatmul.mubr.msk.f32.gmra.mrb[238].mxu1 %vm596_vm0, %v19790_v41  ;;  %v21983_v41 = vld [vmem:[#allocation10 + $0xf0] sm:$0xff] }
 0xb4c   : > { %19807 = vmatprep.mubr.msk.f32.mxu1 %vm596_vm0, %v12712_v26  ;;  %v21986_v26 = vld [vmem:[#allocation10 + $0x108] sm:$0xff] }
 0xb4f   : > { %19808 = vmatmul.mubr.msk.f32.gmra.mrb[240].mxu1 %vm596_vm0, %v19793_v37  ;;  %v21985_v37 = vld [vmem:[#allocation10 + $0x100] sm:$0xff] }
 0xb50   : > { %19810 = vmatprep.mubr.msk.f32.mxu1 %vm596_vm0, %v12722_v48  ;;  %v21988_v48 = vld [vmem:[#allocation10 + $0x118] sm:$0xff] }
 0xb53   : > { %19811 = vmatmul.mubr.msk.f32.gmra.mrb[242].mxu1 %vm596_vm0, %v19796_v18  ;;  %v21987_v18 = vld [vmem:[#allocation10 + $0x110] sm:$0xff] }
 0xc1a   : > { %v19803_v62 = vpop.f32.mrb[236].mxu1 }
 0xc1b   : > { %v12880_v27 = vadd.f32 %v19803_v62, %v16178_v15  ;;  %v12824_v47 = vpop.f32.mrb[237].mxu1  ;;  %v21990_v62 = vld [vmem:[#allocation10 + $0x128] sm:$0xff] }
 0xc1c   : > { %v12879_v50 = vadd.f32 %v16178_v15, %v12824_v47  ;;  %v21992_v47 = vld [vmem:[#allocation10 + $0x138] sm:$0xff] }
 0xc1d   : > { %v12888_v2 = vmax.f32 %v12880_v27, 0.0  ;;  %v21991_v27 = vld [vmem:[#allocation10 + $0x130] sm:$0xff] }
 0xc1e   : > { %v12887_v52 = vmax.f32 %v12879_v50, 0.0  ;;  %v19806_v30 = vpop.f32.mrb[238].mxu1  ;;  %v21993_v50 = vld [vmem:[#allocation10 + $0x140] sm:$0xff] }
 0xc1f   : > { %v12882_v38 = vadd.f32 %v19806_v30, %v16178_v15  ;;  %v12834_v32 = vpop.f32.mrb[239].mxu1  ;;  %v21996_v30 = vld [vmem:[#allocation10 + $0x158] sm:$0xff] }
 0xc20   : > { %v25622_v42 = vpack.c.bf16 %v12888_v2, %v12887_v52  ;;  %v12881_v36 = vadd.f32 %v16178_v15, %v12834_v32  ;;  %v21994_v2 = vld [vmem:[#allocation10 + $0x148] sm:$0xff]  ;;  %v21995_v52 = vld [vmem:[#allocation10 + $0x150] sm:$0xff] }
 0xc21   : > { %v12890_v34 = vmax.f32 %v12882_v38, 0.0  ;;  %v13109_v38 = vld [vmem:[#allocation8 + $0x2e0] sm:$0xff]  ;;  %v13110_v32 = vld [vmem:[#allocation8 + $0x2e8] sm:$0xff] }
 0xc22   : > { %v12889_v57 = vmax.f32 %v12881_v36, 0.0  ;;  %v19809_v54 = vpop.f32.mrb[240].mxu1  ;;  %21134 = vmatprep.subr.bf16.mxu0 %v25622_v42  ;;  %v21997_v36 = vld [vmem:[#allocation10 + $0x160] sm:$0xff] }
 0xc23   : > { %v12884_v39 = vadd.f32 %v19809_v54, %v16178_v15  ;;  %v12844_v33 = vpop.f32.mrb[241].mxu1  ;;  %21136 = vmatpush3.bf16.msra.mxu0 %v25622_v42  ;;  %v21999_v54 = vld [vmem:[#allocation10 + $0x170] sm:$0xff] }
 0xc24   : > { %v25626_v59 = vpack.c.bf16 %v12890_v34, %v12889_v57  ;;  %v12883_v46 = vadd.f32 %v16178_v15, %v12844_v33  ;;  %v21165_v34 = vpack.c.bf16 %v13110_v32, %v13109_v38  ;;  %v21998_v57 = vld [vmem:[#allocation10 + $0x168] sm:$0xff]  ;;  %v22001_v33 = vld [vmem:[#allocation10 + $0x180] sm:$0xff]  ;;  %v13965_v38 = vld [vmem:[#allocation8 + $0x310] sm:$0xff] }
 0xc25   : > { %v12892_v45 = vmax.f32 %v12884_v39, 0.0  ;;  %v22000_v39 = vld [vmem:[#allocation10 + $0x178] sm:$0xff] }
 0xc26   : > { %v12891_v19 = vmax.f32 %v12883_v46, 0.0  ;;  %v19812_v5 = vpop.f32.mrb[242].mxu1  ;;  %21138 = vmatprep.subr.bf16.mxu0 %v25626_v59  ;;  %21166 = vmatprep.subr.bf16.mxu1 %v21165_v34  ;;  %v22002_v46 = vld [vmem:[#allocation10 + $0x188] sm:$0xff]  ;;  %v13966_v32 = vld [vmem:[#allocation8 + $0x318] sm:$0xff] }
 0xc27   : > { %v12886_v44 = vadd.f32 %v19812_v5, %v16178_v15  ;;  %v12854_v40 = vpop.f32.mrb[243].mxu1  ;;  %21140 = vmatpush3.bf16.msra.mxu0 %v25626_v59  ;;  %21168 = vmatpush3.bf16.msra.mxu1 %v21165_v34  ;;  %v22005_v5 = vld [vmem:[#allocation10 + $0x1a0] sm:$0xff] }
 0xc28   : > { %v25630_v23 = vpack.c.bf16 %v12892_v45, %v12891_v19  ;;  %v12885_v58 = vadd.f32 %v16178_v15, %v12854_v40  ;;  %v21989_v15 = vld [vmem:[#allocation10 + $0x120] sm:$0xff]  ;;  %v22003_v45 = vld [vmem:[#allocation10 + $0x190] sm:$0xff]  ;;  %v22004_v19 = vld [vmem:[#allocation10 + $0x198] sm:$0xff] }
 0xc29   : > { %v12894_v51 = vmax.f32 %v12886_v44, 0.0  ;;  %v13001_v44 = vld [vmem:[#allocation8 + $0x2d0] sm:$0xff]  ;;  %v13002_v40 = vld [vmem:[#allocation8 + $0x2d8] sm:$0xff] }
 0xc2a   : > { %v12893_v7 = vmax.f32 %v12885_v58, 0.0  ;;  %21142 = vmatprep.subr.bf16.mxu0 %v25630_v23  ;;  %v25743_v58 = vpack.c.bf16 %v13002_v40, %v13001_v44  ;;  %v14211_v44 = vld [vmem:[#allocation8 + $0x328] sm:$0xff] }
 0xc2b   : > { %21144 = vmatpush3.bf16.msra.mxu0 %v25630_v23 }
 0xc2c   : > { %v25634_v25 = vpack.c.bf16 %v12894_v51, %v12893_v7  ;;  %v22006_v51 = vld [vmem:[#allocation10 + $0x1a8] sm:$0xff]  ;;  %v22007_v7 = vld [vmem:[#allocation10 + $0x1b0] sm:$0xff]  ;;  %21170 = vmatprep.subr.bf16.mxu1 %v25743_v58 }
 0xc2e   : > { %21146 = vmatprep.subr.bf16.mxu0 %v25634_v25 }
 0xc2f   : > { %21148 = vmatpush3.bf16.msra.mxu0 %v25634_v25 }
 0xc30   : > { %21150 = vmatprep.subr.bf16.mxu0 %v25622_v42 }
 0xc32   : > { %19830 = vmatmul.mubr.msk.f32.vlgmr.msra.gmra.mrb[180].mxu0 %vm896_vm1, %v21954_v12  ;;  %v22008_v12 = vld [vmem:[#allocation10 + $0x1b8] sm:$0xff] }
 0xc33   : > { %21152 = vmatpush3.bf16.msra.mxu0 %v25622_v42  ;;  %19832 = vmatprep.mubr.msk.f32.mxu0 %vm896_vm1, %v21955_v11  ;;  %v22009_v11 = vld [vmem:[#allocation10 + $0x1c0] sm:$0xff] }
 0xc34   : > { %21154 = vmatprep.subr.bf16.mxu0 %v25626_v59 }
 0xc36   : > { %19833 = vmatmul.mubr.msk.f32.gmra.mrb[182].mxu0 %vm896_vm1, %v21956_v1  ;;  %v22010_v1 = vld [vmem:[#allocation10 + $0x1c8] sm:$0xff] }
 0xc37   : > { %21156 = vmatpush3.bf16.msra.mxu0 %v25626_v59  ;;  %19835 = vmatprep.mubr.msk.f32.mxu0 %vm896_vm1, %v21957_v60  ;;  %v22011_v60 = vld [vmem:[#allocation10 + $0x1d0] sm:$0xff] }
 0xc38   : > { %21158 = vmatprep.subr.bf16.mxu0 %v25630_v23 }
 0xc3a   : > { %19836 = vmatmul.mubr.msk.f32.gmra.mrb[184].mxu0 %vm896_vm1, %v21958_v0  ;;  %v22012_v0 = vld [vmem:[#allocation10 + $0x1d8] sm:$0xff] }
 0xc3b   : > { %21160 = vmatpush3.bf16.msra.mxu0 %v25630_v23  ;;  %19838 = vmatprep.mubr.msk.f32.mxu0 %vm896_vm1, %v21959_v3  ;;  %v22013_v3 = vld [vmem:[#allocation10 + $0x1e0] sm:$0xff] }
 0xc3c   : > { %21162 = vmatprep.subr.bf16.mxu0 %v25634_v25 }
 0xc3e   : > { %19839 = vmatmul.mubr.msk.f32.gmra.mrb[186].mxu0 %vm896_vm1, %v21960_v43  ;;  %v22014_v43 = vld [vmem:[#allocation10 + $0x1e8] sm:$0xff] }
 0xc3f   : > { %21164 = vmatpush3.bf16.msra.mxu0 %v25634_v25  ;;  %19857 = vmatprep.mubr.msk.f32.mxu0 %vm896_vm1, %v21961_v17  ;;  %v22016_v17 = vld [vmem:[#allocation10 + $0x1f8] sm:$0xff] }
 0xc40   : > { %21174 = vmatprep.subr.bf16.mxu0 %v25622_v42 }
 0xc42   : > { %19858 = vmatmul.mubr.msk.f32.vlgmr.msra.gmra.mrb[188].mxu0 %vm896_vm1, %v21962_v63  ;;  %v22018_v63 = vld [vmem:[#allocation10 + $0x208] sm:$0xff] }
 0xc43   : > { %21176 = vmatpush3.bf16.msra.mxu0 %v25622_v42  ;;  %19860 = vmatprep.mubr.msk.f32.mxu0 %vm896_vm1, %v21963_v56  ;;  %v22019_v56 = vld [vmem:[#allocation10 + $0x210] sm:$0xff] }
 0xc44   : > { %21178 = vmatprep.subr.bf16.mxu0 %v25626_v59 }
 0xc46   : > { %19861 = vmatmul.mubr.msk.f32.gmra.mrb[190].mxu0 %vm896_vm1, %v21964_v9  ;;  %v22021_v9 = vld [vmem:[#allocation10 + $0x220] sm:$0xff] }
 0xc47   : > { %21180 = vmatpush3.bf16.msra.mxu0 %v25626_v59  ;;  %19863 = vmatprep.mubr.msk.f32.mxu0 %vm896_vm1, %v21965_v8  ;;  %v22022_v8 = vld [vmem:[#allocation10 + $0x228] sm:$0xff] }
 0xc48   : > { %21182 = vmatprep.subr.bf16.mxu0 %v25630_v23 }
 0xc4a   : > { %19864 = vmatmul.mubr.msk.f32.gmra.mrb[192].mxu0 %vm896_vm1, %v21966_v53  ;;  %v22023_v53 = vld [vmem:[#allocation10 + $0x230] sm:$0xff] }
 0xc4b   : > { %21184 = vmatpush3.bf16.msra.mxu0 %v25630_v23  ;;  %19866 = vmatprep.mubr.msk.f32.mxu0 %vm896_vm1, %v21967_v61 }
 0xc4c   : > { %21186 = vmatprep.subr.bf16.mxu0 %v25634_v25 }
 0xc4e   : > { %19867 = vmatmul.mubr.msk.f32.gmra.mrb[194].mxu0 %vm896_vm1, %v21968_v6 }
 0xc4f   : > { %21188 = vmatpush3.bf16.msra.mxu0 %v25634_v25  ;;  %19917 = vmatprep.mubr.msk.f32.mxu0 %vm896_vm1, %v21969_v4 }
 0xc50   : > { %21194 = vmatprep.subr.bf16.mxu0 %v25622_v42 }
 0xc52   : > { %19918 = vmatmul.mubr.msk.f32.vlgmr.msra.gmra.mrb[196].mxu0 %vm896_vm1, %v21970_v35 }
 0xc53   : > { %21196 = vmatpush3.bf16.msra.mxu0 %v25622_v42  ;;  %19920 = vmatprep.mubr.msk.f32.mxu0 %vm896_vm1, %v21971_v49 }
 0xc54   : > { %21198 = vmatprep.subr.bf16.mxu0 %v25626_v59 }
 0xc56   : > { %19921 = vmatmul.mubr.msk.f32.gmra.mrb[198].mxu0 %vm896_vm1, %v21972_v55 }
 0xc57   : > { %21200 = vmatpush3.bf16.msra.mxu0 %v25626_v59  ;;  %19923 = vmatprep.mubr.msk.f32.mxu0 %vm896_vm1, %v21973_v31 }
 0xc58   : > { %21202 = vmatprep.subr.bf16.mxu0 %v25630_v23 }
 0xc5a   : > { %19924 = vmatmul.mubr.msk.f32.gmra.mrb[200].mxu0 %vm896_vm1, %v21974_v16 }
 0xc5b   : > { %21204 = vmatpush3.bf16.msra.mxu0 %v25630_v23  ;;  %19926 = vmatprep.mubr.msk.f32.mxu0 %vm896_vm1, %v21975_v21  ;;  %v13475_v21 = vld [vmem:[#allocation8 + $0x2f0] sm:$0xff] }
 0xc5c   : > { %21206 = vmatprep.subr.bf16.mxu0 %v25634_v25 }
 0xc5e   : > { %19927 = vmatmul.mubr.msk.f32.gmra.mrb[202].mxu0 %vm896_vm1, %v21976_v13  ;;  %v13476_v13 = vld [vmem:[#allocation8 + $0x2f8] sm:$0xff] }
 0xc5f   : > { %21208 = vmatpush3.bf16.msra.mxu0 %v25634_v25  ;;  %19961 = vmatprep.mubr.msk.f32.mxu0 %vm896_vm1, %v21977_v29 }
 0xc60   : > { %21214 = vmatprep.subr.bf16.mxu0 %v25622_v42 }
 0xc62   : > { %19962 = vmatmul.mubr.msk.f32.vlgmr.msra.gmra.mrb[204].mxu0 %vm896_vm1, %v21978_v28 }
 0xc63   : > { %21216 = vmatpush3.bf16.msra.mxu0 %v25622_v42  ;;  %19964 = vmatprep.mubr.msk.f32.mxu0 %vm896_vm1, %v21979_v10  ;;  %v21189_v10 = vpack.c.bf16 %v13476_v13, %v13475_v21 }
 0xc64   : > { %21218 = vmatprep.subr.bf16.mxu0 %v25626_v59 }
 0xc66   : > { %19965 = vmatmul.mubr.msk.f32.gmra.mrb[206].mxu0 %vm896_vm1, %v21980_v22 }
 0xc67   : > { %21220 = vmatpush3.bf16.msra.mxu0 %v25626_v59  ;;  %19967 = vmatprep.mubr.msk.f32.mxu0 %vm896_vm1, %v21981_v20 }
 0xc68   : > { %21222 = vmatprep.subr.bf16.mxu0 %v25630_v23 }
 0xc6a   : > { %19968 = vmatmul.mubr.msk.f32.gmra.mrb[208].mxu0 %vm896_vm1, %v21982_v24 }
 0xc6b   : > { %21224 = vmatpush3.bf16.msra.mxu0 %v25630_v23  ;;  %19970 = vmatprep.mubr.msk.f32.mxu0 %vm896_vm1, %v21983_v41 }
 0xc6c   : > { %21226 = vmatprep.subr.bf16.mxu0 %v25634_v25 }
 0xc6e   : > { %19971 = vmatmul.mubr.msk.f32.gmra.mrb[210].mxu0 %vm896_vm1, %v21984_v14 }
 0xc6f   : > { %21228 = vmatpush3.bf16.msra.mxu0 %v25634_v25  ;;  %20005 = vmatprep.mubr.msk.f32.mxu0 %vm896_vm1, %v21985_v37 }
 0xc70   : > { %21234 = vmatprep.subr.bf16.mxu0 %v25622_v42 }
 0xc72   : > { %20006 = vmatmul.mubr.msk.f32.vlgmr.msra.gmra.mrb[212].mxu0 %vm896_vm1, %v21986_v26  ;;  %v13720_v26 = vld [vmem:[#allocation8 + $0x300] sm:$0xff] }
 0xc73   : > { %21236 = vmatpush3.bf16.msra.mxu0 %v25622_v42  ;;  %20008 = vmatprep.mubr.msk.f32.mxu0 %vm896_vm1, %v21987_v18  ;;  %v13721_v18 = vld [vmem:[#allocation8 + $0x308] sm:$0xff] }
 0xc74   : > { %21238 = vmatprep.subr.bf16.mxu0 %v25626_v59 }
 0xc76   : > { %20009 = vmatmul.mubr.msk.f32.gmra.mrb[214].mxu0 %vm896_vm1, %v21988_v48 }
 0xc77   : > { %21240 = vmatpush3.bf16.msra.mxu0 %v25626_v59  ;;  %20011 = vmatprep.mubr.msk.f32.mxu0 %vm896_vm1, %v21989_v15 }
 0xc78   : > { %21242 = vmatprep.subr.bf16.mxu0 %v25630_v23 }
 0xc7a   : > { %20012 = vmatmul.mubr.msk.f32.gmra.mrb[216].mxu0 %vm896_vm1, %v21990_v62  ;;  %v21209_v62 = vpack.c.bf16 %v13721_v18, %v13720_v26 }
 0xc7b   : > { %21244 = vmatpush3.bf16.msra.mxu0 %v25630_v23  ;;  %20014 = vmatprep.mubr.msk.f32.mxu0 %vm896_vm1, %v21991_v27 }
 0xc7c   : > { %21246 = vmatprep.subr.bf16.mxu0 %v25634_v25 }
 0xc7e   : > { %20015 = vmatmul.mubr.msk.f32.gmra.mrb[218].mxu0 %vm896_vm1, %v21992_v47 }
 0xc7f   : > { %21248 = vmatpush3.bf16.msra.mxu0 %v25634_v25  ;;  %20049 = vmatprep.mubr.msk.f32.mxu0 %vm896_vm1, %v21993_v50 }
 0xc80   : > { %21254 = vmatprep.subr.bf16.mxu0 %v25622_v42 }
 0xc82   : > { %20050 = vmatmul.mubr.msk.f32.vlgmr.msra.gmra.mrb[220].mxu0 %vm896_vm1, %v21994_v2 }
 0xc83   : > { %21256 = vmatpush3.bf16.msra.mxu0 %v25622_v42  ;;  %20052 = vmatprep.mubr.msk.f32.mxu0 %vm896_vm1, %v21995_v52 }
 0xc84   : > { %21258 = vmatprep.subr.bf16.mxu0 %v25626_v59 }
 0xc86   : > { %20053 = vmatmul.mubr.msk.f32.gmra.mrb[222].mxu0 %vm896_vm1, %v21996_v30 }
 0xc87   : > { %21260 = vmatpush3.bf16.msra.mxu0 %v25626_v59  ;;  %20055 = vmatprep.mubr.msk.f32.mxu0 %vm896_vm1, %v21997_v36 }
 0xc88   : > { %21262 = vmatprep.subr.bf16.mxu0 %v25630_v23 }
 0xc8a   : > { %20056 = vmatmul.mubr.msk.f32.gmra.mrb[224].mxu0 %vm896_vm1, %v21998_v57  ;;  %v21229_v57 = vpack.c.bf16 %v13966_v32, %v13965_v38 }
 0xc8b   : > { %21264 = vmatpush3.bf16.msra.mxu0 %v25630_v23  ;;  %20058 = vmatprep.mubr.msk.f32.mxu0 %vm896_vm1, %v21999_v54 }
 0xc8c   : > { %21266 = vmatprep.subr.bf16.mxu0 %v25634_v25 }
 0xc8e   : > { %20059 = vmatmul.mubr.msk.f32.gmra.mrb[226].mxu0 %vm896_vm1, %v22000_v39 }
 0xc8f   : > { %21268 = vmatpush3.bf16.msra.mxu0 %v25634_v25  ;;  %20093 = vmatprep.mubr.msk.f32.mxu0 %vm896_vm1, %v22001_v33 }
 0xc90   : > { %21274 = vmatprep.subr.bf16.mxu0 %v25622_v42 }
 0xc92   : > { %20094 = vmatmul.mubr.msk.f32.vlgmr.msra.gmra.mrb[228].mxu0 %vm896_vm1, %v22002_v46 }
 0xc93   : > { %21276 = vmatpush3.bf16.msra.mxu0 %v25622_v42  ;;  %20096 = vmatprep.mubr.msk.f32.mxu0 %vm896_vm1, %v22003_v45 }
 0xc94   : > { %21278 = vmatprep.subr.bf16.mxu0 %v25626_v59 }
 0xc96   : > { %20097 = vmatmul.mubr.msk.f32.gmra.mrb[230].mxu0 %vm896_vm1, %v22004_v19 }
 0xc97   : > { %21280 = vmatpush3.bf16.msra.mxu0 %v25626_v59  ;;  %20099 = vmatprep.mubr.msk.f32.mxu0 %vm896_vm1, %v22005_v5  ;;  %v14210_v5 = vld [vmem:[#allocation8 + $0x320] sm:$0xff] }
 0xc98   : > { %21282 = vmatprep.subr.bf16.mxu0 %v25630_v23 }
 0xc9a   : > { %20100 = vmatmul.mubr.msk.f32.gmra.mrb[232].mxu0 %vm896_vm1, %v22006_v51  ;;  %v21249_v51 = vpack.c.bf16 %v14211_v44, %v14210_v5  ;;  %v26518_v44 = vld [vmem:[#allocation63_spill] sm:$0xff] }
 0xc9b   : > { %21284 = vmatpush3.bf16.msra.mxu0 %v25630_v23  ;;  %20102 = vmatprep.mubr.msk.f32.mxu0 %vm896_vm1, %v22007_v7 }
 0xc9c   : > { %21286 = vmatprep.subr.bf16.mxu0 %v25634_v25 }
 0xc9e   : > { %20103 = vmatmul.mubr.msk.f32.gmra.mrb[234].mxu0 %vm896_vm1, %v22008_v12 }
 0xc9f   : > { %21288 = vmatpush3.bf16.msra.mxu0 %v25634_v25  ;;  %20137 = vmatprep.mubr.msk.f32.mxu0 %vm896_vm1, %v22009_v11 }
 0xca0   : > { %21294 = vmatprep.subr.bf16.mxu0 %v25622_v42 }
 0xca2   : > { %20138 = vmatmul.mubr.msk.f32.vlgmr.msra.gmra.mrb[236].mxu0 %vm896_vm1, %v22010_v1 }
 0xca3   : > { %21296 = vmatpush3.bf16.msra.mxu0 %v25622_v42  ;;  %20140 = vmatprep.mubr.msk.f32.mxu0 %vm896_vm1, %v22011_v60  ;;  %v22015_v42 = vld [vmem:[#allocation10 + $0x1f0] sm:$0xff] }
 0xca4   : > { %21298 = vmatprep.subr.bf16.mxu0 %v25626_v59 }
 0xca6   : > { %20141 = vmatmul.mubr.msk.f32.gmra.mrb[238].mxu0 %vm896_vm1, %v22012_v0 }
 0xca7   : > { %21300 = vmatpush3.bf16.msra.mxu0 %v25626_v59  ;;  %20143 = vmatprep.mubr.msk.f32.mxu0 %vm896_vm1, %v22013_v3  ;;  %v22017_v59 = vld [vmem:[#allocation10 + $0x200] sm:$0xff]  ;;  %v14455_v3 = vld [vmem:[#allocation8 + $0x330] sm:$0xff] }
 0xca8   : > { %21302 = vmatprep.subr.bf16.mxu0 %v25630_v23 }
 0xcaa   : > { %20144 = vmatmul.mubr.msk.f32.gmra.mrb[240].mxu0 %vm896_vm1, %v22014_v43  ;;  %v14456_v43 = vld [vmem:[#allocation8 + $0x338] sm:$0xff] }
 0xcab   : > { %21304 = vmatpush3.bf16.msra.mxu0 %v25630_v23  ;;  %20146 = vmatprep.mubr.msk.f32.mxu0 %vm896_vm1, %v22015_v42  ;;  %v22020_v23 = vld [vmem:[#allocation10 + $0x218] sm:$0xff] }
 0xcac   : > { %21306 = vmatprep.subr.bf16.mxu0 %v25634_v25 }
 0xcae   : > { %20147 = vmatmul.mubr.msk.f32.gmra.mrb[242].mxu0 %vm896_vm1, %v22016_v17 }
 0xcaf   : > { %21308 = vmatpush3.bf16.msra.mxu0 %v25634_v25  ;;  %20181 = vmatprep.mubr.msk.f32.mxu0 %vm896_vm1, %v22017_v59  ;;  %v22024_v25 = vld [vmem:[#allocation10 + $0x238] sm:$0xff]  ;;  %v21269_v59 = vpack.c.bf16 %v14456_v43, %v14455_v3 }
 0xcb0   : > { %v26521_v3 = vld [vmem:[#allocation73_spill] sm:$0xff] }
 0xcb2   : > { %20182 = vmatmul.mubr.msk.f32.vlgmr.msra.gmra.mrb[244].mxu0 %vm896_vm1, %v22018_v63 }
 0xcb3   : > { %20184 = vmatprep.mubr.msk.f32.mxu0 %vm896_vm1, %v22019_v56 }
 0xcb6   : > { %20185 = vmatmul.mubr.msk.f32.gmra.mrb[246].mxu0 %vm896_vm1, %v22020_v23 }
 0xcb7   : > { %20187 = vmatprep.mubr.msk.f32.mxu0 %vm896_vm1, %v22021_v9 }
 0xcba   : > { %20188 = vmatmul.mubr.msk.f32.gmra.mrb[248].mxu0 %vm896_vm1, %v22022_v8 }
 0xcbb   : > { %20190 = vmatprep.mubr.msk.f32.mxu0 %vm896_vm1, %v22023_v53 }
 0xcbe   : > { %20191 = vmatmul.mubr.msk.f32.gmra.mrb[250].mxu0 %vm896_vm1, %v22024_v25  ;;  %v14700_v25 = vld [vmem:[#allocation8 + $0x340] sm:$0xff] }
 0xd05   : > { %v19831_v61 = vpop.f32.mrb[180].mxu0 }
 0xd06   : > { %v12961_v6 = vpop.f32.mrb[181].mxu0 }
 0xd09   : > { %v19834_v4 = vpop.f32.mrb[182].mxu0 }
 0xd0a   : > { %v12971_v35 = vpop.f32.mrb[183].mxu0 }
 0xd0d   : > { %v19837_v49 = vpop.f32.mrb[184].mxu0 }
 0xd0e   : > { %v12981_v55 = vpop.f32.mrb[185].mxu0 }
 0xd11   : > { %v19840_v31 = vpop.f32.mrb[186].mxu0 }
 0xd12   : > { %v12991_v16 = vpop.f32.mrb[187].mxu0 }
 0xd15   : > { %v19859_v29 = vpop.f32.mrb[188].mxu0 }
 0xd16   : > { %v13069_v28 = vpop.f32.mrb[189].mxu0 }
 0xd17   : > { %19873 = vmatprep.mubr.msk.f32.mxu1 %vm596_vm0, %v13069_v28  ;;  %v14946_v28 = vld [vmem:[#allocation8 + $0x358] sm:$0xff] }
 0xd18   : > { %19874 = vmatmul.mubr.msk.f32.vlgmr.msra.gmra.mrb[244].mxu1 %vm596_vm0, %v19859_v29  ;;  %v14945_v29 = vld [vmem:[#allocation8 + $0x350] sm:$0xff] }
 0xd19   : > { %v19862_v22 = vpop.f32.mrb[190].mxu0  ;;  %21172 = vmatpush3.bf16.msra.mxu1 %v25743_v58 }
 0xd1a   : > { %v13079_v20 = vpop.f32.mrb[191].mxu0  ;;  %21190 = vmatprep.subr.bf16.mxu1 %v21189_v10 }
 0xd1b   : > { %19876 = vmatprep.mubr.msk.f32.mxu1 %vm596_vm0, %v13079_v20  ;;  %v21309_v20 = vpack.c.bf16 %v14946_v28, %v14945_v29 }
 0xd1c   : > { %19877 = vmatmul.mubr.msk.f32.gmra.mrb[246].mxu1 %vm596_vm0, %v19862_v22 }
 0xd1d   : > { %v19865_v24 = vpop.f32.mrb[192].mxu0 }
 0xd1e   : > { %v13089_v41 = vpop.f32.mrb[193].mxu0 }
 0xd1f   : > { %19879 = vmatprep.mubr.msk.f32.mxu1 %vm596_vm0, %v13089_v41 }
 0xd20   : > { %19880 = vmatmul.mubr.msk.f32.gmra.mrb[248].mxu1 %vm596_vm0, %v19865_v24 }
 0xd21   : > { %v19868_v14 = vpop.f32.mrb[194].mxu0 }
 0xd22   : > { %v13099_v37 = vpop.f32.mrb[195].mxu0 }
 0xd23   : > { %19882 = vmatprep.mubr.msk.f32.mxu1 %vm596_vm0, %v13099_v37 }
 0xd24   : > { %19883 = vmatmul.mubr.msk.f32.gmra.mrb[250].mxu1 %vm596_vm0, %v19868_v14 }
 0xd25   : > { %19889 = vmatprep.mubr.msk.f32.mxu1 %vm596_vm0, %v12961_v6  ;;  %v19919_v48 = vpop.f32.mrb[196].mxu0 }
 0xd26   : > { %v13435_v15 = vpop.f32.mrb[197].mxu0 }
 0xd28   : > { %19890 = vmatmul.mubr.msk.f32.vlgmr.msra.gmra.mrb[244].mxu1 %vm596_vm0, %v19831_v61  ;;  %v14701_v61 = vld [vmem:[#allocation8 + $0x348] sm:$0xff] }
 0xd29   : > { %19892 = vmatprep.mubr.msk.f32.mxu1 %vm596_vm0, %v12971_v35  ;;  %21192 = vmatpush3.bf16.msra.mxu1 %v21189_v10  ;;  %v19922_v27 = vpop.f32.mrb[198].mxu0  ;;  %v21289_v35 = vpack.c.bf16 %v14701_v61, %v14700_v25  ;;  %v15117_v25 = vpop.permute.xlu0 %15116 }
 0xd2a   : > { %21210 = vmatprep.subr.bf16.mxu1 %v21209_v62  ;;  %v13445_v47 = vpop.f32.mrb[199].mxu0 }
 0xd2c   : > { %19893 = vmatmul.mubr.msk.f32.gmra.mrb[246].mxu1 %vm596_vm0, %v19834_v4 }
 0xd2d   : > { %19895 = vmatprep.mubr.msk.f32.mxu1 %vm596_vm0, %v12981_v55  ;;  %v19925_v50 = vpop.f32.mrb[200].mxu0 }
 0xd2e   : > { %v13455_v2 = vpop.f32.mrb[201].mxu0 }
 0xd30   : > { %19896 = vmatmul.mubr.msk.f32.gmra.mrb[248].mxu1 %vm596_vm0, %v19837_v49 }
 0xd31   : > { %19898 = vmatprep.mubr.msk.f32.mxu1 %vm596_vm0, %v12991_v16  ;;  %v19928_v52 = vpop.f32.mrb[202].mxu0 }
 0xd32   : > { %v13465_v30 = vpop.f32.mrb[203].mxu0 }
 0xd34   : > { %19899 = vmatmul.mubr.msk.f32.gmra.mrb[250].mxu1 %vm596_vm0, %v19840_v31 }
 0xd35   : > { %19933 = vmatprep.mubr.msk.f32.mxu1 %vm596_vm0, %v13435_v15  ;;  %v19963_v36 = vpop.f32.mrb[204].mxu0 }
 0xd36   : > { %v13680_v34 = vpop.f32.mrb[205].mxu0 }
 0xd38   : > { %19934 = vmatmul.mubr.msk.f32.vlgmr.msra.gmra.mrb[244].mxu1 %vm596_vm0, %v19919_v48 }
 0xd39   : > { %21212 = vmatpush3.bf16.msra.mxu1 %v21209_v62  ;;  %19936 = vmatprep.mubr.msk.f32.mxu1 %vm596_vm0, %v13445_v47  ;;  %v19966_v54 = vpop.f32.mrb[206].mxu0 }
 0xd3a   : > { %21230 = vmatprep.subr.bf16.mxu1 %v21229_v57  ;;  %v13690_v39 = vpop.f32.mrb[207].mxu0 }
 0xd3c   : > { %19937 = vmatmul.mubr.msk.f32.gmra.mrb[246].mxu1 %vm596_vm0, %v19922_v27 }
 0xd3d   : > { %19939 = vmatprep.mubr.msk.f32.mxu1 %vm596_vm0, %v13455_v2  ;;  %v19969_v33 = vpop.f32.mrb[208].mxu0 }
 0xd3e   : > { %v13700_v46 = vpop.f32.mrb[209].mxu0 }
 0xd40   : > { %19940 = vmatmul.mubr.msk.f32.gmra.mrb[248].mxu1 %vm596_vm0, %v19925_v50 }
 0xd41   : > { %19942 = vmatprep.mubr.msk.f32.mxu1 %vm596_vm0, %v13465_v30  ;;  %v19972_v45 = vpop.f32.mrb[210].mxu0  ;;  %v16324_v30 = vld [vmem:[%s26269_s11 + $0x5] ss:$0 sm:$0xff] }
 0xd42   : > { %v13710_v19 = vpop.f32.mrb[211].mxu0 }
 0xd44   : > { %19943 = vmatmul.mubr.msk.f32.gmra.mrb[250].mxu1 %vm596_vm0, %v19928_v52 }
 0xd45   : > { %19977 = vmatprep.mubr.msk.f32.mxu1 %vm596_vm0, %v13680_v34  ;;  %v20007_v40 = vpop.f32.mrb[212].mxu0 }
 0xd46   : > { %v13925_v58 = vpop.f32.mrb[213].mxu0 }
 0xd48   : > { %19978 = vmatmul.mubr.msk.f32.vlgmr.msra.gmra.mrb[244].mxu1 %vm596_vm0, %v19963_v36 }
 0xd49   : > { %21232 = vmatpush3.bf16.msra.mxu1 %v21229_v57  ;;  %19980 = vmatprep.mubr.msk.f32.mxu1 %vm596_vm0, %v13690_v39  ;;  %v20010_v7 = vpop.f32.mrb[214].mxu0  ;;  %v26516_v57 = vld [vmem:[#allocation59_spill] sm:$0xff]  ;;  %v26517_v39 = vld [vmem:[#allocation65_spill] sm:$0xff] }
 0xd4a   : > { %21250 = vmatprep.subr.bf16.mxu1 %v21249_v51  ;;  %v13935_v12 = vpop.f32.mrb[215].mxu0 }
 0xd4c   : > { %19981 = vmatmul.mubr.msk.f32.gmra.mrb[246].mxu1 %vm596_vm0, %v19966_v54 }
 0xd4d   : > { %19983 = vmatprep.mubr.msk.f32.mxu1 %vm596_vm0, %v13700_v46  ;;  %v20013_v11 = vpop.f32.mrb[216].mxu0 }
 0xd4e   : > { %v13945_v1 = vpop.f32.mrb[217].mxu0 }
 0xd50   : > { %19984 = vmatmul.mubr.msk.f32.gmra.mrb[248].mxu1 %vm596_vm0, %v19969_v33 }
 0xd51   : > { %19986 = vmatprep.mubr.msk.f32.mxu1 %vm596_vm0, %v13710_v19  ;;  %v20016_v60 = vpop.f32.mrb[218].mxu0 }
 0xd52   : > { %v13955_v0 = vpop.f32.mrb[219].mxu0 }
 0xd54   : > { %19987 = vmatmul.mubr.msk.f32.gmra.mrb[250].mxu1 %vm596_vm0, %v19972_v45 }
 0xd55   : > { %20021 = vmatprep.mubr.msk.f32.mxu1 %vm596_vm0, %v13925_v58  ;;  %v20051_v42 = vpop.f32.mrb[220].mxu0  ;;  %v26519_v58 = vld [vmem:[#allocation69_spill] sm:$0xff] }
 0xd56   : > { %v14170_v17 = vpop.f32.mrb[221].mxu0 }
 0xd58   : > { %20022 = vmatmul.mubr.msk.f32.vlgmr.msra.gmra.mrb[244].mxu1 %vm596_vm0, %v20007_v40 }
 0xd59   : > { %21252 = vmatpush3.bf16.msra.mxu1 %v21249_v51  ;;  %20024 = vmatprep.mubr.msk.f32.mxu1 %vm596_vm0, %v13935_v12  ;;  %v20054_v63 = vpop.f32.mrb[222].mxu0 }
 0xd5a   : > { %21270 = vmatprep.subr.bf16.mxu1 %v21269_v59  ;;  %v14180_v56 = vpop.f32.mrb[223].mxu0 }
 0xd5c   : > { %20025 = vmatmul.mubr.msk.f32.gmra.mrb[246].mxu1 %vm596_vm0, %v20010_v7 }
 0xd5d   : > { %20027 = vmatprep.mubr.msk.f32.mxu1 %vm596_vm0, %v13945_v1  ;;  %v20057_v23 = vpop.f32.mrb[224].mxu0 }
 0xd5e   : > { %v14190_v9 = vpop.f32.mrb[225].mxu0 }
 0xd60   : > { %20028 = vmatmul.mubr.msk.f32.gmra.mrb[248].mxu1 %vm596_vm0, %v20013_v11 }
 0xd61   : > { %20030 = vmatprep.mubr.msk.f32.mxu1 %vm596_vm0, %v13955_v0  ;;  %v20060_v8 = vpop.f32.mrb[226].mxu0 }
 0xd62   : > { %v14200_v53 = vpop.f32.mrb[227].mxu0 }
 0xd64   : > { %20031 = vmatmul.mubr.msk.f32.gmra.mrb[250].mxu1 %vm596_vm0, %v20016_v60  ;;  %v26520_v60 = vld [vmem:[#allocation67_spill] sm:$0xff] }
 0xd65   : > { %20065 = vmatprep.mubr.msk.f32.mxu1 %vm596_vm0, %v14170_v17  ;;  %v20095_v6 = vpop.f32.mrb[228].mxu0 }
 0xd66   : > { %v14415_v4 = vpop.f32.mrb[229].mxu0 }
 0xd68   : > { %20066 = vmatmul.mubr.msk.f32.vlgmr.msra.gmra.mrb[244].mxu1 %vm596_vm0, %v20051_v42 }
 0xd69   : > { %21272 = vmatpush3.bf16.msra.mxu1 %v21269_v59  ;;  %20068 = vmatprep.mubr.msk.f32.mxu1 %vm596_vm0, %v14180_v56  ;;  %v20098_v49 = vpop.f32.mrb[230].mxu0  ;;  %v26522_v56 = vld [vmem:[#allocation71_spill] sm:$0xff] }
 0xd6a   : > { %21290 = vmatprep.subr.bf16.mxu1 %v21289_v35  ;;  %v14425_v55 = vpop.f32.mrb[231].mxu0 }
 0xd6c   : > { %20069 = vmatmul.mubr.msk.f32.gmra.mrb[246].mxu1 %vm596_vm0, %v20054_v63 }
 0xd6d   : > { %20071 = vmatprep.mubr.msk.f32.mxu1 %vm596_vm0, %v14190_v9  ;;  %v20101_v31 = vpop.f32.mrb[232].mxu0  ;;  %v26523_v9 = vld [vmem:[#allocation62_spill] sm:$0xff] }
 0xd6e   : > { %v14435_v16 = vpop.f32.mrb[233].mxu0 }
 0xd70   : > { %20072 = vmatmul.mubr.msk.f32.gmra.mrb[248].mxu1 %vm596_vm0, %v20057_v23 }
 0xd71   : > { %20074 = vmatprep.mubr.msk.f32.mxu1 %vm596_vm0, %v14200_v53  ;;  %v20104_v21 = vpop.f32.mrb[234].mxu0  ;;  %v15119_v53 = vpop.permute.xlu1 %15118 }
 0xd72   : > { %v14445_v13 = vpop.f32.mrb[235].mxu0 }
 0xd74   : > { %20075 = vmatmul.mubr.msk.f32.gmra.mrb[250].mxu1 %vm596_vm0, %v20060_v8 }
 0xd75   : > { %20109 = vmatprep.mubr.msk.f32.mxu1 %vm596_vm0, %v14415_v4  ;;  %v20139_v10 = vpop.f32.mrb[236].mxu0  ;;  %v15123_v61 = vpop.permute.xlu1 %15122 }
 0xd76   : > { %v14660_v22 = vpop.f32.mrb[237].mxu0 }
 0xd78   : > { %20110 = vmatmul.mubr.msk.f32.vlgmr.msra.gmra.mrb[244].mxu1 %vm596_vm0, %v20095_v6  ;;  %v15121_v6 = vpop.permute.xlu0 %15120 }
 0xd79   : > { %21292 = vmatpush3.bf16.msra.mxu1 %v21289_v35  ;;  %20112 = vmatprep.mubr.msk.f32.mxu1 %vm596_vm0, %v14425_v55  ;;  %v20142_v24 = vpop.f32.mrb[238].mxu0  ;;  %v15127_v4 = vpop.permute.xlu1 %15126 }
 0xd7a   : > { %21310 = vmatprep.subr.bf16.mxu1 %v21309_v20  ;;  %v14670_v41 = vpop.f32.mrb[239].mxu0 }
 0xd7c   : > { %20113 = vmatmul.mubr.msk.f32.gmra.mrb[246].mxu1 %vm596_vm0, %v20098_v49  ;;  %v15125_v35 = vpop.permute.xlu0 %15124 }
 0xd7d   : > { %20115 = vmatprep.mubr.msk.f32.mxu1 %vm596_vm0, %v14435_v16  ;;  %v20145_v14 = vpop.f32.mrb[240].mxu0  ;;  %v15151_v49 = vpop.permute.xlu1 %15150 }
 0xd7e   : > { %v14680_v37 = vpop.f32.mrb[241].mxu0 }
 0xd80   : > { %20116 = vmatmul.mubr.msk.f32.gmra.mrb[248].mxu1 %vm596_vm0, %v20101_v31  ;;  %v15149_v55 = vpop.permute.xlu0 %15148 }
 0xd81   : > { %20118 = vmatprep.mubr.msk.f32.mxu1 %vm596_vm0, %v14445_v13  ;;  %v20148_v26 = vpop.f32.mrb[242].mxu0  ;;  %v15131_v31 = vpop.permute.xlu1 %15130 }
 0xd82   : > { %v14690_v18 = vpop.f32.mrb[243].mxu0 }
 0xd84   : > { %20119 = vmatmul.mubr.msk.f32.gmra.mrb[250].mxu1 %vm596_vm0, %v20104_v21  ;;  %v15129_v16 = vpop.permute.xlu0 %15128 }
 0xd85   : > { %20153 = vmatprep.mubr.msk.f32.mxu1 %vm596_vm0, %v14660_v22  ;;  %v20183_v48 = vpop.f32.mrb[244].mxu0  ;;  %v15155_v21 = vpop.permute.xlu1 %15154 }
 0xd86   : > { %v14905_v15 = vpop.f32.mrb[245].mxu0 }
 0xd88   : > { %20154 = vmatmul.mubr.msk.f32.vlgmr.msra.gmra.mrb[244].mxu1 %vm596_vm0, %v20139_v10  ;;  %v15153_v13 = vpop.permute.xlu0 %15152 }
 0xd89   : > { %21312 = vmatpush3.bf16.msra.mxu1 %v21309_v20  ;;  %20156 = vmatprep.mubr.msk.f32.mxu1 %vm596_vm0, %v14670_v41  ;;  %v20186_v62 = vpop.f32.mrb[246].mxu0  ;;  %v15159_v29 = vpop.permute.xlu1 %15158  ;;  %v15205_v20 = vsel %vm596_vm0, %v26516_v57, %v15119_v53 }
 0xd8a   : > { %v14915_v27 = vpop.f32.mrb[247].mxu0  ;;  %v15214_v41 = vsel %vm15212_vm6, %v15205_v20, %v15151_v49 }
 0xd8c   : > { %20157 = vmatmul.mubr.msk.f32.gmra.mrb[246].mxu1 %vm596_vm0, %v20142_v24  ;;  %v15157_v28 = vpop.permute.xlu0 %15156  ;;  %v15204_v24 = vsel %vm596_vm0, %v26517_v39, %v15117_v25 }
 0xd8d   : > { %20159 = vmatprep.mubr.msk.f32.mxu1 %vm596_vm0, %v14680_v37  ;;  %v20189_v47 = vpop.f32.mrb[248].mxu0  ;;  %v15163_v10 = vpop.permute.xlu1 %15162  ;;  %v15213_v37 = vsel %vm15212_vm6, %v15204_v24, %v15149_v55 }
 0xd8e   : > { %v14925_v50 = vpop.f32.mrb[249].mxu0 }
 0xd90   : > { %20160 = vmatmul.mubr.msk.f32.gmra.mrb[248].mxu1 %vm596_vm0, %v20145_v14  ;;  %v15161_v22 = vpop.permute.xlu0 %15160 }
 0xd91   : > { %20162 = vmatprep.mubr.msk.f32.mxu1 %vm596_vm0, %v14690_v18  ;;  %v20192_v2 = vpop.f32.mrb[250].mxu0 }
 0xd92   : > { %v14935_v52 = vpop.f32.mrb[251].mxu0 }
 0xd94   : > { %20163 = vmatmul.mubr.msk.f32.gmra.mrb[250].mxu1 %vm596_vm0, %v20148_v26 }
 0xd95   : > { %20197 = vmatprep.mubr.msk.f32.mxu1 %vm596_vm0, %v14905_v15  ;;  %v15207_v15 = vsel %vm596_vm0, %v26518_v44, %v15123_v61 }
 0xd98   : > { %20198 = vmatmul.mubr.msk.f32.vlgmr.msra.gmra.mrb[244].mxu1 %vm596_vm0, %v20183_v48 }
 0xd99   : > { %20200 = vmatprep.mubr.msk.f32.mxu1 %vm596_vm0, %v14915_v27  ;;  %v15216_v27 = vsel %vm15212_vm6, %v15207_v15, %v15155_v21 }
 0xd9c   : > { %20201 = vmatmul.mubr.msk.f32.gmra.mrb[246].mxu1 %vm596_vm0, %v20186_v62  ;;  %v15206_v62 = vsel %vm596_vm0, %v26519_v58, %v15121_v6 }
 0xd9d   : > { %20203 = vmatprep.mubr.msk.f32.mxu1 %vm596_vm0, %v14925_v50  ;;  %v15215_v50 = vsel %vm15212_vm6, %v15206_v62, %v15153_v13 }
 0xda0   : > { %20204 = vmatmul.mubr.msk.f32.gmra.mrb[248].mxu1 %vm596_vm0, %v20189_v47 }
 0xda1   : > { %20206 = vmatprep.mubr.msk.f32.mxu1 %vm596_vm0, %v14935_v52 }
 0xda4   : > { %20207 = vmatmul.mubr.msk.f32.gmra.mrb[250].mxu1 %vm596_vm0, %v20192_v2 }
 0xe6b   : > { %v20199_v38 = vpop.f32.mrb[244].mxu1 }
 0xe6c   : > { %v15093_v32 = vadd.f32 %v20199_v38, %v16324_v30  ;;  %v15037_v36 = vpop.f32.mrb[245].mxu1  ;;  %v15209_v38 = vsel %vm596_vm0, %v26520_v60, %v15127_v4 }
 0xe6d   : > { %v15092_v34 = vadd.f32 %v16324_v30, %v15037_v36  ;;  %v15218_v36 = vsel %vm15212_vm6, %v15209_v38, %v15159_v29 }
 0xe6e   : > { %v15101_v54 = vadd.f32 %v15093_v32, %v26516_v57  ;;  %v15208_v32 = vsel %vm596_vm0, %v26521_v3, %v15125_v35 }
 0xe6f   : > { %v15100_v33 = vadd.f32 %v15092_v34, %v26517_v39  ;;  %v20202_v46 = vpop.f32.mrb[246].mxu1  ;;  %v15217_v57 = vsel %vm15212_vm6, %v15208_v32, %v15157_v28 }
 0xe70   : > { %v15095_v45 = vadd.f32 %v20202_v46, %v16324_v30  ;;  %15182 = vrot.lane.b32.xlu1 %v15101_v54, %s22321_s10  ;;  %v15047_v19 = vpop.f32.mrb[247].mxu1  ;;  %v15211_v46 = vsel %vm596_vm0, %v26522_v56, %v15131_v31 }
 0xe71   : > { %v15094_v5 = vadd.f32 %v16324_v30, %v15047_v19  ;;  %15180 = vrot.lane.b32.xlu0 %v15100_v33, %s22321_s10  ;;  %v15220_v19 = vsel %vm15212_vm6, %v15211_v46, %v15163_v10 }
 0xe72   : > { %v15103_v40 = vadd.f32 %v15095_v45, %v26518_v44  ;;  %v15210_v45 = vsel %vm596_vm0, %v26523_v9, %v15129_v16 }
 0xe73   : > { %v15102_v51 = vadd.f32 %v15094_v5, %v26519_v58  ;;  %v20205_v7 = vpop.f32.mrb[248].mxu1  ;;  %v15219_v44 = vsel %vm15212_vm6, %v15210_v45, %v15161_v22 }
 0xe74   : > { %v15097_v12 = vadd.f32 %v20205_v7, %v16324_v30  ;;  %15186 = vrot.lane.b32.xlu1 %v15103_v40, %s22321_s10  ;;  %v15057_v11 = vpop.f32.mrb[249].mxu1 }
 0xe75   : > { %v15096_v1 = vadd.f32 %v16324_v30, %v15057_v11  ;;  %15184 = vrot.lane.b32.xlu0 %v15102_v51, %s22321_s10 }
 0xe76   : > { %v15105_v0 = vadd.f32 %v15097_v12, %v26520_v60 }
 0xe77   : > { %v15104_v43 = vadd.f32 %v15096_v1, %v26521_v3  ;;  %v20208_v42 = vpop.f32.mrb[250].mxu1 }
 0xe78   : > { %v15099_v17 = vadd.f32 %v20208_v42, %v16324_v30  ;;  %15190 = vrot.lane.b32.xlu1 %v15105_v0, %s22321_s10  ;;  %v15067_v59 = vpop.f32.mrb[251].mxu1 }
 0xe79   : > { %v15098_v63 = vadd.f32 %v16324_v30, %v15067_v59  ;;  %15188 = vrot.lane.b32.xlu0 %v15104_v43, %s22321_s10 }
 0xe7a   : > { %v15107_v23 = vadd.f32 %v15099_v17, %v26522_v56 }
 0xe7b   : > { %v15106_v8 = vadd.f32 %v15098_v63, %v26523_v9 }
 0xe7c   : > { %15194 = vrot.lane.b32.xlu1 %v15107_v23, %s22321_s10 }
 0xe7d   : > { %15192 = vrot.lane.b32.xlu0 %v15106_v8, %s22321_s10 }
 0xee2   : > { %v15183_v14 = vpop.permute.xlu1 %15182 }
 0xee3   : > { %v15223_v26 = vsel %vm15221_vm7, %v15214_v41, %v15183_v14  ;;  %v15181_v18 = vpop.permute.xlu0 %15180 }
 0xee4   : > { %15231 = vst.msk [vmem:[%s25868_s12 + $0x8] sm:$0xff] %vm896_vm1, %v15223_v26  ;;  %v15222_v48 = vsel %vm15221_vm7, %v15213_v37, %v15181_v18 }
 0xee5   : > { %15230 = vst.msk [vmem:[%s25868_s12] sm:$0xff] %vm896_vm1, %v15222_v48 }
 0xee6   : > { %v15187_v47 = vpop.permute.xlu1 %15186 }
 0xee7   : > { %v15225_v2 = vsel %vm15221_vm7, %v15216_v27, %v15187_v47  ;;  %v15185_v52 = vpop.permute.xlu0 %15184 }
 0xee8   : > { %15233 = vst.msk [vmem:[%s25868_s12 + $0x18] sm:$0xff] %vm896_vm1, %v15225_v2  ;;  %v15224_v30 = vsel %vm15221_vm7, %v15215_v50, %v15185_v52 }
 0xee9   : > { %15232 = vst.msk [vmem:[%s25868_s12 + $0x10] sm:$0xff] %vm896_vm1, %v15224_v30 }
 0xeea   : > { %v15191_v34 = vpop.permute.xlu1 %15190 }
 0xeeb   : > { %v15227_v54 = vsel %vm15221_vm7, %v15218_v36, %v15191_v34  ;;  %v15189_v39 = vpop.permute.xlu0 %15188 }
 0xeec   : > { %15235 = vst.msk [vmem:[%s25868_s12 + $0x28] sm:$0xff] %vm896_vm1, %v15227_v54  ;;  %v15226_v33 = vsel %vm15221_vm7, %v15217_v57, %v15189_v39 }
 0xeed   : > { %15234 = vst.msk [vmem:[%s25868_s12 + $0x20] sm:$0xff] %vm896_vm1, %v15226_v33 }
 0xeee   : > { %v15195_v5 = vpop.permute.xlu1 %15194 }
 0xeef   : > { %v15229_v40 = vsel %vm15221_vm7, %v15220_v19, %v15195_v5  ;;  %v15193_v58 = vpop.permute.xlu0 %15192 }
 0xef0   : > { %15237 = vst.msk [vmem:[%s25868_s12 + $0x38] sm:$0xff] %vm896_vm1, %v15229_v40  ;;  %v15228_v51 = vsel %vm15221_vm7, %v15219_v44, %v15193_v58 }
 0xef1   : > { %15236 = vst.msk [vmem:[%s25868_s12 + $0x30] sm:$0xff] %vm896_vm1, %v15228_v51 }
 0xef2   : > { %22238 = shalt.err (!%p22235_p8)
}
 0xef3   : > { %s22239_s2 = scalar_lea.hbm %s25911_s6, 1024  ;;  %s22243_s17 = scalar_lea.hbm %s26524_s20, 2048 }
 0xef4   : > { %p22240_p11 = scmp.ne.s32.totalorder %s25911_s6, %s22239_s2  ;;  %p22244_p1 = scmp.lt.u32.totalorder %s25911_s6, %s26524_s20 }
 0xef5   : > { %p22245_p13 = scmp.lt.u32.totalorder %s22243_s17, %s22239_s2  ;;  %p22247_p7 = scmp.lt.u32.totalorder %s22239_s2, %s25911_s6 }
 0xef6   : > { %p22241_p3 = pnand %p22240_p11, %p26525_p2 }
 0xef7   : > { %p22246_p0 = por %p22245_p13, %p22244_p1 }
 0xef8   : > { %p22242_p12 = pneg %p22241_p3 }
 0xef9   : > { %p22248_p6 = por %p22247_p7, %p22246_p0 }
 0xefb   : > { %p22249_p10 = pnand %p22248_p6, %p22242_p12 }
 0xefd   : > { %22252 = shalt.err (!%p22249_p10)
}
 0xefe   : > { %s22323_s21 = smov 128   ;;  %s22324_s14 = smov 8  }
 0xeff   : > { %21729 = dma.vmem_to_hbm [thread:$0]  (%p26525_p2), %s25901_s30, 1024, %s25911_s6, %s15239_s24, %s22323_s21, %s22323_s21, %s22324_s14  }
 0xf00 PF: > { %s15267_s5 = sand.u32 1, %s22295_s25   ;;  %p26526_p5 = scmp.ne.s32.totalorder %s26148_s29, 0 }
 0xf01   : > { %p26527_p9 = scmp.ge.s32.totalorder %s22307_s28, 2  ;;  %s15268_s19 = scalar_lea.sflag [#allocation4], %s15267_s5 }
 0xf03   : > { %p21755_p4 = pnand %p26527_p9, %p26526_p5 }
 0xf05   : > { %22290 = dma.done.wait (!%p21755_p4), %s15268_s19, 1024  }
 0xf06   : > { %22292 = vsyncadd (!%p21755_p4), %s15268_s19, 4294966272  ;;  %s26528_s8 = sld [smem:[#allocation21_spill]]  ;;  %p31_p8 = scmp.ge.s32.totalorder %s22568_s16, 4  }
 0xf07   : > { %s26529_s25 = smov %s22299_s26  ;;  %s26530_s26 = smov %s22303_s27 }
 0xf08   : > { %s26532_s28 = smov %s22568_s16  ;;  %33 = sbr.rel (!%p31_p8) target bundleno = 21 (0x15), region = 226 }
 0xf0c   : > { %s26531_s27 = smov %s26528_s8 }
 0xf0f   :  { %15273 = vsyncpa [#allocation3], 1 }
 0xf10   :  { %15275 = vsyncpa [#allocation3 + $0x1], 1 }
 0xf11   :  { %15276 = vsyncpa [#allocation6], 1 }
 0xf12   :  { %15278 = vsyncpa [#allocation6 + $0x1], 1 }
 0xf13   :  { %15279 = vsyncpa [#allocation9], 1 }
 0xf14   :  { %15280 = vsyncpa [#allocation12], 1 }
 0xf15   :  { %15281 = vsyncpa [#allocation4], 1 }
 0xf16   :  { %15283 = vsyncpa [#allocation4 + $0x1], 1 }

</bundles_post_ra>
